<compile_context>
chip_gen: v7x
topology: tpu7x:2x2x1
jax: 0.10.0
libtpu: 0.0.40
codegen_flags: <defaults>
</compile_context>

<pallas_src>
import functools

import numpy as np
import jax
import jax.numpy as jnp
from jax.experimental import pallas as pl
from jax.experimental.pallas import tpu as pltpu

# Make the XLA reference use full-precision f32 matmuls so the kernel/ref comparison is tight.
jax.config.update("jax_default_matmul_precision", "highest")


# ----------------------------------------------------------------------------
# Pallas kernel: whole forward pass (tiny problem, single invocation, grid=(),
# everything resident in VMEM).
# ----------------------------------------------------------------------------
def model_kernel(x_ref,      # [T*BN, F]        time-major flattened input
                 gic_ref,    # [BN, 3*Hp]       input-gate constant: (emb+b_enc)@w_ih + biases
                 wxg_ref,    # [F, 3*Hp]        encoder folded into gate weights (lane-padded)
                 whh_ref,    # [Hp, 3*Hp]       recurrent gate weights (lane/sublane-padded)
                 p_ref,      # [2, BN, BN]      block-diagonal diffusion supports (fwd, bwd)
                 wfd_ref,    # [(2k+1)*Hp, OUT_PAD]  filter->decoder folded weights
                 bias_ref,   # [2, BW]          row 0: b_hn (lanes 0..H-1), row 1: b_fd
                 out_ref,    # [BN, OUT_PAD]
                 *, k: int, batch: int, n_nodes: int, hp: int):
    BN = batch * n_nodes
    T = x_ref.shape[0] // BN
    Hp = hp
    OUTW = out_ref.shape[1]

    # ---- all input-gate contributions for ALL time steps: one MXU pass (encoder folded) ----
    gi_x = jnp.dot(x_ref[...], wxg_ref[...], preferred_element_type=jnp.float32)   # [T*BN, 3Hp]
    gi_all = gi_x.reshape(T, BN, 3 * Hp) + gic_ref[...][None, :, :]                # pre-added const

    whh = whh_ref[...]                                        # loaded once, reused every step
    bhn = jnp.broadcast_to(bias_ref[0:1, 0:Hp], (BN, Hp))     # broadcast hoisted out of the loop

    # ---- GRU over time; t = 0 peeled (h = 0 -> gh = 0, no recurrent matmul) ----
    gi0 = gi_all[0]
    r = jax.nn.sigmoid(gi0[:, 0:Hp])
    z = jax.nn.sigmoid(gi0[:, Hp:2 * Hp])
    n = jnp.tanh(gi0[:, 2 * Hp:3 * Hp] + r * bhn)
    h = (1.0 - z) * n                                         # [BN, Hp]

    for t in range(1, T):                                     # T static -> fully unrolled
        gi = gi_all[t]
        gh = jnp.dot(h, whh, preferred_element_type=jnp.float32)                   # [BN, 3Hp]
        # gate slices are vreg-aligned (multiples of 128 lanes)
        r = jax.nn.sigmoid(gi[:, 0:Hp] + gh[:, 0:Hp])
        z = jax.nn.sigmoid(gi[:, Hp:2 * Hp] + gh[:, Hp:2 * Hp])
        n = jnp.tanh(gi[:, 2 * Hp:3 * Hp] + r * (gh[:, 2 * Hp:3 * Hp] + bhn))
        h = (1.0 - z) * n + z * h

    # ---- diffusion conv + folded filter/decoder: one matmul per hop over the whole batch,
    #      accumulated into the output (no lane concatenation, no per-batch loop) ----
    pf = p_ref[0]                                             # [BN, BN] block-diagonal
    pb = p_ref[1]
    out = jnp.broadcast_to(bias_ref[1:2, 0:OUTW], (BN, OUTW))
    out = out + jnp.dot(h, wfd_ref[0:Hp, :], preferred_element_type=jnp.float32)
    xs = h
    for i in range(k):
        xs = jnp.dot(pf, xs, preferred_element_type=jnp.float32)
        out = out + jnp.dot(xs, wfd_ref[(1 + i) * Hp:(2 + i) * Hp, :],
                            preferred_element_type=jnp.float32)
    xs = h
    for i in range(k):
        xs = jnp.dot(pb, xs, preferred_element_type=jnp.float32)
        out = out + jnp.dot(xs, wfd_ref[(1 + k + i) * Hp:(2 + k + i) * Hp, :],
                            preferred_element_type=jnp.float32)
    out_ref[...] = out                                        # lane-dense (128-lane) store


# ----------------------------------------------------------------------------
# Glue: dense normalized diffusion supports from (edge_index, edge_weight).
# NOTE: row-normalized A with A[i, j] = w(j -> i); verify against tsl DiffConv's
#       transition-matrix convention before using on non-toy graphs.
# ----------------------------------------------------------------------------
def dense_support(edge_index, edge_weight, n):
    src, dst = edge_index[0], edge_index[1]
    A = jnp.zeros((n, n), jnp.float32).at[dst, src].add(edge_weight)
    deg = A.sum(axis=1, keepdims=True)
    return A / jnp.where(deg == 0.0, 1.0, deg)


def time_then_space_forward(x, edge_index, edge_weight, params, horizon, k):
    B, T, N, F = x.shape
    H = params["w_enc"].shape[1]
    BN = B * N
    OUT = F * horizon
    OUT_PAD = int(pl.cdiv(OUT, 128)) * 128       # lane-dense padded output width
    Hp = int(pl.cdiv(H, 128)) * 128              # lane-padded per-gate / hidden width
    NH = 2 * k + 1
    BW = max(Hp, OUT_PAD)

    # time-major, node-flattened, time-merged input (row = t*B*N + b*N + n)
    x_flat = jnp.transpose(x, (1, 0, 2, 3)).reshape(T * BN, F)
    emb_bn = jnp.tile(params["emb"], (B, 1))                            # [BN, H]

    # block-diagonal diffusion supports over the whole batch, stacked (fwd, bwd)
    Pf = dense_support(edge_index, edge_weight, N)
    Pb = dense_support(jnp.flip(edge_index, 0), edge_weight, N)
    eye_b = jnp.eye(B, dtype=jnp.float32)
    p_both = jnp.stack([jnp.kron(eye_b, Pf), jnp.kron(eye_b, Pb)], axis=0)   # [2, BN, BN]

    # encoder folded into gate projection; each gate block lane-padded to Hp
    wxg = jnp.zeros((F, 3 * Hp), jnp.float32)
    whh_pad = jnp.zeros((Hp, 3 * Hp), jnp.float32)
    gic = jnp.zeros((BN, 3 * Hp), jnp.float32)
    xe_const = emb_bn + params["b_enc"]                                 # [BN, H]
    for g in range(3):                                                  # gate order: r, z, n
        wxg = wxg.at[:, g * Hp:g * Hp + H].set(params["w_enc"] @ params["w_ih"][g])
        whh_pad = whh_pad.at[:H, g * Hp:g * Hp + H].set(params["w_hh"][g])
        bg = params["b_ih"][g] + (params["b_hh"][g] if g < 2 else 0.0)
        gic = gic.at[:, g * Hp:g * Hp + H].set(xe_const @ params["w_ih"][g] + bg)

    # filter -> decoder pre-fold (no activation between them), per-hop sublane-padded to Hp rows
    w_dec_pad = jnp.zeros((H, OUT_PAD), jnp.float32).at[:, :OUT].set(params["w_dec"])
    wfd = jnp.zeros((NH * Hp, OUT_PAD), jnp.float32)
    for i in range(NH):
        wfd = wfd.at[i * Hp:i * Hp + H, :].set(params["w_filt"][i] @ w_dec_pad)
    b_fd = jnp.zeros((1, OUT_PAD), jnp.float32).at[:, :OUT].set(
        params["b_filt"] @ params["w_dec"] + params["b_dec"])

    # packed small biases: row 0 = b_hn (padded), row 1 = folded output bias
    bias_pack = jnp.zeros((2, BW), jnp.float32)
    bias_pack = bias_pack.at[0, :H].set(params["b_hh"][2][0])
    bias_pack = bias_pack.at[1, :OUT_PAD].set(b_fd[0])

    vmem = pl.BlockSpec(memory_space=pltpu.MemorySpace.VMEM)
    out_pad = pl.pallas_call(
        functools.partial(model_kernel, k=k, batch=B, n_nodes=N, hp=Hp),
        out_shape=jax.ShapeDtypeStruct((BN, OUT_PAD), jnp.float32),
        in_specs=[vmem] * 7,
        out_specs=vmem,
    )(x_flat, gic, wxg, whh_pad, p_both, wfd, bias_pack)

    out2d = out_pad[:, :OUT]
    # rearrange 'b n (t f) -> b t n f'
    return out2d.reshape(B, N, horizon, F).transpose(0, 2, 1, 3)


# ----------------------------------------------------------------------------
# Pure-JAX reference (same math, unfused parameters) used only to check the kernel.
# ----------------------------------------------------------------------------
def reference_forward(x, edge_index, edge_weight, params, horizon, k):
    B, T, N, F = x.shape
    x_tbn = jnp.transpose(x, (1, 0, 2, 3)).reshape(T, B * N, F)
    emb = jnp.tile(params["emb"], (B, 1))
    eye_b = jnp.eye(B, dtype=jnp.float32)
    Pf = jnp.kron(eye_b, dense_support(edge_index, edge_weight, N))
    Pb = jnp.kron(eye_b, dense_support(jnp.flip(edge_index, 0), edge_weight, N))
    H = params["w_enc"].shape[1]
    h = jnp.zeros((B * N, H), jnp.float32)
    for t in range(T):
        xe = x_tbn[t] @ params["w_enc"] + params["b_enc"] + emb
        r = jax.nn.sigmoid(xe @ params["w_ih"][0] + params["b_ih"][0]
                           + h @ params["w_hh"][0] + params["b_hh"][0])
        z = jax.nn.sigmoid(xe @ params["w_ih"][1] + params["b_ih"][1]
                           + h @ params["w_hh"][1] + params["b_hh"][1])
        n = jnp.tanh(xe @ params["w_ih"][2] + params["b_ih"][2]
                     + r * (h @ params["w_hh"][2] + params["b_hh"][2]))
        h = (1.0 - z) * n + z * h
    hops = [h]
    xs = h
    for _ in range(k):
        xs = Pf @ xs
        hops.append(xs)
    xs = h
    for _ in range(k):
        xs = Pb @ xs
        hops.append(xs)
    zc = params["b_filt"]
    for i, hp_ in enumerate(hops):
        zc = zc + hp_ @ params["w_filt"][i]
    out = zc @ params["w_dec"] + params["b_dec"]
    return out.reshape(B, N, horizon, F).transpose(0, 2, 1, 3)


if __name__ == "__main__":
    # Small, deterministic configuration
    B, T = 2, 8                 # batch, time window
    F_IN = 4                    # input_size
    N = 8                       # n_nodes
    HORIZON = 3                 # horizon
    H = 32                      # hidden_size
    K = 2                       # gnn_kernel
    # TODO(synk): rnn_layers fixed to 1 (the module default); multi-layer GRU stacking not emitted.

    key = jax.random.PRNGKey(0)
    keys = jax.random.split(key, 12)

    def init(k_, shape, fan_in):
        bound = 1.0 / np.sqrt(fan_in)
        return jax.random.uniform(k_, shape, jnp.float32, -bound, bound)

    params = dict(
        w_enc=init(keys[0], (F_IN, H), F_IN),
        b_enc=init(keys[1], (1, H), F_IN),
        emb=jax.random.normal(keys[2], (N, H), jnp.float32) * 0.1,
        w_ih=init(keys[3], (3, H, H), H),
        w_hh=init(keys[4], (3, H, H), H),
        b_ih=init(keys[5], (3, 1, H), H),
        b_hh=init(keys[6], (3, 1, H), H),
        w_filt=init(keys[7], (2 * K + 1, H, H), (2 * K + 1) * H),
        b_filt=init(keys[8], (1, H), (2 * K + 1) * H),
        w_dec=init(keys[9], (H, F_IN * HORIZON), H),
        b_dec=init(keys[10], (1, F_IN * HORIZON), H),
    )

    x = jax.random.normal(keys[11], (B, T, N, F_IN), jnp.float32)

    # deterministic small graph: bidirectional ring over N nodes
    src = np.arange(N)
    dst = (src + 1) % N
    edge_index = jnp.asarray(
        np.stack([np.concatenate([src, dst]), np.concatenate([dst, src])]), jnp.int32)
    edge_weight = jax.random.uniform(jax.random.PRNGKey(1), (2 * N,), jnp.float32, 0.5, 1.5)

    out = time_then_space_forward(x, edge_index, edge_weight, params, HORIZON, K)
    out = jax.block_until_ready(out)

    ref = jax.block_until_ready(
        reference_forward(x, edge_index, edge_weight, params, HORIZON, K))

    assert out.shape == (B, HORIZON, N, F_IN), out.shape
    # both sides are f32 with highest-precision matmuls; folds are algebraically exact
    assert np.allclose(np.asarray(out), np.asarray(ref), atol=1e-4, rtol=1e-4), (
        float(np.max(np.abs(np.asarray(out) - np.asarray(ref)))))

    print("KERNEL_OK")
</pallas_src>

<mosaic_0001>
module attributes {stable_mosaic.version = 11 : i64} {
  func.func @model_kernel(%arg0: memref<128x4xf32, #tpu.memory_space<vmem>>, %arg1: memref<16x384xf32, #tpu.memory_space<vmem>>, %arg2: memref<4x384xf32, #tpu.memory_space<vmem>>, %arg3: memref<128x384xf32, #tpu.memory_space<vmem>>, %arg4: memref<2x16x16xf32, #tpu.memory_space<vmem>>, %arg5: memref<640x128xf32, #tpu.memory_space<vmem>>, %arg6: memref<2x128xf32, #tpu.memory_space<vmem>>, %arg7: memref<16x128xf32, #tpu.memory_space<vmem>>) attributes {dimension_semantics = [], scalar_prefetch = 0 : i64, scratch_operands = 0 : i64, tpu.core_type = #tpu.core_type<tc>} {
    %c0 = arith.constant 0 : index
    %c0_0 = arith.constant 0 : index
    %0 = vector.load %arg0[%c0, %c0_0] : memref<128x4xf32, #tpu.memory_space<vmem>>, vector<128x4xf32>
    %c0_1 = arith.constant 0 : index
    %c0_2 = arith.constant 0 : index
    %1 = vector.load %arg2[%c0_1, %c0_2] : memref<4x384xf32, #tpu.memory_space<vmem>>, vector<4x384xf32>
    %cst = arith.constant dense<0.000000e+00> : vector<128x384xf32>
    %2 = tpu.matmul %0, %1, %cst {dimension_numbers = #tpu.dot_dimension_numbers<[1], [0], [0], [1], [0, 0, 1, 1], [], []>, precision = #tpu.contract_precision<fp32>} : vector<128x4xf32>, vector<4x384xf32>, vector<128x384xf32> -> vector<128x384xf32>
    %3 = vector.shape_cast %2 : vector<128x384xf32> to vector<8x16x384xf32>
    %c0_3 = arith.constant 0 : index
    %c0_4 = arith.constant 0 : index
    %4 = vector.load %arg1[%c0_3, %c0_4] : memref<16x384xf32, #tpu.memory_space<vmem>>, vector<16x384xf32>
    %5 = vector.shape_cast %4 : vector<16x384xf32> to vector<1x16x384xf32>
    %6 = vector.broadcast %5 : vector<1x16x384xf32> to vector<8x16x384xf32>
    %7 = arith.addf %3, %6 : vector<8x16x384xf32>
    %c0_5 = arith.constant 0 : index
    %c0_6 = arith.constant 0 : index
    %8 = vector.load %arg3[%c0_5, %c0_6] : memref<128x384xf32, #tpu.memory_space<vmem>>, vector<128x384xf32>
    %c0_7 = arith.constant 0 : index
    %c0_8 = arith.constant 0 : index
    %9 = vector.load %arg6[%c0_7, %c0_8] : memref<2x128xf32, #tpu.memory_space<vmem>>, vector<1x128xf32>
    %10 = vector.shape_cast %9 : vector<1x128xf32> to vector<1x128xf32>
    %11 = vector.broadcast %10 : vector<1x128xf32> to vector<16x128xf32>
    %12 = vector.extract_strided_slice %7 {offsets = [0, 0, 0], sizes = [1, 16, 384], strides = [1, 1, 1]} : vector<8x16x384xf32> to vector<1x16x384xf32>
    %13 = vector.shape_cast %12 : vector<1x16x384xf32> to vector<16x384xf32>
    %14 = vector.extract_strided_slice %13 {offsets = [0, 0], sizes = [16, 128], strides = [1, 1]} : vector<16x384xf32> to vector<16x128xf32>
    %15 = arith.negf %14 : vector<16x128xf32>
    %16 = math.exp %15 : vector<16x128xf32>
    %cst_9 = arith.constant 1.000000e+00 : f32
    %17 = vector.broadcast %cst_9 : f32 to vector<16x128xf32>
    %18 = arith.addf %17, %16 : vector<16x128xf32>
    %19 = arith.divf %17, %18 : vector<16x128xf32>
    %20 = vector.extract_strided_slice %13 {offsets = [0, 128], sizes = [16, 128], strides = [1, 1]} : vector<16x384xf32> to vector<16x128xf32>
    %21 = arith.negf %20 : vector<16x128xf32>
    %22 = math.exp %21 : vector<16x128xf32>
    %cst_10 = arith.constant 1.000000e+00 : f32
    %23 = vector.broadcast %cst_10 : f32 to vector<16x128xf32>
    %24 = arith.addf %23, %22 : vector<16x128xf32>
    %25 = arith.divf %23, %24 : vector<16x128xf32>
    %26 = vector.extract_strided_slice %13 {offsets = [0, 256], sizes = [16, 128], strides = [1, 1]} : vector<16x384xf32> to vector<16x128xf32>
    %27 = arith.mulf %19, %11 : vector<16x128xf32>
    %28 = arith.addf %26, %27 : vector<16x128xf32>
    %29 = math.tanh %28 : vector<16x128xf32>
    %cst_11 = arith.constant 1.000000e+00 : f32
    %30 = vector.broadcast %cst_11 : f32 to vector<16x128xf32>
    %31 = arith.subf %30, %25 : vector<16x128xf32>
    %32 = arith.mulf %31, %29 : vector<16x128xf32>
    %33 = vector.extract_strided_slice %7 {offsets = [1, 0, 0], sizes = [1, 16, 384], strides = [1, 1, 1]} : vector<8x16x384xf32> to vector<1x16x384xf32>
    %34 = vector.shape_cast %33 : vector<1x16x384xf32> to vector<16x384xf32>
    %cst_12 = arith.constant dense<0.000000e+00> : vector<16x384xf32>
    %35 = tpu.matmul %32, %8, %cst_12 {dimension_numbers = #tpu.dot_dimension_numbers<[1], [0], [0], [1], [0, 0, 1, 1], [], []>, precision = #tpu.contract_precision<fp32>} : vector<16x128xf32>, vector<128x384xf32>, vector<16x384xf32> -> vector<16x384xf32>
    %36 = vector.extract_strided_slice %34 {offsets = [0, 0], sizes = [16, 128], strides = [1, 1]} : vector<16x384xf32> to vector<16x128xf32>
    %37 = vector.extract_strided_slice %35 {offsets = [0, 0], sizes = [16, 128], strides = [1, 1]} : vector<16x384xf32> to vector<16x128xf32>
    %38 = arith.addf %36, %37 : vector<16x128xf32>
    %39 = arith.negf %38 : vector<16x128xf32>
    %40 = math.exp %39 : vector<16x128xf32>
    %cst_13 = arith.constant 1.000000e+00 : f32
    %41 = vector.broadcast %cst_13 : f32 to vector<16x128xf32>
    %42 = arith.addf %41, %40 : vector<16x128xf32>
    %43 = arith.divf %41, %42 : vector<16x128xf32>
    %44 = vector.extract_strided_slice %34 {offsets = [0, 128], sizes = [16, 128], strides = [1, 1]} : vector<16x384xf32> to vector<16x128xf32>
    %45 = vector.extract_strided_slice %35 {offsets = [0, 128], sizes = [16, 128], strides = [1, 1]} : vector<16x384xf32> to vector<16x128xf32>
    %46 = arith.addf %44, %45 : vector<16x128xf32>
    %47 = arith.negf %46 : vector<16x128xf32>
    %48 = math.exp %47 : vector<16x128xf32>
    %cst_14 = arith.constant 1.000000e+00 : f32
    %49 = vector.broadcast %cst_14 : f32 to vector<16x128xf32>
    %50 = arith.addf %49, %48 : vector<16x128xf32>
    %51 = arith.divf %49, %50 : vector<16x128xf32>
    %52 = vector.extract_strided_slice %34 {offsets = [0, 256], sizes = [16, 128], strides = [1, 1]} : vector<16x384xf32> to vector<16x128xf32>
    %53 = vector.extract_strided_slice %35 {offsets = [0, 256], sizes = [16, 128], strides = [1, 1]} : vector<16x384xf32> to vector<16x128xf32>
    %54 = arith.addf %53, %11 : vector<16x128xf32>
    %55 = arith.mulf %43, %54 : vector<16x128xf32>
    %56 = arith.addf %52, %55 : vector<16x128xf32>
    %57 = math.tanh %56 : vector<16x128xf32>
    %cst_15 = arith.constant 1.000000e+00 : f32
    %58 = vector.broadcast %cst_15 : f32 to vector<16x128xf32>
    %59 = arith.subf %58, %51 : vector<16x128xf32>
    %60 = arith.mulf %59, %57 : vector<16x128xf32>
    %61 = arith.mulf %51, %32 : vector<16x128xf32>
    %62 = arith.addf %60, %61 : vector<16x128xf32>
    %63 = vector.extract_strided_slice %7 {offsets = [2, 0, 0], sizes = [1, 16, 384], strides = [1, 1, 1]} : vector<8x16x384xf32> to vector<1x16x384xf32>
    %64 = vector.shape_cast %63 : vector<1x16x384xf32> to vector<16x384xf32>
    %cst_16 = arith.constant dense<0.000000e+00> : vector<16x384xf32>
    %65 = tpu.matmul %62, %8, %cst_16 {dimension_numbers = #tpu.dot_dimension_numbers<[1], [0], [0], [1], [0, 0, 1, 1], [], []>, precision = #tpu.contract_precision<fp32>} : vector<16x128xf32>, vector<128x384xf32>, vector<16x384xf32> -> vector<16x384xf32>
    %66 = vector.extract_strided_slice %64 {offsets = [0, 0], sizes = [16, 128], strides = [1, 1]} : vector<16x384xf32> to vector<16x128xf32>
    %67 = vector.extract_strided_slice %65 {offsets = [0, 0], sizes = [16, 128], strides = [1, 1]} : vector<16x384xf32> to vector<16x128xf32>
    %68 = arith.addf %66, %67 : vector<16x128xf32>
    %69 = arith.negf %68 : vector<16x128xf32>
    %70 = math.exp %69 : vector<16x128xf32>
    %cst_17 = arith.constant 1.000000e+00 : f32
    %71 = vector.broadcast %cst_17 : f32 to vector<16x128xf32>
    %72 = arith.addf %71, %70 : vector<16x128xf32>
    %73 = arith.divf %71, %72 : vector<16x128xf32>
    %74 = vector.extract_strided_slice %64 {offsets = [0, 128], sizes = [16, 128], strides = [1, 1]} : vector<16x384xf32> to vector<16x128xf32>
    %75 = vector.extract_strided_slice %65 {offsets = [0, 128], sizes = [16, 128], strides = [1, 1]} : vector<16x384xf32> to vector<16x128xf32>
    %76 = arith.addf %74, %75 : vector<16x128xf32>
    %77 = arith.negf %76 : vector<16x128xf32>
    %78 = math.exp %77 : vector<16x128xf32>
    %cst_18 = arith.constant 1.000000e+00 : f32
    %79 = vector.broadcast %cst_18 : f32 to vector<16x128xf32>
    %80 = arith.addf %79, %78 : vector<16x128xf32>
    %81 = arith.divf %79, %80 : vector<16x128xf32>
    %82 = vector.extract_strided_slice %64 {offsets = [0, 256], sizes = [16, 128], strides = [1, 1]} : vector<16x384xf32> to vector<16x128xf32>
    %83 = vector.extract_strided_slice %65 {offsets = [0, 256], sizes = [16, 128], strides = [1, 1]} : vector<16x384xf32> to vector<16x128xf32>
    %84 = arith.addf %83, %11 : vector<16x128xf32>
    %85 = arith.mulf %73, %84 : vector<16x128xf32>
    %86 = arith.addf %82, %85 : vector<16x128xf32>
    %87 = math.tanh %86 : vector<16x128xf32>
    %cst_19 = arith.constant 1.000000e+00 : f32
    %88 = vector.broadcast %cst_19 : f32 to vector<16x128xf32>
    %89 = arith.subf %88, %81 : vector<16x128xf32>
    %90 = arith.mulf %89, %87 : vector<16x128xf32>
    %91 = arith.mulf %81, %62 : vector<16x128xf32>
    %92 = arith.addf %90, %91 : vector<16x128xf32>
    %93 = vector.extract_strided_slice %7 {offsets = [3, 0, 0], sizes = [1, 16, 384], strides = [1, 1, 1]} : vector<8x16x384xf32> to vector<1x16x384xf32>
    %94 = vector.shape_cast %93 : vector<1x16x384xf32> to vector<16x384xf32>
    %cst_20 = arith.constant dense<0.000000e+00> : vector<16x384xf32>
    %95 = tpu.matmul %92, %8, %cst_20 {dimension_numbers = #tpu.dot_dimension_numbers<[1], [0], [0], [1], [0, 0, 1, 1], [], []>, precision = #tpu.contract_precision<fp32>} : vector<16x128xf32>, vector<128x384xf32>, vector<16x384xf32> -> vector<16x384xf32>
    %96 = vector.extract_strided_slice %94 {offsets = [0, 0], sizes = [16, 128], strides = [1, 1]} : vector<16x384xf32> to vector<16x128xf32>
    %97 = vector.extract_strided_slice %95 {offsets = [0, 0], sizes = [16, 128], strides = [1, 1]} : vector<16x384xf32> to vector<16x128xf32>
    %98 = arith.addf %96, %97 : vector<16x128xf32>
    %99 = arith.negf %98 : vector<16x128xf32>
    %100 = math.exp %99 : vector<16x128xf32>
    %cst_21 = arith.constant 1.000000e+00 : f32
    %101 = vector.broadcast %cst_21 : f32 to vector<16x128xf32>
    %102 = arith.addf %101, %100 : vector<16x128xf32>
    %103 = arith.divf %101, %102 : vector<16x128xf32>
    %104 = vector.extract_strided_slice %94 {offsets = [0, 128], sizes = [16, 128], strides = [1, 1]} : vector<16x384xf32> to vector<16x128xf32>
    %105 = vector.extract_strided_slice %95 {offsets = [0, 128], sizes = [16, 128], strides = [1, 1]} : vector<16x384xf32> to vector<16x128xf32>
    %106 = arith.addf %104, %105 : vector<16x128xf32>
    %107 = arith.negf %106 : vector<16x128xf32>
    %108 = math.exp %107 : vector<16x128xf32>
    %cst_22 = arith.constant 1.000000e+00 : f32
    %109 = vector.broadcast %cst_22 : f32 to vector<16x128xf32>
    %110 = arith.addf %109, %108 : vector<16x128xf32>
    %111 = arith.divf %109, %110 : vector<16x128xf32>
    %112 = vector.extract_strided_slice %94 {offsets = [0, 256], sizes = [16, 128], strides = [1, 1]} : vector<16x384xf32> to vector<16x128xf32>
    %113 = vector.extract_strided_slice %95 {offsets = [0, 256], sizes = [16, 128], strides = [1, 1]} : vector<16x384xf32> to vector<16x128xf32>
    %114 = arith.addf %113, %11 : vector<16x128xf32>
    %115 = arith.mulf %103, %114 : vector<16x128xf32>
    %116 = arith.addf %112, %115 : vector<16x128xf32>
    %117 = math.tanh %116 : vector<16x128xf32>
    %cst_23 = arith.constant 1.000000e+00 : f32
    %118 = vector.broadcast %cst_23 : f32 to vector<16x128xf32>
    %119 = arith.subf %118, %111 : vector<16x128xf32>
    %120 = arith.mulf %119, %117 : vector<16x128xf32>
    %121 = arith.mulf %111, %92 : vector<16x128xf32>
    %122 = arith.addf %120, %121 : vector<16x128xf32>
    %123 = vector.extract_strided_slice %7 {offsets = [4, 0, 0], sizes = [1, 16, 384], strides = [1, 1, 1]} : vector<8x16x384xf32> to vector<1x16x384xf32>
    %124 = vector.shape_cast %123 : vector<1x16x384xf32> to vector<16x384xf32>
    %cst_24 = arith.constant dense<0.000000e+00> : vector<16x384xf32>
    %125 = tpu.matmul %122, %8, %cst_24 {dimension_numbers = #tpu.dot_dimension_numbers<[1], [0], [0], [1], [0, 0, 1, 1], [], []>, precision = #tpu.contract_precision<fp32>} : vector<16x128xf32>, vector<128x384xf32>, vector<16x384xf32> -> vector<16x384xf32>
    %126 = vector.extract_strided_slice %124 {offsets = [0, 0], sizes = [16, 128], strides = [1, 1]} : vector<16x384xf32> to vector<16x128xf32>
    %127 = vector.extract_strided_slice %125 {offsets = [0, 0], sizes = [16, 128], strides = [1, 1]} : vector<16x384xf32> to vector<16x128xf32>
    %128 = arith.addf %126, %127 : vector<16x128xf32>
    %129 = arith.negf %128 : vector<16x128xf32>
    %130 = math.exp %129 : vector<16x128xf32>
    %cst_25 = arith.constant 1.000000e+00 : f32
    %131 = vector.broadcast %cst_25 : f32 to vector<16x128xf32>
    %132 = arith.addf %131, %130 : vector<16x128xf32>
    %133 = arith.divf %131, %132 : vector<16x128xf32>
    %134 = vector.extract_strided_slice %124 {offsets = [0, 128], sizes = [16, 128], strides = [1, 1]} : vector<16x384xf32> to vector<16x128xf32>
    %135 = vector.extract_strided_slice %125 {offsets = [0, 128], sizes = [16, 128], strides = [1, 1]} : vector<16x384xf32> to vector<16x128xf32>
    %136 = arith.addf %134, %135 : vector<16x128xf32>
    %137 = arith.negf %136 : vector<16x128xf32>
    %138 = math.exp %137 : vector<16x128xf32>
    %cst_26 = arith.constant 1.000000e+00 : f32
    %139 = vector.broadcast %cst_26 : f32 to vector<16x128xf32>
    %140 = arith.addf %139, %138 : vector<16x128xf32>
    %141 = arith.divf %139, %140 : vector<16x128xf32>
    %142 = vector.extract_strided_slice %124 {offsets = [0, 256], sizes = [16, 128], strides = [1, 1]} : vector<16x384xf32> to vector<16x128xf32>
    %143 = vector.extract_strided_slice %125 {offsets = [0, 256], sizes = [16, 128], strides = [1, 1]} : vector<16x384xf32> to vector<16x128xf32>
    %144 = arith.addf %143, %11 : vector<16x128xf32>
    %145 = arith.mulf %133, %144 : vector<16x128xf32>
    %146 = arith.addf %142, %145 : vector<16x128xf32>
    %147 = math.tanh %146 : vector<16x128xf32>
    %cst_27 = arith.constant 1.000000e+00 : f32
    %148 = vector.broadcast %cst_27 : f32 to vector<16x128xf32>
    %149 = arith.subf %148, %141 : vector<16x128xf32>
    %150 = arith.mulf %149, %147 : vector<16x128xf32>
    %151 = arith.mulf %141, %122 : vector<16x128xf32>
    %152 = arith.addf %150, %151 : vector<16x128xf32>
    %153 = vector.extract_strided_slice %7 {offsets = [5, 0, 0], sizes = [1, 16, 384], strides = [1, 1, 1]} : vector<8x16x384xf32> to vector<1x16x384xf32>
    %154 = vector.shape_cast %153 : vector<1x16x384xf32> to vector<16x384xf32>
    %cst_28 = arith.constant dense<0.000000e+00> : vector<16x384xf32>
    %155 = tpu.matmul %152, %8, %cst_28 {dimension_numbers = #tpu.dot_dimension_numbers<[1], [0], [0], [1], [0, 0, 1, 1], [], []>, precision = #tpu.contract_precision<fp32>} : vector<16x128xf32>, vector<128x384xf32>, vector<16x384xf32> -> vector<16x384xf32>
    %156 = vector.extract_strided_slice %154 {offsets = [0, 0], sizes = [16, 128], strides = [1, 1]} : vector<16x384xf32> to vector<16x128xf32>
    %157 = vector.extract_strided_slice %155 {offsets = [0, 0], sizes = [16, 128], strides = [1, 1]} : vector<16x384xf32> to vector<16x128xf32>
    %158 = arith.addf %156, %157 : vector<16x128xf32>
    %159 = arith.negf %158 : vector<16x128xf32>
    %160 = math.exp %159 : vector<16x128xf32>
    %cst_29 = arith.constant 1.000000e+00 : f32
    %161 = vector.broadcast %cst_29 : f32 to vector<16x128xf32>
    %162 = arith.addf %161, %160 : vector<16x128xf32>
    %163 = arith.divf %161, %162 : vector<16x128xf32>
    %164 = vector.extract_strided_slice %154 {offsets = [0, 128], sizes = [16, 128], strides = [1, 1]} : vector<16x384xf32> to vector<16x128xf32>
    %165 = vector.extract_strided_slice %155 {offsets = [0, 128], sizes = [16, 128], strides = [1, 1]} : vector<16x384xf32> to vector<16x128xf32>
    %166 = arith.addf %164, %165 : vector<16x128xf32>
    %167 = arith.negf %166 : vector<16x128xf32>
    %168 = math.exp %167 : vector<16x128xf32>
    %cst_30 = arith.constant 1.000000e+00 : f32
    %169 = vector.broadcast %cst_30 : f32 to vector<16x128xf32>
    %170 = arith.addf %169, %168 : vector<16x128xf32>
    %171 = arith.divf %169, %170 : vector<16x128xf32>
    %172 = vector.extract_strided_slice %154 {offsets = [0, 256], sizes = [16, 128], strides = [1, 1]} : vector<16x384xf32> to vector<16x128xf32>
    %173 = vector.extract_strided_slice %155 {offsets = [0, 256], sizes = [16, 128], strides = [1, 1]} : vector<16x384xf32> to vector<16x128xf32>
    %174 = arith.addf %173, %11 : vector<16x128xf32>
    %175 = arith.mulf %163, %174 : vector<16x128xf32>
    %176 = arith.addf %172, %175 : vector<16x128xf32>
    %177 = math.tanh %176 : vector<16x128xf32>
    %cst_31 = arith.constant 1.000000e+00 : f32
    %178 = vector.broadcast %cst_31 : f32 to vector<16x128xf32>
    %179 = arith.subf %178, %171 : vector<16x128xf32>
    %180 = arith.mulf %179, %177 : vector<16x128xf32>
    %181 = arith.mulf %171, %152 : vector<16x128xf32>
    %182 = arith.addf %180, %181 : vector<16x128xf32>
    %183 = vector.extract_strided_slice %7 {offsets = [6, 0, 0], sizes = [1, 16, 384], strides = [1, 1, 1]} : vector<8x16x384xf32> to vector<1x16x384xf32>
    %184 = vector.shape_cast %183 : vector<1x16x384xf32> to vector<16x384xf32>
    %cst_32 = arith.constant dense<0.000000e+00> : vector<16x384xf32>
    %185 = tpu.matmul %182, %8, %cst_32 {dimension_numbers = #tpu.dot_dimension_numbers<[1], [0], [0], [1], [0, 0, 1, 1], [], []>, precision = #tpu.contract_precision<fp32>} : vector<16x128xf32>, vector<128x384xf32>, vector<16x384xf32> -> vector<16x384xf32>
    %186 = vector.extract_strided_slice %184 {offsets = [0, 0], sizes = [16, 128], strides = [1, 1]} : vector<16x384xf32> to vector<16x128xf32>
    %187 = vector.extract_strided_slice %185 {offsets = [0, 0], sizes = [16, 128], strides = [1, 1]} : vector<16x384xf32> to vector<16x128xf32>
    %188 = arith.addf %186, %187 : vector<16x128xf32>
    %189 = arith.negf %188 : vector<16x128xf32>
    %190 = math.exp %189 : vector<16x128xf32>
    %cst_33 = arith.constant 1.000000e+00 : f32
    %191 = vector.broadcast %cst_33 : f32 to vector<16x128xf32>
    %192 = arith.addf %191, %190 : vector<16x128xf32>
    %193 = arith.divf %191, %192 : vector<16x128xf32>
    %194 = vector.extract_strided_slice %184 {offsets = [0, 128], sizes = [16, 128], strides = [1, 1]} : vector<16x384xf32> to vector<16x128xf32>
    %195 = vector.extract_strided_slice %185 {offsets = [0, 128], sizes = [16, 128], strides = [1, 1]} : vector<16x384xf32> to vector<16x128xf32>
    %196 = arith.addf %194, %195 : vector<16x128xf32>
    %197 = arith.negf %196 : vector<16x128xf32>
    %198 = math.exp %197 : vector<16x128xf32>
    %cst_34 = arith.constant 1.000000e+00 : f32
    %199 = vector.broadcast %cst_34 : f32 to vector<16x128xf32>
    %200 = arith.addf %199, %198 : vector<16x128xf32>
    %201 = arith.divf %199, %200 : vector<16x128xf32>
    %202 = vector.extract_strided_slice %184 {offsets = [0, 256], sizes = [16, 128], strides = [1, 1]} : vector<16x384xf32> to vector<16x128xf32>
    %203 = vector.extract_strided_slice %185 {offsets = [0, 256], sizes = [16, 128], strides = [1, 1]} : vector<16x384xf32> to vector<16x128xf32>
    %204 = arith.addf %203, %11 : vector<16x128xf32>
    %205 = arith.mulf %193, %204 : vector<16x128xf32>
    %206 = arith.addf %202, %205 : vector<16x128xf32>
    %207 = math.tanh %206 : vector<16x128xf32>
    %cst_35 = arith.constant 1.000000e+00 : f32
    %208 = vector.broadcast %cst_35 : f32 to vector<16x128xf32>
    %209 = arith.subf %208, %201 : vector<16x128xf32>
    %210 = arith.mulf %209, %207 : vector<16x128xf32>
    %211 = arith.mulf %201, %182 : vector<16x128xf32>
    %212 = arith.addf %210, %211 : vector<16x128xf32>
    %213 = vector.extract_strided_slice %7 {offsets = [7, 0, 0], sizes = [1, 16, 384], strides = [1, 1, 1]} : vector<8x16x384xf32> to vector<1x16x384xf32>
    %214 = vector.shape_cast %213 : vector<1x16x384xf32> to vector<16x384xf32>
    %cst_36 = arith.constant dense<0.000000e+00> : vector<16x384xf32>
    %215 = tpu.matmul %212, %8, %cst_36 {dimension_numbers = #tpu.dot_dimension_numbers<[1], [0], [0], [1], [0, 0, 1, 1], [], []>, precision = #tpu.contract_precision<fp32>} : vector<16x128xf32>, vector<128x384xf32>, vector<16x384xf32> -> vector<16x384xf32>
    %216 = vector.extract_strided_slice %214 {offsets = [0, 0], sizes = [16, 128], strides = [1, 1]} : vector<16x384xf32> to vector<16x128xf32>
    %217 = vector.extract_strided_slice %215 {offsets = [0, 0], sizes = [16, 128], strides = [1, 1]} : vector<16x384xf32> to vector<16x128xf32>
    %218 = arith.addf %216, %217 : vector<16x128xf32>
    %219 = arith.negf %218 : vector<16x128xf32>
    %220 = math.exp %219 : vector<16x128xf32>
    %cst_37 = arith.constant 1.000000e+00 : f32
    %221 = vector.broadcast %cst_37 : f32 to vector<16x128xf32>
    %222 = arith.addf %221, %220 : vector<16x128xf32>
    %223 = arith.divf %221, %222 : vector<16x128xf32>
    %224 = vector.extract_strided_slice %214 {offsets = [0, 128], sizes = [16, 128], strides = [1, 1]} : vector<16x384xf32> to vector<16x128xf32>
    %225 = vector.extract_strided_slice %215 {offsets = [0, 128], sizes = [16, 128], strides = [1, 1]} : vector<16x384xf32> to vector<16x128xf32>
    %226 = arith.addf %224, %225 : vector<16x128xf32>
    %227 = arith.negf %226 : vector<16x128xf32>
    %228 = math.exp %227 : vector<16x128xf32>
    %cst_38 = arith.constant 1.000000e+00 : f32
    %229 = vector.broadcast %cst_38 : f32 to vector<16x128xf32>
    %230 = arith.addf %229, %228 : vector<16x128xf32>
    %231 = arith.divf %229, %230 : vector<16x128xf32>
    %232 = vector.extract_strided_slice %214 {offsets = [0, 256], sizes = [16, 128], strides = [1, 1]} : vector<16x384xf32> to vector<16x128xf32>
    %233 = vector.extract_strided_slice %215 {offsets = [0, 256], sizes = [16, 128], strides = [1, 1]} : vector<16x384xf32> to vector<16x128xf32>
    %234 = arith.addf %233, %11 : vector<16x128xf32>
    %235 = arith.mulf %223, %234 : vector<16x128xf32>
    %236 = arith.addf %232, %235 : vector<16x128xf32>
    %237 = math.tanh %236 : vector<16x128xf32>
    %cst_39 = arith.constant 1.000000e+00 : f32
    %238 = vector.broadcast %cst_39 : f32 to vector<16x128xf32>
    %239 = arith.subf %238, %231 : vector<16x128xf32>
    %240 = arith.mulf %239, %237 : vector<16x128xf32>
    %241 = arith.mulf %231, %212 : vector<16x128xf32>
    %242 = arith.addf %240, %241 : vector<16x128xf32>
    %c0_40 = arith.constant 0 : index
    %c0_41 = arith.constant 0 : index
    %c0_42 = arith.constant 0 : index
    %243 = vector.load %arg4[%c0_40, %c0_41, %c0_42] : memref<2x16x16xf32, #tpu.memory_space<vmem>>, vector<1x16x16xf32>
    %244 = vector.shape_cast %243 : vector<1x16x16xf32> to vector<16x16xf32>
    %c1 = arith.constant 1 : index
    %c0_43 = arith.constant 0 : index
    %c0_44 = arith.constant 0 : index
    %245 = vector.load %arg4[%c1, %c0_43, %c0_44] : memref<2x16x16xf32, #tpu.memory_space<vmem>>, vector<1x16x16xf32>
    %246 = vector.shape_cast %245 : vector<1x16x16xf32> to vector<16x16xf32>
    %c1_45 = arith.constant 1 : index
    %c0_46 = arith.constant 0 : index
    %247 = vector.load %arg6[%c1_45, %c0_46] : memref<2x128xf32, #tpu.memory_space<vmem>>, vector<1x128xf32>
    %248 = vector.shape_cast %247 : vector<1x128xf32> to vector<1x128xf32>
    %249 = vector.broadcast %248 : vector<1x128xf32> to vector<16x128xf32>
    %c0_47 = arith.constant 0 : index
    %c0_48 = arith.constant 0 : index
    %250 = vector.load %arg5[%c0_47, %c0_48] : memref<640x128xf32, #tpu.memory_space<vmem>>, vector<128x128xf32>
    %cst_49 = arith.constant dense<0.000000e+00> : vector<16x128xf32>
    %251 = tpu.matmul %242, %250, %cst_49 {dimension_numbers = #tpu.dot_dimension_numbers<[1], [0], [0], [1], [0, 0, 1, 1], [], []>, precision = #tpu.contract_precision<fp32>} : vector<16x128xf32>, vector<128x128xf32>, vector<16x128xf32> -> vector<16x128xf32>
    %252 = arith.addf %249, %251 : vector<16x128xf32>
    %cst_50 = arith.constant dense<0.000000e+00> : vector<16x128xf32>
    %253 = tpu.matmul %244, %242, %cst_50 {dimension_numbers = #tpu.dot_dimension_numbers<[1], [0], [0], [1], [0, 0, 1, 1], [], []>, precision = #tpu.contract_precision<fp32>} : vector<16x16xf32>, vector<16x128xf32>, vector<16x128xf32> -> vector<16x128xf32>
    %c128 = arith.constant 128 : index
    %c0_51 = arith.constant 0 : index
    %254 = vector.load %arg5[%c128, %c0_51] : memref<640x128xf32, #tpu.memory_space<vmem>>, vector<128x128xf32>
    %cst_52 = arith.constant dense<0.000000e+00> : vector<16x128xf32>
    %255 = tpu.matmul %253, %254, %cst_52 {dimension_numbers = #tpu.dot_dimension_numbers<[1], [0], [0], [1], [0, 0, 1, 1], [], []>, precision = #tpu.contract_precision<fp32>} : vector<16x128xf32>, vector<128x128xf32>, vector<16x128xf32> -> vector<16x128xf32>
    %256 = arith.addf %252, %255 : vector<16x128xf32>
    %cst_53 = arith.constant dense<0.000000e+00> : vector<16x128xf32>
    %257 = tpu.matmul %244, %253, %cst_53 {dimension_numbers = #tpu.dot_dimension_numbers<[1], [0], [0], [1], [0, 0, 1, 1], [], []>, precision = #tpu.contract_precision<fp32>} : vector<16x16xf32>, vector<16x128xf32>, vector<16x128xf32> -> vector<16x128xf32>
    %c256 = arith.constant 256 : index
    %c0_54 = arith.constant 0 : index
    %258 = vector.load %arg5[%c256, %c0_54] : memref<640x128xf32, #tpu.memory_space<vmem>>, vector<128x128xf32>
    %cst_55 = arith.constant dense<0.000000e+00> : vector<16x128xf32>
    %259 = tpu.matmul %257, %258, %cst_55 {dimension_numbers = #tpu.dot_dimension_numbers<[1], [0], [0], [1], [0, 0, 1, 1], [], []>, precision = #tpu.contract_precision<fp32>} : vector<16x128xf32>, vector<128x128xf32>, vector<16x128xf32> -> vector<16x128xf32>
    %260 = arith.addf %256, %259 : vector<16x128xf32>
    %cst_56 = arith.constant dense<0.000000e+00> : vector<16x128xf32>
    %261 = tpu.matmul %246, %242, %cst_56 {dimension_numbers = #tpu.dot_dimension_numbers<[1], [0], [0], [1], [0, 0, 1, 1], [], []>, precision = #tpu.contract_precision<fp32>} : vector<16x16xf32>, vector<16x128xf32>, vector<16x128xf32> -> vector<16x128xf32>
    %c384 = arith.constant 384 : index
    %c0_57 = arith.constant 0 : index
    %262 = vector.load %arg5[%c384, %c0_57] : memref<640x128xf32, #tpu.memory_space<vmem>>, vector<128x128xf32>
    %cst_58 = arith.constant dense<0.000000e+00> : vector<16x128xf32>
    %263 = tpu.matmul %261, %262, %cst_58 {dimension_numbers = #tpu.dot_dimension_numbers<[1], [0], [0], [1], [0, 0, 1, 1], [], []>, precision = #tpu.contract_precision<fp32>} : vector<16x128xf32>, vector<128x128xf32>, vector<16x128xf32> -> vector<16x128xf32>
    %264 = arith.addf %260, %263 : vector<16x128xf32>
    %cst_59 = arith.constant dense<0.000000e+00> : vector<16x128xf32>
    %265 = tpu.matmul %246, %261, %cst_59 {dimension_numbers = #tpu.dot_dimension_numbers<[1], [0], [0], [1], [0, 0, 1, 1], [], []>, precision = #tpu.contract_precision<fp32>} : vector<16x16xf32>, vector<16x128xf32>, vector<16x128xf32> -> vector<16x128xf32>
    %c512 = arith.constant 512 : index
    %c0_60 = arith.constant 0 : index
    %266 = vector.load %arg5[%c512, %c0_60] : memref<640x128xf32, #tpu.memory_space<vmem>>, vector<128x128xf32>
    %cst_61 = arith.constant dense<0.000000e+00> : vector<16x128xf32>
    %267 = tpu.matmul %265, %266, %cst_61 {dimension_numbers = #tpu.dot_dimension_numbers<[1], [0], [0], [1], [0, 0, 1, 1], [], []>, precision = #tpu.contract_precision<fp32>} : vector<16x128xf32>, vector<128x128xf32>, vector<16x128xf32> -> vector<16x128xf32>
    %268 = arith.addf %264, %267 : vector<16x128xf32>
    %c0_62 = arith.constant 0 : index
    %c0_63 = arith.constant 0 : index
    %269 = vector.load %arg7[%c0_62, %c0_63] : memref<16x128xf32, #tpu.memory_space<vmem>>, vector<16x128xf32>
    tpu.vector_store %arg7[%c0_62, %c0_63], %268 {strides = array<i32>} : memref<16x128xf32, #tpu.memory_space<vmem>>, vector<16x128xf32>,
    return
  }
}

</mosaic_0001>

<bundles_post_ra>
// kernel: tpu_custom_call.1
= control target key start
LH: loop header
LB: loop body
LE: loop exit
PB: predicated region body
PF: predicated region fallthrough
CT: control target
= control target key end

     0   :  { %12 = vsyncpa [#allocation3], 0  ;;  %s34045_s0 = inlined_call_operand.vmem [shape: f32[128,4], index: 0, kind: input, shape index: {}]   ;;  %s34046_s1 = inlined_call_operand.vmem [shape: f32[16,384], index: 1, kind: input, shape index: {}]   ;;  %s34047_s2 = inlined_call_operand.vmem [shape: f32[4,384], index: 2, kind: input, shape index: {}]   ;;  %s34048_s3 = inlined_call_operand.hbm [shape: f32[128,384], index: 3, kind: input, shape index: {}]   ;;  %s34049_s4 = inlined_call_operand.vmem [shape: f32[2,16,16], index: 4, kind: input, shape index: {}]   ;;  %s34050_s5 = inlined_call_operand.hbm [shape: f32[640,128], index: 5, kind: input, shape index: {}]   ;;  %s34051_s6 = inlined_call_operand.vmem [shape: f32[2,128], index: 6, kind: input, shape index: {}]   ;;  %s34052_s7 = inlined_call_operand.hbm [shape: f32[16,128], index: 7, kind: output, shape index: {}]  }
   0x1   :  { %13 = vsyncpa [#allocation6], 0 }
   0x2   :  { %14 = vsyncpa [#allocation4], 0  ;;  %s28529_s24 = smov [#allocation2]   ;;  %s28457_s28 = scalar_lea.hbm %s34048_s3, 6144 }
   0x3   :  { %s26_s25 = sshll.u32 %s28529_s24, 4  ;;  %p28458_p0 = scmp.ne.s32.totalorder %s34048_s3, %s28457_s28  ;;  %s27_s25 = int_to_ptr.vmem [resolvable:$true] %s26_s25 }
   0x4   :  { %p28461_p1 = scmp.lt.u32.totalorder %s28457_s28, %s34048_s3 }
   0x6   :  { %p28463_p2 = pnand %p28461_p1, %p28458_p0 }
   0x8   :  { %28466 = shalt.err (!%p28463_p2)
}
   0x9   :  { %s28467_s10 = scalar_lea.vmem %s27_s25, 6144  ;;  %p28472_p4 = scmp.lt.s32.totalorder %s27_s25, %s27_s25 }
   0xa   :  { %p28468_p3 = scmp.ne.s32.totalorder %s27_s25, %s28467_s10  ;;  %p28473_p5 = scmp.lt.s32.totalorder %s28467_s10, %s28467_s10 }
   0xc   :  { %p28474_p6 = por %p28473_p5, %p28472_p4 }
   0xe   :  { %p28475_p7 = pnand %p28474_p6, %p28468_p3 }
  0x10   :  { %28478 = shalt.err (!%p28475_p7)
}
  0x11   :  { %s28530_s11 = smov 384   ;;  %s28531_s12 = smov 24  }
  0x12   :  { %32 = dma.hbm_to_vmem [thread:$0]  %s34048_s3, 6144, %s27_s25, [#allocation3], %s28530_s11, %s28530_s11, %s28531_s12  }
  0x13   :  { %s28532_s15 = smov [#allocation5]   ;;  %s28479_s19 = scalar_lea.hbm %s34050_s5, 10240 }
  0x14   :  { %s40_s16 = sshll.u32 %s28532_s15, 4  ;;  %p28480_p8 = scmp.ne.s32.totalorder %s34050_s5, %s28479_s19  ;;  %s41_s16 = int_to_ptr.vmem [resolvable:$true] %s40_s16 }
  0x15   :  { %p28483_p9 = scmp.lt.u32.totalorder %s28479_s19, %s34050_s5 }
  0x17   :  { %p28485_p10 = pnand %p28483_p9, %p28480_p8 }
  0x19   :  { %28488 = shalt.err (!%p28485_p10)
}
  0x1a   :  { %s28489_s24 = scalar_lea.vmem %s41_s16, 10240  ;;  %p28494_p12 = scmp.lt.s32.totalorder %s41_s16, %s41_s16 }
  0x1b   :  { %p28490_p11 = scmp.ne.s32.totalorder %s41_s16, %s28489_s24  ;;  %p28495_p13 = scmp.lt.s32.totalorder %s28489_s24, %s28489_s24 }
  0x1d   :  { %p28496_p0 = por %p28495_p13, %p28494_p12 }
  0x1f   :  { %p28497_p1 = pnand %p28496_p0, %p28490_p11 }
  0x21   :  { %28500 = shalt.err (!%p28497_p1)
}
  0x22   :  { %s28533_s3 = smov 128   ;;  %s28534_s25 = smov 8  }
  0x23   :  { %46 = dma.hbm_to_vmem [thread:$0]  %s34050_s5, 10240, %s41_s16, [#allocation6], %s28533_s3, %s28533_s3, %s28534_s25  }
  0x24   :  { %28523 = dma.done.wait [#allocation3], 6144  }
  0x25   :  { %28524 = vsyncadd [#allocation3], 4294961152 }
  0x26   :  { %28525 = dma.done.wait [#allocation6], 10240  }
  0x27   :  { %28526 = vsyncadd [#allocation6], 4294957056  ;;  %v34064_v0 = vmov 0.0   ;;  %vm125_vm0 = vcmask 1043456   ;;  %vm76_vm1 = vcmask 31744   ;;  %v71_v1 = vld [vmem:[%s34047_s2] sm:$0xff] }
  0x28   :  { %198 = vmatprep.mubr.f32.mxu0 %v34064_v0  ;;  %v72_v2 = vld [vmem:[%s34047_s2 + $0x8] sm:$0xf]  ;;  %v55_v3 = vld [vmem:[%s34045_s0] sm:$0xff]  ;;  %v75_v4 = vcombine.high %v71_v1, %v71_v1  ;;  %v126_v6 = vsel %vm125_vm0, %v71_v1, 0  ;;  %v57_v9 = vld [vmem:[%s34045_s0 + $0x10] sm:$0xff]  ;;  %vm14700_vm2 = vcmask 130048  }
  0x29   :  { %v28615_v5 = vsel %vm125_vm0, %v72_v2, 0  ;;  %v78_v7 = vsel %vm76_vm1, %v55_v3, 0  ;;  %v56_v8 = vld [vmem:[%s34045_s0 + $0x8] sm:$0xff]  ;;  %v58_v10 = vld [vmem:[%s34045_s0 + $0x18] sm:$0xff]  ;;  %v28631_v12 = vand.u32 4294901760, %v126_v6  ;;  %v59_v15 = vld [vmem:[%s34045_s0 + $0x20] sm:$0xff] }
  0x2a   :  { %v28629_v11 = vand.u32 4294901760, %v28615_v5  ;;  %v28633_v13 = vand.u32 4294901760, %v78_v7  ;;  %v81_v14 = vsel %vm76_vm1, %v56_v8, 0  ;;  %v128_v16 = vsel %vm125_vm0, %v75_v4, 0  ;;  %v60_v24 = vld [vmem:[%s34045_s0 + $0x28] sm:$0xff]  ;;  %v61_v41 = vld [vmem:[%s34045_s0 + $0x30] sm:$0xff] }
  0x2b   :  { %v28640_v17 = vand.u32 4294901760, %v81_v14  ;;  %v84_v18 = vsel %vm76_vm1, %v57_v9, 0  ;;  %v87_v19 = vsel %vm76_vm1, %v58_v10, 0  ;;  %v28644_v20 = vand.u32 4294901760, %v128_v16  ;;  %v62_v44 = vld [vmem:[%s34045_s0 + $0x38] sm:$0xff]  ;;  %v63_v49 = vld [vmem:[%s34045_s0 + $0x40] sm:$0xff] }
  0x2c   :  { %v28647_v21 = vsub.f32 %v126_v6, %v28631_v12  ;;  %v28650_v22 = vsub.f32 %v78_v7, %v28633_v13  ;;  %v28652_v23 = vand.u32 4294901760, %v84_v18  ;;  %21209 = vmatprep.subr.mxu1 %v28629_v11  ;;  %21211 = vmatprep.mubr.f32.mxu1 %v28633_v13  ;;  %v28662_v26 = vand.u32 4294901760, %v87_v19  ;;  %v64_v57 = vld [vmem:[%s34045_s0 + $0x48] sm:$0xff]  ;;  %v65_v59 = vld [vmem:[%s34045_s0 + $0x50] sm:$0xff]  ;;  %v66_v4 = vld [vmem:[%s34045_s0 + $0x58] sm:$0xff]  ;;  %s28536_s16 = smov [#allocation7]  }
  0x2d   :  { %v28660_v25 = vsub.f32 %v81_v14, %v28640_v17  ;;  %v90_v27 = vsel %vm76_vm1, %v59_v15, 0  ;;  %21210 = vmatpush3.msra.mxu1 %v28629_v11  ;;  %133 = vmatprep.subr.mxu0 %v28644_v20  ;;  %v28671_v29 = vsub.f32 %v128_v16, %v28644_v20  ;;  %v93_v35 = vsel %vm76_vm1, %v60_v24, 0  ;;  %v67_v7 = vld [vmem:[%s34045_s0 + $0x60] sm:$0xff]  ;;  %s19536_s17 = sshll.u32 %s28536_s16, 4  ;;  %s19537_s17 = int_to_ptr.vmem [resolvable:$true] %s19536_s17 }
  0x2e   :  { %v28668_v28 = vand.u32 4294901760, %v28650_v22  ;;  %v34053_v30 = vand.u32 4294901760, %v28647_v21  ;;  %v28675_v31 = vsub.f32 %v84_v18, %v28652_v23  ;;  %21212 = vmatmul.mubr.f32.vlgmr.msra.gmra.mrb[0].mxu1 %v28640_v17  ;;  %135 = vmatpush1.msra.mxu0 %v28631_v12  ;;  %v28683_v33 = vsub.f32 %v87_v19, %v28662_v26  ;;  %v68_v19 = vld [vmem:[%s34045_s0 + $0x68] sm:$0xff]  ;;  %s28501_s18 = scalar_lea.vmem %s19537_s17, 256  ;;  %p28506_p3 = scmp.lt.s32.totalorder %s19537_s17, %s19537_s17 }
  0x2f   :  { %v28680_v32 = vand.u32 4294901760, %v28660_v25  ;;  %v28685_v34 = vand.u32 4294901760, %v90_v27  ;;  %21214 = vmatprep.mubr.f32.mxu1 %v28652_v23  ;;  %v34054_v37 = vand.u32 4294901760, %v28671_v29  ;;  %v28718_v48 = vand.u32 4294901760, %v93_v35  ;;  %p28502_p2 = scmp.ne.s32.totalorder %s19537_s17, %s28501_s18  ;;  %p28507_p4 = scmp.lt.s32.totalorder %s28501_s18, %s28501_s18 }
  0x30   :  { %v202_v36 = vsub.f32 %v28650_v22, %v28668_v28  ;;  %v384_v38 = vsub.f32 %v28647_v21, %v34053_v30  ;;  %v28696_v39 = vand.u32 4294901760, %v28675_v31  ;;  %v28713_v46 = vand.u32 4294901760, %v28683_v33 }
  0x31   :  { %v213_v40 = vsub.f32 %v28660_v25, %v28680_v32  ;;  %v378_v43 = vsub.f32 %v28671_v29, %v34054_v37  ;;  %v28716_v47 = vsub.f32 %v90_v27, %v28685_v34  ;;  %v96_v53 = vsel %vm76_vm1, %v61_v41, 0  ;;  %v69_v27 = vld [vmem:[%s34045_s0 + $0x70] sm:$0xff]  ;;  %p28508_p5 = por %p28507_p4, %p28506_p3 }
  0x32   :  { %v28703_v42 = vand.u32 4294901760, %v202_v36  ;;  %21215 = vmatmul.mubr.f32.gmra.mrb[2].mxu1 %v28662_v26  ;;  %v385_v45 = vand.u32 4294901760, %v384_v38  ;;  %v224_v52 = vsub.f32 %v28675_v31, %v28696_v39  ;;  %v28731_v54 = vand.u32 4294901760, %v96_v53 }
  0x33   :  { %21217 = vmatprep.mubr.f32.mxu1 %v28685_v34  ;;  %v28725_v50 = vand.u32 4294901760, %v213_v40  ;;  %v379_v51 = vand.u32 4294901760, %v378_v43  ;;  %v99_v55 = vsel %vm76_vm1, %v62_v44, 0  ;;  %v102_v56 = vsel %vm76_vm1, %v63_v49, 0  ;;  %p28509_p6 = pnand %p28508_p5, %p28502_p2 }
  0x34   :  { %204 = vmatmul.mubr.f32.vlgmr.msra.gmra.mrb[0].mxu0 %v28703_v42  ;;  %v28740_v58 = vsub.f32 %v93_v35, %v28718_v48  ;;  %v28747_v60 = vand.u32 4294901760, %v224_v52  ;;  %v235_v61 = vsub.f32 %v28683_v33, %v28713_v46  ;;  %v28752_v62 = vand.u32 4294901760, %v28716_v47 }
  0x35   :  { %209 = vmatprep.mubr.f32.mxu0 %v34064_v0  ;;  %380 = vmatprep.subr.mxu0 %v379_v51  ;;  %v28754_v63 = vand.u32 4294901760, %v99_v55  ;;  %v28758_v1 = vand.u32 4294901760, %v102_v56  ;;  %v105_v2 = vsel %vm76_vm1, %v64_v57, 0  ;;  %v108_v3 = vsel %vm76_vm1, %v65_v59, 0 }
  0x36   :  { %21218 = vmatmul.mubr.f32.gmra.mrb[4].mxu1 %v28718_v48  ;;  %386 = vmatpush1.msra.mxu0 %v385_v45  ;;  %v28767_v6 = vand.u32 4294901760, %v28740_v58  ;;  %v28774_v8 = vand.u32 4294901760, %v235_v61  ;;  %v246_v9 = vsub.f32 %v28716_v47, %v28752_v62  ;;  %v28779_v10 = vsub.f32 %v96_v53, %v28731_v54  ;;  %v70_v45 = vld [vmem:[%s34045_s0 + $0x78] sm:$0xff] }
  0x37   :  { %21220 = vmatprep.mubr.f32.mxu1 %v28731_v54  ;;  %564 = vmatprep.subr.mxu0 %v28671_v29  ;;  %v28781_v14 = vand.u32 4294901760, %v105_v2  ;;  %v28784_v15 = vand.u32 4294901760, %v108_v3  ;;  %v111_v16 = vsel %vm76_vm1, %v66_v4, 0  ;;  %v114_v18 = vsel %vm76_vm1, %v67_v7, 0 }
  0x38   :  { %215 = vmatmul.mubr.f32.gmra.mrb[2].mxu0 %v28725_v50  ;;  %34531 = vst [vmem:[#allocation11_spill] sm:$0xff] %v28774_v8  ;;  %v257_v24 = vsub.f32 %v28740_v58, %v28767_v6  ;;  %v28799_v35 = vand.u32 4294901760, %v246_v9  ;;  %v28802_v36 = vand.u32 4294901760, %v28779_v10  ;;  %v28805_v38 = vsub.f32 %v99_v55, %v28754_v63 }
  0x39   :  { %220 = vmatprep.mubr.f32.mxu0 %v34064_v0  ;;  %v28807_v40 = vand.u32 4294901760, %v111_v16  ;;  %v28810_v41 = vand.u32 4294901760, %v114_v18  ;;  %v117_v43 = vsel %vm76_vm1, %v68_v19, 0  ;;  %v120_v44 = vsel %vm76_vm1, %v69_v27, 0 }
  0x3a   :  { %21221 = vmatmul.mubr.f32.gmra.mrb[6].mxu1 %v28754_v63  ;;  %34532 = vst [vmem:[#allocation12_spill] sm:$0xff] %v28799_v35  ;;  %v28818_v49 = vand.u32 4294901760, %v257_v24  ;;  %v268_v51 = vsub.f32 %v28779_v10, %v28802_v36  ;;  %v28825_v52 = vand.u32 4294901760, %v28805_v38  ;;  %v28828_v53 = vsub.f32 %v102_v56, %v28758_v1 }
  0x3b   :  { %21223 = vmatprep.mubr.f32.mxu1 %v28758_v1  ;;  %v28830_v55 = vand.u32 4294901760, %v117_v43  ;;  %v28833_v57 = vand.u32 4294901760, %v120_v44  ;;  %v123_v59 = vsel %vm76_vm1, %v70_v45, 0  ;;  %v28838_v61 = vsub.f32 %v105_v2, %v28781_v14 }
  0x3c   :  { %226 = vmatmul.mubr.f32.gmra.mrb[4].mxu0 %v28747_v60  ;;  %34533 = vst [vmem:[#allocation13_spill] sm:$0xff] %v28818_v49  ;;  %v28842_v4 = vand.u32 4294901760, %v268_v51  ;;  %v279_v56 = vsub.f32 %v28805_v38, %v28825_v52  ;;  %v28847_v7 = vand.u32 4294901760, %v28828_v53  ;;  %v28849_v9 = vand.u32 4294901760, %v123_v59 }
  0x3d   :  { %231 = vmatprep.mubr.f32.mxu0 %v34064_v0  ;;  %v28859_v24 = vand.u32 4294901760, %v28838_v61  ;;  %v28862_v27 = vsub.f32 %v108_v3, %v28784_v15  ;;  %v28874_v30 = vsub.f32 %v111_v16, %v28807_v40 }
  0x3e   :  { %21224 = vmatmul.mubr.f32.gmra.mrb[8].mxu1 %v28781_v14  ;;  %34534 = vst [vmem:[#allocation14_spill] sm:$0xff] %v28842_v4  ;;  %v28854_v2 = vand.u32 4294901760, %v279_v56  ;;  %v290_v19 = vsub.f32 %v28828_v53, %v28847_v7 }
  0x3f   :  { %21226 = vmatprep.mubr.f32.mxu1 %v28784_v15  ;;  %v301_v51 = vsub.f32 %v28838_v61, %v28859_v24  ;;  %v28871_v56 = vand.u32 4294901760, %v28862_v27 }
  0x40   :  { %237 = vmatmul.mubr.f32.gmra.mrb[6].mxu0 %v28774_v8  ;;  %34535 = vst [vmem:[#allocation15_spill] sm:$0xff] %v28854_v2  ;;  %v28866_v45 = vand.u32 4294901760, %v290_v19  ;;  %v28883_v19 = vand.u32 4294901760, %v28874_v30 }
  0x41   :  { %242 = vmatprep.mubr.f32.mxu0 %v34064_v0  ;;  %v28878_v3 = vand.u32 4294901760, %v301_v51  ;;  %v312_v37 = vsub.f32 %v28862_v27, %v28871_v56 }
  0x42   :  { %21227 = vmatmul.mubr.f32.gmra.mrb[10].mxu1 %v28807_v40  ;;  %34536 = vst [vmem:[#allocation16_spill] sm:$0xff] %v28866_v45 }
  0x43   :  { %21229 = vmatprep.mubr.f32.mxu1 %v28810_v41  ;;  %34537 = vst [vmem:[#allocation17_spill] sm:$0xff] %v28878_v3  ;;  %v28890_v16 = vand.u32 4294901760, %v312_v37 }
  0x44   :  { %248 = vmatmul.mubr.f32.gmra.mrb[8].mxu0 %v28799_v35  ;;  %v28922_v35 = vsub.f32 %v123_v59, %v28849_v9 }
  0x45   :  { %253 = vmatprep.mubr.f32.mxu0 %v34064_v0  ;;  %34538 = vst [vmem:[#allocation18_spill] sm:$0xff] %v28890_v16 }
  0x46   :  { %21230 = vmatmul.mubr.f32.gmra.mrb[12].mxu1 %v28830_v55 }
  0x47   :  { %21232 = vmatprep.mubr.f32.mxu1 %v28833_v57 }
  0x48   :  { %259 = vmatmul.mubr.f32.gmra.mrb[10].mxu0 %v28818_v49  ;;  %v28910_v49 = vsub.f32 %v120_v44, %v28833_v57 }
  0x49   :  { %264 = vmatprep.mubr.f32.mxu0 %v34064_v0 }
  0x4a   :  { %21233 = vmatmul.mubr.f32.gmra.mrb[14].mxu1 %v28849_v9 }
  0x4c   :  { %270 = vmatmul.mubr.f32.gmra.mrb[12].mxu0 %v28842_v4  ;;  %v28898_v4 = vsub.f32 %v117_v43, %v28830_v55 }
  0x4d   :  { %275 = vmatprep.mubr.f32.mxu0 %v34064_v0 }
  0x4e   :  { %v28907_v37 = vand.u32 4294901760, %v28898_v4 }
  0x50   :  { %281 = vmatmul.mubr.f32.gmra.mrb[14].mxu0 %v28854_v2  ;;  %v28886_v2 = vsub.f32 %v114_v18, %v28810_v41 }
  0x51   :  { %286 = vmatprep.mubr.f32.mxu0 %v34064_v0 }
  0x52   :  { %v28895_v51 = vand.u32 4294901760, %v28886_v2 }
  0x54   :  { %292 = vmatmul.mubr.f32.gmra.mrb[16].mxu0 %v28866_v45  ;;  %v323_v45 = vsub.f32 %v28874_v30, %v28883_v19 }
  0x55   :  { %297 = vmatprep.mubr.f32.mxu0 %v34064_v0 }
  0x56   :  { %v28902_v18 = vand.u32 4294901760, %v323_v45  ;;  %v28919_v45 = vand.u32 4294901760, %v28910_v49 }
  0x58   :  { %303 = vmatmul.mubr.f32.gmra.mrb[18].mxu0 %v28878_v3  ;;  %34539 = vst [vmem:[#allocation19_spill] sm:$0xff] %v28902_v18  ;;  %v334_v3 = vsub.f32 %v28886_v2, %v28895_v51 }
  0x59   :  { %308 = vmatprep.mubr.f32.mxu0 %v34064_v0 }
  0x5a   :  { %v28914_v43 = vand.u32 4294901760, %v334_v3  ;;  %v28931_v3 = vand.u32 4294901760, %v28922_v35 }
  0x5c   :  { %314 = vmatmul.mubr.f32.gmra.mrb[20].mxu0 %v28890_v16  ;;  %v345_v16 = vsub.f32 %v28898_v4, %v28907_v37  ;;  %34540 = vst [vmem:[#allocation20_spill] sm:$0xff] %v28931_v3  ;;  %v367_v59 = vsub.f32 %v28922_v35, %v28931_v3 }
  0x5d   :  { %319 = vmatprep.mubr.f32.mxu0 %v34064_v0 }
  0x5e   :  { %v28926_v44 = vand.u32 4294901760, %v345_v16  ;;  %v28941_v16 = vand.u32 4294901760, %v367_v59  ;;  %v34543_v59 = vld [vmem:[#allocation11_spill] sm:$0xff] }
  0x60   :  { %325 = vmatmul.mubr.f32.gmra.mrb[22].mxu0 %v28902_v18  ;;  %v356_v18 = vsub.f32 %v28910_v49, %v28919_v45 }
  0x61   :  { %330 = vmatprep.mubr.f32.mxu0 %v34064_v0 }
  0x62   :  { %v28935_v8 = vand.u32 4294901760, %v356_v18  ;;  %v34541_v18 = vand.u32 4294901760, %v28671_v29  ;;  %v34542_v29 = vand.u32 4294901760, %v28647_v21 }
  0x64   :  { %336 = vmatmul.mubr.f32.gmra.mrb[24].mxu0 %v28914_v43 }
  0x65   :  { %341 = vmatprep.mubr.f32.mxu0 %v34064_v0 }
  0x68   :  { %347 = vmatmul.mubr.f32.gmra.mrb[26].mxu0 %v28926_v44 }
  0x69   :  { %352 = vmatprep.mubr.f32.mxu0 %v34064_v0 }
  0x6c   :  { %358 = vmatmul.mubr.f32.gmra.mrb[28].mxu0 %v28935_v8 }
  0x6d   :  { %363 = vmatprep.mubr.f32.mxu0 %v34064_v0 }
  0x70   :  { %369 = vmatmul.mubr.f32.gmra.mrb[30].mxu0 %v28941_v16 }
  0x71   :  { %449 = vmatprep.mubr.f32.mxu0 %v34064_v0 }
  0x74   :  { %451 = vmatmul.mubr.f32.vlgmr.msra.gmra.mrb[0].mxu0 %v28633_v13 }
  0x75   :  { %456 = vmatprep.mubr.f32.mxu0 %v34064_v0  ;;  %567 = vmatpush1.msra.mxu0 %v28647_v21 }
  0x76   :  { %760 = vmatprep.subr.mxu0 %v28644_v20 }
  0x78   :  { %458 = vmatmul.mubr.f32.gmra.mrb[2].mxu0 %v28640_v17 }
  0x79   :  { %463 = vmatprep.mubr.f32.mxu0 %v34064_v0 }
  0x7c   :  { %465 = vmatmul.mubr.f32.gmra.mrb[4].mxu0 %v28652_v23 }
  0x7d   :  { %470 = vmatprep.mubr.f32.mxu0 %v34064_v0 }
  0x80   :  { %472 = vmatmul.mubr.f32.gmra.mrb[6].mxu0 %v28662_v26 }
  0x81   :  { %477 = vmatprep.mubr.f32.mxu0 %v34064_v0 }
  0x84   :  { %479 = vmatmul.mubr.f32.gmra.mrb[8].mxu0 %v28685_v34 }
  0x85   :  { %484 = vmatprep.mubr.f32.mxu0 %v34064_v0 }
  0x88   :  { %486 = vmatmul.mubr.f32.gmra.mrb[10].mxu0 %v28718_v48 }
  0x89   :  { %491 = vmatprep.mubr.f32.mxu0 %v34064_v0 }
  0x8c   :  { %493 = vmatmul.mubr.f32.gmra.mrb[12].mxu0 %v28731_v54 }
  0x8d   :  { %498 = vmatprep.mubr.f32.mxu0 %v34064_v0 }
  0x90   :  { %500 = vmatmul.mubr.f32.gmra.mrb[14].mxu0 %v28754_v63 }
  0x91   :  { %505 = vmatprep.mubr.f32.mxu0 %v34064_v0 }
  0x94   :  { %507 = vmatmul.mubr.f32.gmra.mrb[16].mxu0 %v28758_v1 }
  0x95   :  { %512 = vmatprep.mubr.f32.mxu0 %v34064_v0 }
  0x98   :  { %514 = vmatmul.mubr.f32.gmra.mrb[18].mxu0 %v28781_v14 }
  0x99   :  { %519 = vmatprep.mubr.f32.mxu0 %v34064_v0 }
  0x9c   :  { %521 = vmatmul.mubr.f32.gmra.mrb[20].mxu0 %v28784_v15 }
  0x9d   :  { %526 = vmatprep.mubr.f32.mxu0 %v34064_v0 }
  0xa0   :  { %528 = vmatmul.mubr.f32.gmra.mrb[22].mxu0 %v28807_v40 }
  0xa1   :  { %533 = vmatprep.mubr.f32.mxu0 %v34064_v0 }
  0xa4   :  { %535 = vmatmul.mubr.f32.gmra.mrb[24].mxu0 %v28810_v41 }
  0xa5   :  { %540 = vmatprep.mubr.f32.mxu0 %v34064_v0 }
  0xa8   :  { %542 = vmatmul.mubr.f32.gmra.mrb[26].mxu0 %v28830_v55 }
  0xa9   :  { %547 = vmatprep.mubr.f32.mxu0 %v34064_v0 }
  0xac   :  { %549 = vmatmul.mubr.f32.gmra.mrb[28].mxu0 %v28833_v57 }
  0xad   :  { %554 = vmatprep.mubr.f32.mxu0 %v34064_v0 }
  0xb0   :  { %556 = vmatmul.mubr.f32.gmra.mrb[30].mxu0 %v28849_v9 }
  0xb1   :  { %630 = vmatprep.mubr.f32.mxu0 %v34064_v0 }
  0xb4   :  { %633 = vmatmul.mubr.f32.vlgmr.msra.gmra.mrb[0].mxu0 %v28650_v22 }
  0xb5   :  { %638 = vmatprep.mubr.f32.mxu0 %v34064_v0  ;;  %762 = vmatpush1.msra.mxu0 %v28631_v12 }
  0xb6   :  { %973 = vmatprep.subr.mxu0 %v34541_v18  ;;  %v34544_v18 = vld [vmem:[#allocation12_spill] sm:$0xff] }
  0xb8   :  { %641 = vmatmul.mubr.f32.gmra.mrb[2].mxu0 %v28660_v25 }
  0xb9   :  { %646 = vmatprep.mubr.f32.mxu0 %v34064_v0 }
  0xbc   :  { %649 = vmatmul.mubr.f32.gmra.mrb[4].mxu0 %v28675_v31 }
  0xbd   :  { %654 = vmatprep.mubr.f32.mxu0 %v34064_v0 }
  0xc0   :  { %657 = vmatmul.mubr.f32.gmra.mrb[6].mxu0 %v28683_v33 }
  0xc1   :  { %662 = vmatprep.mubr.f32.mxu0 %v34064_v0 }
  0xc4   :  { %665 = vmatmul.mubr.f32.gmra.mrb[8].mxu0 %v28716_v47 }
  0xc5   :  { %670 = vmatprep.mubr.f32.mxu0 %v34064_v0 }
  0xc8   :  { %673 = vmatmul.mubr.f32.gmra.mrb[10].mxu0 %v28740_v58 }
  0xc9   :  { %678 = vmatprep.mubr.f32.mxu0 %v34064_v0 }
  0xcc   :  { %681 = vmatmul.mubr.f32.gmra.mrb[12].mxu0 %v28779_v10 }
  0xcd   :  { %686 = vmatprep.mubr.f32.mxu0 %v34064_v0 }
  0xd0   :  { %689 = vmatmul.mubr.f32.gmra.mrb[14].mxu0 %v28805_v38 }
  0xd1   :  { %694 = vmatprep.mubr.f32.mxu0 %v34064_v0 }
  0xd4   :  { %697 = vmatmul.mubr.f32.gmra.mrb[16].mxu0 %v28828_v53 }
  0xd5   :  { %702 = vmatprep.mubr.f32.mxu0 %v34064_v0 }
  0xd8   :  { %705 = vmatmul.mubr.f32.gmra.mrb[18].mxu0 %v28838_v61 }
  0xd9   :  { %710 = vmatprep.mubr.f32.mxu0 %v34064_v0 }
  0xdc   :  { %713 = vmatmul.mubr.f32.gmra.mrb[20].mxu0 %v28862_v27 }
  0xdd   :  { %718 = vmatprep.mubr.f32.mxu0 %v34064_v0 }
  0xe0   :  { %721 = vmatmul.mubr.f32.gmra.mrb[22].mxu0 %v28874_v30 }
  0xe1   :  { %726 = vmatprep.mubr.f32.mxu0 %v34064_v0 }
  0xe4   :  { %729 = vmatmul.mubr.f32.gmra.mrb[24].mxu0 %v28886_v2 }
  0xe5   :  { %734 = vmatprep.mubr.f32.mxu0 %v34064_v0 }
  0xe8   :  { %737 = vmatmul.mubr.f32.gmra.mrb[26].mxu0 %v28898_v4 }
  0xe9   :  { %742 = vmatprep.mubr.f32.mxu0 %v34064_v0 }
  0xec   :  { %745 = vmatmul.mubr.f32.gmra.mrb[28].mxu0 %v28910_v49 }
  0xed   :  { %750 = vmatprep.mubr.f32.mxu0 %v34064_v0 }
  0xf0   :  { %753 = vmatmul.mubr.f32.gmra.mrb[30].mxu0 %v28922_v35 }
  0xf1   :  { %825 = vmatprep.mubr.f32.mxu0 %v34064_v0 }
  0xf4   :  { %829 = vmatmul.mubr.f32.vlgmr.msra.gmra.mrb[0].mxu0 %v28668_v28 }
  0xf5   :  { %834 = vmatprep.mubr.f32.mxu0 %v34064_v0  ;;  %977 = vmatpush1.msra.mxu0 %v34542_v29  ;;  %v34545_v29 = vld [vmem:[#allocation13_spill] sm:$0xff] }
  0xf6   :  { %1154 = vmatprep.subr.mxu0 %v28644_v20 }
  0xf8   :  { %838 = vmatmul.mubr.f32.gmra.mrb[2].mxu0 %v28680_v32 }
  0xf9   :  { %843 = vmatprep.mubr.f32.mxu0 %v34064_v0 }
  0xfc   :  { %847 = vmatmul.mubr.f32.gmra.mrb[4].mxu0 %v28696_v39 }
  0xfd   :  { %852 = vmatprep.mubr.f32.mxu0 %v34064_v0 }
 0x100   :  { %856 = vmatmul.mubr.f32.gmra.mrb[6].mxu0 %v28713_v46 }
 0x101   :  { %861 = vmatprep.mubr.f32.mxu0 %v34064_v0 }
 0x104   :  { %865 = vmatmul.mubr.f32.gmra.mrb[8].mxu0 %v28752_v62 }
 0x105   :  { %870 = vmatprep.mubr.f32.mxu0 %v34064_v0 }
 0x108   :  { %874 = vmatmul.mubr.f32.gmra.mrb[10].mxu0 %v28767_v6 }
 0x109   :  { %879 = vmatprep.mubr.f32.mxu0 %v34064_v0 }
 0x10c   :  { %883 = vmatmul.mubr.f32.gmra.mrb[12].mxu0 %v28802_v36 }
 0x10d   :  { %888 = vmatprep.mubr.f32.mxu0 %v34064_v0 }
 0x110   :  { %892 = vmatmul.mubr.f32.gmra.mrb[14].mxu0 %v28825_v52 }
 0x111   :  { %897 = vmatprep.mubr.f32.mxu0 %v34064_v0 }
 0x114   :  { %901 = vmatmul.mubr.f32.gmra.mrb[16].mxu0 %v28847_v7 }
 0x115   :  { %906 = vmatprep.mubr.f32.mxu0 %v34064_v0 }
 0x118   :  { %910 = vmatmul.mubr.f32.gmra.mrb[18].mxu0 %v28859_v24 }
 0x119   :  { %915 = vmatprep.mubr.f32.mxu0 %v34064_v0 }
 0x11c   :  { %919 = vmatmul.mubr.f32.gmra.mrb[20].mxu0 %v28871_v56 }
 0x11d   :  { %924 = vmatprep.mubr.f32.mxu0 %v34064_v0 }
 0x120   :  { %928 = vmatmul.mubr.f32.gmra.mrb[22].mxu0 %v28883_v19 }
 0x121   :  { %933 = vmatprep.mubr.f32.mxu0 %v34064_v0 }
 0x124   :  { %937 = vmatmul.mubr.f32.gmra.mrb[24].mxu0 %v28895_v51 }
 0x125   :  { %942 = vmatprep.mubr.f32.mxu0 %v34064_v0 }
 0x128   :  { %946 = vmatmul.mubr.f32.gmra.mrb[26].mxu0 %v28907_v37 }
 0x129   :  { %951 = vmatprep.mubr.f32.mxu0 %v34064_v0 }
 0x12c   :  { %955 = vmatmul.mubr.f32.gmra.mrb[28].mxu0 %v28919_v45 }
 0x12d   :  { %960 = vmatprep.mubr.f32.mxu0 %v34064_v0 }
 0x130   :  { %964 = vmatmul.mubr.f32.gmra.mrb[30].mxu0 %v28931_v3  ;;  %v34548_v3 = vld [vmem:[#allocation16_spill] sm:$0xff] }
 0x131   :  { %1040 = vmatprep.mubr.f32.mxu0 %v34064_v0 }
 0x134   :  { %1042 = vmatmul.mubr.f32.vlgmr.msra.gmra.mrb[0].mxu0 %v28633_v13 }
 0x135   :  { %1047 = vmatprep.mubr.f32.mxu0 %v34064_v0  ;;  %1156 = vmatpush1.msra.mxu0 %v28631_v12  ;;  %v29080_v12 = vsub.f32 %v28615_v5, %v28629_v11 }
 0x136   :  { %21079 = vmatprep.subr.mxu0 %v28629_v11 }
 0x137   :  { %v29085_v20 = vand.u32 4294901760, %v29080_v12 }
 0x138   :  { %1049 = vmatmul.mubr.f32.gmra.mrb[2].mxu0 %v28640_v17 }
 0x139   :  { %1054 = vmatprep.mubr.f32.mxu0 %v34064_v0  ;;  %v1562_v21 = vsub.f32 %v29080_v12, %v29085_v20 }
 0x13b   :  { %v1563_v5 = vand.u32 4294901760, %v1562_v21  ;;  %v34546_v21 = vld [vmem:[#allocation14_spill] sm:$0xff] }
 0x13c   :  { %1056 = vmatmul.mubr.f32.gmra.mrb[4].mxu0 %v28652_v23 }
 0x13d   :  { %1061 = vmatprep.mubr.f32.mxu0 %v34064_v0 }
 0x140   :  { %1063 = vmatmul.mubr.f32.gmra.mrb[6].mxu0 %v28662_v26 }
 0x141   :  { %1068 = vmatprep.mubr.f32.mxu0 %v34064_v0 }
 0x144   :  { %1070 = vmatmul.mubr.f32.gmra.mrb[8].mxu0 %v28685_v34 }
 0x145   :  { %1075 = vmatprep.mubr.f32.mxu0 %v34064_v0 }
 0x148   :  { %1077 = vmatmul.mubr.f32.gmra.mrb[10].mxu0 %v28718_v48 }
 0x149   :  { %1082 = vmatprep.mubr.f32.mxu0 %v34064_v0 }
 0x14c   :  { %1084 = vmatmul.mubr.f32.gmra.mrb[12].mxu0 %v28731_v54 }
 0x14d   :  { %1089 = vmatprep.mubr.f32.mxu0 %v34064_v0 }
 0x150   :  { %1091 = vmatmul.mubr.f32.gmra.mrb[14].mxu0 %v28754_v63 }
 0x151   :  { %1096 = vmatprep.mubr.f32.mxu0 %v34064_v0 }
 0x154   :  { %1098 = vmatmul.mubr.f32.gmra.mrb[16].mxu0 %v28758_v1 }
 0x155   :  { %1103 = vmatprep.mubr.f32.mxu0 %v34064_v0 }
 0x158   :  { %1105 = vmatmul.mubr.f32.gmra.mrb[18].mxu0 %v28781_v14 }
 0x159   :  { %1110 = vmatprep.mubr.f32.mxu0 %v34064_v0 }
 0x15c   :  { %1112 = vmatmul.mubr.f32.gmra.mrb[20].mxu0 %v28784_v15 }
 0x15d   :  { %1117 = vmatprep.mubr.f32.mxu0 %v34064_v0 }
 0x160   :  { %1119 = vmatmul.mubr.f32.gmra.mrb[22].mxu0 %v28807_v40 }
 0x161   :  { %1124 = vmatprep.mubr.f32.mxu0 %v34064_v0 }
 0x164   :  { %1126 = vmatmul.mubr.f32.gmra.mrb[24].mxu0 %v28810_v41 }
 0x165   :  { %1131 = vmatprep.mubr.f32.mxu0 %v34064_v0 }
 0x168   :  { %1133 = vmatmul.mubr.f32.gmra.mrb[26].mxu0 %v28830_v55 }
 0x169   :  { %1138 = vmatprep.mubr.f32.mxu0 %v34064_v0 }
 0x16c   :  { %1140 = vmatmul.mubr.f32.gmra.mrb[28].mxu0 %v28833_v57 }
 0x16d   :  { %1145 = vmatprep.mubr.f32.mxu0 %v34064_v0 }
 0x170   :  { %1147 = vmatmul.mubr.f32.gmra.mrb[30].mxu0 %v28849_v9 }
 0x171   :  { %1219 = vmatprep.mubr.f32.mxu0 %v34064_v0 }
 0x174   :  { %1221 = vmatmul.mubr.f32.vlgmr.msra.gmra.mrb[0].mxu0 %v28633_v13 }
 0x175   :  { %1226 = vmatprep.mubr.f32.mxu0 %v34064_v0  ;;  %21080 = vmatpush3.msra.mxu0 %v28629_v11 }
 0x176   :  { %21105 = vmatprep.subr.mxu0 %v1563_v5 }
 0x178   :  { %1228 = vmatmul.mubr.f32.gmra.mrb[2].mxu0 %v28640_v17 }
 0x179   :  { %1233 = vmatprep.mubr.f32.mxu0 %v34064_v0 }
 0x17c   :  { %1235 = vmatmul.mubr.f32.gmra.mrb[4].mxu0 %v28652_v23 }
 0x17d   :  { %1240 = vmatprep.mubr.f32.mxu0 %v34064_v0 }
 0x180   :  { %1242 = vmatmul.mubr.f32.gmra.mrb[6].mxu0 %v28662_v26 }
 0x181   :  { %1247 = vmatprep.mubr.f32.mxu0 %v34064_v0 }
 0x184   :  { %1249 = vmatmul.mubr.f32.gmra.mrb[8].mxu0 %v28685_v34 }
 0x185   :  { %1254 = vmatprep.mubr.f32.mxu0 %v34064_v0 }
 0x188   :  { %1256 = vmatmul.mubr.f32.gmra.mrb[10].mxu0 %v28718_v48 }
 0x189   :  { %1261 = vmatprep.mubr.f32.mxu0 %v34064_v0 }
 0x18c   :  { %1263 = vmatmul.mubr.f32.gmra.mrb[12].mxu0 %v28731_v54 }
 0x18d   :  { %1268 = vmatprep.mubr.f32.mxu0 %v34064_v0 }
 0x190   :  { %1270 = vmatmul.mubr.f32.gmra.mrb[14].mxu0 %v28754_v63 }
 0x191   :  { %1275 = vmatprep.mubr.f32.mxu0 %v34064_v0 }
 0x194   :  { %1277 = vmatmul.mubr.f32.gmra.mrb[16].mxu0 %v28758_v1 }
 0x195   :  { %1282 = vmatprep.mubr.f32.mxu0 %v34064_v0 }
 0x198   :  { %1284 = vmatmul.mubr.f32.gmra.mrb[18].mxu0 %v28781_v14 }
 0x199   :  { %1289 = vmatprep.mubr.f32.mxu0 %v34064_v0 }
 0x19c   :  { %1291 = vmatmul.mubr.f32.gmra.mrb[20].mxu0 %v28784_v15 }
 0x19d   :  { %1296 = vmatprep.mubr.f32.mxu0 %v34064_v0 }
 0x1a0   :  { %1298 = vmatmul.mubr.f32.gmra.mrb[22].mxu0 %v28807_v40 }
 0x1a1   :  { %1303 = vmatprep.mubr.f32.mxu0 %v34064_v0 }
 0x1a4   :  { %1305 = vmatmul.mubr.f32.gmra.mrb[24].mxu0 %v28810_v41 }
 0x1a5   :  { %1310 = vmatprep.mubr.f32.mxu0 %v34064_v0 }
 0x1a8   :  { %1312 = vmatmul.mubr.f32.gmra.mrb[26].mxu0 %v28830_v55 }
 0x1a9   :  { %1317 = vmatprep.mubr.f32.mxu0 %v34064_v0 }
 0x1ac   :  { %1319 = vmatmul.mubr.f32.gmra.mrb[28].mxu0 %v28833_v57 }
 0x1ad   :  { %1324 = vmatprep.mubr.f32.mxu0 %v34064_v0  ;;  %v34547_v0 = vld [vmem:[#allocation15_spill] sm:$0xff] }
 0x1b0   :  { %1326 = vmatmul.mubr.f32.gmra.mrb[30].mxu0 %v28849_v9 }
 0x1b1   :  { %21081 = vmatprep.mubr.f32.mxu0 %v28703_v42  ;;  %v34549_v42 = vld [vmem:[#allocation17_spill] sm:$0xff] }
 0x1b4   :  { %21082 = vmatmul.mubr.f32.vlgmr.msra.gmra.mrb[32].mxu0 %v28725_v50  ;;  %v34550_v50 = vld [vmem:[#allocation18_spill] sm:$0xff] }
 0x1b5   :  { %21084 = vmatprep.mubr.f32.mxu0 %v28747_v60  ;;  %21106 = vmatpush3.msra.mxu0 %v1563_v5  ;;  %v34551_v60 = vld [vmem:[#allocation19_spill] sm:$0xff]  ;;  %v29341_v5 = vld [vmem:[#allocation2 + $0xc0] sm:$0xff] }
 0x1b6   :  { %21131 = vmatprep.subr.mxu0 %v29080_v12 }
 0x1b8   :  { %21085 = vmatmul.mubr.f32.gmra.mrb[34].mxu0 %v34543_v59  ;;  %v29343_v59 = vld [vmem:[#allocation2 + $0xd8] sm:$0xff] }
 0x1b9   :  { %21087 = vmatprep.mubr.f32.mxu0 %v34544_v18  ;;  %v34074_v18 = vand.u32 4294901760, %v29341_v5 }
 0x1bc   :  { %21088 = vmatmul.mubr.f32.gmra.mrb[36].mxu0 %v34545_v29  ;;  %v34073_v29 = vand.u32 4294901760, %v29343_v59 }
 0x1bd   :  { %21090 = vmatprep.mubr.f32.mxu0 %v34546_v21 }
 0x1c0   :  { %21091 = vmatmul.mubr.f32.gmra.mrb[38].mxu0 %v34547_v0  ;;  %v29157_v0 = vpop.f32.mrb[0].mxu1 }
 0x1c1   :  { %21093 = vmatprep.mubr.f32.mxu0 %v34548_v3  ;;  %v29334_v3 = vld [vmem:[#allocation2 + $0xc8] sm:$0xff] }
 0x1c4   :  { %21094 = vmatmul.mubr.f32.gmra.mrb[40].mxu0 %v34549_v42 }
 0x1c5   :  { %21096 = vmatprep.mubr.f32.mxu0 %v34550_v50 }
 0x1c8   :  { %21097 = vmatmul.mubr.f32.gmra.mrb[42].mxu0 %v34551_v60  ;;  %v29362_v60 = vpack.c.bf16 %v34073_v29, %v34074_v18 }
 0x1c9   :  { %21099 = vmatprep.mubr.f32.mxu0 %v28914_v43 }
 0x1cc   :  { %21100 = vmatmul.mubr.f32.gmra.mrb[44].mxu0 %v28926_v44 }
 0x1cd   :  { %21102 = vmatprep.mubr.f32.mxu0 %v28935_v8 }
 0x1d0   :  { %21103 = vmatmul.mubr.f32.gmra.mrb[46].mxu0 %v28941_v16  ;;  %v29336_v16 = vld [vmem:[#allocation2 + $0xe0] sm:$0xff] }
 0x1d1   :  { %21107 = vmatprep.mubr.f32.mxu0 %v28633_v13 }
 0x1d4   :  { %21108 = vmatmul.mubr.f32.vlgmr.msra.gmra.mrb[32].mxu0 %v28640_v17 }
 0x1d5   :  { %21110 = vmatprep.mubr.f32.mxu0 %v28652_v23  ;;  %21132 = vmatpush3.msra.mxu0 %v29080_v12  ;;  %v34071_v12 = vand.u32 4294901760, %v29334_v3 }
 0x1d6   :  { %21157 = vmatprep.subr.mxu0 %v28629_v11 }
 0x1d8   :  { %21111 = vmatmul.mubr.f32.gmra.mrb[34].mxu0 %v28662_v26 }
 0x1d9   :  { %21113 = vmatprep.mubr.f32.mxu0 %v28685_v34 }
 0x1dc   :  { %21114 = vmatmul.mubr.f32.gmra.mrb[36].mxu0 %v28718_v48 }
 0x1dd   :  { %21116 = vmatprep.mubr.f32.mxu0 %v28731_v54 }
 0x1e0   :  { %21117 = vmatmul.mubr.f32.gmra.mrb[38].mxu0 %v28754_v63 }
 0x1e1   :  { %21119 = vmatprep.mubr.f32.mxu0 %v28758_v1 }
 0x1e4   :  { %21120 = vmatmul.mubr.f32.gmra.mrb[40].mxu0 %v28781_v14 }
 0x1e5   :  { %21122 = vmatprep.mubr.f32.mxu0 %v28784_v15 }
 0x1e8   :  { %21123 = vmatmul.mubr.f32.gmra.mrb[42].mxu0 %v28807_v40 }
 0x1e9   :  { %21125 = vmatprep.mubr.f32.mxu0 %v28810_v41 }
 0x1ec   :  { %21126 = vmatmul.mubr.f32.gmra.mrb[44].mxu0 %v28830_v55 }
 0x1ed   :  { %21128 = vmatprep.mubr.f32.mxu0 %v28833_v57 }
 0x1f0   :  { %21129 = vmatmul.mubr.f32.gmra.mrb[46].mxu0 %v28849_v9 }
 0x1f1   :  { %21133 = vmatprep.mubr.f32.mxu0 %v28650_v22  ;;  %v29179_v22 = vld [vmem:[#allocation2 + $0x20] sm:$0xff] }
 0x1f4   :  { %21134 = vmatmul.mubr.f32.vlgmr.msra.gmra.mrb[32].mxu0 %v28660_v25 }
 0x1f5   :  { %21136 = vmatprep.mubr.f32.mxu0 %v28675_v31  ;;  %21158 = vmatpush3.msra.mxu0 %v28629_v11  ;;  %v29177_v11 = vld [vmem:[#allocation2 + $0x8] sm:$0xff]  ;;  %v2568_v31 = vand.u32 4294901760, %v29179_v22 }
 0x1f6   :  { %21183 = vmatprep.subr.mxu0 %v29085_v20  ;;  %v2564_v25 = vand.u32 4294901760, %v29177_v11 }
 0x1f8   :  { %21137 = vmatmul.mubr.f32.gmra.mrb[34].mxu0 %v28683_v33 }
 0x1f9   :  { %21139 = vmatprep.mubr.f32.mxu0 %v28716_v47 }
 0x1fc   :  { %21140 = vmatmul.mubr.f32.gmra.mrb[36].mxu0 %v28740_v58 }
 0x1fd   :  { %21142 = vmatprep.mubr.f32.mxu0 %v28779_v10  ;;  %v29260_v10 = vpop.f32.mrb[1].mxu1 }
 0x200   :  { %21143 = vmatmul.mubr.f32.gmra.mrb[38].mxu0 %v28805_v38 }
 0x201   :  { %21145 = vmatprep.mubr.f32.mxu0 %v28828_v53 }
 0x204   :  { %21146 = vmatmul.mubr.f32.gmra.mrb[40].mxu0 %v28838_v61 }
 0x205   :  { %21148 = vmatprep.mubr.f32.mxu0 %v28862_v27  ;;  %v29311_v27 = vld [vmem:[#allocation2 + $0x90] sm:$0xff] }
 0x208   :  { %21149 = vmatmul.mubr.f32.gmra.mrb[42].mxu0 %v28874_v30  ;;  %v29191_v30 = vpack.c.bf16 %v2568_v31, %v2564_v25 }
 0x209   :  { %21151 = vmatprep.mubr.f32.mxu0 %v28886_v2 }
 0x20a   :  { %34552 = vst [vmem:[#allocation11_spill] sm:$0xff] %v29191_v30 }
 0x20c   :  { %21152 = vmatmul.mubr.f32.gmra.mrb[44].mxu0 %v28898_v4 }
 0x20d   :  { %21154 = vmatprep.mubr.f32.mxu0 %v28910_v49  ;;  %v29283_v49 = vld [vmem:[#allocation2 + $0x78] sm:$0xff] }
 0x20e   :  { %v34077_v53 = vand.u32 4294901760, %v29283_v49 }
 0x210   :  { %21155 = vmatmul.mubr.f32.gmra.mrb[46].mxu0 %v28922_v35  ;;  %v29274_v35 = vld [vmem:[#allocation2 + $0x68] sm:$0xff] }
 0x211   :  { %21159 = vmatprep.mubr.f32.mxu0 %v28668_v28  ;;  %v29207_v28 = vld [vmem:[#allocation2] sm:$0xff]  ;;  %v34080_v38 = vand.u32 4294901760, %v29274_v35 }
 0x212   :  { %v34068_v33 = vand.u32 4294901760, %v29207_v28 }
 0x214   :  { %21160 = vmatmul.mubr.f32.vlgmr.msra.gmra.mrb[32].mxu0 %v28680_v32  ;;  %v29209_v32 = vld [vmem:[#allocation2 + $0x18] sm:$0xff] }
 0x215   :  { %21162 = vmatprep.mubr.f32.mxu0 %v28696_v39  ;;  %21184 = vmatpush3.msra.mxu0 %v29085_v20  ;;  %v34067_v39 = vand.u32 4294901760, %v29209_v32  ;;  %v34070_v20 = vand.u32 4294901760, %v29336_v16 }
 0x216   :  { %23924 = vmatprep.subr.bf16.mxu0 %v29191_v30 }
 0x217   :  { %v29221_v47 = vpack.c.bf16 %v34067_v39, %v34068_v33  ;;  %v29354_v42 = vpack.c.bf16 %v34070_v20, %v34071_v12  ;;  %v29366_v39 = vld [vmem:[#allocation2 + $0x110] sm:$0xff]  ;;  %v29373_v12 = vld [vmem:[#allocation2 + $0x108] sm:$0xff] }
 0x218   :  { %21163 = vmatmul.mubr.f32.gmra.mrb[34].mxu0 %v28713_v46  ;;  %v34553_v46 = vld [vmem:[#allocation20_spill] sm:$0xff]  ;;  %v29371_v20 = vld [vmem:[#allocation2 + $0xf0] sm:$0xff]  ;;  %v34085_v29 = vand.u32 4294901760, %v29373_v12 }
 0x219   :  { %21165 = vmatprep.mubr.f32.mxu0 %v28752_v62  ;;  %34554 = vst [vmem:[#allocation12_spill] sm:$0xff] %v29221_v47  ;;  %34562 = vst [vmem:[#allocation19_spill] sm:$0xff] %v29354_v42 }
 0x21a   :  { %34563 = vst [vmem:[#allocation20_spill] sm:$0xff] %v29362_v60 }
 0x21c   :  { %21166 = vmatmul.mubr.f32.gmra.mrb[36].mxu0 %v28767_v6 }
 0x21d   :  { %21168 = vmatprep.mubr.f32.mxu0 %v28802_v36  ;;  %v29276_v36 = vld [vmem:[#allocation2 + $0x80] sm:$0xff] }
 0x220   :  { %21169 = vmatmul.mubr.f32.gmra.mrb[38].mxu0 %v28825_v52 }
 0x221   :  { %21171 = vmatprep.mubr.f32.mxu0 %v28847_v7  ;;  %v29304_v7 = vld [vmem:[#allocation2 + $0x98] sm:$0xff] }
 0x222   :  { %v34076_v2 = vand.u32 4294901760, %v29304_v7 }
 0x224   :  { %21172 = vmatmul.mubr.f32.gmra.mrb[40].mxu0 %v28859_v24 }
 0x225   :  { %21174 = vmatprep.mubr.f32.mxu0 %v28871_v56  ;;  %v29313_v56 = vld [vmem:[#allocation2 + $0xa8] sm:$0xff] }
 0x228   :  { %21175 = vmatmul.mubr.f32.gmra.mrb[42].mxu0 %v28883_v19  ;;  %v34072_v19 = vand.u32 4294901760, %v29311_v27 }
 0x229   :  { %21177 = vmatprep.mubr.f32.mxu0 %v28895_v51  ;;  %v34069_v51 = vand.u32 4294901760, %v29313_v56 }
 0x22b   :  { %v29332_v44 = vpack.c.bf16 %v34069_v51, %v34072_v19  ;;  %v34082_v51 = vand.u32 4294901760, %v29366_v39  ;;  %v34086_v19 = vand.u32 4294901760, %v29371_v20 }
 0x22c   :  { %21178 = vmatmul.mubr.f32.gmra.mrb[44].mxu0 %v28907_v37 }
 0x22d   :  { %21180 = vmatprep.mubr.f32.mxu0 %v28919_v45  ;;  %34561 = vst [vmem:[#allocation18_spill] sm:$0xff] %v29332_v44 }
 0x230   :  { %21181 = vmatmul.mubr.f32.gmra.mrb[46].mxu0 %v34553_v46  ;;  %v29364_v46 = vld [vmem:[#allocation2 + $0xf8] sm:$0xff] }
 0x231   :  { %21185 = vmatprep.mubr.f32.mxu0 %v28633_v13  ;;  %v34083_v33 = vand.u32 4294901760, %v29364_v46 }
 0x234   :  { %21186 = vmatmul.mubr.f32.vlgmr.msra.gmra.mrb[32].mxu0 %v28640_v17 }
 0x235   :  { %21188 = vmatprep.mubr.f32.mxu0 %v28652_v23  ;;  %23926 = vmatpush1.bf16.msra.mxu0 %v29221_v47 }
 0x238   :  { %21189 = vmatmul.mubr.f32.gmra.mrb[34].mxu0 %v28662_v26 }
 0x239   :  { %21191 = vmatprep.mubr.f32.mxu0 %v28685_v34  ;;  %v34555_v34 = vmov 0.0  }
 0x23c   :  { %21192 = vmatmul.mubr.f32.gmra.mrb[36].mxu0 %v28718_v48  ;;  %v29248_v48 = vld [vmem:[#allocation2 + $0x38] sm:$0xff] }
 0x23d   :  { %21194 = vmatprep.mubr.f32.mxu0 %v28731_v54  ;;  %v29250_v54 = vld [vmem:[#allocation2 + $0x50] sm:$0xff]  ;;  %v34088_v58 = vand.u32 4294901760, %v29248_v48 }
 0x23e   :  { %v34087_v62 = vand.u32 4294901760, %v29250_v54  ;;  %v34576_v47 = vand.u32 4294901760, %v29250_v54 }
 0x240   :  { %21195 = vmatmul.mubr.f32.gmra.mrb[38].mxu0 %v28754_v63  ;;  %v29254_v63 = vld [vmem:[#allocation2 + $0x30] sm:$0xff] }
 0x241   :  { %21197 = vmatprep.mubr.f32.mxu0 %v28758_v1  ;;  %v29256_v1 = vld [vmem:[#allocation2 + $0x48] sm:$0xff]  ;;  %v34084_v6 = vand.u32 4294901760, %v29254_v63  ;;  %v34577_v30 = vand.u32 4294901760, %v29254_v63 }
 0x242   :  { %v34081_v8 = vand.u32 4294901760, %v29256_v1 }
 0x244   :  { %21198 = vmatmul.mubr.f32.gmra.mrb[40].mxu0 %v28781_v14  ;;  %v29266_v14 = vpack.c.bf16 %v34087_v62, %v34088_v58  ;;  %v29419_v58 = vsub.f32 %v29177_v11, %v2564_v25 }
 0x245   :  { %21200 = vmatprep.mubr.f32.mxu0 %v28784_v15  ;;  %v29272_v15 = vpack.c.bf16 %v34081_v8, %v34084_v6 }
 0x246   :  { %34556 = vst [vmem:[#allocation13_spill] sm:$0xff] %v29266_v14  ;;  %23928 = vmatprep.subr.bf16.mxu0 %v29266_v14  ;;  %v34575_v14 = vand.u32 4294901760, %v29248_v48 }
 0x247   :  { %v29234_v13 = vpop.f32.mrb[0].mxu0  ;;  %34557 = vst [vmem:[#allocation14_spill] sm:$0xff] %v29272_v15  ;;  %23930 = vmatpush1.bf16.msra.mxu0 %v29272_v15 }
 0x248   :  { %v29236_v17 = vpop.f32.mrb[1].mxu0  ;;  %21201 = vmatmul.mubr.f32.gmra.mrb[42].mxu0 %v28807_v40  ;;  %v34079_v40 = vand.u32 4294901760, %v29276_v36 }
 0x249   :  { %21203 = vmatprep.mubr.f32.mxu0 %v28810_v41  ;;  %v29281_v41 = vld [vmem:[#allocation2 + $0x60] sm:$0xff] }
 0x24a   :  { %v34078_v52 = vand.u32 4294901760, %v29281_v41 }
 0x24b   :  { %v29240_v23 = vpop.f32.mrb[2].mxu0 }
 0x24c   :  { %v29242_v26 = vpop.f32.mrb[3].mxu0  ;;  %21204 = vmatmul.mubr.f32.gmra.mrb[44].mxu0 %v28830_v55  ;;  %v29288_v55 = vpop.f32.mrb[2].mxu1  ;;  %v29302_v4 = vpack.c.bf16 %v34077_v53, %v34078_v52  ;;  %v29392_v53 = vpack.c.bf16 %v34085_v29, %v34086_v19  ;;  %v29394_v52 = vld [vmem:[#allocation2 + $0x128] sm:$0xff] }
 0x24d   :  { %21206 = vmatprep.mubr.f32.mxu0 %v28833_v57  ;;  %v29294_v57 = vpack.c.bf16 %v34079_v40, %v34080_v38  ;;  %v29296_v61 = vpop.f32.mrb[3].mxu1  ;;  %v29396_v40 = vld [vmem:[#allocation2 + $0x140] sm:$0xff]  ;;  %v34096_v38 = vand.u32 4294901760, %v29394_v52 }
 0x24e   :  { %34559 = vst [vmem:[#allocation16_spill] sm:$0xff] %v29302_v4  ;;  %v29318_v37 = vpop.f32.mrb[4].mxu1  ;;  %34565 = vst [vmem:[#allocation22_spill] sm:$0xff] %v29392_v53  ;;  %v34095_v8 = vand.u32 4294901760, %v29396_v40 }
 0x24f   :  { %34558 = vst [vmem:[#allocation15_spill] sm:$0xff] %v29294_v57  ;;  %23932 = vmatprep.subr.bf16.mxu0 %v29294_v57  ;;  %v29326_v45 = vpop.f32.mrb[5].mxu1 }
 0x250   :  { %21207 = vmatmul.mubr.f32.gmra.mrb[46].mxu0 %v28849_v9  ;;  %v29306_v9 = vld [vmem:[#allocation2 + $0xb0] sm:$0xff]  ;;  %v29348_v21 = vpop.f32.mrb[6].mxu1  ;;  %v29414_v62 = vpack.c.bf16 %v34095_v8, %v34096_v38  ;;  %v29434_v8 = vld [vmem:[#allocation2 + $0x158] sm:$0xff] }
 0x251   :  { %2660 = vmatprep.mubr.f32.mxu0 %v34555_v34  ;;  %v34075_v24 = vand.u32 4294901760, %v29306_v9  ;;  %23934 = vmatpush1.bf16.msra.mxu0 %v29302_v4  ;;  %v29356_v50 = vpop.f32.mrb[7].mxu1  ;;  %v29436_v38 = vld [vmem:[#allocation2 + $0x170] sm:$0xff]  ;;  %v34117_v11 = vand.u32 4294901760, %v29434_v8  ;;  %v29486_v34 = vsub.f32 %v29254_v63, %v34577_v30  ;;  %v34584_v63 = vand.u32 4294901760, %v29281_v41 }
 0x252   :  { %v29378_v18 = vpop.f32.mrb[8].mxu1  ;;  %34566 = vst [vmem:[#allocation23_spill] sm:$0xff] %v29414_v62  ;;  %v34115_v25 = vand.u32 4294901760, %v29436_v38 }
 0x253   :  { %v29324_v43 = vpack.c.bf16 %v34075_v24, %v34076_v2  ;;  %v29384_v24 = vpack.c.bf16 %v34082_v51, %v34083_v33  ;;  %v29386_v2 = vpop.f32.mrb[9].mxu1  ;;  %v29401_v51 = vld [vmem:[#allocation2 + $0x120] sm:$0xff]  ;;  %v29403_v33 = vld [vmem:[#allocation2 + $0x138] sm:$0xff] }
 0x254   :  { %v29408_v19 = vpop.f32.mrb[10].mxu1  ;;  %v34568_v29 = vand.u32 4294901760, %v29401_v51 }
 0x255   :  { %34560 = vst [vmem:[#allocation17_spill] sm:$0xff] %v29324_v43  ;;  %23936 = vmatprep.subr.bf16.mxu0 %v29324_v43  ;;  %34564 = vst [vmem:[#allocation21_spill] sm:$0xff] %v29384_v24  ;;  %v29426_v6 = vpop.f32.mrb[11].mxu1 }
 0x256   :  { %23938 = vmatpush1.bf16.msra.mxu0 %v29332_v44  ;;  %34567 = vst [vmem:[#allocation24_spill] sm:$0xff] %v29426_v6  ;;  %v29450_v43 = vpop.f32.mrb[12].mxu1 }
 0x257   :  { %23940 = vmatprep.subr.bf16.mxu0 %v29354_v42  ;;  %v34116_v42 = vand.u32 4294901760, %v29419_v58  ;;  %34571 = vst [vmem:[#allocation26_spill] sm:$0xff] %v29450_v43  ;;  %v29464_v57 = vpop.f32.mrb[13].mxu1 }
 0x258   :  { %34573 = vst [vmem:[#allocation28_spill] sm:$0xff] %v29464_v57 }
 0x259   :  { %v2686_v4 = vsub.f32 %v29419_v58, %v34116_v42 }
 0x25a   :  { %23942 = vmatpush1.bf16.msra.mxu0 %v29362_v60 }
 0x25b   :  { %23944 = vmatprep.subr.bf16.mxu0 %v29384_v24  ;;  %v34569_v24 = vand.u32 4294901760, %v29403_v33  ;;  %v2687_v42 = vand.u32 4294901760, %v2686_v4  ;;  %v29495_v4 = vpop.f32.mrb[14].mxu1 }
 0x25c   :  { %34579 = vst [vmem:[#allocation30_spill] sm:$0xff] %v29495_v4 }
 0x25d   :  { %v29432_v60 = vpack.c.bf16 %v34569_v24, %v34568_v29 }
 0x25e   :  { %23946 = vmatpush1.bf16.msra.mxu0 %v29392_v53  ;;  %v29424_v53 = vsub.f32 %v29179_v22, %v2568_v31  ;;  %v29441_v22 = vld [vmem:[#allocation2 + $0x150] sm:$0xff]  ;;  %v29443_v31 = vld [vmem:[#allocation2 + $0x168] sm:$0xff] }
 0x25f   :  { %34570 = vst [vmem:[#allocation25_spill] sm:$0xff] %v29432_v60  ;;  %23948 = vmatprep.subr.bf16.mxu0 %v29414_v62  ;;  %v34124_v24 = vand.u32 4294901760, %v29441_v22  ;;  %v34123_v29 = vand.u32 4294901760, %v29443_v31  ;;  %v29456_v62 = vpack.c.bf16 %v34115_v25, %v34117_v11  ;;  %v29475_v25 = vsub.f32 %v29248_v48, %v34575_v14 }
 0x260   :  { %v34120_v44 = vand.u32 4294901760, %v29424_v53  ;;  %v34578_v48 = vand.u32 4294901760, %v29256_v1 }
 0x261   :  { %34572 = vst [vmem:[#allocation27_spill] sm:$0xff] %v29456_v62  ;;  %v29470_v15 = vpack.c.bf16 %v34123_v29, %v34124_v24  ;;  %v34127_v29 = vand.u32 4294901760, %v29475_v25  ;;  %v29501_v24 = vpop.f32.mrb[15].mxu1 }
 0x262   :  { %23950 = vmatpush1.bf16.msra.mxu0 %v29432_v60  ;;  %v2698_v60 = vsub.f32 %v29424_v53, %v34120_v44  ;;  %v29481_v44 = vsub.f32 %v29250_v54, %v34576_v47  ;;  %v29493_v14 = vsub.f32 %v29256_v1, %v34578_v48  ;;  %v34133_v54 = vand.u32 4294901760, %v29486_v34  ;;  %34581 = vst [vmem:[#allocation32_spill] sm:$0xff] %v29501_v24 }
 0x263   :  { %34574 = vst [vmem:[#allocation29_spill] sm:$0xff] %v29470_v15  ;;  %23952 = vmatprep.subr.bf16.mxu0 %v29456_v62  ;;  %v2710_v30 = vsub.f32 %v29475_v25, %v34127_v29  ;;  %v34583_v48 = vand.u32 4294901760, %v29276_v36  ;;  %v34586_v24 = vand.u32 4294901760, %v29283_v49 }
 0x264   :  { %v2699_v11 = vand.u32 4294901760, %v2698_v60  ;;  %v34132_v47 = vand.u32 4294901760, %v29481_v44 }
 0x265   :  { %v29522_v29 = vsub.f32 %v29276_v36, %v34583_v48 }
 0x266   :  { %23954 = vmatpush1.bf16.msra.mxu0 %v29470_v15  ;;  %v29497_v60 = vpack.c.bf16 %v2699_v11, %v2687_v42  ;;  %v34582_v15 = vand.u32 4294901760, %v29274_v35  ;;  %v2722_v42 = vsub.f32 %v29481_v44, %v34132_v47  ;;  %v2716_v11 = vsub.f32 %v29486_v34, %v34133_v54 }
 0x267   :  { %v29536_v54 = vsub.f32 %v29283_v49, %v34586_v24  ;;  %v34135_v48 = vand.u32 4294901760, %v29522_v29 }
 0x268   :  { %34580 = vst [vmem:[#allocation31_spill] sm:$0xff] %v29497_v60  ;;  %v29510_v1 = vsub.f32 %v29274_v35, %v34582_v15  ;;  %23956 = vmatprep.subr.bf16.mxu0 %v29497_v60  ;;  %v29527_v15 = vsub.f32 %v29281_v41, %v34584_v63  ;;  %v2711_v35 = vand.u32 4294901760, %v2710_v30  ;;  %v34585_v60 = vand.u32 4294901760, %v29493_v14 }
 0x269   :  { %v2723_v4 = vand.u32 4294901760, %v2722_v42  ;;  %v2717_v36 = vand.u32 4294901760, %v2716_v11  ;;  %v34587_v63 = vand.u32 4294901760, %v29304_v7  ;;  %v2746_v24 = vsub.f32 %v29522_v29, %v34135_v48 }
 0x26a   :  { %v2728_v62 = vsub.f32 %v29493_v14, %v34585_v60  ;;  %v34134_v47 = vand.u32 4294901760, %v29510_v1  ;;  %v34137_v57 = vand.u32 4294901760, %v29527_v15  ;;  %v34589_v42 = vand.u32 4294901760, %v29306_v9 }
 0x26b   :  { %v29547_v43 = vsub.f32 %v29304_v7, %v34587_v63  ;;  %v29549_v49 = vpack.c.bf16 %v2723_v4, %v2711_v35  ;;  %v34591_v7 = vand.u32 4294901760, %v29536_v54  ;;  %v2747_v63 = vand.u32 4294901760, %v2746_v24 }
 0x26c   :  { %v2729_v41 = vand.u32 4294901760, %v2728_v62  ;;  %v2734_v30 = vsub.f32 %v29510_v1, %v34134_v47  ;;  %v2740_v62 = vsub.f32 %v29527_v15, %v34137_v57  ;;  %v29560_v11 = vsub.f32 %v29306_v9, %v34589_v42 }
 0x26d   :  { %34588 = vst [vmem:[#allocation33_spill] sm:$0xff] %v29549_v49  ;;  %v2752_v4 = vsub.f32 %v29536_v54, %v34591_v7  ;;  %v34138_v35 = vand.u32 4294901760, %v29547_v43  ;;  %v34592_v57 = vand.u32 4294901760, %v29311_v27  ;;  %v34596_v24 = vand.u32 4294901760, %v29334_v3 }
 0x26e   :  { %v29562_v47 = vpack.c.bf16 %v2729_v41, %v2717_v36  ;;  %v2735_v60 = vand.u32 4294901760, %v2734_v30  ;;  %v2741_v48 = vand.u32 4294901760, %v2740_v62  ;;  %v34139_v49 = vand.u32 4294901760, %v29560_v11 }
 0x26f   :  { %v29572_v6 = vsub.f32 %v29311_v27, %v34592_v57  ;;  %v2753_v9 = vand.u32 4294901760, %v2752_v4  ;;  %v2758_v36 = vsub.f32 %v29547_v43, %v34138_v35  ;;  %v34594_v41 = vand.u32 4294901760, %v29313_v56 }
 0x270   :  { %34590 = vst [vmem:[#allocation34_spill] sm:$0xff] %v29562_v47  ;;  %v29585_v62 = vsub.f32 %v29334_v3, %v34596_v24  ;;  %v29587_v42 = vpack.c.bf16 %v2747_v63, %v2735_v60  ;;  %v2770_v57 = vsub.f32 %v29560_v11, %v34139_v49  ;;  %v34599_v7 = vand.u32 4294901760, %v29336_v16 }
 0x271   :  { %34593 = vst [vmem:[#allocation35_spill] sm:$0xff] %v29572_v6  ;;  %v29580_v30 = vsub.f32 %v29313_v56, %v34594_v41  ;;  %v34142_v27 = vand.u32 4294901760, %v29572_v6  ;;  %v29598_v56 = vpack.c.bf16 %v2753_v9, %v2741_v48  ;;  %v2759_v41 = vand.u32 4294901760, %v2758_v36 }
 0x272   :  { %34597 = vst [vmem:[#allocation37_spill] sm:$0xff] %v29585_v62  ;;  %34598 = vst [vmem:[#allocation38_spill] sm:$0xff] %v29587_v42  ;;  %v29596_v4 = vsub.f32 %v29336_v16, %v34599_v7  ;;  %v34143_v3 = vand.u32 4294901760, %v29585_v62  ;;  %v2771_v60 = vand.u32 4294901760, %v2770_v57  ;;  %v34602_v49 = vand.u32 4294901760, %v29341_v5 }
 0x273   :  { %34595 = vst [vmem:[#allocation36_spill] sm:$0xff] %v29580_v30  ;;  %34601 = vst [vmem:[#allocation40_spill] sm:$0xff] %v29598_v56  ;;  %v34141_v35 = vand.u32 4294901760, %v29580_v30  ;;  %v2764_v63 = vsub.f32 %v29572_v6, %v34142_v27  ;;  %v34604_v9 = vand.u32 4294901760, %v29343_v59  ;;  %v34606_v57 = vand.u32 4294901760, %v29364_v46 }
 0x274   :  { %34600 = vst [vmem:[#allocation39_spill] sm:$0xff] %v29596_v4  ;;  %v34147_v24 = vand.u32 4294901760, %v29596_v4  ;;  %v29609_v42 = vsub.f32 %v29341_v5, %v34602_v49  ;;  %v2782_v48 = vsub.f32 %v29585_v62, %v34143_v3  ;;  %v29627_v5 = vpack.c.bf16 %v2771_v60, %v2759_v41 }
 0x275   :  { %v2776_v16 = vsub.f32 %v29580_v30, %v34141_v35  ;;  %v29620_v36 = vsub.f32 %v29343_v59, %v34604_v9  ;;  %v29625_v7 = vsub.f32 %v29364_v46, %v34606_v57  ;;  %v2765_v49 = vand.u32 4294901760, %v2764_v63 }
 0x276   :  { %34603 = vst [vmem:[#allocation41_spill] sm:$0xff] %v29609_v42  ;;  %34608 = vst [vmem:[#allocation44_spill] sm:$0xff] %v29627_v5  ;;  %v2794_v35 = vsub.f32 %v29596_v4, %v34147_v24  ;;  %v34146_v27 = vand.u32 4294901760, %v29609_v42  ;;  %v2783_v56 = vand.u32 4294901760, %v2782_v48  ;;  %v34609_v41 = vand.u32 4294901760, %v29366_v39 }
 0x277   :  { %34605 = vst [vmem:[#allocation42_spill] sm:$0xff] %v29620_v36  ;;  %34607 = vst [vmem:[#allocation43_spill] sm:$0xff] %v29625_v7  ;;  %v2777_v3 = vand.u32 4294901760, %v2776_v16  ;;  %v34148_v47 = vand.u32 4294901760, %v29620_v36  ;;  %v34150_v59 = vand.u32 4294901760, %v29625_v7  ;;  %v34611_v63 = vand.u32 4294901760, %v29371_v20 }
 0x278   :  { %v2795_v9 = vand.u32 4294901760, %v2794_v35  ;;  %v2788_v46 = vsub.f32 %v29609_v42, %v34146_v27  ;;  %v29641_v60 = vsub.f32 %v29366_v39, %v34609_v41  ;;  %v34614_v27 = vand.u32 4294901760, %v29373_v12 }
 0x279   :  { %v29646_v57 = vsub.f32 %v29371_v20, %v34611_v63  ;;  %v29648_v16 = vpack.c.bf16 %v2777_v3, %v2765_v49  ;;  %v2800_v35 = vsub.f32 %v29620_v36, %v34148_v47  ;;  %v2806_v48 = vsub.f32 %v29625_v7, %v34150_v59 }
 0x27a   :  { %34610 = vst [vmem:[#allocation45_spill] sm:$0xff] %v29641_v60  ;;  %v29659_v39 = vsub.f32 %v29373_v12, %v34614_v27  ;;  %v29661_v41 = vpack.c.bf16 %v2795_v9, %v2783_v56  ;;  %v2789_v24 = vand.u32 4294901760, %v2788_v46  ;;  %v34152_v20 = vand.u32 4294901760, %v29641_v60 }
 0x27b   :  { %34612 = vst [vmem:[#allocation46_spill] sm:$0xff] %v29646_v57  ;;  %34613 = vst [vmem:[#allocation47_spill] sm:$0xff] %v29648_v16  ;;  %v34151_v3 = vand.u32 4294901760, %v29646_v57  ;;  %v2801_v49 = vand.u32 4294901760, %v2800_v35  ;;  %v2807_v63 = vand.u32 4294901760, %v2806_v48  ;;  %v34617_v16 = vand.u32 4294901760, %v29394_v52 }
 0x27c   :  { %34615 = vst [vmem:[#allocation48_spill] sm:$0xff] %v29659_v39  ;;  %34616 = vst [vmem:[#allocation49_spill] sm:$0xff] %v29661_v41  ;;  %v34154_v47 = vand.u32 4294901760, %v29659_v39  ;;  %v2818_v12 = vsub.f32 %v29641_v60, %v34152_v20  ;;  %v34619_v56 = vand.u32 4294901760, %v29396_v40  ;;  %v34621_v46 = vand.u32 4294901760, %v29401_v51 }
 0x27d   :  { %v29669_v59 = vsub.f32 %v29394_v52, %v34617_v16  ;;  %v2812_v27 = vsub.f32 %v29646_v57, %v34151_v3  ;;  %v29687_v52 = vpack.c.bf16 %v2801_v49, %v2789_v24  ;;  %v34624_v3 = vand.u32 4294901760, %v29403_v33 }
 0x27e   :  { %v29680_v9 = vsub.f32 %v29396_v40, %v34619_v56  ;;  %v29685_v35 = vsub.f32 %v29401_v51, %v34621_v46  ;;  %v2824_v16 = vsub.f32 %v29659_v39, %v34154_v47  ;;  %v2819_v40 = vand.u32 4294901760, %v2818_v12 }
 0x27f   :  { %34618 = vst [vmem:[#allocation50_spill] sm:$0xff] %v29669_v59  ;;  %34623 = vst [vmem:[#allocation53_spill] sm:$0xff] %v29687_v52  ;;  %v34156_v48 = vand.u32 4294901760, %v29669_v59  ;;  %v29696_v20 = vsub.f32 %v29403_v33, %v34624_v3  ;;  %v2813_v56 = vand.u32 4294901760, %v2812_v27  ;;  %v34626_v47 = vand.u32 4294901760, %v29434_v8 }
 0x280   :  { %34620 = vst [vmem:[#allocation51_spill] sm:$0xff] %v29680_v9  ;;  %34622 = vst [vmem:[#allocation52_spill] sm:$0xff] %v29685_v35  ;;  %v34157_v41 = vand.u32 4294901760, %v29680_v9  ;;  %v34159_v51 = vand.u32 4294901760, %v29685_v35  ;;  %v2825_v46 = vand.u32 4294901760, %v2824_v16  ;;  %v29709_v33 = vpack.c.bf16 %v2819_v40, %v2807_v63 }
 0x281   :  { %34625 = vst [vmem:[#allocation54_spill] sm:$0xff] %v29696_v20  ;;  %v2830_v24 = vsub.f32 %v29669_v59, %v34156_v48  ;;  %v29707_v52 = vsub.f32 %v29434_v8, %v34626_v47  ;;  %v34629_v27 = vand.u32 4294901760, %v29436_v38  ;;  %v34632_v8 = vand.u32 4294901760, %v29696_v20 }
 0x282   :  { %34628 = vst [vmem:[#allocation56_spill] sm:$0xff] %v29709_v33  ;;  %v2842_v3 = vsub.f32 %v29680_v9, %v34157_v41  ;;  %v2836_v12 = vsub.f32 %v29685_v35, %v34159_v51  ;;  %v29722_v48 = vpack.c.bf16 %v2825_v46, %v2813_v56  ;;  %v34633_v51 = vand.u32 4294901760, %v29441_v22 }
 0x283   :  { %34627 = vst [vmem:[#allocation55_spill] sm:$0xff] %v29707_v52  ;;  %v29720_v16 = vsub.f32 %v29436_v38, %v34629_v27  ;;  %v2831_v49 = vand.u32 4294901760, %v2830_v24  ;;  %v2848_v47 = vsub.f32 %v29696_v20, %v34632_v8  ;;  %v34161_v63 = vand.u32 4294901760, %v29707_v52 }
 0x284   :  { %34631 = vst [vmem:[#allocation58_spill] sm:$0xff] %v29722_v48  ;;  %v2843_v40 = vand.u32 4294901760, %v2842_v3  ;;  %v2837_v41 = vand.u32 4294901760, %v2836_v12  ;;  %v29732_v5 = vsub.f32 %v29441_v22, %v34633_v51  ;;  %v34635_v46 = vand.u32 4294901760, %v29443_v31 }
 0x285   :  { %34630 = vst [vmem:[#allocation57_spill] sm:$0xff] %v29720_v16  ;;  %v34164_v33 = vand.u32 4294901760, %v29720_v16  ;;  %v2849_v38 = vand.u32 4294901760, %v2848_v47  ;;  %v2854_v56 = vsub.f32 %v29707_v52, %v34161_v63 }
 0x286   :  { %34634 = vst [vmem:[#allocation59_spill] sm:$0xff] %v29732_v5  ;;  %v29740_v24 = vsub.f32 %v29443_v31, %v34635_v46  ;;  %v29742_v27 = vpack.c.bf16 %v2843_v40, %v2831_v49  ;;  %v34163_v12 = vand.u32 4294901760, %v29732_v5 }
 0x287   :  { %v2866_v3 = vsub.f32 %v29720_v16, %v34164_v33  ;;  %v29748_v22 = vpack.c.bf16 %v2849_v38, %v2837_v41  ;;  %v2855_v51 = vand.u32 4294901760, %v2854_v56  ;;  %v29761_v41 = vpack.c.bf16 %v29424_v53, %v29419_v58 }
 0x288   :  { %34636 = vst [vmem:[#allocation60_spill] sm:$0xff] %v29740_v24  ;;  %34637 = vst [vmem:[#allocation61_spill] sm:$0xff] %v29742_v27  ;;  %v34162_v8 = vand.u32 4294901760, %v29740_v24  ;;  %v2860_v63 = vsub.f32 %v29732_v5, %v34163_v12  ;;  %v29767_v56 = vpack.c.bf16 %v29481_v44, %v29475_v25  ;;  %v29803_v12 = vpack.c.bf16 %v29659_v39, %v29646_v57  ;;  %v29824_v39 = vld [vmem:[%s34046_s1 + $0x18] sm:$0xff] }
 0x289   :  { %34638 = vst [vmem:[#allocation62_spill] sm:$0xff] %v29748_v22  ;;  %v2867_v47 = vand.u32 4294901760, %v2866_v3  ;;  %34640 = vst [vmem:[#allocation64_spill] sm:$0xff] %v29761_v41  ;;  %v29771_v3 = vpack.c.bf16 %v29493_v14, %v29486_v34  ;;  %v29807_v33 = vpack.c.bf16 %v29680_v9, %v29669_v59  ;;  %v29829_v9 = vld [vmem:[%s34046_s1] sm:$0xff] }
 0x28a   :  { %v2872_v31 = vsub.f32 %v29740_v24, %v34162_v8  ;;  %v2861_v40 = vand.u32 4294901760, %v2860_v63  ;;  %34642 = vst [vmem:[#allocation66_spill] sm:$0xff] %v29767_v56  ;;  %v29779_v63 = vpack.c.bf16 %v29536_v54, %v29527_v15  ;;  %v29799_v8 = vpack.c.bf16 %v29641_v60, %v29625_v7  ;;  %34651 = vst [vmem:[#allocation75_spill] sm:$0xff] %v29803_v12 }
 0x28b   :  { %v29757_v49 = vpack.c.bf16 %v2867_v47, %v2855_v51  ;;  %34643 = vst [vmem:[#allocation67_spill] sm:$0xff] %v29771_v3  ;;  %v29775_v51 = vpack.c.bf16 %v29522_v29, %v29510_v1  ;;  %v29783_v47 = vpack.c.bf16 %v29560_v11, %v29547_v43  ;;  %34652 = vst [vmem:[#allocation76_spill] sm:$0xff] %v29807_v33 }
 0x28c   :  { %v2873_v46 = vand.u32 4294901760, %v2872_v31  ;;  %34645 = vst [vmem:[#allocation69_spill] sm:$0xff] %v29779_v63  ;;  %v29787_v31 = vpack.c.bf16 %v29580_v30, %v29572_v6  ;;  %34650 = vst [vmem:[#allocation74_spill] sm:$0xff] %v29799_v8  ;;  %v29819_v60 = vpack.c.bf16 %v29740_v24, %v29732_v5  ;;  %v29838_v24 = vld [vmem:[%s34046_s1 + $0x20] sm:$0xff]  ;;  %v29843_v5 = vld [vmem:[%s34046_s1 + $0x8] sm:$0xff] }
 0x28d   :  { %34639 = vst [vmem:[#allocation63_spill] sm:$0xff] %v29757_v49  ;;  %34644 = vst [vmem:[#allocation68_spill] sm:$0xff] %v29775_v51 }
 0x28e   :  { %v29763_v38 = vpack.c.bf16 %v2873_v46, %v2861_v40  ;;  %34646 = vst [vmem:[#allocation70_spill] sm:$0xff] %v29783_v47  ;;  %34647 = vst [vmem:[#allocation71_spill] sm:$0xff] %v29787_v31  ;;  %v29791_v40 = vpack.c.bf16 %v29596_v4, %v29585_v62  ;;  %v29795_v46 = vpack.c.bf16 %v29620_v36, %v29609_v42 }
 0x28f   :  { %v29811_v4 = vpack.c.bf16 %v29696_v20, %v29685_v35  ;;  %v29815_v36 = vpack.c.bf16 %v29720_v16, %v29707_v52  ;;  %34655 = vst [vmem:[#allocation79_spill] sm:$0xff] %v29819_v60  ;;  %34656 = vst [vmem:[#allocation80_spill] sm:$0xff] %v29824_v39  ;;  %v2432_v20 = vadd.f32 %v29824_v39, %v29240_v23 }
 0x290   :  { %34641 = vst [vmem:[#allocation65_spill] sm:$0xff] %v29763_v38  ;;  %34648 = vst [vmem:[#allocation72_spill] sm:$0xff] %v29791_v40  ;;  %v2429_v16 = vadd.f32 %v29829_v9, %v29234_v13  ;;  %v2433_v23 = vadd.f32 %v29838_v24, %v29242_v26  ;;  %v2430_v13 = vadd.f32 %v29843_v5, %v29236_v17  ;;  %v29852_v17 = vld [vmem:[%s34046_s1 + $0x28] sm:$0xff] }
 0x291   :  { %34649 = vst [vmem:[#allocation73_spill] sm:$0xff] %v29795_v46  ;;  %34653 = vst [vmem:[#allocation77_spill] sm:$0xff] %v29811_v4  ;;  %v19551_v52 = vmul.f32 -1.442695, %v2432_v20 }
 0x292   :  { %34654 = vst [vmem:[#allocation78_spill] sm:$0xff] %v29815_v36  ;;  %34657 = vst [vmem:[#allocation81_spill] sm:$0xff] %v29829_v9  ;;  %v19550_v35 = vmul.f32 -1.442695, %v2429_v16  ;;  %v19553_v20 = vmul.f32 -1.442695, %v2433_v23 }
 0x293   :  { %28282 = vpow2.f32 %v19551_v52  ;;  %34658 = vst [vmem:[#allocation82_spill] sm:$0xff] %v29838_v24  ;;  %34659 = vst [vmem:[#allocation83_spill] sm:$0xff] %v29843_v5  ;;  %v19552_v52 = vmul.f32 -1.442695, %v2430_v13  ;;  %v29858_v13 = vld [vmem:[%s34051_s6] ss:$0 sm:$0xff] }
 0x294   :  { %28284 = vpow2.f32 %v19550_v35  ;;  %34660 = vst [vmem:[#allocation84_spill] sm:$0xff] %v29858_v13 }
 0x295   :  { %28286 = vpow2.f32 %v19553_v20 }
 0x296   :  { %28288 = vpow2.f32 %v19552_v52 }
 0x29d   :  { %v28283_v16 = vpop.eup %28282 }
 0x29e   :  { %v28285_v35 = vpop.eup %28284  ;;  %v2537_v9 = vadd.f32 1.0, %v28283_v16 }
 0x29f   :  { %v2536_v39 = vadd.f32 1.0, %v28285_v35  ;;  %v28287_v59 = vpop.eup %28286 }
 0x2a0   :  { %28290 = vrcp.f32 %v2537_v9  ;;  %v28289_v57 = vpop.eup %28288  ;;  %v2549_v7 = vadd.f32 1.0, %v28287_v59  ;;  %v29863_v59 = vld [vmem:[%s34046_s1 + $0x10] sm:$0xff] }
 0x2a1   :  { %28292 = vrcp.f32 %v2536_v39  ;;  %v2548_v62 = vadd.f32 1.0, %v28289_v57 }
 0x2a2   :  { %28294 = vrcp.f32 %v2549_v7 }
 0x2a3   :  { %28296 = vrcp.f32 %v2548_v62 }
 0x2aa   :  { %v28291_v42 = vpop.eup %28290 }
 0x2ab   :  { %v28293_v26 = vpop.eup %28292  ;;  %v2555_v20 = vmul.f32 %v28291_v42, %v29858_v13 }
 0x307   :  { %v21187_v30 = vpop.f32.mrb[32].mxu0 }
 0x308   :  { %v27695_v23 = vadd.f32 %v29157_v0, %v21187_v30  ;;  %v2167_v39 = vpop.f32.mrb[33].mxu0  ;;  %v2554_v30 = vmul.f32 %v28293_v26, %v29858_v13 }
 0x309   :  { %v27696_v57 = vadd.f32 %v29260_v10, %v2167_v39 }
 0x30a   :  { %v2434_v9 = vadd.f32 %v27695_v23, %v29852_v17 }
 0x30b   :  { %v2431_v0 = vadd.f32 %v27696_v57, %v29863_v59  ;;  %v21190_v16 = vpop.f32.mrb[34].mxu0 }
 0x30c   :  { %v2557_v52 = vadd.f32 %v2555_v20, %v2434_v9  ;;  %v27697_v35 = vadd.f32 %v29288_v55, %v21190_v16  ;;  %v2179_v5 = vpop.f32.mrb[35].mxu0 }
 0x30d   :  { %v2556_v24 = vadd.f32 %v2554_v30, %v2431_v0  ;;  %v27698_v6 = vadd.f32 %v29296_v61, %v2179_v5  ;;  %v34665_v5 = vand.u32 4294901760, %v29207_v28 }
 0x30e   :  { %28298 = vtanh.f32 %v2557_v52  ;;  %v29873_v10 = vadd.f32 %v27697_v35, %v29852_v17 }
 0x30f   :  { %28300 = vtanh.f32 %v2556_v24  ;;  %v29876_v42 = vadd.f32 %v27698_v6, %v29863_v59  ;;  %v21193_v62 = vpop.f32.mrb[36].mxu0  ;;  %v29889_v24 = vsub.f32 %v29207_v28, %v34665_v5  ;;  %v34666_v6 = vand.u32 4294901760, %v29209_v32 }
 0x310   :  { %34661 = vst [vmem:[#allocation85_spill] sm:$0xff] %v29873_v10  ;;  %v27699_v7 = vadd.f32 %v29318_v37, %v21193_v62  ;;  %v2191_v26 = vpop.f32.mrb[37].mxu0  ;;  %v28295_v37 = vpop.eup %28294 }
 0x311   :  { %34662 = vst [vmem:[#allocation86_spill] sm:$0xff] %v29876_v42  ;;  %v27700_v23 = vadd.f32 %v29326_v45, %v2191_v26  ;;  %v29894_v57 = vsub.f32 %v29209_v32, %v34666_v6  ;;  %v28297_v20 = vpop.eup %28296  ;;  %v2561_v16 = vsub.f32 1.0, %v28295_v37  ;;  %v34188_v35 = vand.u32 4294901760, %v29889_v24 }
 0x312   :  { %v29881_v55 = vadd.f32 %v27699_v7, %v29852_v17  ;;  %v2560_v7 = vsub.f32 1.0, %v28297_v20 }
 0x313   :  { %v29884_v39 = vadd.f32 %v27700_v23, %v29863_v59  ;;  %v21196_v61 = vpop.f32.mrb[38].mxu0  ;;  %v34187_v32 = vand.u32 4294901760, %v29894_v57 }
 0x314   :  { %34663 = vst [vmem:[#allocation87_spill] sm:$0xff] %v29881_v55  ;;  %v27701_v45 = vadd.f32 %v29348_v21, %v21196_v61  ;;  %v2203_v9 = vpop.f32.mrb[39].mxu0  ;;  %v30005_v55 = vpack.c.bf16 %v29894_v57, %v29889_v24 }
 0x315   :  { %34664 = vst [vmem:[#allocation88_spill] sm:$0xff] %v29884_v39  ;;  %v27702_v0 = vadd.f32 %v29356_v50, %v2203_v9 }
 0x316   :  { %v29899_v30 = vadd.f32 %v27701_v45, %v29852_v17  ;;  %34699 = vst [vmem:[#allocation101_spill] sm:$0xff] %v30005_v55 }
 0x317   :  { %v29902_v52 = vadd.f32 %v27702_v0, %v29863_v59  ;;  %v21199_v28 = vpop.f32.mrb[40].mxu0 }
 0x318   :  { %34667 = vst [vmem:[#allocation89_spill] sm:$0xff] %v29899_v30  ;;  %v28299_v62 = vpop.eup %28298  ;;  %v27703_v21 = vadd.f32 %v29378_v18, %v21199_v28  ;;  %v2215_v26 = vpop.f32.mrb[41].mxu0  ;;  %v2692_v18 = vsub.f32 %v29889_v24, %v34188_v35  ;;  %v34673_v28 = vld [vmem:[#allocation24_spill] sm:$0xff] }
 0x319   :  { %34668 = vst [vmem:[#allocation90_spill] sm:$0xff] %v29902_v52  ;;  %v28301_v23 = vpop.eup %28300  ;;  %v29907_v61 = vmul.f32 %v28299_v62, %v2561_v16  ;;  %v27704_v50 = vadd.f32 %v29386_v2, %v2215_v26  ;;  %v2704_v2 = vsub.f32 %v29894_v57, %v34187_v32 }
 0x31a   :  { %v29910_v5 = vmul.f32 %v28301_v23, %v2560_v7  ;;  %v29913_v6 = vadd.f32 %v27703_v21, %v29852_v17  ;;  %v2693_v32 = vand.u32 4294901760, %v2692_v18 }
 0x31b   :  { %34669 = vst [vmem:[#allocation91_spill] sm:$0xff] %v29907_v61  ;;  %v29916_v37 = vand.u32 4294901760, %v29907_v61  ;;  %v29919_v45 = vadd.f32 %v27704_v50, %v29863_v59  ;;  %v21202_v9 = vpop.f32.mrb[42].mxu0 }
 0x31c   :  { %34670 = vst [vmem:[#allocation92_spill] sm:$0xff] %v29910_v5  ;;  %34671 = vst [vmem:[#allocation93_spill] sm:$0xff] %v29913_v6  ;;  %v29928_v20 = vand.u32 4294901760, %v29910_v5  ;;  %v27705_v0 = vadd.f32 %v29408_v19, %v21202_v9  ;;  %v2227_v16 = vpop.f32.mrb[43].mxu0  ;;  %v2705_v19 = vand.u32 4294901760, %v2704_v2  ;;  %v34678_v9 = vld [vmem:[#allocation26_spill] sm:$0xff] }
 0x31d   :  { %34672 = vst [vmem:[#allocation94_spill] sm:$0xff] %v29919_v45  ;;  %v27706_v62 = vadd.f32 %v34673_v28, %v2227_v16  ;;  %v29934_v7 = vsub.f32 %v29907_v61, %v29916_v37 }
 0x31e   :  { %v29937_v21 = vadd.f32 %v27705_v0, %v29852_v17  ;;  %v29941_v26 = vsub.f32 %v29910_v5, %v29928_v20  ;;  %v34679_v0 = vld [vmem:[#allocation28_spill] sm:$0xff] }
 0x31f   :  { %34674 = vst [vmem:[#allocation24_spill] sm:$0xff] %v29934_v7  ;;  %v29944_v23 = vadd.f32 %v27706_v62, %v29863_v59  ;;  %v21205_v50 = vpop.f32.mrb[44].mxu0  ;;  %v29951_v6 = vand.u32 4294901760, %v29934_v7 }
 0x320   :  { %34675 = vst [vmem:[#allocation95_spill] sm:$0xff] %v29937_v21  ;;  %34676 = vst [vmem:[#allocation96_spill] sm:$0xff] %v29941_v26  ;;  %v27707_v35 = vadd.f32 %v34678_v9, %v21205_v50  ;;  %v2239_v16 = vpop.f32.mrb[45].mxu0  ;;  %v29948_v28 = vand.u32 4294901760, %v29941_v26  ;;  %v29962_v50 = vpack.c.bf16 %v2705_v19, %v2693_v32  ;;  %v34683_v9 = vld [vmem:[#allocation30_spill] sm:$0xff]  ;;  %v34688_v32 = vmov 0.0  }
 0x321   :  { %34677 = vst [vmem:[#allocation97_spill] sm:$0xff] %v29944_v23  ;;  %v27708_v21 = vadd.f32 %v34679_v0, %v2239_v16  ;;  %v2675_v16 = vsub.f32 %v29934_v7, %v29951_v6  ;;  %v34685_v0 = vld [vmem:[#allocation32_spill] sm:$0xff]  ;;  %v34689_v19 = vld [vmem:[#allocation33_spill] sm:$0xff] }
 0x322   :  { %v29955_v45 = vadd.f32 %v27707_v35, %v29852_v17  ;;  %v2664_v62 = vsub.f32 %v29941_v26, %v29948_v28  ;;  %34682 = vst [vmem:[#allocation98_spill] sm:$0xff] %v29962_v50 }
 0x323   :  { %v29960_v18 = vadd.f32 %v27708_v21, %v29863_v59  ;;  %v21208_v2 = vpop.f32.mrb[46].mxu0 }
 0x324   :  { %34680 = vst [vmem:[#allocation26_spill] sm:$0xff] %v29955_v45  ;;  %v27709_v23 = vadd.f32 %v34683_v9, %v21208_v2  ;;  %v2251_v30 = vpop.f32.mrb[47].mxu0  ;;  %v29965_v52 = vand.u32 4294901760, %v2664_v62  ;;  %v29980_v62 = vand.u32 4294901760, %v2675_v16  ;;  %v34691_v2 = vld [vmem:[#allocation34_spill] sm:$0xff]  ;;  %v34696_v9 = vld [vmem:[#allocation49_spill] sm:$0xff] }
 0x325   :  { %34681 = vst [vmem:[#allocation28_spill] sm:$0xff] %v29960_v18  ;;  %v27710_v35 = vadd.f32 %v34685_v0, %v2251_v30  ;;  %v34693_v30 = vld [vmem:[#allocation40_spill] sm:$0xff]  ;;  %v34697_v0 = vld [vmem:[#allocation53_spill] sm:$0xff] }
 0x326   :  { %34684 = vst [vmem:[#allocation30_spill] sm:$0xff] %v29965_v52  ;;  %v29971_v45 = vadd.f32 %v27709_v23, %v29852_v17  ;;  %2666 = vmatmul.mubr.f32.vlgmr.msra.gmra.mrb[4].mxu0 %v29965_v52  ;;  %34690 = vst [vmem:[#allocation100_spill] sm:$0xff] %v29980_v62  ;;  %v34692_v17 = vld [vmem:[#allocation38_spill] sm:$0xff]  ;;  %v34695_v23 = vld [vmem:[#allocation47_spill] sm:$0xff] }
 0x327   :  { %v29975_v21 = vadd.f32 %v27710_v35, %v29863_v59  ;;  %23958 = vmatpush1.bf16.msra.mxu0 %v29962_v50  ;;  %2671 = vmatprep.mubr.f32.mxu0 %v34688_v32  ;;  %v34694_v59 = vld [vmem:[#allocation44_spill] sm:$0xff]  ;;  %v29996_v35 = vld [vmem:[#allocation2 + $0x10] sm:$0xff] }
 0x328   :  { %34686 = vst [vmem:[#allocation32_spill] sm:$0xff] %v29971_v45  ;;  %23960 = vmatprep.subr.bf16.mxu0 %v34689_v19  ;;  %v34698_v16 = vld [vmem:[#allocation56_spill] sm:$0xff]  ;;  %v29998_v45 = vld [vmem:[#allocation2 + $0x28] sm:$0xff]  ;;  %v34710_v50 = vld [vmem:[#allocation11_spill] sm:$0xff] }
 0x329   :  { %34687 = vst [vmem:[#allocation99_spill] sm:$0xff] %v29975_v21  ;;  %v34198_v21 = vand.u32 4294901760, %v29996_v35  ;;  %v34197_v18 = vand.u32 4294901760, %v29998_v45 }
 0x32a   :  { %2677 = vmatmul.mubr.f32.gmra.mrb[6].mxu0 %v29980_v62 }
 0x32b   :  { %23962 = vmatpush1.bf16.msra.mxu0 %v34691_v2  ;;  %2907 = vmatprep.mubr.f32.mxu0 %v34688_v32  ;;  %v30012_v39 = vpack.c.bf16 %v34197_v18, %v34198_v21  ;;  %v30032_v21 = vld [vmem:[#allocation2 + $0x70] sm:$0xff] }
 0x32c   :  { %23964 = vmatprep.subr.bf16.mxu0 %v34692_v17 }
 0x32d   :  { %24500 = vmatprep.subr.bf16.mxu1 %v30012_v39 }
 0x32e   :  { %24502 = vmatpush3.bf16.msra.mxu1 %v30012_v39 }
 0x32f   :  { %23966 = vmatpush1.bf16.msra.mxu0 %v34693_v30 }
 0x330   :  { %23968 = vmatprep.subr.bf16.mxu0 %v34694_v59 }
 0x333   :  { %23970 = vmatpush1.bf16.msra.mxu0 %v34695_v23 }
 0x334   :  { %23972 = vmatprep.subr.bf16.mxu0 %v34696_v9 }
 0x337   :  { %23974 = vmatpush1.bf16.msra.mxu0 %v34697_v0 }
 0x338   :  { %23976 = vmatprep.subr.bf16.mxu0 %v34698_v16 }
 0x33b   :  { %23978 = vmatpush1.bf16.msra.mxu0 %v29722_v48 }
 0x33c   :  { %23980 = vmatprep.subr.bf16.mxu0 %v29742_v27 }
 0x33f   :  { %23982 = vmatpush1.bf16.msra.mxu0 %v29748_v22  ;;  %v30016_v22 = vld [vmem:[#allocation2 + $0x58] sm:$0xff] }
 0x340   :  { %23984 = vmatprep.subr.bf16.mxu0 %v29757_v49  ;;  %v30014_v49 = vld [vmem:[#allocation2 + $0x40] sm:$0xff]  ;;  %v34205_v27 = vand.u32 4294901760, %v30016_v22 }
 0x341   :  { %v34708_v2 = vand.u32 4294901760, %v30014_v49 }
 0x343   :  { %23986 = vmatpush1.bf16.msra.mxu0 %v29763_v38  ;;  %v34206_v38 = vand.u32 4294901760, %v30014_v49 }
 0x344   :  { %23988 = vmatprep.subr.bf16.mxu0 %v29761_v41  ;;  %v30034_v41 = vld [vmem:[#allocation2 + $0x88] sm:$0xff] }
 0x345   :  { %v30029_v18 = vpack.c.bf16 %v34205_v27, %v34206_v38  ;;  %v34211_v48 = vand.u32 4294901760, %v30034_v41  ;;  %v30050_v38 = vld [vmem:[#allocation2 + $0xa0] sm:$0xff] }
 0x346   :  { %2909 = vmatmul.mubr.f32.vlgmr.msra.gmra.mrb[4].mxu0 %v29928_v20  ;;  %v34216_v16 = vand.u32 4294901760, %v30050_v38 }
 0x347   :  { %23990 = vmatpush1.bf16.msra.mxu0 %v30005_v55  ;;  %2914 = vmatprep.mubr.f32.mxu0 %v34688_v32  ;;  %v34212_v55 = vand.u32 4294901760, %v30032_v21 }
 0x348   :  { %23992 = vmatprep.subr.bf16.mxu0 %v29767_v56  ;;  %24504 = vmatprep.subr.bf16.mxu1 %v30029_v18  ;;  %v30052_v56 = vld [vmem:[#allocation2 + $0xb8] sm:$0xff] }
 0x349   :  { %v30047_v27 = vpack.c.bf16 %v34211_v48, %v34212_v55  ;;  %24506 = vmatpush3.bf16.msra.mxu1 %v30029_v18  ;;  %v30066_v55 = vld [vmem:[#allocation2 + $0xd0] sm:$0xff]  ;;  %v34717_v61 = vand.u32 4294901760, %v30052_v56 }
 0x34a   :  { %2916 = vmatmul.mubr.f32.gmra.mrb[6].mxu0 %v29916_v37  ;;  %v34222_v0 = vand.u32 4294901760, %v30066_v55 }
 0x34b   :  { %23994 = vmatpush1.bf16.msra.mxu0 %v29771_v3  ;;  %3050 = vmatprep.mubr.f32.mxu0 %v34688_v32  ;;  %34700 = vst [vmem:[#allocation102_spill] sm:$0xff] %v30047_v27  ;;  %v34215_v3 = vand.u32 4294901760, %v30052_v56  ;;  %v30203_v42 = vsub.f32 %v30052_v56, %v34717_v61 }
 0x34c   :  { %23996 = vmatprep.subr.bf16.mxu0 %v29775_v51  ;;  %24508 = vmatprep.subr.bf16.mxu1 %v30047_v27  ;;  %v30068_v51 = vld [vmem:[#allocation2 + $0xe8] sm:$0xff] }
 0x34d   :  { %v30063_v48 = vpack.c.bf16 %v34215_v3, %v34216_v16  ;;  %24510 = vmatpush3.bf16.msra.mxu1 %v30047_v27  ;;  %v34221_v9 = vand.u32 4294901760, %v30068_v51  ;;  %v30082_v16 = vld [vmem:[#allocation2 + $0x100] sm:$0xff]  ;;  %v34745_v27 = vand.u32 4294901760, %v29424_v53 }
 0x34f   :  { %23998 = vmatpush1.bf16.msra.mxu0 %v29779_v63  ;;  %34701 = vst [vmem:[#allocation103_spill] sm:$0xff] %v30063_v48  ;;  %24512 = vmatprep.subr.bf16.mxu1 %v30063_v48  ;;  %v30079_v3 = vpack.c.bf16 %v34221_v9, %v34222_v0  ;;  %v34228_v63 = vand.u32 4294901760, %v30082_v16  ;;  %v30098_v0 = vld [vmem:[#allocation2 + $0x130] sm:$0xff] }
 0x350   :  { %24000 = vmatprep.subr.bf16.mxu0 %v29783_v47  ;;  %v30084_v47 = vld [vmem:[#allocation2 + $0x118] sm:$0xff] }
 0x351   :  { %34702 = vst [vmem:[#allocation104_spill] sm:$0xff] %v30079_v3  ;;  %24514 = vmatpush3.bf16.msra.mxu1 %v30063_v48  ;;  %v34227_v23 = vand.u32 4294901760, %v30084_v47 }
 0x352   :  { %24516 = vmatprep.subr.bf16.mxu1 %v30079_v3 }
 0x353   :  { %24002 = vmatpush1.bf16.msra.mxu0 %v29787_v31  ;;  %v30095_v9 = vpack.c.bf16 %v34227_v23, %v34228_v63  ;;  %v34238_v31 = vand.u32 4294901760, %v30098_v0  ;;  %v34705_v63 = vand.u32 4294901760, %v29996_v35 }
 0x354   :  { %24004 = vmatprep.subr.bf16.mxu0 %v29791_v40  ;;  %v30100_v40 = vld [vmem:[#allocation2 + $0x148] sm:$0xff] }
 0x355   :  { %34703 = vst [vmem:[#allocation105_spill] sm:$0xff] %v30095_v9  ;;  %24518 = vmatpush3.bf16.msra.mxu1 %v30079_v3  ;;  %v34237_v59 = vand.u32 4294901760, %v30100_v40  ;;  %v34734_v3 = vld [vmem:[#allocation20_spill] sm:$0xff] }
 0x356   :  { %24520 = vmatprep.subr.bf16.mxu1 %v30095_v9 }
 0x357   :  { %24006 = vmatpush1.bf16.msra.mxu0 %v29795_v46  ;;  %v30111_v23 = vpack.c.bf16 %v34237_v59, %v34238_v31  ;;  %v34706_v46 = vand.u32 4294901760, %v29998_v45 }
 0x358   :  { %24008 = vmatprep.subr.bf16.mxu0 %v29799_v8  ;;  %v30116_v8 = vsub.f32 %v29996_v35, %v34705_v63 }
 0x359   :  { %34704 = vst [vmem:[#allocation106_spill] sm:$0xff] %v30111_v23  ;;  %v30121_v30 = vsub.f32 %v29998_v45, %v34706_v46  ;;  %24522 = vmatpush3.bf16.msra.mxu1 %v30095_v9 }
 0x35a   :  { %v34245_v31 = vand.u32 4294901760, %v30116_v8  ;;  %24524 = vmatprep.subr.bf16.mxu1 %v30111_v23 }
 0x35b   :  { %24010 = vmatpush1.bf16.msra.mxu0 %v29803_v12  ;;  %v30124_v12 = vld [vmem:[#allocation2 + $0x160] sm:$0xff]  ;;  %v34246_v63 = vand.u32 4294901760, %v30121_v30  ;;  %v30335_v53 = vpack.c.bf16 %v30121_v30, %v30116_v8 }
 0x35c   :  { %24012 = vmatprep.subr.bf16.mxu0 %v29807_v33  ;;  %v30126_v33 = vld [vmem:[#allocation2 + $0x178] sm:$0xff]  ;;  %v34244_v17 = vand.u32 4294901760, %v30124_v12  ;;  %v3573_v45 = vsub.f32 %v30116_v8, %v34245_v31 }
 0x35d   :  { %v34243_v59 = vand.u32 4294901760, %v30126_v33  ;;  %v3580_v35 = vsub.f32 %v30121_v30, %v34246_v63  ;;  %24526 = vmatpush3.bf16.msra.mxu1 %v30111_v23  ;;  %34755 = vst [vmem:[#allocation108_spill] sm:$0xff] %v30335_v53 }
 0x35f   :  { %24014 = vmatpush1.bf16.msra.mxu0 %v29811_v4  ;;  %v30139_v46 = vpack.c.bf16 %v34243_v59, %v34244_v17  ;;  %v30150_v4 = vsub.f32 %v30014_v49, %v34708_v2  ;;  %v3574_v59 = vand.u32 4294901760, %v3573_v45  ;;  %v3581_v17 = vand.u32 4294901760, %v3580_v35 }
 0x360   :  { %24016 = vmatprep.subr.bf16.mxu0 %v29815_v36  ;;  %v34709_v36 = vand.u32 4294901760, %v30016_v22  ;;  %v34713_v45 = vand.u32 4294901760, %v30034_v41 }
 0x361   :  { %34707 = vst [vmem:[#allocation107_spill] sm:$0xff] %v30139_v46  ;;  %v34251_v31 = vand.u32 4294901760, %v30150_v4  ;;  %24528 = vmatprep.subr.bf16.mxu1 %v30139_v46  ;;  %v30163_v49 = vpack.c.bf16 %v3581_v17, %v3574_v59 }
 0x362   :  { %v30155_v19 = vsub.f32 %v30016_v22, %v34709_v36  ;;  %v34712_v22 = vand.u32 4294901760, %v30032_v21  ;;  %v30176_v35 = vsub.f32 %v30034_v41, %v34713_v45  ;;  %24530 = vmatpush3.bf16.msra.mxu1 %v30139_v46 }
 0x363   :  { %24018 = vmatpush1.bf16.msra.mxu0 %v29819_v60  ;;  %34711 = vst [vmem:[#allocation11_spill] sm:$0xff] %v30163_v49  ;;  %v3587_v36 = vsub.f32 %v30150_v4, %v34251_v31  ;;  %24532 = vmatprep.subr.bf16.mxu1 %v30163_v49  ;;  %v34730_v49 = vld [vmem:[#allocation19_spill] sm:$0xff] }
 0x364   :  { %v34252_v63 = vand.u32 4294901760, %v30155_v19  ;;  %24020 = vmatprep.subr.bf16.mxu0 %v34710_v50  ;;  %v30171_v2 = vsub.f32 %v30032_v21, %v34712_v22  ;;  %v34258_v31 = vand.u32 4294901760, %v30176_v35  ;;  %v34714_v21 = vld [vmem:[#allocation12_spill] sm:$0xff]  ;;  %v34715_v22 = vld [vmem:[#allocation13_spill] sm:$0xff] }
 0x365   :  { %v3588_v17 = vand.u32 4294901760, %v3587_v36 }
 0x366   :  { %v3594_v60 = vsub.f32 %v30155_v19, %v34252_v63  ;;  %3053 = vmatmul.mubr.f32.vlgmr.msra.gmra.mrb[4].mxu0 %v29941_v26  ;;  %v34255_v59 = vand.u32 4294901760, %v30171_v2  ;;  %v3608_v36 = vsub.f32 %v30176_v35, %v34258_v31  ;;  %v34716_v63 = vand.u32 4294901760, %v30050_v38  ;;  %v34719_v26 = vld [vmem:[#allocation14_spill] sm:$0xff] }
 0x367   :  { %24022 = vmatpush1.bf16.msra.mxu0 %v34714_v21  ;;  %3058 = vmatprep.mubr.f32.mxu0 %v34688_v32  ;;  %v34264_v31 = vand.u32 4294901760, %v30203_v42 }
 0x368   :  { %v3595_v41 = vand.u32 4294901760, %v3594_v60  ;;  %24024 = vmatprep.subr.bf16.mxu0 %v34715_v22  ;;  %v3601_v45 = vsub.f32 %v30171_v2, %v34255_v59  ;;  %v30198_v5 = vsub.f32 %v30050_v38, %v34716_v63  ;;  %v3609_v59 = vand.u32 4294901760, %v3608_v36  ;;  %v34720_v38 = vld [vmem:[#allocation15_spill] sm:$0xff] }
 0x369   :  { %v3622_v61 = vsub.f32 %v30203_v42, %v34264_v31 }
 0x36a   :  { %v30205_v60 = vpack.c.bf16 %v3595_v41, %v3588_v17  ;;  %3061 = vmatmul.mubr.f32.gmra.mrb[6].mxu0 %v29934_v7  ;;  %v3602_v10 = vand.u32 4294901760, %v3601_v45  ;;  %v34262_v13 = vand.u32 4294901760, %v30198_v5  ;;  %v34722_v17 = vand.u32 4294901760, %v30066_v55 }
 0x36b   :  { %24026 = vmatpush1.bf16.msra.mxu0 %v34719_v26  ;;  %3163 = vmatprep.mubr.f32.mxu0 %v34688_v32  ;;  %v34723_v45 = vand.u32 4294901760, %v30068_v51 }
 0x36c   :  { %34718 = vst [vmem:[#allocation12_spill] sm:$0xff] %v30205_v60  ;;  %24028 = vmatprep.subr.bf16.mxu0 %v34720_v38  ;;  %v30213_v63 = vpack.c.bf16 %v3609_v59, %v3602_v10  ;;  %v3615_v56 = vsub.f32 %v30198_v5, %v34262_v13  ;;  %v30224_v41 = vsub.f32 %v30066_v55, %v34722_v17  ;;  %v3623_v59 = vand.u32 4294901760, %v3622_v61  ;;  %v34725_v60 = vld [vmem:[#allocation17_spill] sm:$0xff] }
 0x36d   :  { %v30229_v36 = vsub.f32 %v30068_v51, %v34723_v45  ;;  %v34727_v17 = vand.u32 4294901760, %v30082_v16 }
 0x36e   :  { %34721 = vst [vmem:[#allocation13_spill] sm:$0xff] %v30213_v63  ;;  %v3616_v10 = vand.u32 4294901760, %v3615_v56  ;;  %v34266_v7 = vand.u32 4294901760, %v30224_v41  ;;  %v34724_v63 = vld [vmem:[#allocation16_spill] sm:$0xff]  ;;  %v34728_v56 = vand.u32 4294901760, %v30084_v47 }
 0x36f   :  { %24030 = vmatpush1.bf16.msra.mxu0 %v34724_v63  ;;  %v34270_v13 = vand.u32 4294901760, %v30229_v36  ;;  %v30243_v51 = vsub.f32 %v30082_v16, %v34727_v17  ;;  %v34731_v17 = vand.u32 4294901760, %v30098_v0 }
 0x370   :  { %24032 = vmatprep.subr.bf16.mxu0 %v34725_v60  ;;  %v30235_v31 = vpack.c.bf16 %v3623_v59, %v3616_v10  ;;  %v3629_v55 = vsub.f32 %v30224_v41, %v34266_v7  ;;  %v30248_v61 = vsub.f32 %v30084_v47, %v34728_v56  ;;  %v34729_v7 = vld [vmem:[#allocation18_spill] sm:$0xff]  ;;  %v34732_v56 = vand.u32 4294901760, %v30100_v40 }
 0x371   :  { %v3636_v45 = vsub.f32 %v30229_v36, %v34270_v13  ;;  %v34275_v59 = vand.u32 4294901760, %v30243_v51 }
 0x372   :  { %34726 = vst [vmem:[#allocation14_spill] sm:$0xff] %v30235_v31  ;;  %v3630_v10 = vand.u32 4294901760, %v3629_v55  ;;  %v34280_v31 = vand.u32 4294901760, %v30248_v61  ;;  %v30266_v55 = vsub.f32 %v30098_v0, %v34731_v17  ;;  %v30271_v13 = vsub.f32 %v30100_v40, %v34732_v56  ;;  %v34739_v56 = vld [vmem:[#allocation22_spill] sm:$0xff] }
 0x373   :  { %24034 = vmatpush1.bf16.msra.mxu0 %v34729_v7  ;;  %v3637_v62 = vand.u32 4294901760, %v3636_v45  ;;  %v3643_v16 = vsub.f32 %v30243_v51, %v34275_v59 }
 0x374   :  { %24036 = vmatprep.subr.bf16.mxu0 %v34730_v49  ;;  %v3650_v47 = vsub.f32 %v30248_v61, %v34280_v31  ;;  %v34283_v59 = vand.u32 4294901760, %v30266_v55  ;;  %v34285_v9 = vand.u32 4294901760, %v30271_v13  ;;  %v34735_v31 = vld [vmem:[#allocation21_spill] sm:$0xff] }
 0x375   :  { %v30273_v45 = vpack.c.bf16 %v3637_v62, %v3630_v10  ;;  %v3644_v46 = vand.u32 4294901760, %v3643_v16  ;;  %v34737_v62 = vand.u32 4294901760, %v30124_v12  ;;  %v34738_v16 = vand.u32 4294901760, %v30126_v33 }
 0x376   :  { %v3651_v23 = vand.u32 4294901760, %v3650_v47  ;;  %v3657_v0 = vsub.f32 %v30266_v55, %v34283_v59  ;;  %v3664_v40 = vsub.f32 %v30271_v13, %v34285_v9 }
 0x377   :  { %34733 = vst [vmem:[#allocation15_spill] sm:$0xff] %v30273_v45  ;;  %24038 = vmatpush1.bf16.msra.mxu0 %v34734_v3  ;;  %v30290_v10 = vsub.f32 %v30124_v12, %v34737_v62  ;;  %v30295_v47 = vsub.f32 %v30126_v33, %v34738_v16  ;;  %v34743_v16 = vld [vmem:[#allocation27_spill] sm:$0xff]  ;;  %v34744_v45 = vand.u32 4294901760, %v29419_v58  ;;  %v34753_v58 = vand.u32 4294901760, %v29481_v44 }
 0x378   :  { %24040 = vmatprep.subr.bf16.mxu0 %v34735_v31  ;;  %v30279_v48 = vpack.c.bf16 %v3651_v23, %v3644_v46  ;;  %v3658_v23 = vand.u32 4294901760, %v3657_v0  ;;  %v3665_v46 = vand.u32 4294901760, %v3664_v40  ;;  %v34742_v40 = vld [vmem:[#allocation25_spill] sm:$0xff]  ;;  %v30348_v44 = vpack.c.bf16 %v30155_v19, %v30150_v4 }
 0x379   :  { %v34290_v17 = vand.u32 4294901760, %v30290_v10  ;;  %v34291_v59 = vand.u32 4294901760, %v30295_v47 }
 0x37a   :  { %34736 = vst [vmem:[#allocation16_spill] sm:$0xff] %v30279_v48  ;;  %v34740_v48 = vld [vmem:[#allocation23_spill] sm:$0xff]  ;;  %v30301_v9 = vpack.c.bf16 %v3665_v46, %v3658_v23  ;;  %v30315_v23 = vpack.c.bf16 %v34745_v27, %v34744_v45  ;;  %v34756_v27 = vand.u32 4294901760, %v29486_v34  ;;  %34759 = vst [vmem:[#allocation110_spill] sm:$0xff] %v30348_v44  ;;  %v34763_v34 = vand.u32 4294901760, %v29527_v15 }
 0x37b   :  { %24042 = vmatpush1.bf16.msra.mxu0 %v34739_v56  ;;  %v3671_v12 = vsub.f32 %v30290_v10, %v34290_v17  ;;  %v3678_v33 = vsub.f32 %v30295_v47, %v34291_v59  ;;  %v34749_v17 = vand.u32 4294901760, %v29889_v24  ;;  %v34750_v59 = vand.u32 4294901760, %v29894_v57  ;;  %v34770_v15 = vld [vmem:[#allocation35_spill] sm:$0xff] }
 0x37c   :  { %24044 = vmatprep.subr.bf16.mxu0 %v34740_v48  ;;  %34741 = vst [vmem:[#allocation17_spill] sm:$0xff] %v30301_v9  ;;  %34746 = vst [vmem:[#allocation18_spill] sm:$0xff] %v30315_v23  ;;  %v34748_v9 = vld [vmem:[#allocation29_spill] sm:$0xff]  ;;  %v34757_v24 = vand.u32 4294901760, %v29493_v14  ;;  %v34764_v14 = vand.u32 4294901760, %v29536_v54  ;;  %v34771_v54 = vand.u32 4294901760, %v34770_v15 }
 0x37d   :  { %v3672_v0 = vand.u32 4294901760, %v3671_v12  ;;  %v3679_v62 = vand.u32 4294901760, %v3678_v33  ;;  %v30324_v12 = vpack.c.bf16 %v34750_v59, %v34749_v17  ;;  %v34752_v33 = vand.u32 4294901760, %v29475_v25 }
 0x37e   :  { %v30344_v57 = vpack.c.bf16 %v34757_v24, %v34756_v27  ;;  %v34760_v25 = vand.u32 4294901760, %v29510_v1  ;;  %v34761_v59 = vand.u32 4294901760, %v29522_v29  ;;  %v30363_v17 = vpack.c.bf16 %v34764_v14, %v34763_v34  ;;  %v34781_v14 = vld [vmem:[#allocation41_spill] sm:$0xff] }
 0x37f   :  { %24046 = vmatpush1.bf16.msra.mxu0 %v34742_v40  ;;  %v30317_v46 = vpack.c.bf16 %v3679_v62, %v3672_v0  ;;  %34751 = vst [vmem:[#allocation20_spill] sm:$0xff] %v30324_v12  ;;  %v30331_v52 = vpack.c.bf16 %v34753_v58, %v34752_v33  ;;  %v30368_v0 = vpack.c.bf16 %v30176_v35, %v30171_v2  ;;  %v34767_v29 = vand.u32 4294901760, %v29547_v43  ;;  %v34772_v33 = vld [vmem:[#allocation36_spill] sm:$0xff] }
 0x380   :  { %24048 = vmatprep.subr.bf16.mxu0 %v34743_v16  ;;  %34758 = vst [vmem:[#allocation109_spill] sm:$0xff] %v30344_v57  ;;  %v30355_v45 = vpack.c.bf16 %v34761_v59, %v34760_v25  ;;  %34765 = vst [vmem:[#allocation112_spill] sm:$0xff] %v30363_v17  ;;  %v34768_v1 = vand.u32 4294901760, %v29560_v11  ;;  %v34773_v58 = vand.u32 4294901760, %v34772_v33  ;;  %v30386_v24 = vpack.c.bf16 %v30203_v42, %v30198_v5  ;;  %v34776_v25 = vld [vmem:[#allocation37_spill] sm:$0xff]  ;;  %v34778_v59 = vld [vmem:[#allocation39_spill] sm:$0xff] }
 0x381   :  { %34747 = vst [vmem:[#allocation19_spill] sm:$0xff] %v30317_v46  ;;  %34754 = vst [vmem:[#allocation21_spill] sm:$0xff] %v30331_v52  ;;  %v34777_v43 = vand.u32 4294901760, %v34776_v25  ;;  %v34779_v11 = vand.u32 4294901760, %v34778_v59  ;;  %v30404_v33 = vpack.c.bf16 %v30229_v36, %v30224_v41 }
 0x382   :  { %34762 = vst [vmem:[#allocation111_spill] sm:$0xff] %v30355_v45  ;;  %34766 = vst [vmem:[#allocation113_spill] sm:$0xff] %v30368_v0  ;;  %v30375_v62 = vpack.c.bf16 %v34768_v1, %v34767_v29  ;;  %v30382_v27 = vpack.c.bf16 %v34773_v58, %v34771_v54  ;;  %v34782_v29 = vand.u32 4294901760, %v34781_v14  ;;  %v34783_v1 = vld [vmem:[#allocation42_spill] sm:$0xff]  ;;  %v34787_v58 = vld [vmem:[#allocation43_spill] sm:$0xff] }
 0x383   :  { %24050 = vmatpush1.bf16.msra.mxu0 %v34748_v9  ;;  %34775 = vst [vmem:[#allocation36_spill] sm:$0xff] %v30386_v24  ;;  %v30393_v34 = vpack.c.bf16 %v34779_v11, %v34777_v43  ;;  %v34784_v15 = vand.u32 4294901760, %v34783_v1  ;;  %34786 = vst [vmem:[#allocation41_spill] sm:$0xff] %v30404_v33  ;;  %v34788_v25 = vand.u32 4294901760, %v34787_v58  ;;  %v34792_v11 = vld [vmem:[#allocation46_spill] sm:$0xff] }
 0x384   :  { %24052 = vmatprep.subr.bf16.mxu0 %v30315_v23  ;;  %34769 = vst [vmem:[#allocation114_spill] sm:$0xff] %v30375_v62  ;;  %34774 = vst [vmem:[#allocation35_spill] sm:$0xff] %v30382_v27  ;;  %v34793_v14 = vand.u32 4294901760, %v34792_v11  ;;  %v34840_v23 = vand.u32 4294901760, %v30150_v4  ;;  %v34846_v4 = vand.u32 4294901760, %v30198_v5  ;;  %v34852_v5 = vand.u32 4294901760, %v30243_v51 }
 0x385   :  { %34780 = vst [vmem:[#allocation37_spill] sm:$0xff] %v30393_v34  ;;  %v30400_v54 = vpack.c.bf16 %v34784_v15, %v34782_v29  ;;  %v30422_v15 = vpack.c.bf16 %v30248_v61, %v30243_v51  ;;  %v34858_v51 = vand.u32 4294901760, %v30290_v10 }
 0x386   :  { %3167 = vmatmul.mubr.f32.vlgmr.msra.gmra.mrb[4].mxu0 %v29948_v28 }
 0x387   :  { %24054 = vmatpush1.bf16.msra.mxu0 %v30324_v12  ;;  %3172 = vmatprep.mubr.f32.mxu0 %v34688_v32  ;;  %34785 = vst [vmem:[#allocation39_spill] sm:$0xff] %v30400_v54 }
 0x388   :  { %24056 = vmatprep.subr.bf16.mxu0 %v30331_v52  ;;  %v34835_v52 = vld [vmem:[#allocation96_spill] sm:$0xff] }
 0x38a   :  { %3176 = vmatmul.mubr.f32.gmra.mrb[6].mxu0 %v29951_v6 }
 0x38b   :  { %24058 = vmatpush1.bf16.msra.mxu0 %v30344_v57  ;;  %3342 = vmatprep.mubr.f32.mxu0 %v34688_v32  ;;  %v34834_v57 = vld [vmem:[#allocation17_spill] sm:$0xff] }
 0x38c   :  { %24060 = vmatprep.subr.bf16.mxu0 %v30355_v45  ;;  %v34811_v45 = vld [vmem:[#allocation57_spill] sm:$0xff] }
 0x38f   :  { %24062 = vmatpush1.bf16.msra.mxu0 %v30363_v17  ;;  %v34800_v17 = vld [vmem:[#allocation51_spill] sm:$0xff] }
 0x390   :  { %24064 = vmatprep.subr.bf16.mxu0 %v30375_v62  ;;  %v34789_v62 = vld [vmem:[#allocation45_spill] sm:$0xff] }
 0x391   :  { %v34790_v59 = vand.u32 4294901760, %v34789_v62  ;;  %34797 = vst [vmem:[#allocation45_spill] sm:$0xff] %v30422_v15  ;;  %v34801_v62 = vand.u32 4294901760, %v34800_v17  ;;  %v34812_v17 = vand.u32 4294901760, %v34811_v45  ;;  %v34820_v45 = vld [vmem:[#allocation30_spill] sm:$0xff] }
 0x393   :  { %24066 = vmatpush1.bf16.msra.mxu0 %v30382_v27  ;;  %v30411_v43 = vpack.c.bf16 %v34790_v59, %v34788_v25  ;;  %v34794_v27 = vld [vmem:[#allocation48_spill] sm:$0xff] }
 0x394   :  { %24068 = vmatprep.subr.bf16.mxu0 %v30393_v34  ;;  %v34795_v1 = vand.u32 4294901760, %v34794_v27  ;;  %v34798_v34 = vld [vmem:[#allocation50_spill] sm:$0xff]  ;;  %v34803_v59 = vld [vmem:[#allocation52_spill] sm:$0xff] }
 0x395   :  { %34791 = vst [vmem:[#allocation42_spill] sm:$0xff] %v30411_v43  ;;  %v34799_v58 = vand.u32 4294901760, %v34798_v34  ;;  %v34804_v11 = vand.u32 4294901760, %v34803_v59 }
 0x396   :  { %v30418_v29 = vpack.c.bf16 %v34795_v1, %v34793_v14  ;;  %v30440_v1 = vpack.c.bf16 %v30271_v13, %v30266_v55 }
 0x397   :  { %24070 = vmatpush1.bf16.msra.mxu0 %v30400_v54  ;;  %v30429_v25 = vpack.c.bf16 %v34801_v62, %v34799_v58  ;;  %v34805_v54 = vld [vmem:[#allocation54_spill] sm:$0xff]  ;;  %v34814_v62 = vld [vmem:[#allocation59_spill] sm:$0xff] }
 0x398   :  { %34796 = vst [vmem:[#allocation43_spill] sm:$0xff] %v30418_v29  ;;  %24072 = vmatprep.subr.bf16.mxu0 %v30411_v43  ;;  %v34806_v27 = vand.u32 4294901760, %v34805_v54  ;;  %34808 = vst [vmem:[#allocation50_spill] sm:$0xff] %v30440_v1  ;;  %v34809_v43 = vld [vmem:[#allocation55_spill] sm:$0xff]  ;;  %v34815_v59 = vand.u32 4294901760, %v34814_v62  ;;  %v34825_v62 = vld [vmem:[#allocation106_spill] sm:$0xff] }
 0x399   :  { %34802 = vst [vmem:[#allocation46_spill] sm:$0xff] %v30429_v25  ;;  %v34810_v34 = vand.u32 4294901760, %v34809_v43  ;;  %v34821_v43 = vld [vmem:[#allocation102_spill] sm:$0xff] }
 0x39a   :  { %v30436_v14 = vpack.c.bf16 %v34806_v27, %v34804_v11  ;;  %v30458_v27 = vpack.c.bf16 %v30295_v47, %v30290_v10  ;;  %v34861_v10 = vld [vmem:[#allocation31_spill] sm:$0xff] }
 0x39b   :  { %24074 = vmatpush1.bf16.msra.mxu0 %v30418_v29  ;;  %v30447_v58 = vpack.c.bf16 %v34812_v17, %v34810_v34  ;;  %v34816_v29 = vld [vmem:[#allocation60_spill] sm:$0xff]  ;;  %v34824_v17 = vld [vmem:[#allocation105_spill] sm:$0xff] }
 0x39c   :  { %34807 = vst [vmem:[#allocation48_spill] sm:$0xff] %v30436_v14  ;;  %24076 = vmatprep.subr.bf16.mxu0 %v30429_v25  ;;  %v34817_v54 = vand.u32 4294901760, %v34816_v29  ;;  %34819 = vst [vmem:[#allocation54_spill] sm:$0xff] %v30458_v27  ;;  %v34822_v29 = vld [vmem:[#allocation103_spill] sm:$0xff]  ;;  %v34823_v34 = vld [vmem:[#allocation104_spill] sm:$0xff] }
 0x39d   :  { %34813 = vst [vmem:[#allocation51_spill] sm:$0xff] %v30447_v58  ;;  %v34832_v25 = vld [vmem:[#allocation15_spill] sm:$0xff] }
 0x39e   :  { %v30454_v11 = vpack.c.bf16 %v34817_v54, %v34815_v59  ;;  %v34826_v59 = vld [vmem:[#allocation107_spill] sm:$0xff] }
 0x39f   :  { %24078 = vmatpush1.bf16.msra.mxu0 %v30436_v14  ;;  %v34827_v54 = vld [vmem:[#allocation11_spill] sm:$0xff]  ;;  %v34831_v14 = vld [vmem:[#allocation14_spill] sm:$0xff] }
 0x3a0   :  { %34818 = vst [vmem:[#allocation52_spill] sm:$0xff] %v30454_v11  ;;  %24080 = vmatprep.subr.bf16.mxu0 %v30447_v58  ;;  %v34830_v58 = vld [vmem:[#allocation13_spill] sm:$0xff] }
 0x3a3   :  { %24082 = vmatpush1.bf16.msra.mxu0 %v30454_v11  ;;  %v34829_v11 = vld [vmem:[#allocation12_spill] sm:$0xff] }
 0x3a4   :  { %24084 = vmatprep.subr.bf16.mxu0 %v34710_v50 }
 0x3a6   :  { %3344 = vmatmul.mubr.f32.vlgmr.msra.gmra.mrb[4].mxu0 %v29928_v20 }
 0x3a7   :  { %24086 = vmatpush1.bf16.msra.mxu0 %v34714_v21  ;;  %3349 = vmatprep.mubr.f32.mxu0 %v34688_v32 }
 0x3a8   :  { %24088 = vmatprep.subr.bf16.mxu0 %v34715_v22 }
 0x3aa   :  { %3351 = vmatmul.mubr.f32.gmra.mrb[6].mxu0 %v29916_v37 }
 0x3ab   :  { %24090 = vmatpush1.bf16.msra.mxu0 %v34719_v26  ;;  %3453 = vmatprep.mubr.f32.mxu0 %v34688_v32 }
 0x3ac   :  { %24092 = vmatprep.subr.bf16.mxu0 %v34720_v38 }
 0x3af   :  { %24094 = vmatpush1.bf16.msra.mxu0 %v34724_v63 }
 0x3b0   :  { %24096 = vmatprep.subr.bf16.mxu0 %v34725_v60 }
 0x3b3   :  { %24098 = vmatpush1.bf16.msra.mxu0 %v34729_v7 }
 0x3b4   :  { %24100 = vmatprep.subr.bf16.mxu0 %v34730_v49 }
 0x3b7   :  { %24102 = vmatpush1.bf16.msra.mxu0 %v34734_v3 }
 0x3b8   :  { %24104 = vmatprep.subr.bf16.mxu0 %v34735_v31 }
 0x3bb   :  { %24106 = vmatpush1.bf16.msra.mxu0 %v34739_v56 }
 0x3bc   :  { %24108 = vmatprep.subr.bf16.mxu0 %v34740_v48 }
 0x3bf   :  { %24110 = vmatpush1.bf16.msra.mxu0 %v34742_v40 }
 0x3c0   :  { %24112 = vmatprep.subr.bf16.mxu0 %v34743_v16 }
 0x3c3   :  { %24114 = vmatpush1.bf16.msra.mxu0 %v34748_v9 }
 0x3c4   :  { %24116 = vmatprep.subr.bf16.mxu0 %v30012_v39 }
 0x3c6   :  { %3455 = vmatmul.mubr.f32.vlgmr.msra.gmra.mrb[4].mxu0 %v29928_v20 }
 0x3c7   :  { %24118 = vmatpush3.bf16.msra.mxu0 %v30012_v39  ;;  %3460 = vmatprep.mubr.f32.mxu0 %v34688_v32 }
 0x3c8   :  { %24120 = vmatprep.subr.bf16.mxu0 %v30029_v18 }
 0x3ca   :  { %3462 = vmatmul.mubr.f32.gmra.mrb[6].mxu0 %v29916_v37 }
 0x3cb   :  { %24122 = vmatpush3.bf16.msra.mxu0 %v30029_v18  ;;  %21267 = vmatprep.mubr.f32.mxu0 %v34820_v45  ;;  %v34828_v45 = vld [vmem:[#allocation100_spill] sm:$0xff] }
 0x3cc   :  { %24124 = vmatprep.subr.bf16.mxu0 %v34821_v43 }
 0x3cf   :  { %24126 = vmatpush3.bf16.msra.mxu0 %v34821_v43 }
 0x3d0   :  { %24128 = vmatprep.subr.bf16.mxu0 %v34822_v29 }
 0x3d3   :  { %24130 = vmatpush3.bf16.msra.mxu0 %v34822_v29 }
 0x3d4   :  { %24132 = vmatprep.subr.bf16.mxu0 %v34823_v34 }
 0x3d7   :  { %24134 = vmatpush3.bf16.msra.mxu0 %v34823_v34 }
 0x3d8   :  { %24136 = vmatprep.subr.bf16.mxu0 %v34824_v17 }
 0x3db   :  { %24138 = vmatpush3.bf16.msra.mxu0 %v34824_v17 }
 0x3dc   :  { %24140 = vmatprep.subr.bf16.mxu0 %v34825_v62 }
 0x3df   :  { %24142 = vmatpush3.bf16.msra.mxu0 %v34825_v62 }
 0x3e0   :  { %24144 = vmatprep.subr.bf16.mxu0 %v34826_v59 }
 0x3e3   :  { %24146 = vmatpush3.bf16.msra.mxu0 %v34826_v59 }
 0x3e4   :  { %24148 = vmatprep.subr.bf16.mxu0 %v34827_v54 }
 0x3e6   :  { %21268 = vmatmul.mubr.f32.vlgmr.msra.gmra.mrb[48].mxu0 %v34828_v45  ;;  %v34833_v45 = vld [vmem:[#allocation16_spill] sm:$0xff] }
 0x3e7   :  { %24150 = vmatpush3.bf16.msra.mxu0 %v34827_v54  ;;  %21302 = vmatprep.mubr.f32.mxu0 %v29928_v20 }
 0x3e8   :  { %24152 = vmatprep.subr.bf16.mxu0 %v34829_v11 }
 0x3eb   :  { %24154 = vmatpush3.bf16.msra.mxu0 %v34829_v11 }
 0x3ec   :  { %24156 = vmatprep.subr.bf16.mxu0 %v34830_v58 }
 0x3ef   :  { %24158 = vmatpush3.bf16.msra.mxu0 %v34830_v58 }
 0x3f0   :  { %24160 = vmatprep.subr.bf16.mxu0 %v34831_v14 }
 0x3f3   :  { %24162 = vmatpush3.bf16.msra.mxu0 %v34831_v14 }
 0x3f4   :  { %24164 = vmatprep.subr.bf16.mxu0 %v34832_v25 }
 0x3f7   :  { %24166 = vmatpush3.bf16.msra.mxu0 %v34832_v25 }
 0x3f8   :  { %24168 = vmatprep.subr.bf16.mxu0 %v34833_v45 }
 0x3fb   :  { %24170 = vmatpush3.bf16.msra.mxu0 %v34833_v45 }
 0x3fc   :  { %24172 = vmatprep.subr.bf16.mxu0 %v34834_v57 }
 0x3ff   :  { %24174 = vmatpush3.bf16.msra.mxu0 %v34834_v57 }
 0x400   :  { %24176 = vmatprep.subr.bf16.mxu0 %v30317_v46 }
 0x403   :  { %24178 = vmatpush3.bf16.msra.mxu0 %v30317_v46 }
 0x404   :  { %24180 = vmatprep.subr.bf16.mxu0 %v30335_v53 }
 0x406   :  { %21303 = vmatmul.mubr.f32.vlgmr.msra.gmra.mrb[48].mxu0 %v29916_v37 }
 0x407   :  { %24182 = vmatpush3.bf16.msra.mxu0 %v30335_v53  ;;  %21337 = vmatprep.mubr.f32.mxu0 %v34835_v52  ;;  %v34836_v52 = vld [vmem:[#allocation24_spill] sm:$0xff] }
 0x408   :  { %24184 = vmatprep.subr.bf16.mxu0 %v30348_v44 }
 0x40b   :  { %24186 = vmatpush3.bf16.msra.mxu0 %v30348_v44 }
 0x40c   :  { %24188 = vmatprep.subr.bf16.mxu0 %v30368_v0 }
 0x40f   :  { %24190 = vmatpush3.bf16.msra.mxu0 %v30368_v0 }
 0x410   :  { %24192 = vmatprep.subr.bf16.mxu0 %v30386_v24 }
 0x413   :  { %24194 = vmatpush3.bf16.msra.mxu0 %v30386_v24 }
 0x414   :  { %24196 = vmatprep.subr.bf16.mxu0 %v30404_v33 }
 0x417   :  { %24198 = vmatpush3.bf16.msra.mxu0 %v30404_v33 }
 0x418   :  { %24200 = vmatprep.subr.bf16.mxu0 %v30422_v15 }
 0x41b   :  { %24202 = vmatpush3.bf16.msra.mxu0 %v30422_v15 }
 0x41c   :  { %24204 = vmatprep.subr.bf16.mxu0 %v30440_v1 }
 0x41f   :  { %24206 = vmatpush3.bf16.msra.mxu0 %v30440_v1 }
 0x420   :  { %24208 = vmatprep.subr.bf16.mxu0 %v30458_v27 }
 0x423   :  { %24210 = vmatpush3.bf16.msra.mxu0 %v30458_v27  ;;  %v34841_v27 = vand.u32 4294901760, %v30155_v19 }
 0x424   :  { %24212 = vmatprep.subr.bf16.mxu0 %v30012_v39 }
 0x425   :  { %v30567_v1 = vpack.c.bf16 %v34841_v27, %v34840_v23 }
 0x426   :  { %21338 = vmatmul.mubr.f32.vlgmr.msra.gmra.mrb[48].mxu0 %v34836_v52  ;;  %v34838_v52 = vand.u32 4294901760, %v30121_v30  ;;  %v34844_v30 = vand.u32 4294901760, %v30176_v35  ;;  %v34850_v35 = vand.u32 4294901760, %v30229_v36  ;;  %v34856_v36 = vand.u32 4294901760, %v30271_v13 }
 0x427   :  { %24214 = vmatpush3.bf16.msra.mxu0 %v30012_v39  ;;  %21372 = vmatprep.mubr.f32.mxu0 %v29948_v28  ;;  %v34837_v28 = vand.u32 4294901760, %v30116_v8  ;;  %34842 = vst [vmem:[#allocation57_spill] sm:$0xff] %v30567_v1  ;;  %v34843_v8 = vand.u32 4294901760, %v30171_v2  ;;  %v34849_v2 = vand.u32 4294901760, %v30224_v41  ;;  %v34855_v41 = vand.u32 4294901760, %v30266_v55 }
 0x428   :  { %24216 = vmatprep.subr.bf16.mxu0 %v30029_v18 }
 0x429   :  { %v30559_v12 = vpack.c.bf16 %v34838_v52, %v34837_v28  ;;  %v30577_v28 = vpack.c.bf16 %v34844_v30, %v34843_v8  ;;  %v30593_v23 = vpack.c.bf16 %v34850_v35, %v34849_v2  ;;  %v30609_v52 = vpack.c.bf16 %v34856_v36, %v34855_v41  ;;  %v34865_v41 = vld [vmem:[#allocation83_spill] sm:$0xff] }
 0x42b   :  { %24218 = vmatpush3.bf16.msra.mxu0 %v30029_v18  ;;  %34839 = vst [vmem:[#allocation55_spill] sm:$0xff] %v30559_v12  ;;  %34845 = vst [vmem:[#allocation59_spill] sm:$0xff] %v30577_v28 }
 0x42c   :  { %24220 = vmatprep.subr.bf16.mxu0 %v34821_v43  ;;  %34851 = vst [vmem:[#allocation30_spill] sm:$0xff] %v30593_v23  ;;  %34857 = vst [vmem:[#allocation103_spill] sm:$0xff] %v30609_v52 }
 0x42f   :  { %24222 = vmatpush3.bf16.msra.mxu0 %v34821_v43 }
 0x430   :  { %24224 = vmatprep.subr.bf16.mxu0 %v34822_v29 }
 0x433   :  { %24226 = vmatpush3.bf16.msra.mxu0 %v34822_v29 }
 0x434   :  { %24228 = vmatprep.subr.bf16.mxu0 %v34823_v34 }
 0x437   :  { %24230 = vmatpush3.bf16.msra.mxu0 %v34823_v34 }
 0x438   :  { %24232 = vmatprep.subr.bf16.mxu0 %v34824_v17 }
 0x43b   :  { %24234 = vmatpush3.bf16.msra.mxu0 %v34824_v17 }
 0x43c   :  { %24236 = vmatprep.subr.bf16.mxu0 %v34825_v62 }
 0x43f   :  { %24238 = vmatpush3.bf16.msra.mxu0 %v34825_v62 }
 0x440   :  { %24240 = vmatprep.subr.bf16.mxu0 %v34826_v59 }
 0x443   :  { %24242 = vmatpush3.bf16.msra.mxu0 %v34826_v59 }
 0x444   :  { %24244 = vmatprep.subr.bf16.mxu0 %v30559_v12 }
 0x446   :  { %21373 = vmatmul.mubr.f32.vlgmr.msra.gmra.mrb[48].mxu0 %v29951_v6  ;;  %v34847_v6 = vand.u32 4294901760, %v30203_v42  ;;  %v34853_v42 = vand.u32 4294901760, %v30248_v61  ;;  %v34859_v61 = vand.u32 4294901760, %v30295_v47  ;;  %v34862_v47 = vld [vmem:[#allocation80_spill] sm:$0xff] }
 0x447   :  { %24246 = vmatpush3.bf16.msra.mxu0 %v30559_v12  ;;  %21407 = vmatprep.mubr.f32.mxu0 %v29928_v20 }
 0x448   :  { %24248 = vmatprep.subr.bf16.mxu0 %v30567_v1  ;;  %v30585_v19 = vpack.c.bf16 %v34847_v6, %v34846_v4  ;;  %v30601_v27 = vpack.c.bf16 %v34853_v42, %v34852_v5  ;;  %v30617_v8 = vpack.c.bf16 %v34859_v61, %v34858_v51  ;;  %v34863_v4 = vld [vmem:[#allocation81_spill] sm:$0xff]  ;;  %v34864_v5 = vld [vmem:[#allocation82_spill] sm:$0xff] }
 0x44a   :  { %34848 = vst [vmem:[#allocation60_spill] sm:$0xff] %v30585_v19  ;;  %34854 = vst [vmem:[#allocation102_spill] sm:$0xff] %v30601_v27 }
 0x44b   :  { %24250 = vmatpush3.bf16.msra.mxu0 %v30567_v1  ;;  %34860 = vst [vmem:[#allocation11_spill] sm:$0xff] %v30617_v8 }
 0x44c   :  { %24252 = vmatprep.subr.bf16.mxu0 %v30577_v28 }
 0x44f   :  { %24254 = vmatpush3.bf16.msra.mxu0 %v30577_v28 }
 0x450   :  { %24256 = vmatprep.subr.bf16.mxu0 %v30585_v19 }
 0x453   :  { %24258 = vmatpush3.bf16.msra.mxu0 %v30585_v19 }
 0x454   :  { %24260 = vmatprep.subr.bf16.mxu0 %v30593_v23 }
 0x457   :  { %24262 = vmatpush3.bf16.msra.mxu0 %v30593_v23  ;;  %v34869_v23 = vld [vmem:[#allocation91_spill] sm:$0xff] }
 0x458   :  { %24264 = vmatprep.subr.bf16.mxu0 %v30601_v27 }
 0x45b   :  { %24266 = vmatpush3.bf16.msra.mxu0 %v30601_v27 }
 0x45c   :  { %24268 = vmatprep.subr.bf16.mxu0 %v30609_v52 }
 0x45f   :  { %24270 = vmatpush3.bf16.msra.mxu0 %v30609_v52 }
 0x460   :  { %24272 = vmatprep.subr.bf16.mxu0 %v30617_v8 }
 0x463   :  { %24274 = vmatpush3.bf16.msra.mxu0 %v30617_v8 }
 0x464   :  { %24276 = vmatprep.subr.bf16.mxu0 %v30012_v39 }
 0x466   :  { %21408 = vmatmul.mubr.f32.vlgmr.msra.gmra.mrb[48].mxu0 %v29916_v37 }
 0x467   :  { %24278 = vmatpush3.bf16.msra.mxu0 %v30012_v39  ;;  %21442 = vmatprep.mubr.f32.mxu0 %v29928_v20 }
 0x468   :  { %24280 = vmatprep.subr.bf16.mxu0 %v30029_v18 }
 0x46b   :  { %24282 = vmatpush3.bf16.msra.mxu0 %v30029_v18 }
 0x46c   :  { %24284 = vmatprep.subr.bf16.mxu0 %v34821_v43 }
 0x46f   :  { %24286 = vmatpush3.bf16.msra.mxu0 %v34821_v43 }
 0x470   :  { %24288 = vmatprep.subr.bf16.mxu0 %v34822_v29 }
 0x473   :  { %24290 = vmatpush3.bf16.msra.mxu0 %v34822_v29 }
 0x474   :  { %24292 = vmatprep.subr.bf16.mxu0 %v34823_v34 }
 0x477   :  { %24294 = vmatpush3.bf16.msra.mxu0 %v34823_v34 }
 0x478   :  { %24296 = vmatprep.subr.bf16.mxu0 %v34824_v17 }
 0x47b   :  { %24298 = vmatpush3.bf16.msra.mxu0 %v34824_v17 }
 0x47c   :  { %24300 = vmatprep.subr.bf16.mxu0 %v34825_v62 }
 0x47f   :  { %24302 = vmatpush3.bf16.msra.mxu0 %v34825_v62 }
 0x480   :  { %24304 = vmatprep.subr.bf16.mxu0 %v34826_v59 }
 0x483   :  { %24306 = vmatpush3.bf16.msra.mxu0 %v34826_v59 }
 0x484   :  { %24308 = vmatprep.subr.bf16.mxu0 %v34710_v50 }
 0x486   :  { %21443 = vmatmul.mubr.f32.vlgmr.msra.gmra.mrb[48].mxu0 %v29916_v37 }
 0x487   :  { %24310 = vmatpush1.bf16.msra.mxu0 %v34714_v21  ;;  %4292 = vmatprep.mubr.f32.mxu0 %v34688_v32 }
 0x488   :  { %24312 = vmatprep.subr.bf16.mxu0 %v34715_v22 }
 0x48b   :  { %24314 = vmatpush1.bf16.msra.mxu0 %v34719_v26 }
 0x48c   :  { %24316 = vmatprep.subr.bf16.mxu0 %v34720_v38 }
 0x48f   :  { %24318 = vmatpush1.bf16.msra.mxu0 %v34724_v63 }
 0x490   :  { %24320 = vmatprep.subr.bf16.mxu0 %v34725_v60 }
 0x493   :  { %24322 = vmatpush1.bf16.msra.mxu0 %v34729_v7 }
 0x494   :  { %24324 = vmatprep.subr.bf16.mxu0 %v34730_v49 }
 0x497   :  { %24326 = vmatpush1.bf16.msra.mxu0 %v34734_v3 }
 0x498   :  { %24328 = vmatprep.subr.bf16.mxu0 %v34735_v31 }
 0x499   :  { %v3456_v13 = vpop.f32.mrb[4].mxu0 }
 0x49a   :  { %v3458_v37 = vpop.f32.mrb[5].mxu0  ;;  %v27667_v6 = vadd.f32 %v3456_v13, %v34863_v4 }
 0x49b   :  { %24330 = vmatpush1.bf16.msra.mxu0 %v34739_v56  ;;  %v27668_v36 = vadd.f32 %v3458_v37, %v34865_v41 }
 0x49c   :  { %24332 = vmatprep.subr.bf16.mxu0 %v34740_v48  ;;  %v19554_v35 = vmul.f32 -1.442695, %v27667_v6  ;;  %v34866_v6 = vld [vmem:[#allocation84_spill] sm:$0xff] }
 0x49d   :  { %v3463_v20 = vpop.f32.mrb[6].mxu0  ;;  %v19556_v61 = vmul.f32 -1.442695, %v27668_v36 }
 0x49e   :  { %v3465_v55 = vpop.f32.mrb[7].mxu0  ;;  %v27669_v30 = vadd.f32 %v3463_v20, %v34862_v47 }
 0x49f   :  { %24334 = vmatpush1.bf16.msra.mxu0 %v34742_v40  ;;  %v27670_v42 = vadd.f32 %v3465_v55, %v34864_v5 }
 0x4a0   :  { %24336 = vmatprep.subr.bf16.mxu0 %v34743_v16  ;;  %v19555_v2 = vmul.f32 -1.442695, %v27669_v30 }
 0x4a1   :  { %v19557_v51 = vmul.f32 -1.442695, %v27670_v42 }
 0x4a2   :  { %28302 = vpow2.f32 %v19555_v2 }
 0x4a3   :  { %24338 = vmatpush1.bf16.msra.mxu0 %v34748_v9  ;;  %28304 = vpow2.f32 %v19554_v35 }
 0x4a4   :  { %24340 = vmatprep.subr.bf16.mxu0 %v34861_v10  ;;  %28306 = vpow2.f32 %v19557_v51 }
 0x4a5   :  { %28308 = vpow2.f32 %v19556_v61 }
 0x4ac   :  { %v28303_v8 = vpop.eup %28302 }
 0x4ad   :  { %v28305_v52 = vpop.eup %28304  ;;  %v4161_v27 = vadd.f32 1.0, %v28303_v8  ;;  %v34867_v8 = vld [vmem:[#allocation85_spill] sm:$0xff] }
 0x4ae   :  { %v4160_v10 = vadd.f32 1.0, %v28305_v52  ;;  %v28307_v20 = vpop.eup %28306 }
 0x4af   :  { %28310 = vrcp.f32 %v4161_v27  ;;  %v28309_v13 = vpop.eup %28308  ;;  %v4175_v47 = vadd.f32 1.0, %v28307_v20  ;;  %v34868_v27 = vld [vmem:[#allocation86_spill] sm:$0xff] }
 0x4b0   :  { %28312 = vrcp.f32 %v4160_v10  ;;  %v4174_v30 = vadd.f32 1.0, %v28309_v13 }
 0x4b1   :  { %28314 = vrcp.f32 %v4175_v47 }
 0x4b2   :  { %28316 = vrcp.f32 %v4174_v30 }
 0x4b9   :  { %v28311_v35 = vpop.eup %28310 }
 0x4ba   :  { %v28313_v5 = vpop.eup %28312 }
 0x4bb   :  { %v28315_v36 = vpop.eup %28314 }
 0x4bc   :  { %v28317_v51 = vpop.eup %28316  ;;  %v4189_v61 = vsub.f32 1.0, %v28315_v36  ;;  %v4193_v19 = vmul.f32 %v28315_v36, %v34869_v23  ;;  %v34871_v36 = vld [vmem:[#allocation98_spill] sm:$0xff] }
 0x4bd   :  { %v4188_v13 = vsub.f32 1.0, %v28317_v51 }
 0x559   :  { %v21444_v4 = vpop.f32.mrb[48].mxu0 }
 0x55a   :  { %v4181_v2 = vadd.f32 %v21444_v4, %v34866_v6  ;;  %v4142_v55 = vpop.f32.mrb[49].mxu0 }
 0x55b   :  { %v4180_v37 = vadd.f32 %v34866_v6, %v4142_v55  ;;  %v34870_v55 = vld [vmem:[#allocation92_spill] sm:$0xff] }
 0x55c   :  { %v4183_v42 = vmul.f32 %v28311_v35, %v4181_v2  ;;  %v4192_v47 = vmul.f32 %v28317_v51, %v34870_v55  ;;  %v34872_v51 = vld [vmem:[#allocation33_spill] sm:$0xff] }
 0x55d   :  { %v4182_v41 = vmul.f32 %v28313_v5, %v4180_v37  ;;  %v34878_v55 = vld [vmem:[#allocation49_spill] sm:$0xff] }
 0x55e   :  { %v4185_v52 = vadd.f32 %v4183_v42, %v34867_v8 }
 0x55f   :  { %v4184_v10 = vadd.f32 %v4182_v41, %v34868_v27 }
 0x560   :  { %28318 = vtanh.f32 %v4185_v52 }
 0x561   :  { %28320 = vtanh.f32 %v4184_v10 }
 0x56a   :  { %v28319_v20 = vpop.eup %28318 }
 0x56b   :  { %v28321_v4 = vpop.eup %28320  ;;  %v4191_v6 = vmul.f32 %v28319_v20, %v4189_v61  ;;  %v34873_v61 = vld [vmem:[#allocation34_spill] sm:$0xff] }
 0x56c   :  { %v4190_v2 = vmul.f32 %v28321_v4, %v4188_v13  ;;  %v34874_v20 = vld [vmem:[#allocation38_spill] sm:$0xff]  ;;  %v34875_v13 = vld [vmem:[#allocation40_spill] sm:$0xff] }
 0x56d   :  { %v30669_v30 = vadd.f32 %v4193_v19, %v4191_v6  ;;  %v34876_v4 = vld [vmem:[#allocation44_spill] sm:$0xff]  ;;  %v34877_v6 = vld [vmem:[#allocation47_spill] sm:$0xff] }
 0x56e   :  { %v30671_v35 = vadd.f32 %v4192_v47, %v4190_v2  ;;  %v34879_v47 = vld [vmem:[#allocation53_spill] sm:$0xff]  ;;  %v34880_v2 = vld [vmem:[#allocation56_spill] sm:$0xff] }
 0x56f   :  { %v30674_v37 = vand.u32 4294901760, %v30669_v30 }
 0x570   :  { %v30677_v5 = vand.u32 4294901760, %v30671_v35 }
 0x571   :  { %v30681_v42 = vsub.f32 %v30669_v30, %v30674_v37 }
 0x572   :  { %v30685_v23 = vsub.f32 %v30671_v35, %v30677_v5 }
 0x573   :  { %v30688_v41 = vand.u32 4294901760, %v30681_v42 }
 0x574   :  { %v30691_v19 = vand.u32 4294901760, %v30685_v23 }
 0x575   :  { %v4307_v8 = vsub.f32 %v30681_v42, %v30688_v41 }
 0x576   :  { %v4296_v52 = vsub.f32 %v30685_v23, %v30691_v19 }
 0x577   :  { %v4308_v10 = vand.u32 4294901760, %v4307_v8  ;;  %v34881_v8 = vld [vmem:[#allocation58_spill] sm:$0xff] }
 0x578   :  { %v4297_v27 = vand.u32 4294901760, %v4296_v52  ;;  %v34882_v52 = vld [vmem:[#allocation61_spill] sm:$0xff] }
 0x57a   :  { %4298 = vmatmul.mubr.f32.vlgmr.msra.gmra.mrb[8].mxu0 %v4297_v27  ;;  %21477 = vmatprep.mubr.f32.mxu1 %v4297_v27  ;;  %v34883_v27 = vld [vmem:[#allocation62_spill] sm:$0xff] }
 0x57b   :  { %24342 = vmatpush1.bf16.msra.mxu0 %v34871_v36  ;;  %21478 = vmatmul.mubr.f32.vlgmr.msra.gmra.mrb[16].mxu1 %v4308_v10 }
 0x57c   :  { %24534 = vmatpush3.bf16.msra.mxu1 %v34827_v54  ;;  %21512 = vmatprep.mubr.f32.mxu1 %v30677_v5 }
 0x57d   :  { %4303 = vmatprep.mubr.f32.mxu0 %v34688_v32  ;;  %24344 = vmatprep.subr.bf16.mxu0 %v34872_v51 }
 0x57e   :  { %4309 = vmatmul.mubr.f32.gmra.mrb[10].mxu0 %v4308_v10  ;;  %24536 = vmatprep.subr.bf16.mxu1 %v34829_v11  ;;  %v34884_v10 = vld [vmem:[#allocation63_spill] sm:$0xff] }
 0x57f   :  { %24346 = vmatpush1.bf16.msra.mxu0 %v34873_v61  ;;  %4539 = vmatprep.mubr.f32.mxu0 %v34688_v32 }
 0x580   :  { %24538 = vmatpush3.bf16.msra.mxu1 %v34829_v11  ;;  %24348 = vmatprep.subr.bf16.mxu0 %v34874_v20 }
 0x581   :  { %24540 = vmatprep.subr.bf16.mxu1 %v34830_v58 }
 0x583   :  { %24350 = vmatpush1.bf16.msra.mxu0 %v34875_v13 }
 0x584   :  { %24542 = vmatpush3.bf16.msra.mxu1 %v34830_v58  ;;  %24352 = vmatprep.subr.bf16.mxu0 %v34876_v4 }
 0x585   :  { %24544 = vmatprep.subr.bf16.mxu1 %v34831_v14 }
 0x587   :  { %24354 = vmatpush1.bf16.msra.mxu0 %v34877_v6 }
 0x588   :  { %24546 = vmatpush3.bf16.msra.mxu1 %v34831_v14  ;;  %24356 = vmatprep.subr.bf16.mxu0 %v34878_v55 }
 0x589   :  { %24548 = vmatprep.subr.bf16.mxu1 %v34832_v25 }
 0x58b   :  { %24358 = vmatpush1.bf16.msra.mxu0 %v34879_v47 }
 0x58c   :  { %24550 = vmatpush3.bf16.msra.mxu1 %v34832_v25  ;;  %24360 = vmatprep.subr.bf16.mxu0 %v34880_v2  ;;  %v34885_v25 = vld [vmem:[#allocation65_spill] sm:$0xff]  ;;  %v34886_v2 = vld [vmem:[#allocation64_spill] sm:$0xff] }
 0x58d   :  { %24552 = vmatprep.subr.bf16.mxu1 %v34833_v45 }
 0x58f   :  { %24362 = vmatpush1.bf16.msra.mxu0 %v34881_v8 }
 0x590   :  { %24554 = vmatpush3.bf16.msra.mxu1 %v34833_v45  ;;  %24364 = vmatprep.subr.bf16.mxu0 %v34882_v52  ;;  %v34887_v45 = vld [vmem:[#allocation101_spill] sm:$0xff] }
 0x591   :  { %24556 = vmatprep.subr.bf16.mxu1 %v34834_v57 }
 0x593   :  { %24366 = vmatpush1.bf16.msra.mxu0 %v34883_v27 }
 0x594   :  { %24558 = vmatpush3.bf16.msra.mxu1 %v34834_v57  ;;  %24368 = vmatprep.subr.bf16.mxu0 %v34884_v10  ;;  %v34888_v57 = vld [vmem:[#allocation66_spill] sm:$0xff] }
 0x595   :  { %24560 = vmatprep.subr.bf16.mxu1 %v30317_v46 }
 0x597   :  { %24370 = vmatpush1.bf16.msra.mxu0 %v34885_v25 }
 0x598   :  { %24562 = vmatpush3.bf16.msra.mxu1 %v30317_v46  ;;  %24372 = vmatprep.subr.bf16.mxu0 %v34886_v2  ;;  %v34889_v46 = vld [vmem:[#allocation67_spill] sm:$0xff]  ;;  %v34892_v2 = vld [vmem:[#allocation70_spill] sm:$0xff] }
 0x599   :  { %24564 = vmatprep.subr.bf16.mxu1 %v30335_v53 }
 0x59a   :  { %4541 = vmatmul.mubr.f32.vlgmr.msra.gmra.mrb[8].mxu0 %v30677_v5 }
 0x59b   :  { %24374 = vmatpush1.bf16.msra.mxu0 %v34887_v45  ;;  %21513 = vmatmul.mubr.f32.vlgmr.msra.gmra.mrb[16].mxu1 %v30674_v37  ;;  %v34890_v45 = vld [vmem:[#allocation68_spill] sm:$0xff] }
 0x59c   :  { %24566 = vmatpush3.bf16.msra.mxu1 %v30335_v53  ;;  %21547 = vmatprep.mubr.f32.mxu1 %v30685_v23  ;;  %v34891_v53 = vld [vmem:[#allocation69_spill] sm:$0xff] }
 0x59d   :  { %4546 = vmatprep.mubr.f32.mxu0 %v34688_v32  ;;  %24376 = vmatprep.subr.bf16.mxu0 %v34888_v57  ;;  %v34893_v57 = vld [vmem:[#allocation71_spill] sm:$0xff] }
 0x59e   :  { %4548 = vmatmul.mubr.f32.gmra.mrb[10].mxu0 %v30674_v37  ;;  %24568 = vmatprep.subr.bf16.mxu1 %v30348_v44 }
 0x59f   :  { %24378 = vmatpush1.bf16.msra.mxu0 %v34889_v46  ;;  %4682 = vmatprep.mubr.f32.mxu0 %v34688_v32  ;;  %v34894_v46 = vld [vmem:[#allocation72_spill] sm:$0xff] }
 0x5a0   :  { %24570 = vmatpush3.bf16.msra.mxu1 %v30348_v44  ;;  %24380 = vmatprep.subr.bf16.mxu0 %v34890_v45  ;;  %v34895_v44 = vld [vmem:[#allocation73_spill] sm:$0xff]  ;;  %v34896_v45 = vld [vmem:[#allocation74_spill] sm:$0xff] }
 0x5a1   :  { %24572 = vmatprep.subr.bf16.mxu1 %v30368_v0 }
 0x5a3   :  { %24382 = vmatpush1.bf16.msra.mxu0 %v34891_v53 }
 0x5a4   :  { %24574 = vmatpush3.bf16.msra.mxu1 %v30368_v0  ;;  %24384 = vmatprep.subr.bf16.mxu0 %v34892_v2  ;;  %v34897_v0 = vld [vmem:[#allocation75_spill] sm:$0xff]  ;;  %v34898_v2 = vld [vmem:[#allocation76_spill] sm:$0xff] }
 0x5a5   :  { %24576 = vmatprep.subr.bf16.mxu1 %v30386_v24 }
 0x5a7   :  { %24386 = vmatpush1.bf16.msra.mxu0 %v34893_v57  ;;  %v34899_v57 = vld [vmem:[#allocation50_spill] sm:$0xff] }
 0x5a8   :  { %24578 = vmatpush3.bf16.msra.mxu1 %v30386_v24  ;;  %24388 = vmatprep.subr.bf16.mxu0 %v34894_v46  ;;  %v34900_v24 = vld [vmem:[#allocation77_spill] sm:$0xff]  ;;  %v34901_v46 = vld [vmem:[#allocation78_spill] sm:$0xff] }
 0x5a9   :  { %24580 = vmatprep.subr.bf16.mxu1 %v30404_v33 }
 0x5ab   :  { %24390 = vmatpush1.bf16.msra.mxu0 %v34895_v44  ;;  %v34902_v44 = vld [vmem:[#allocation54_spill] sm:$0xff] }
 0x5ac   :  { %24582 = vmatpush3.bf16.msra.mxu1 %v30404_v33  ;;  %24392 = vmatprep.subr.bf16.mxu0 %v34896_v45  ;;  %v34903_v33 = vld [vmem:[#allocation79_spill] sm:$0xff] }
 0x5ad   :  { %24584 = vmatprep.subr.bf16.mxu1 %v30422_v15 }
 0x5af   :  { %24394 = vmatpush1.bf16.msra.mxu0 %v34897_v0 }
 0x5b0   :  { %24586 = vmatpush3.bf16.msra.mxu1 %v30422_v15  ;;  %24396 = vmatprep.subr.bf16.mxu0 %v34898_v2 }
 0x5b1   :  { %24588 = vmatprep.subr.bf16.mxu1 %v34899_v57 }
 0x5b3   :  { %24398 = vmatpush1.bf16.msra.mxu0 %v34900_v24 }
 0x5b4   :  { %24590 = vmatpush3.bf16.msra.mxu1 %v34899_v57  ;;  %24400 = vmatprep.subr.bf16.mxu0 %v34901_v46 }
 0x5b5   :  { %24592 = vmatprep.subr.bf16.mxu1 %v34902_v44 }
 0x5b7   :  { %24402 = vmatpush1.bf16.msra.mxu0 %v34903_v33  ;;  %v34914_v33 = vld [vmem:[#allocation30_spill] sm:$0xff] }
 0x5b8   :  { %24594 = vmatpush3.bf16.msra.mxu1 %v34902_v44  ;;  %24404 = vmatprep.subr.bf16.mxu0 %v34710_v50  ;;  %v34906_v44 = vld [vmem:[#allocation21_spill] sm:$0xff] }
 0x5b9   :  { %24596 = vmatprep.subr.bf16.mxu1 %v30012_v39 }
 0x5ba   :  { %4685 = vmatmul.mubr.f32.vlgmr.msra.gmra.mrb[8].mxu0 %v30685_v23  ;;  %v34905_v23 = vld [vmem:[#allocation20_spill] sm:$0xff] }
 0x5bb   :  { %24406 = vmatpush1.bf16.msra.mxu0 %v34714_v21  ;;  %21548 = vmatmul.mubr.f32.vlgmr.msra.gmra.mrb[16].mxu1 %v30681_v42 }
 0x5bc   :  { %24598 = vmatpush3.bf16.msra.mxu1 %v30012_v39  ;;  %21582 = vmatprep.mubr.f32.mxu1 %v30691_v19 }
 0x5bd   :  { %4690 = vmatprep.mubr.f32.mxu0 %v34688_v32  ;;  %24408 = vmatprep.subr.bf16.mxu0 %v34715_v22 }
 0x5be   :  { %4693 = vmatmul.mubr.f32.gmra.mrb[10].mxu0 %v30681_v42  ;;  %24600 = vmatprep.subr.bf16.mxu1 %v30029_v18  ;;  %v34904_v42 = vld [vmem:[#allocation18_spill] sm:$0xff] }
 0x5bf   :  { %24410 = vmatpush1.bf16.msra.mxu0 %v34719_v26  ;;  %4795 = vmatprep.mubr.f32.mxu0 %v34688_v32 }
 0x5c0   :  { %24602 = vmatpush3.bf16.msra.mxu1 %v30029_v18  ;;  %24412 = vmatprep.subr.bf16.mxu0 %v34720_v38 }
 0x5c1   :  { %24604 = vmatprep.subr.bf16.mxu1 %v34821_v43 }
 0x5c3   :  { %24414 = vmatpush1.bf16.msra.mxu0 %v34724_v63 }
 0x5c4   :  { %24606 = vmatpush3.bf16.msra.mxu1 %v34821_v43  ;;  %24416 = vmatprep.subr.bf16.mxu0 %v34725_v60 }
 0x5c5   :  { %24608 = vmatprep.subr.bf16.mxu1 %v34822_v29 }
 0x5c7   :  { %24418 = vmatpush1.bf16.msra.mxu0 %v34729_v7 }
 0x5c8   :  { %24610 = vmatpush3.bf16.msra.mxu1 %v34822_v29  ;;  %24420 = vmatprep.subr.bf16.mxu0 %v34730_v49 }
 0x5c9   :  { %24612 = vmatprep.subr.bf16.mxu1 %v34823_v34 }
 0x5cb   :  { %24422 = vmatpush1.bf16.msra.mxu0 %v34734_v3 }
 0x5cc   :  { %24614 = vmatpush3.bf16.msra.mxu1 %v34823_v34  ;;  %24424 = vmatprep.subr.bf16.mxu0 %v34735_v31 }
 0x5cd   :  { %24616 = vmatprep.subr.bf16.mxu1 %v34824_v17 }
 0x5cf   :  { %24426 = vmatpush1.bf16.msra.mxu0 %v34739_v56 }
 0x5d0   :  { %24618 = vmatpush3.bf16.msra.mxu1 %v34824_v17  ;;  %24428 = vmatprep.subr.bf16.mxu0 %v34740_v48 }
 0x5d1   :  { %24620 = vmatprep.subr.bf16.mxu1 %v34825_v62 }
 0x5d3   :  { %24430 = vmatpush1.bf16.msra.mxu0 %v34742_v40 }
 0x5d4   :  { %24622 = vmatpush3.bf16.msra.mxu1 %v34825_v62  ;;  %24432 = vmatprep.subr.bf16.mxu0 %v34743_v16 }
 0x5d5   :  { %24624 = vmatprep.subr.bf16.mxu1 %v34826_v59 }
 0x5d7   :  { %24434 = vmatpush1.bf16.msra.mxu0 %v34748_v9 }
 0x5d8   :  { %24626 = vmatpush3.bf16.msra.mxu1 %v34826_v59  ;;  %24436 = vmatprep.subr.bf16.mxu0 %v34904_v42  ;;  %v34907_v42 = vld [vmem:[#allocation109_spill] sm:$0xff] }
 0x5d9   :  { %24628 = vmatprep.subr.bf16.mxu1 %v30559_v12 }
 0x5da   :  { %4799 = vmatmul.mubr.f32.vlgmr.msra.gmra.mrb[8].mxu0 %v30691_v19  ;;  %v34908_v19 = vld [vmem:[#allocation111_spill] sm:$0xff] }
 0x5db   :  { %24438 = vmatpush1.bf16.msra.mxu0 %v34905_v23  ;;  %21583 = vmatmul.mubr.f32.vlgmr.msra.gmra.mrb[16].mxu1 %v30688_v41  ;;  %v34910_v23 = vld [vmem:[#allocation114_spill] sm:$0xff] }
 0x5dc   :  { %24630 = vmatpush3.bf16.msra.mxu1 %v30559_v12  ;;  %21617 = vmatprep.mubr.f32.mxu1 %v30677_v5  ;;  %v34909_v12 = vld [vmem:[#allocation112_spill] sm:$0xff] }
 0x5dd   :  { %4804 = vmatprep.mubr.f32.mxu0 %v34688_v32  ;;  %24440 = vmatprep.subr.bf16.mxu0 %v34906_v44  ;;  %v34911_v44 = vld [vmem:[#allocation60_spill] sm:$0xff] }
 0x5de   :  { %4808 = vmatmul.mubr.f32.gmra.mrb[10].mxu0 %v30688_v41  ;;  %24632 = vmatprep.subr.bf16.mxu1 %v30567_v1  ;;  %v34912_v41 = vld [vmem:[#allocation35_spill] sm:$0xff] }
 0x5df   :  { %24442 = vmatpush1.bf16.msra.mxu0 %v34907_v42  ;;  %4974 = vmatprep.mubr.f32.mxu0 %v34688_v32  ;;  %v34913_v42 = vld [vmem:[#allocation37_spill] sm:$0xff] }
 0x5e0   :  { %24634 = vmatpush3.bf16.msra.mxu1 %v30567_v1  ;;  %24444 = vmatprep.subr.bf16.mxu0 %v34908_v19  ;;  %v34915_v1 = vld [vmem:[#allocation39_spill] sm:$0xff]  ;;  %v34916_v19 = vld [vmem:[#allocation42_spill] sm:$0xff] }
 0x5e1   :  { %24636 = vmatprep.subr.bf16.mxu1 %v30577_v28 }
 0x5e3   :  { %24446 = vmatpush1.bf16.msra.mxu0 %v34909_v12  ;;  %v34917_v12 = vld [vmem:[#allocation102_spill] sm:$0xff] }
 0x5e4   :  { %24638 = vmatpush3.bf16.msra.mxu1 %v30577_v28  ;;  %24448 = vmatprep.subr.bf16.mxu0 %v34910_v23  ;;  %v34918_v28 = vld [vmem:[#allocation43_spill] sm:$0xff]  ;;  %v34919_v23 = vld [vmem:[#allocation46_spill] sm:$0xff] }
 0x5e5   :  { %24640 = vmatprep.subr.bf16.mxu1 %v34911_v44 }
 0x5e7   :  { %24450 = vmatpush1.bf16.msra.mxu0 %v34912_v41  ;;  %v34920_v41 = vld [vmem:[#allocation103_spill] sm:$0xff] }
 0x5e8   :  { %24642 = vmatpush3.bf16.msra.mxu1 %v34911_v44  ;;  %24452 = vmatprep.subr.bf16.mxu0 %v34913_v42  ;;  %v34921_v44 = vld [vmem:[#allocation48_spill] sm:$0xff]  ;;  %v34922_v42 = vld [vmem:[#allocation51_spill] sm:$0xff] }
 0x5e9   :  { %24644 = vmatprep.subr.bf16.mxu1 %v34914_v33 }
 0x5eb   :  { %24454 = vmatpush1.bf16.msra.mxu0 %v34915_v1  ;;  %v34923_v1 = vld [vmem:[#allocation11_spill] sm:$0xff] }
 0x5ec   :  { %24646 = vmatpush3.bf16.msra.mxu1 %v34914_v33  ;;  %24456 = vmatprep.subr.bf16.mxu0 %v34916_v19  ;;  %v34924_v33 = vld [vmem:[#allocation52_spill] sm:$0xff] }
 0x5ed   :  { %24648 = vmatprep.subr.bf16.mxu1 %v34917_v12  ;;  %v30936_v19 = vld [vmem:[%s34046_s1 + $0x18] sm:$0xff] }
 0x5ee   :  { %34928 = vst [vmem:[#allocation13_spill] sm:$0xff] %v30936_v19 }
 0x5ef   :  { %24458 = vmatpush1.bf16.msra.mxu0 %v34918_v28 }
 0x5f0   :  { %24650 = vmatpush3.bf16.msra.mxu1 %v34917_v12  ;;  %24460 = vmatprep.subr.bf16.mxu0 %v34919_v23  ;;  %v30930_v23 = vld [vmem:[%s34046_s1 + $0x8] sm:$0xff] }
 0x5f1   :  { %24652 = vmatprep.subr.bf16.mxu1 %v34920_v41  ;;  %34927 = vst [vmem:[#allocation12_spill] sm:$0xff] %v30930_v23 }
 0x5f3   :  { %24462 = vmatpush1.bf16.msra.mxu0 %v34921_v44 }
 0x5f4   :  { %24654 = vmatpush3.bf16.msra.mxu1 %v34920_v41  ;;  %24464 = vmatprep.subr.bf16.mxu0 %v34922_v42 }
 0x5f5   :  { %24656 = vmatprep.subr.bf16.mxu1 %v34923_v1 }
 0x5f7   :  { %24466 = vmatpush1.bf16.msra.mxu0 %v34924_v33 }
 0x5f8   :  { %24658 = vmatpush3.bf16.msra.mxu1 %v34923_v1  ;;  %24468 = vmatprep.subr.bf16.mxu0 %v34710_v50  ;;  %v30924_v1 = vld [vmem:[%s34046_s1] sm:$0xff] }
 0x5f9   :  { %24660 = vmatprep.subr.bf16.mxu1 %v30012_v39  ;;  %34926 = vst [vmem:[#allocation100_spill] sm:$0xff] %v30924_v1 }
 0x5fa   :  { %4976 = vmatmul.mubr.f32.vlgmr.msra.gmra.mrb[8].mxu0 %v30677_v5 }
 0x5fb   :  { %24470 = vmatpush1.bf16.msra.mxu0 %v34714_v21  ;;  %21618 = vmatmul.mubr.f32.vlgmr.msra.gmra.mrb[16].mxu1 %v30674_v37 }
 0x5fc   :  { %24662 = vmatpush3.bf16.msra.mxu1 %v30012_v39  ;;  %21652 = vmatprep.mubr.f32.mxu1 %v30677_v5 }
 0x5fd   :  { %4981 = vmatprep.mubr.f32.mxu0 %v34688_v32  ;;  %24472 = vmatprep.subr.bf16.mxu0 %v34715_v22 }
 0x5fe   :  { %4983 = vmatmul.mubr.f32.gmra.mrb[10].mxu0 %v30674_v37  ;;  %24664 = vmatprep.subr.bf16.mxu1 %v30029_v18 }
 0x5ff   :  { %24474 = vmatpush1.bf16.msra.mxu0 %v34719_v26  ;;  %5085 = vmatprep.mubr.f32.mxu0 %v34688_v32 }
 0x600   :  { %24666 = vmatpush3.bf16.msra.mxu1 %v30029_v18  ;;  %24476 = vmatprep.subr.bf16.mxu0 %v34720_v38 }
 0x601   :  { %24668 = vmatprep.subr.bf16.mxu1 %v34821_v43 }
 0x603   :  { %24478 = vmatpush1.bf16.msra.mxu0 %v34724_v63 }
 0x604   :  { %24670 = vmatpush3.bf16.msra.mxu1 %v34821_v43  ;;  %24480 = vmatprep.subr.bf16.mxu0 %v34725_v60 }
 0x605   :  { %24672 = vmatprep.subr.bf16.mxu1 %v34822_v29 }
 0x607   :  { %24482 = vmatpush1.bf16.msra.mxu0 %v34729_v7 }
 0x608   :  { %24674 = vmatpush3.bf16.msra.mxu1 %v34822_v29  ;;  %24484 = vmatprep.subr.bf16.mxu0 %v34730_v49 }
 0x609   :  { %24676 = vmatprep.subr.bf16.mxu1 %v34823_v34 }
 0x60b   :  { %24486 = vmatpush1.bf16.msra.mxu0 %v34734_v3 }
 0x60c   :  { %24678 = vmatpush3.bf16.msra.mxu1 %v34823_v34  ;;  %24488 = vmatprep.subr.bf16.mxu0 %v34735_v31 }
 0x60d   :  { %24680 = vmatprep.subr.bf16.mxu1 %v34824_v17 }
 0x60f   :  { %24490 = vmatpush1.bf16.msra.mxu0 %v34739_v56 }
 0x610   :  { %24682 = vmatpush3.bf16.msra.mxu1 %v34824_v17  ;;  %24492 = vmatprep.subr.bf16.mxu0 %v34740_v48 }
 0x611   :  { %24684 = vmatprep.subr.bf16.mxu1 %v34825_v62 }
 0x613   :  { %24494 = vmatpush1.bf16.msra.mxu0 %v34742_v40 }
 0x614   :  { %24686 = vmatpush3.bf16.msra.mxu1 %v34825_v62  ;;  %24496 = vmatprep.subr.bf16.mxu0 %v34743_v16 }
 0x615   :  { %24688 = vmatprep.subr.bf16.mxu1 %v34826_v59 }
 0x617   :  { %24498 = vmatpush1.bf16.msra.mxu0 %v34748_v9 }
 0x618   :  { %24690 = vmatpush3.bf16.msra.mxu1 %v34826_v59  ;;  %24692 = vmatprep.subr.bf16.mxu0 %v34710_v50 }
 0x619   :  { %24884 = vmatprep.subr.bf16.mxu1 %v30012_v39 }
 0x61a   :  { %5087 = vmatmul.mubr.f32.vlgmr.msra.gmra.mrb[8].mxu0 %v30677_v5 }
 0x61b   :  { %21653 = vmatmul.mubr.f32.vlgmr.msra.gmra.mrb[16].mxu1 %v30674_v37  ;;  %5092 = vmatprep.mubr.f32.mxu0 %v34688_v32 }
 0x61c   :  { %24694 = vmatpush1.bf16.msra.mxu0 %v34714_v21  ;;  %24886 = vmatpush3.bf16.msra.mxu1 %v30012_v39 }
 0x61d   :  { %24696 = vmatprep.subr.bf16.mxu0 %v34715_v22  ;;  %24888 = vmatprep.subr.bf16.mxu1 %v30029_v18 }
 0x61e   :  { %5094 = vmatmul.mubr.f32.gmra.mrb[10].mxu0 %v30674_v37  ;;  %v34925_v37 = vld [vmem:[#allocation31_spill] sm:$0xff] }
 0x61f   :  { %5924 = vmatprep.mubr.f32.mxu0 %v34688_v32 }
 0x620   :  { %24698 = vmatpush1.bf16.msra.mxu0 %v34719_v26  ;;  %24890 = vmatpush3.bf16.msra.mxu1 %v30029_v18 }
 0x621   :  { %24700 = vmatprep.subr.bf16.mxu0 %v34720_v38  ;;  %24892 = vmatprep.subr.bf16.mxu1 %v34821_v43 }
 0x624   :  { %24702 = vmatpush1.bf16.msra.mxu0 %v34724_v63  ;;  %24894 = vmatpush3.bf16.msra.mxu1 %v34821_v43 }
 0x625   :  { %24704 = vmatprep.subr.bf16.mxu0 %v34725_v60  ;;  %24896 = vmatprep.subr.bf16.mxu1 %v34822_v29 }
 0x628   :  { %24706 = vmatpush1.bf16.msra.mxu0 %v34729_v7  ;;  %24898 = vmatpush3.bf16.msra.mxu1 %v34822_v29 }
 0x629   :  { %24708 = vmatprep.subr.bf16.mxu0 %v34730_v49  ;;  %24900 = vmatprep.subr.bf16.mxu1 %v34823_v34 }
 0x62c   :  { %24710 = vmatpush1.bf16.msra.mxu0 %v34734_v3  ;;  %24902 = vmatpush3.bf16.msra.mxu1 %v34823_v34 }
 0x62d   :  { %24712 = vmatprep.subr.bf16.mxu0 %v34735_v31  ;;  %24904 = vmatprep.subr.bf16.mxu1 %v34824_v17 }
 0x630   :  { %24714 = vmatpush1.bf16.msra.mxu0 %v34739_v56  ;;  %24906 = vmatpush3.bf16.msra.mxu1 %v34824_v17  ;;  %v30948_v17 = vld [vmem:[%s34051_s6] ss:$0 sm:$0xff] }
 0x631   :  { %24716 = vmatprep.subr.bf16.mxu0 %v34740_v48  ;;  %24908 = vmatprep.subr.bf16.mxu1 %v34825_v62 }
 0x634   :  { %24718 = vmatpush1.bf16.msra.mxu0 %v34742_v40  ;;  %24910 = vmatpush3.bf16.msra.mxu1 %v34825_v62 }
 0x635   :  { %24720 = vmatprep.subr.bf16.mxu0 %v34743_v16  ;;  %24912 = vmatprep.subr.bf16.mxu1 %v34826_v59 }
 0x638   :  { %24722 = vmatpush1.bf16.msra.mxu0 %v34748_v9  ;;  %24914 = vmatpush3.bf16.msra.mxu1 %v34826_v59 }
 0x639   :  { %24724 = vmatprep.subr.bf16.mxu0 %v34925_v37  ;;  %24916 = vmatprep.subr.bf16.mxu1 %v34827_v54 }
 0x6ed   :  { %v5088_v5 = vpop.f32.mrb[8].mxu0 }
 0x6ee   :  { %v27671_v33 = vadd.f32 %v30924_v1, %v5088_v5  ;;  %v5090_v41 = vpop.f32.mrb[9].mxu0  ;;  %v21654_v42 = vpop.f32.mrb[16].mxu1 }
 0x6ef   :  { %v5774_v44 = vpop.f32.mrb[17].mxu1  ;;  %v27672_v37 = vadd.f32 %v30930_v23, %v5090_v41 }
 0x6f0   :  { %v19558_v12 = vmul.f32 -1.442695, %v27671_v33  ;;  %v30942_v33 = vld [vmem:[%s34046_s1 + $0x20] sm:$0xff] }
 0x6f1   :  { %v5095_v28 = vpop.f32.mrb[10].mxu0  ;;  %34929 = vst [vmem:[#allocation14_spill] sm:$0xff] %v30942_v33  ;;  %v19560_v62 = vmul.f32 -1.442695, %v27672_v37  ;;  %v5813_v37 = vadd.f32 %v30948_v17, %v21654_v42 }
 0x6f2   :  { %28322 = vpow2.f32 %v19558_v12  ;;  %v27673_v5 = vadd.f32 %v30936_v19, %v5095_v28  ;;  %v5097_v1 = vpop.f32.mrb[11].mxu0 }
 0x6f3   :  { %v27674_v9 = vadd.f32 %v30942_v33, %v5097_v1  ;;  %v5812_v1 = vadd.f32 %v30948_v17, %v5774_v44 }
 0x6f4   :  { %v19559_v59 = vmul.f32 -1.442695, %v27673_v5 }
 0x6f5   :  { %v19561_v41 = vmul.f32 -1.442695, %v27674_v9 }
 0x6f6   :  { %28324 = vpow2.f32 %v19559_v59 }
 0x6f7   :  { %28326 = vpow2.f32 %v19560_v62 }
 0x6f8   :  { %28328 = vpow2.f32 %v19561_v41 }
 0x6fc   :  { %v28323_v12 = vpop.eup %28322 }
 0x6fd   :  { %v5792_v23 = vadd.f32 1.0, %v28323_v12  ;;  %v34931_v12 = vld [vmem:[#allocation87_spill] sm:$0xff] }
 0x6ff   :  { %28330 = vrcp.f32 %v5792_v23  ;;  %v34930_v23 = vld [vmem:[#allocation88_spill] sm:$0xff] }
 0x700   :  { %v28325_v16 = vpop.eup %28324 }
 0x701   :  { %v5793_v40 = vadd.f32 1.0, %v28325_v16  ;;  %v28327_v28 = vpop.eup %28326 }
 0x702   :  { %v28329_v5 = vpop.eup %28328  ;;  %v5806_v19 = vadd.f32 1.0, %v28327_v28 }
 0x703   :  { %28332 = vrcp.f32 %v5793_v40  ;;  %v5807_v9 = vadd.f32 1.0, %v28329_v5 }
 0x704   :  { %28334 = vrcp.f32 %v5806_v19 }
 0x705   :  { %28336 = vrcp.f32 %v5807_v9 }
 0x709   :  { %v28331_v59 = vpop.eup %28330 }
 0x70a   :  { %v5814_v62 = vmul.f32 %v28331_v59, %v5812_v1 }
 0x70c   :  { %v5816_v41 = vadd.f32 %v5814_v62, %v34930_v23 }
 0x70d   :  { %v28333_v16 = vpop.eup %28332 }
 0x70e   :  { %28338 = vtanh.f32 %v5816_v41  ;;  %v5815_v40 = vmul.f32 %v28333_v16, %v5813_v37  ;;  %v28335_v33 = vpop.eup %28334 }
 0x70f   :  { %v28337_v48 = vpop.eup %28336  ;;  %v5820_v56 = vsub.f32 1.0, %v28335_v33  ;;  %v5824_v44 = vmul.f32 %v28335_v33, %v30671_v35 }
 0x710   :  { %v5817_v28 = vadd.f32 %v5815_v40, %v34931_v12  ;;  %v5821_v1 = vsub.f32 1.0, %v28337_v48  ;;  %v5825_v62 = vmul.f32 %v28337_v48, %v30669_v30  ;;  %v34932_v40 = vld [vmem:[#allocation56_spill] sm:$0xff]  ;;  %v34933_v12 = vld [vmem:[#allocation15_spill] sm:$0xff] }
 0x712   :  { %28340 = vtanh.f32 %v5817_v28  ;;  %v34934_v28 = vld [vmem:[#allocation16_spill] sm:$0xff] }
 0x718   :  { %v28339_v34 = vpop.eup %28338 }
 0x719   :  { %v5822_v5 = vmul.f32 %v28339_v34, %v5820_v56 }
 0x71b   :  { %v30955_v19 = vadd.f32 %v5824_v44, %v5822_v5  ;;  %v34935_v44 = vld [vmem:[#allocation17_spill] sm:$0xff]  ;;  %v34936_v5 = vld [vmem:[#allocation64_spill] sm:$0xff] }
 0x71c   :  { %v28341_v42 = vpop.eup %28340 }
 0x71d   :  { %v30958_v59 = vand.u32 4294901760, %v30955_v19  ;;  %v5823_v9 = vmul.f32 %v28341_v42, %v5821_v1  ;;  %v34937_v1 = vld [vmem:[#allocation19_spill] sm:$0xff]  ;;  %v34938_v42 = vld [vmem:[#allocation101_spill] sm:$0xff] }
 0x71f   :  { %v30963_v37 = vsub.f32 %v30955_v19, %v30958_v59  ;;  %v30965_v23 = vadd.f32 %v5825_v62, %v5823_v9  ;;  %v34939_v9 = vld [vmem:[#allocation66_spill] sm:$0xff]  ;;  %v34940_v62 = vld [vmem:[#allocation108_spill] sm:$0xff] }
 0x721   :  { %v30968_v41 = vand.u32 4294901760, %v30963_v37  ;;  %v30971_v56 = vand.u32 4294901760, %v30965_v23 }
 0x723   :  { %v5928_v34 = vsub.f32 %v30963_v37, %v30968_v41  ;;  %v30977_v35 = vsub.f32 %v30965_v23, %v30971_v56 }
 0x725   :  { %v5929_v48 = vand.u32 4294901760, %v5928_v34  ;;  %v30980_v30 = vand.u32 4294901760, %v30977_v35  ;;  %v34941_v34 = vld [vmem:[#allocation67_spill] sm:$0xff] }
 0x727   :  { %5930 = vmatmul.mubr.f32.vlgmr.msra.gmra.mrb[12].mxu0 %v5929_v48  ;;  %21687 = vmatprep.mubr.f32.mxu1 %v5929_v48  ;;  %v5939_v33 = vsub.f32 %v30977_v35, %v30980_v30  ;;  %v34942_v48 = vld [vmem:[#allocation68_spill] sm:$0xff] }
 0x728   :  { %24726 = vmatpush1.bf16.msra.mxu0 %v34871_v36  ;;  %5935 = vmatprep.mubr.f32.mxu0 %v34688_v32 }
 0x729   :  { %24728 = vmatprep.subr.bf16.mxu0 %v34872_v51  ;;  %v5940_v16 = vand.u32 4294901760, %v5939_v33  ;;  %v34943_v33 = vld [vmem:[#allocation110_spill] sm:$0xff] }
 0x72b   :  { %5941 = vmatmul.mubr.f32.gmra.mrb[14].mxu0 %v5940_v16  ;;  %21688 = vmatmul.mubr.f32.vlgmr.msra.gmra.mrb[18].mxu1 %v5940_v16  ;;  %v34944_v16 = vld [vmem:[#allocation70_spill] sm:$0xff] }
 0x72c   :  { %24730 = vmatpush1.bf16.msra.mxu0 %v34873_v61  ;;  %24918 = vmatpush3.bf16.msra.mxu1 %v34827_v54 }
 0x72d   :  { %21722 = vmatprep.mubr.f32.mxu1 %v30958_v59  ;;  %24732 = vmatprep.subr.bf16.mxu0 %v34874_v20 }
 0x72e   :  { %24920 = vmatprep.subr.bf16.mxu1 %v34829_v11  ;;  %6171 = vmatprep.mubr.f32.mxu0 %v34688_v32 }
 0x730   :  { %24734 = vmatpush1.bf16.msra.mxu0 %v34875_v13  ;;  %24922 = vmatpush3.bf16.msra.mxu1 %v34829_v11 }
 0x731   :  { %24736 = vmatprep.subr.bf16.mxu0 %v34876_v4  ;;  %24924 = vmatprep.subr.bf16.mxu1 %v34830_v58 }
 0x734   :  { %24738 = vmatpush1.bf16.msra.mxu0 %v34877_v6  ;;  %24926 = vmatpush3.bf16.msra.mxu1 %v34830_v58 }
 0x735   :  { %24740 = vmatprep.subr.bf16.mxu0 %v34878_v55  ;;  %24928 = vmatprep.subr.bf16.mxu1 %v34831_v14 }
 0x738   :  { %24742 = vmatpush1.bf16.msra.mxu0 %v34879_v47  ;;  %24930 = vmatpush3.bf16.msra.mxu1 %v34831_v14 }
 0x739   :  { %24744 = vmatprep.subr.bf16.mxu0 %v34932_v40  ;;  %24932 = vmatprep.subr.bf16.mxu1 %v34933_v12 }
 0x73c   :  { %24746 = vmatpush1.bf16.msra.mxu0 %v34881_v8  ;;  %24934 = vmatpush3.bf16.msra.mxu1 %v34933_v12 }
 0x73d   :  { %24748 = vmatprep.subr.bf16.mxu0 %v34882_v52  ;;  %24936 = vmatprep.subr.bf16.mxu1 %v34934_v28 }
 0x740   :  { %24750 = vmatpush1.bf16.msra.mxu0 %v34883_v27  ;;  %24938 = vmatpush3.bf16.msra.mxu1 %v34934_v28 }
 0x741   :  { %24752 = vmatprep.subr.bf16.mxu0 %v34884_v10  ;;  %24940 = vmatprep.subr.bf16.mxu1 %v34935_v44 }
 0x744   :  { %24754 = vmatpush1.bf16.msra.mxu0 %v34885_v25  ;;  %24942 = vmatpush3.bf16.msra.mxu1 %v34935_v44 }
 0x745   :  { %24756 = vmatprep.subr.bf16.mxu0 %v34936_v5  ;;  %24944 = vmatprep.subr.bf16.mxu1 %v34937_v1 }
 0x747   :  { %6173 = vmatmul.mubr.f32.vlgmr.msra.gmra.mrb[12].mxu0 %v30958_v59 }
 0x748   :  { %24758 = vmatpush1.bf16.msra.mxu0 %v34938_v42  ;;  %24946 = vmatpush3.bf16.msra.mxu1 %v34937_v1  ;;  %v34946_v42 = vld [vmem:[#allocation71_spill] sm:$0xff] }
 0x749   :  { %6178 = vmatprep.mubr.f32.mxu0 %v34688_v32  ;;  %24760 = vmatprep.subr.bf16.mxu0 %v34939_v9  ;;  %v34945_v9 = vld [vmem:[#allocation113_spill] sm:$0xff] }
 0x74a   :  { %24948 = vmatprep.subr.bf16.mxu1 %v34940_v62 }
 0x74b   :  { %6180 = vmatmul.mubr.f32.gmra.mrb[14].mxu0 %v30971_v56  ;;  %21723 = vmatmul.mubr.f32.vlgmr.msra.gmra.mrb[18].mxu1 %v30971_v56 }
 0x74c   :  { %24762 = vmatpush1.bf16.msra.mxu0 %v34941_v34  ;;  %24950 = vmatpush3.bf16.msra.mxu1 %v34940_v62  ;;  %v34947_v34 = vld [vmem:[#allocation72_spill] sm:$0xff] }
 0x74d   :  { %21757 = vmatprep.mubr.f32.mxu1 %v30963_v37  ;;  %24764 = vmatprep.subr.bf16.mxu0 %v34942_v48  ;;  %v34948_v62 = vld [vmem:[#allocation36_spill] sm:$0xff]  ;;  %v34949_v48 = vld [vmem:[#allocation73_spill] sm:$0xff] }
 0x74e   :  { %24952 = vmatprep.subr.bf16.mxu1 %v34943_v33  ;;  %6314 = vmatprep.mubr.f32.mxu0 %v34688_v32 }
 0x750   :  { %24766 = vmatpush1.bf16.msra.mxu0 %v34891_v53  ;;  %24954 = vmatpush3.bf16.msra.mxu1 %v34943_v33  ;;  %v34950_v53 = vld [vmem:[#allocation41_spill] sm:$0xff] }
 0x751   :  { %24768 = vmatprep.subr.bf16.mxu0 %v34944_v16  ;;  %24956 = vmatprep.subr.bf16.mxu1 %v34945_v9  ;;  %v34976_v16 = vld [vmem:[#allocation42_spill] sm:$0xff] }
 0x754   :  { %24770 = vmatpush1.bf16.msra.mxu0 %v34946_v42  ;;  %24958 = vmatpush3.bf16.msra.mxu1 %v34945_v9  ;;  %v34966_v42 = vld [vmem:[#allocation109_spill] sm:$0xff]  ;;  %v34971_v9 = vld [vmem:[#allocation59_spill] sm:$0xff] }
 0x755   :  { %24772 = vmatprep.subr.bf16.mxu0 %v34947_v34  ;;  %24960 = vmatprep.subr.bf16.mxu1 %v34948_v62  ;;  %v34965_v34 = vld [vmem:[#allocation55_spill] sm:$0xff] }
 0x758   :  { %24774 = vmatpush1.bf16.msra.mxu0 %v34949_v48  ;;  %24962 = vmatpush3.bf16.msra.mxu1 %v34948_v62  ;;  %v34951_v48 = vld [vmem:[#allocation79_spill] sm:$0xff]  ;;  %v34964_v62 = vld [vmem:[#allocation21_spill] sm:$0xff] }
 0x759   :  { %24776 = vmatprep.subr.bf16.mxu0 %v34896_v45  ;;  %24964 = vmatprep.subr.bf16.mxu1 %v34950_v53  ;;  %v34963_v45 = vld [vmem:[#allocation20_spill] sm:$0xff] }
 0x75c   :  { %24778 = vmatpush1.bf16.msra.mxu0 %v34897_v0  ;;  %24966 = vmatpush3.bf16.msra.mxu1 %v34950_v53  ;;  %v34952_v0 = vld [vmem:[#allocation54_spill] sm:$0xff]  ;;  %v34962_v53 = vld [vmem:[#allocation107_spill] sm:$0xff] }
 0x75d   :  { %24780 = vmatprep.subr.bf16.mxu0 %v34898_v2  ;;  %24968 = vmatprep.subr.bf16.mxu1 %v30422_v15  ;;  %v34961_v2 = vld [vmem:[#allocation18_spill] sm:$0xff] }
 0x760   :  { %24782 = vmatpush1.bf16.msra.mxu0 %v34900_v24  ;;  %24970 = vmatpush3.bf16.msra.mxu1 %v30422_v15  ;;  %v34959_v24 = vld [vmem:[#allocation106_spill] sm:$0xff]  ;;  %v34960_v15 = vld [vmem:[#allocation29_spill] sm:$0xff] }
 0x761   :  { %24784 = vmatprep.subr.bf16.mxu0 %v34901_v46  ;;  %24972 = vmatprep.subr.bf16.mxu1 %v34899_v57  ;;  %v34958_v46 = vld [vmem:[#allocation27_spill] sm:$0xff] }
 0x764   :  { %24786 = vmatpush1.bf16.msra.mxu0 %v34951_v48  ;;  %24974 = vmatpush3.bf16.msra.mxu1 %v34899_v57  ;;  %v34956_v48 = vld [vmem:[#allocation105_spill] sm:$0xff] }
 0x765   :  { %24788 = vmatprep.subr.bf16.mxu0 %v34710_v50  ;;  %24976 = vmatprep.subr.bf16.mxu1 %v34952_v0  ;;  %v34957_v57 = vld [vmem:[#allocation25_spill] sm:$0xff] }
 0x767   :  { %6317 = vmatmul.mubr.f32.vlgmr.msra.gmra.mrb[12].mxu0 %v30963_v37  ;;  %v34953_v37 = vld [vmem:[#allocation104_spill] sm:$0xff] }
 0x768   :  { %24790 = vmatpush1.bf16.msra.mxu0 %v34714_v21  ;;  %24978 = vmatpush3.bf16.msra.mxu1 %v34952_v0  ;;  %v34955_v0 = vld [vmem:[#allocation23_spill] sm:$0xff] }
 0x769   :  { %6322 = vmatprep.mubr.f32.mxu0 %v34688_v32  ;;  %24792 = vmatprep.subr.bf16.mxu0 %v34715_v22 }
 0x76a   :  { %24980 = vmatprep.subr.bf16.mxu1 %v30012_v39 }
 0x76b   :  { %6325 = vmatmul.mubr.f32.gmra.mrb[14].mxu0 %v30977_v35  ;;  %21758 = vmatmul.mubr.f32.vlgmr.msra.gmra.mrb[18].mxu1 %v30977_v35  ;;  %v34954_v35 = vld [vmem:[#allocation22_spill] sm:$0xff] }
 0x76c   :  { %24794 = vmatpush1.bf16.msra.mxu0 %v34719_v26  ;;  %24982 = vmatpush3.bf16.msra.mxu1 %v30012_v39 }
 0x76d   :  { %21792 = vmatprep.mubr.f32.mxu1 %v30968_v41  ;;  %24796 = vmatprep.subr.bf16.mxu0 %v34720_v38 }
 0x76e   :  { %24984 = vmatprep.subr.bf16.mxu1 %v30029_v18  ;;  %6427 = vmatprep.mubr.f32.mxu0 %v34688_v32 }
 0x770   :  { %24798 = vmatpush1.bf16.msra.mxu0 %v34724_v63  ;;  %24986 = vmatpush3.bf16.msra.mxu1 %v30029_v18 }
 0x771   :  { %24800 = vmatprep.subr.bf16.mxu0 %v34725_v60  ;;  %24988 = vmatprep.subr.bf16.mxu1 %v34821_v43 }
 0x774   :  { %24802 = vmatpush1.bf16.msra.mxu0 %v34729_v7  ;;  %24990 = vmatpush3.bf16.msra.mxu1 %v34821_v43 }
 0x775   :  { %24804 = vmatprep.subr.bf16.mxu0 %v34730_v49  ;;  %24992 = vmatprep.subr.bf16.mxu1 %v34822_v29 }
 0x778   :  { %24806 = vmatpush1.bf16.msra.mxu0 %v34734_v3  ;;  %24994 = vmatpush3.bf16.msra.mxu1 %v34822_v29 }
 0x779   :  { %24808 = vmatprep.subr.bf16.mxu0 %v34735_v31  ;;  %24996 = vmatprep.subr.bf16.mxu1 %v34953_v37 }
 0x77c   :  { %24810 = vmatpush1.bf16.msra.mxu0 %v34954_v35  ;;  %24998 = vmatpush3.bf16.msra.mxu1 %v34953_v37 }
 0x77d   :  { %24812 = vmatprep.subr.bf16.mxu0 %v34955_v0  ;;  %25000 = vmatprep.subr.bf16.mxu1 %v34956_v48 }
 0x780   :  { %24814 = vmatpush1.bf16.msra.mxu0 %v34957_v57  ;;  %25002 = vmatpush3.bf16.msra.mxu1 %v34956_v48 }
 0x781   :  { %24816 = vmatprep.subr.bf16.mxu0 %v34958_v46  ;;  %25004 = vmatprep.subr.bf16.mxu1 %v34959_v24 }
 0x784   :  { %24818 = vmatpush1.bf16.msra.mxu0 %v34960_v15  ;;  %25006 = vmatpush3.bf16.msra.mxu1 %v34959_v24 }
 0x785   :  { %24820 = vmatprep.subr.bf16.mxu0 %v34961_v2  ;;  %25008 = vmatprep.subr.bf16.mxu1 %v34962_v53  ;;  %v34969_v2 = vld [vmem:[#allocation112_spill] sm:$0xff] }
 0x787   :  { %6431 = vmatmul.mubr.f32.vlgmr.msra.gmra.mrb[12].mxu0 %v30968_v41  ;;  %v34967_v41 = vld [vmem:[#allocation111_spill] sm:$0xff] }
 0x788   :  { %24822 = vmatpush1.bf16.msra.mxu0 %v34963_v45  ;;  %25010 = vmatpush3.bf16.msra.mxu1 %v34962_v53  ;;  %v34968_v45 = vld [vmem:[#allocation57_spill] sm:$0xff] }
 0x789   :  { %6436 = vmatprep.mubr.f32.mxu0 %v34688_v32  ;;  %24824 = vmatprep.subr.bf16.mxu0 %v34964_v62  ;;  %v34970_v62 = vld [vmem:[#allocation114_spill] sm:$0xff] }
 0x78a   :  { %25012 = vmatprep.subr.bf16.mxu1 %v34965_v34 }
 0x78b   :  { %6440 = vmatmul.mubr.f32.gmra.mrb[14].mxu0 %v30980_v30  ;;  %21793 = vmatmul.mubr.f32.vlgmr.msra.gmra.mrb[18].mxu1 %v30980_v30  ;;  %v34972_v30 = vld [vmem:[#allocation35_spill] sm:$0xff] }
 0x78c   :  { %24826 = vmatpush1.bf16.msra.mxu0 %v34966_v42  ;;  %25014 = vmatpush3.bf16.msra.mxu1 %v34965_v34  ;;  %v34973_v42 = vld [vmem:[#allocation37_spill] sm:$0xff]  ;;  %v34974_v34 = vld [vmem:[#allocation60_spill] sm:$0xff] }
 0x78d   :  { %21827 = vmatprep.mubr.f32.mxu1 %v30958_v59  ;;  %24828 = vmatprep.subr.bf16.mxu0 %v34967_v41  ;;  %v34975_v41 = vld [vmem:[#allocation39_spill] sm:$0xff] }
 0x78e   :  { %25016 = vmatprep.subr.bf16.mxu1 %v34968_v45  ;;  %6606 = vmatprep.mubr.f32.mxu0 %v34688_v32 }
 0x790   :  { %24830 = vmatpush1.bf16.msra.mxu0 %v34969_v2  ;;  %25018 = vmatpush3.bf16.msra.mxu1 %v34968_v45  ;;  %v34977_v2 = vld [vmem:[#allocation30_spill] sm:$0xff]  ;;  %v34978_v45 = vld [vmem:[#allocation43_spill] sm:$0xff] }
 0x791   :  { %24832 = vmatprep.subr.bf16.mxu0 %v34970_v62  ;;  %25020 = vmatprep.subr.bf16.mxu1 %v34971_v9  ;;  %v34979_v62 = vld [vmem:[#allocation46_spill] sm:$0xff] }
 0x794   :  { %24834 = vmatpush1.bf16.msra.mxu0 %v34972_v30  ;;  %25022 = vmatpush3.bf16.msra.mxu1 %v34971_v9  ;;  %v34980_v30 = vld [vmem:[#allocation102_spill] sm:$0xff]  ;;  %v34981_v9 = vld [vmem:[#allocation48_spill] sm:$0xff] }
 0x795   :  { %24836 = vmatprep.subr.bf16.mxu0 %v34973_v42  ;;  %25024 = vmatprep.subr.bf16.mxu1 %v34974_v34  ;;  %v34982_v42 = vld [vmem:[#allocation51_spill] sm:$0xff] }
 0x798   :  { %24838 = vmatpush1.bf16.msra.mxu0 %v34975_v41  ;;  %25026 = vmatpush3.bf16.msra.mxu1 %v34974_v34  ;;  %v34983_v41 = vld [vmem:[#allocation103_spill] sm:$0xff]  ;;  %v34984_v34 = vld [vmem:[#allocation52_spill] sm:$0xff] }
 0x799   :  { %24840 = vmatprep.subr.bf16.mxu0 %v34976_v16  ;;  %25028 = vmatprep.subr.bf16.mxu1 %v34977_v2  ;;  %v34989_v16 = vld [vmem:[#allocation13_spill] sm:$0xff] }
 0x79c   :  { %24842 = vmatpush1.bf16.msra.mxu0 %v34978_v45  ;;  %25030 = vmatpush3.bf16.msra.mxu1 %v34977_v2  ;;  %v34985_v45 = vld [vmem:[#allocation11_spill] sm:$0xff] }
 0x79d   :  { %24844 = vmatprep.subr.bf16.mxu0 %v34979_v62  ;;  %25032 = vmatprep.subr.bf16.mxu1 %v34980_v30 }
 0x7a0   :  { %24846 = vmatpush1.bf16.msra.mxu0 %v34981_v9  ;;  %25034 = vmatpush3.bf16.msra.mxu1 %v34980_v30  ;;  %v34988_v9 = vld [vmem:[#allocation12_spill] sm:$0xff] }
 0x7a1   :  { %24848 = vmatprep.subr.bf16.mxu0 %v34982_v42  ;;  %25036 = vmatprep.subr.bf16.mxu1 %v34983_v41 }
 0x7a4   :  { %24850 = vmatpush1.bf16.msra.mxu0 %v34984_v34  ;;  %25038 = vmatpush3.bf16.msra.mxu1 %v34983_v41 }
 0x7a5   :  { %24852 = vmatprep.subr.bf16.mxu0 %v34710_v50  ;;  %25040 = vmatprep.subr.bf16.mxu1 %v34985_v45 }
 0x7a7   :  { %6608 = vmatmul.mubr.f32.vlgmr.msra.gmra.mrb[12].mxu0 %v30958_v59 }
 0x7a8   :  { %24854 = vmatpush1.bf16.msra.mxu0 %v34714_v21  ;;  %25042 = vmatpush3.bf16.msra.mxu1 %v34985_v45  ;;  %v34987_v45 = vld [vmem:[#allocation100_spill] sm:$0xff] }
 0x7a9   :  { %6613 = vmatprep.mubr.f32.mxu0 %v34688_v32  ;;  %24856 = vmatprep.subr.bf16.mxu0 %v34715_v22 }
 0x7aa   :  { %25044 = vmatprep.subr.bf16.mxu1 %v30012_v39 }
 0x7ab   :  { %6615 = vmatmul.mubr.f32.gmra.mrb[14].mxu0 %v30971_v56  ;;  %21828 = vmatmul.mubr.f32.vlgmr.msra.gmra.mrb[18].mxu1 %v30971_v56 }
 0x7ac   :  { %24858 = vmatpush1.bf16.msra.mxu0 %v34719_v26  ;;  %25046 = vmatpush3.bf16.msra.mxu1 %v30012_v39 }
 0x7ad   :  { %21862 = vmatprep.mubr.f32.mxu1 %v30958_v59  ;;  %24860 = vmatprep.subr.bf16.mxu0 %v34720_v38 }
 0x7ae   :  { %25048 = vmatprep.subr.bf16.mxu1 %v30029_v18  ;;  %6717 = vmatprep.mubr.f32.mxu0 %v34688_v32 }
 0x7b0   :  { %24862 = vmatpush1.bf16.msra.mxu0 %v34724_v63  ;;  %25050 = vmatpush3.bf16.msra.mxu1 %v30029_v18 }
 0x7b1   :  { %24864 = vmatprep.subr.bf16.mxu0 %v34725_v60  ;;  %25052 = vmatprep.subr.bf16.mxu1 %v34821_v43 }
 0x7b4   :  { %24866 = vmatpush1.bf16.msra.mxu0 %v34729_v7  ;;  %25054 = vmatpush3.bf16.msra.mxu1 %v34821_v43 }
 0x7b5   :  { %24868 = vmatprep.subr.bf16.mxu0 %v34730_v49  ;;  %25056 = vmatprep.subr.bf16.mxu1 %v34822_v29 }
 0x7b8   :  { %24870 = vmatpush1.bf16.msra.mxu0 %v34734_v3  ;;  %25058 = vmatpush3.bf16.msra.mxu1 %v34822_v29 }
 0x7b9   :  { %24872 = vmatprep.subr.bf16.mxu0 %v34735_v31  ;;  %25060 = vmatprep.subr.bf16.mxu1 %v34953_v37 }
 0x7bc   :  { %24874 = vmatpush1.bf16.msra.mxu0 %v34954_v35  ;;  %25062 = vmatpush3.bf16.msra.mxu1 %v34953_v37 }
 0x7bd   :  { %24876 = vmatprep.subr.bf16.mxu0 %v34955_v0  ;;  %25064 = vmatprep.subr.bf16.mxu1 %v34956_v48 }
 0x7c0   :  { %24878 = vmatpush1.bf16.msra.mxu0 %v34957_v57  ;;  %25066 = vmatpush3.bf16.msra.mxu1 %v34956_v48 }
 0x7c1   :  { %24880 = vmatprep.subr.bf16.mxu0 %v34958_v46  ;;  %25068 = vmatprep.subr.bf16.mxu1 %v34959_v24 }
 0x7c4   :  { %24882 = vmatpush1.bf16.msra.mxu0 %v34960_v15  ;;  %25070 = vmatpush3.bf16.msra.mxu1 %v34959_v24 }
 0x7c5   :  { %25072 = vmatprep.subr.bf16.mxu1 %v34962_v53  ;;  %25076 = vmatprep.subr.bf16.mxu0 %v34710_v50 }
 0x7c7   :  { %6719 = vmatmul.mubr.f32.vlgmr.msra.gmra.mrb[12].mxu0 %v30958_v59  ;;  %v34986_v59 = vld [vmem:[#allocation31_spill] sm:$0xff] }
 0x7c8   :  { %25074 = vmatpush3.bf16.msra.mxu1 %v34962_v53  ;;  %6724 = vmatprep.mubr.f32.mxu0 %v34688_v32 }
 0x7c9   :  { %25078 = vmatpush1.bf16.msra.mxu0 %v34714_v21  ;;  %25268 = vmatprep.subr.bf16.mxu1 %v30012_v39 }
 0x7ca   :  { %25080 = vmatprep.subr.bf16.mxu0 %v34715_v22 }
 0x7cb   :  { %6726 = vmatmul.mubr.f32.gmra.mrb[14].mxu0 %v30971_v56  ;;  %21863 = vmatmul.mubr.f32.vlgmr.msra.gmra.mrb[18].mxu1 %v30971_v56 }
 0x7cc   :  { %25270 = vmatpush3.bf16.msra.mxu1 %v30012_v39  ;;  %7556 = vmatprep.mubr.f32.mxu0 %v34688_v32 }
 0x7cd   :  { %25082 = vmatpush1.bf16.msra.mxu0 %v34719_v26  ;;  %25272 = vmatprep.subr.bf16.mxu1 %v30029_v18 }
 0x7ce   :  { %25084 = vmatprep.subr.bf16.mxu0 %v34720_v38 }
 0x7d0   :  { %25274 = vmatpush3.bf16.msra.mxu1 %v30029_v18 }
 0x7d1   :  { %25086 = vmatpush1.bf16.msra.mxu0 %v34724_v63  ;;  %25276 = vmatprep.subr.bf16.mxu1 %v34821_v43 }
 0x7d2   :  { %25088 = vmatprep.subr.bf16.mxu0 %v34725_v60 }
 0x7d4   :  { %25278 = vmatpush3.bf16.msra.mxu1 %v34821_v43 }
 0x7d5   :  { %25090 = vmatpush1.bf16.msra.mxu0 %v34729_v7  ;;  %25280 = vmatprep.subr.bf16.mxu1 %v34822_v29 }
 0x7d6   :  { %25092 = vmatprep.subr.bf16.mxu0 %v34730_v49 }
 0x7d8   :  { %25282 = vmatpush3.bf16.msra.mxu1 %v34822_v29 }
 0x7d9   :  { %25094 = vmatpush1.bf16.msra.mxu0 %v34734_v3  ;;  %25284 = vmatprep.subr.bf16.mxu1 %v34953_v37 }
 0x7da   :  { %25096 = vmatprep.subr.bf16.mxu0 %v34735_v31 }
 0x7dc   :  { %25286 = vmatpush3.bf16.msra.mxu1 %v34953_v37 }
 0x7dd   :  { %25098 = vmatpush1.bf16.msra.mxu0 %v34954_v35  ;;  %25288 = vmatprep.subr.bf16.mxu1 %v34956_v48 }
 0x7de   :  { %25100 = vmatprep.subr.bf16.mxu0 %v34955_v0 }
 0x7e0   :  { %25290 = vmatpush3.bf16.msra.mxu1 %v34956_v48 }
 0x7e1   :  { %25102 = vmatpush1.bf16.msra.mxu0 %v34957_v57  ;;  %25292 = vmatprep.subr.bf16.mxu1 %v34959_v24 }
 0x7e2   :  { %25104 = vmatprep.subr.bf16.mxu0 %v34958_v46 }
 0x7e4   :  { %25294 = vmatpush3.bf16.msra.mxu1 %v34959_v24 }
 0x7e5   :  { %25106 = vmatpush1.bf16.msra.mxu0 %v34960_v15  ;;  %25296 = vmatprep.subr.bf16.mxu1 %v34962_v53 }
 0x7e6   :  { %25108 = vmatprep.subr.bf16.mxu0 %v34986_v59  ;;  %v34990_v59 = vld [vmem:[#allocation14_spill] sm:$0xff] }
 0x7e8   :  { %25298 = vmatpush3.bf16.msra.mxu1 %v34962_v53 }
 0x7e9   :  { %25300 = vmatprep.subr.bf16.mxu1 %v34827_v54 }
 0x89a   :  { %v6720_v56 = vpop.f32.mrb[12].mxu0 }
 0x89b   :  { %v27675_v34 = vadd.f32 %v34987_v45, %v6720_v56  ;;  %v6722_v41 = vpop.f32.mrb[13].mxu0 }
 0x89c   :  { %v27676_v30 = vadd.f32 %v34988_v9, %v6722_v41 }
 0x89d   :  { %v19562_v42 = vmul.f32 -1.442695, %v27675_v34 }
 0x89e   :  { %v6727_v62 = vpop.f32.mrb[14].mxu0  ;;  %v21864_v2 = vpop.f32.mrb[18].mxu1  ;;  %v19564_v53 = vmul.f32 -1.442695, %v27676_v30 }
 0x89f   :  { %28342 = vpow2.f32 %v19562_v42  ;;  %v27677_v15 = vadd.f32 %v34989_v16, %v6727_v62  ;;  %v6729_v24 = vpop.f32.mrb[15].mxu0  ;;  %v7406_v46 = vpop.f32.mrb[19].mxu1 }
 0x8a0   :  { %v27678_v48 = vadd.f32 %v34990_v59, %v6729_v24  ;;  %v7444_v62 = vadd.f32 %v30948_v17, %v7406_v46 }
 0x8a1   :  { %v19563_v57 = vmul.f32 -1.442695, %v27677_v15 }
 0x8a2   :  { %v19565_v0 = vmul.f32 -1.442695, %v27678_v48  ;;  %v34991_v48 = vld [vmem:[#allocation90_spill] sm:$0xff] }
 0x8a3   :  { %28344 = vpow2.f32 %v19563_v57  ;;  %v7445_v57 = vadd.f32 %v30948_v17, %v21864_v2 }
 0x8a4   :  { %28346 = vpow2.f32 %v19564_v53 }
 0x8a5   :  { %28348 = vpow2.f32 %v19565_v0 }
 0x8a9   :  { %v28343_v35 = vpop.eup %28342 }
 0x8aa   :  { %v7424_v45 = vadd.f32 1.0, %v28343_v35  ;;  %v34992_v35 = vld [vmem:[#allocation89_spill] sm:$0xff] }
 0x8ac   :  { %28350 = vrcp.f32 %v7424_v45 }
 0x8ad   :  { %v28345_v34 = vpop.eup %28344 }
 0x8ae   :  { %v7425_v9 = vadd.f32 1.0, %v28345_v34  ;;  %v28347_v41 = vpop.eup %28346 }
 0x8af   :  { %v28349_v42 = vpop.eup %28348  ;;  %v7438_v56 = vadd.f32 1.0, %v28347_v41 }
 0x8b0   :  { %28352 = vrcp.f32 %v7425_v9  ;;  %v7439_v15 = vadd.f32 1.0, %v28349_v42 }
 0x8b1   :  { %28354 = vrcp.f32 %v7438_v56 }
 0x8b2   :  { %28356 = vrcp.f32 %v7439_v15 }
 0x8b6   :  { %v28351_v16 = vpop.eup %28350 }
 0x8b7   :  { %v7446_v24 = vmul.f32 %v28351_v16, %v7444_v62 }
 0x8b9   :  { %v7448_v53 = vadd.f32 %v7446_v24, %v34991_v48 }
 0x8ba   :  { %v28353_v30 = vpop.eup %28352 }
 0x8bb   :  { %v7447_v0 = vmul.f32 %v28353_v30, %v7445_v57  ;;  %28358 = vtanh.f32 %v7448_v53  ;;  %v28355_v45 = vpop.eup %28354 }
 0x8bc   :  { %v28357_v34 = vpop.eup %28356  ;;  %v7452_v9 = vsub.f32 1.0, %v28355_v45  ;;  %v7456_v46 = vmul.f32 %v28355_v45, %v30955_v19  ;;  %v34993_v45 = vld [vmem:[#allocation101_spill] sm:$0xff] }
 0x8bd   :  { %v7449_v59 = vadd.f32 %v7447_v0, %v34992_v35  ;;  %v7453_v56 = vsub.f32 1.0, %v28357_v34  ;;  %v7457_v16 = vmul.f32 %v28357_v34, %v30965_v23  ;;  %v34994_v34 = vld [vmem:[#allocation66_spill] sm:$0xff] }
 0x8bf   :  { %28360 = vtanh.f32 %v7449_v59 }
 0x8c5   :  { %v28359_v41 = vpop.eup %28358 }
 0x8c6   :  { %v7454_v42 = vmul.f32 %v28359_v41, %v7452_v9  ;;  %v34995_v9 = vld [vmem:[#allocation108_spill] sm:$0xff]  ;;  %v34996_v41 = vld [vmem:[#allocation67_spill] sm:$0xff] }
 0x8c8   :  { %v31217_v62 = vadd.f32 %v7456_v46, %v7454_v42  ;;  %v34997_v46 = vld [vmem:[#allocation68_spill] sm:$0xff]  ;;  %v34998_v42 = vld [vmem:[#allocation69_spill] sm:$0xff] }
 0x8c9   :  { %v28361_v17 = vpop.eup %28360 }
 0x8ca   :  { %v7455_v2 = vmul.f32 %v28361_v17, %v7453_v56  ;;  %v31221_v15 = vand.u32 4294901760, %v31217_v62  ;;  %v34999_v56 = vld [vmem:[#allocation70_spill] sm:$0xff]  ;;  %v35000_v17 = vld [vmem:[#allocation113_spill] sm:$0xff] }
 0x8cc   :  { %v31225_v24 = vsub.f32 %v31217_v62, %v31221_v15  ;;  %v31227_v57 = vadd.f32 %v7457_v16, %v7455_v2  ;;  %v35001_v2 = vld [vmem:[#allocation71_spill] sm:$0xff]  ;;  %v35002_v16 = vld [vmem:[#allocation72_spill] sm:$0xff] }
 0x8ce   :  { %v31230_v48 = vand.u32 4294901760, %v31225_v24  ;;  %v31233_v19 = vand.u32 4294901760, %v31227_v57 }
 0x8d0   :  { %v7560_v53 = vsub.f32 %v31225_v24, %v31230_v48  ;;  %v31239_v23 = vsub.f32 %v31227_v57, %v31233_v19 }
 0x8d2   :  { %v7561_v30 = vand.u32 4294901760, %v7560_v53  ;;  %v31242_v0 = vand.u32 4294901760, %v31239_v23  ;;  %v35003_v53 = vld [vmem:[#allocation36_spill] sm:$0xff] }
 0x8d4   :  { %7562 = vmatmul.mubr.f32.vlgmr.msra.gmra.mrb[16].mxu0 %v7561_v30  ;;  %21897 = vmatprep.mubr.f32.mxu1 %v7561_v30  ;;  %v7571_v35 = vsub.f32 %v31239_v23, %v31242_v0  ;;  %v35004_v30 = vld [vmem:[#allocation73_spill] sm:$0xff] }
 0x8d5   :  { %25110 = vmatpush1.bf16.msra.mxu0 %v34871_v36  ;;  %7567 = vmatprep.mubr.f32.mxu0 %v34688_v32 }
 0x8d6   :  { %25112 = vmatprep.subr.bf16.mxu0 %v34872_v51  ;;  %v7572_v59 = vand.u32 4294901760, %v7571_v35  ;;  %v35005_v35 = vld [vmem:[#allocation74_spill] sm:$0xff] }
 0x8d8   :  { %7573 = vmatmul.mubr.f32.gmra.mrb[18].mxu0 %v7572_v59  ;;  %21898 = vmatmul.mubr.f32.vlgmr.msra.gmra.mrb[20].mxu1 %v7572_v59  ;;  %v35006_v59 = vld [vmem:[#allocation41_spill] sm:$0xff] }
 0x8d9   :  { %25114 = vmatpush1.bf16.msra.mxu0 %v34873_v61  ;;  %25302 = vmatpush3.bf16.msra.mxu1 %v34827_v54 }
 0x8da   :  { %21932 = vmatprep.mubr.f32.mxu1 %v31221_v15  ;;  %25116 = vmatprep.subr.bf16.mxu0 %v34874_v20 }
 0x8db   :  { %25304 = vmatprep.subr.bf16.mxu1 %v34829_v11  ;;  %7803 = vmatprep.mubr.f32.mxu0 %v34688_v32 }
 0x8dd   :  { %25118 = vmatpush1.bf16.msra.mxu0 %v34875_v13  ;;  %25306 = vmatpush3.bf16.msra.mxu1 %v34829_v11 }
 0x8de   :  { %25120 = vmatprep.subr.bf16.mxu0 %v34876_v4  ;;  %25308 = vmatprep.subr.bf16.mxu1 %v34830_v58 }
 0x8e1   :  { %25122 = vmatpush1.bf16.msra.mxu0 %v34877_v6  ;;  %25310 = vmatpush3.bf16.msra.mxu1 %v34830_v58 }
 0x8e2   :  { %25124 = vmatprep.subr.bf16.mxu0 %v34878_v55  ;;  %25312 = vmatprep.subr.bf16.mxu1 %v34831_v14 }
 0x8e5   :  { %25126 = vmatpush1.bf16.msra.mxu0 %v34879_v47  ;;  %25314 = vmatpush3.bf16.msra.mxu1 %v34831_v14 }
 0x8e6   :  { %25128 = vmatprep.subr.bf16.mxu0 %v34932_v40  ;;  %25316 = vmatprep.subr.bf16.mxu1 %v34933_v12 }
 0x8e9   :  { %25130 = vmatpush1.bf16.msra.mxu0 %v34881_v8  ;;  %25318 = vmatpush3.bf16.msra.mxu1 %v34933_v12 }
 0x8ea   :  { %25132 = vmatprep.subr.bf16.mxu0 %v34882_v52  ;;  %25320 = vmatprep.subr.bf16.mxu1 %v34934_v28 }
 0x8ed   :  { %25134 = vmatpush1.bf16.msra.mxu0 %v34883_v27  ;;  %25322 = vmatpush3.bf16.msra.mxu1 %v34934_v28 }
 0x8ee   :  { %25136 = vmatprep.subr.bf16.mxu0 %v34884_v10  ;;  %25324 = vmatprep.subr.bf16.mxu1 %v34935_v44 }
 0x8f1   :  { %25138 = vmatpush1.bf16.msra.mxu0 %v34885_v25  ;;  %25326 = vmatpush3.bf16.msra.mxu1 %v34935_v44 }
 0x8f2   :  { %25140 = vmatprep.subr.bf16.mxu0 %v34936_v5  ;;  %25328 = vmatprep.subr.bf16.mxu1 %v34937_v1 }
 0x8f4   :  { %7805 = vmatmul.mubr.f32.vlgmr.msra.gmra.mrb[16].mxu0 %v31221_v15 }
 0x8f5   :  { %25142 = vmatpush1.bf16.msra.mxu0 %v34993_v45  ;;  %25330 = vmatpush3.bf16.msra.mxu1 %v34937_v1 }
 0x8f6   :  { %7810 = vmatprep.mubr.f32.mxu0 %v34688_v32  ;;  %25144 = vmatprep.subr.bf16.mxu0 %v34994_v34 }
 0x8f7   :  { %25332 = vmatprep.subr.bf16.mxu1 %v34995_v9 }
 0x8f8   :  { %7812 = vmatmul.mubr.f32.gmra.mrb[18].mxu0 %v31233_v19  ;;  %21933 = vmatmul.mubr.f32.vlgmr.msra.gmra.mrb[20].mxu1 %v31233_v19 }
 0x8f9   :  { %25146 = vmatpush1.bf16.msra.mxu0 %v34996_v41  ;;  %25334 = vmatpush3.bf16.msra.mxu1 %v34995_v9  ;;  %v35032_v41 = vld [vmem:[#allocation59_spill] sm:$0xff]  ;;  %v35037_v9 = vld [vmem:[#allocation42_spill] sm:$0xff] }
 0x8fa   :  { %21967 = vmatprep.mubr.f32.mxu1 %v31225_v24  ;;  %25148 = vmatprep.subr.bf16.mxu0 %v34997_v46  ;;  %v35027_v46 = vld [vmem:[#allocation109_spill] sm:$0xff] }
 0x8fb   :  { %25336 = vmatprep.subr.bf16.mxu1 %v34943_v33  ;;  %7946 = vmatprep.mubr.f32.mxu0 %v34688_v32 }
 0x8fd   :  { %25150 = vmatpush1.bf16.msra.mxu0 %v34998_v42  ;;  %25338 = vmatpush3.bf16.msra.mxu1 %v34943_v33  ;;  %v35007_v42 = vld [vmem:[#allocation75_spill] sm:$0xff] }
 0x8fe   :  { %25152 = vmatprep.subr.bf16.mxu0 %v34999_v56  ;;  %25340 = vmatprep.subr.bf16.mxu1 %v35000_v17  ;;  %v35008_v56 = vld [vmem:[#allocation76_spill] sm:$0xff]  ;;  %v35026_v33 = vld [vmem:[#allocation55_spill] sm:$0xff] }
 0x901   :  { %25154 = vmatpush1.bf16.msra.mxu0 %v35001_v2  ;;  %25342 = vmatpush3.bf16.msra.mxu1 %v35000_v17  ;;  %v35009_v2 = vld [vmem:[#allocation45_spill] sm:$0xff] }
 0x902   :  { %25156 = vmatprep.subr.bf16.mxu0 %v35002_v16  ;;  %25344 = vmatprep.subr.bf16.mxu1 %v35003_v53  ;;  %v35010_v17 = vld [vmem:[#allocation77_spill] sm:$0xff]  ;;  %v35011_v16 = vld [vmem:[#allocation78_spill] sm:$0xff] }
 0x905   :  { %25158 = vmatpush1.bf16.msra.mxu0 %v35004_v30  ;;  %25346 = vmatpush3.bf16.msra.mxu1 %v35003_v53  ;;  %v35012_v30 = vld [vmem:[#allocation50_spill] sm:$0xff]  ;;  %v35013_v53 = vld [vmem:[#allocation79_spill] sm:$0xff] }
 0x906   :  { %25160 = vmatprep.subr.bf16.mxu0 %v35005_v35  ;;  %25348 = vmatprep.subr.bf16.mxu1 %v35006_v59  ;;  %v35025_v35 = vld [vmem:[#allocation21_spill] sm:$0xff] }
 0x909   :  { %25162 = vmatpush1.bf16.msra.mxu0 %v35007_v42  ;;  %25350 = vmatpush3.bf16.msra.mxu1 %v35006_v59  ;;  %v35014_v42 = vld [vmem:[#allocation54_spill] sm:$0xff]  ;;  %v35024_v59 = vld [vmem:[#allocation20_spill] sm:$0xff] }
 0x90a   :  { %25164 = vmatprep.subr.bf16.mxu0 %v35008_v56  ;;  %25352 = vmatprep.subr.bf16.mxu1 %v35009_v2  ;;  %v35023_v56 = vld [vmem:[#allocation107_spill] sm:$0xff] }
 0x90d   :  { %25166 = vmatpush1.bf16.msra.mxu0 %v35010_v17  ;;  %25354 = vmatpush3.bf16.msra.mxu1 %v35009_v2  ;;  %v35021_v17 = vld [vmem:[#allocation29_spill] sm:$0xff]  ;;  %v35022_v2 = vld [vmem:[#allocation18_spill] sm:$0xff] }
 0x90e   :  { %25168 = vmatprep.subr.bf16.mxu0 %v35011_v16  ;;  %25356 = vmatprep.subr.bf16.mxu1 %v35012_v30  ;;  %v35020_v16 = vld [vmem:[#allocation106_spill] sm:$0xff] }
 0x911   :  { %25170 = vmatpush1.bf16.msra.mxu0 %v35013_v53  ;;  %25358 = vmatpush3.bf16.msra.mxu1 %v35012_v30  ;;  %v35018_v53 = vld [vmem:[#allocation25_spill] sm:$0xff]  ;;  %v35019_v30 = vld [vmem:[#allocation27_spill] sm:$0xff] }
 0x912   :  { %25172 = vmatprep.subr.bf16.mxu0 %v34710_v50  ;;  %25360 = vmatprep.subr.bf16.mxu1 %v35014_v42 }
 0x914   :  { %7949 = vmatmul.mubr.f32.vlgmr.msra.gmra.mrb[16].mxu0 %v31225_v24  ;;  %v35015_v24 = vld [vmem:[#allocation22_spill] sm:$0xff] }
 0x915   :  { %25174 = vmatpush1.bf16.msra.mxu0 %v34714_v21  ;;  %25362 = vmatpush3.bf16.msra.mxu1 %v35014_v42  ;;  %v35017_v42 = vld [vmem:[#allocation105_spill] sm:$0xff] }
 0x916   :  { %7954 = vmatprep.mubr.f32.mxu0 %v34688_v32  ;;  %25176 = vmatprep.subr.bf16.mxu0 %v34715_v22 }
 0x917   :  { %25364 = vmatprep.subr.bf16.mxu1 %v30012_v39 }
 0x918   :  { %7957 = vmatmul.mubr.f32.gmra.mrb[18].mxu0 %v31239_v23  ;;  %21968 = vmatmul.mubr.f32.vlgmr.msra.gmra.mrb[20].mxu1 %v31239_v23  ;;  %v35016_v23 = vld [vmem:[#allocation23_spill] sm:$0xff] }
 0x919   :  { %25178 = vmatpush1.bf16.msra.mxu0 %v34719_v26  ;;  %25366 = vmatpush3.bf16.msra.mxu1 %v30012_v39 }
 0x91a   :  { %22002 = vmatprep.mubr.f32.mxu1 %v31230_v48  ;;  %25180 = vmatprep.subr.bf16.mxu0 %v34720_v38 }
 0x91b   :  { %25368 = vmatprep.subr.bf16.mxu1 %v30029_v18  ;;  %8059 = vmatprep.mubr.f32.mxu0 %v34688_v32 }
 0x91d   :  { %25182 = vmatpush1.bf16.msra.mxu0 %v34724_v63  ;;  %25370 = vmatpush3.bf16.msra.mxu1 %v30029_v18 }
 0x91e   :  { %25184 = vmatprep.subr.bf16.mxu0 %v34725_v60  ;;  %25372 = vmatprep.subr.bf16.mxu1 %v34821_v43 }
 0x921   :  { %25186 = vmatpush1.bf16.msra.mxu0 %v34729_v7  ;;  %25374 = vmatpush3.bf16.msra.mxu1 %v34821_v43 }
 0x922   :  { %25188 = vmatprep.subr.bf16.mxu0 %v34730_v49  ;;  %25376 = vmatprep.subr.bf16.mxu1 %v34822_v29 }
 0x925   :  { %25190 = vmatpush1.bf16.msra.mxu0 %v34734_v3  ;;  %25378 = vmatpush3.bf16.msra.mxu1 %v34822_v29 }
 0x926   :  { %25192 = vmatprep.subr.bf16.mxu0 %v34735_v31  ;;  %25380 = vmatprep.subr.bf16.mxu1 %v34953_v37 }
 0x929   :  { %25194 = vmatpush1.bf16.msra.mxu0 %v35015_v24  ;;  %25382 = vmatpush3.bf16.msra.mxu1 %v34953_v37 }
 0x92a   :  { %25196 = vmatprep.subr.bf16.mxu0 %v35016_v23  ;;  %25384 = vmatprep.subr.bf16.mxu1 %v35017_v42 }
 0x92d   :  { %25198 = vmatpush1.bf16.msra.mxu0 %v35018_v53  ;;  %25386 = vmatpush3.bf16.msra.mxu1 %v35017_v42 }
 0x92e   :  { %25200 = vmatprep.subr.bf16.mxu0 %v35019_v30  ;;  %25388 = vmatprep.subr.bf16.mxu1 %v35020_v16 }
 0x931   :  { %25202 = vmatpush1.bf16.msra.mxu0 %v35021_v17  ;;  %25390 = vmatpush3.bf16.msra.mxu1 %v35020_v16 }
 0x932   :  { %25204 = vmatprep.subr.bf16.mxu0 %v35022_v2  ;;  %25392 = vmatprep.subr.bf16.mxu1 %v35023_v56  ;;  %v35030_v2 = vld [vmem:[#allocation112_spill] sm:$0xff] }
 0x934   :  { %8063 = vmatmul.mubr.f32.vlgmr.msra.gmra.mrb[16].mxu0 %v31230_v48  ;;  %v35028_v48 = vld [vmem:[#allocation111_spill] sm:$0xff] }
 0x935   :  { %25206 = vmatpush1.bf16.msra.mxu0 %v35024_v59  ;;  %25394 = vmatpush3.bf16.msra.mxu1 %v35023_v56  ;;  %v35029_v59 = vld [vmem:[#allocation57_spill] sm:$0xff] }
 0x936   :  { %8068 = vmatprep.mubr.f32.mxu0 %v34688_v32  ;;  %25208 = vmatprep.subr.bf16.mxu0 %v35025_v35  ;;  %v35031_v35 = vld [vmem:[#allocation114_spill] sm:$0xff] }
 0x937   :  { %25396 = vmatprep.subr.bf16.mxu1 %v35026_v33 }
 0x938   :  { %8072 = vmatmul.mubr.f32.gmra.mrb[18].mxu0 %v31242_v0  ;;  %22003 = vmatmul.mubr.f32.vlgmr.msra.gmra.mrb[20].mxu1 %v31242_v0  ;;  %v35033_v0 = vld [vmem:[#allocation35_spill] sm:$0xff] }
 0x939   :  { %25210 = vmatpush1.bf16.msra.mxu0 %v35027_v46  ;;  %25398 = vmatpush3.bf16.msra.mxu1 %v35026_v33  ;;  %v35034_v46 = vld [vmem:[#allocation37_spill] sm:$0xff]  ;;  %v35035_v33 = vld [vmem:[#allocation60_spill] sm:$0xff] }
 0x93a   :  { %22037 = vmatprep.mubr.f32.mxu1 %v31221_v15  ;;  %25212 = vmatprep.subr.bf16.mxu0 %v35028_v48  ;;  %v35036_v48 = vld [vmem:[#allocation39_spill] sm:$0xff] }
 0x93b   :  { %25400 = vmatprep.subr.bf16.mxu1 %v35029_v59  ;;  %8238 = vmatprep.mubr.f32.mxu0 %v34688_v32 }
 0x93d   :  { %25214 = vmatpush1.bf16.msra.mxu0 %v35030_v2  ;;  %25402 = vmatpush3.bf16.msra.mxu1 %v35029_v59  ;;  %v35038_v2 = vld [vmem:[#allocation30_spill] sm:$0xff]  ;;  %v35039_v59 = vld [vmem:[#allocation43_spill] sm:$0xff] }
 0x93e   :  { %25216 = vmatprep.subr.bf16.mxu0 %v35031_v35  ;;  %25404 = vmatprep.subr.bf16.mxu1 %v35032_v41  ;;  %v35040_v35 = vld [vmem:[#allocation46_spill] sm:$0xff] }
 0x941   :  { %25218 = vmatpush1.bf16.msra.mxu0 %v35033_v0  ;;  %25406 = vmatpush3.bf16.msra.mxu1 %v35032_v41  ;;  %v35041_v0 = vld [vmem:[#allocation102_spill] sm:$0xff]  ;;  %v35042_v41 = vld [vmem:[#allocation48_spill] sm:$0xff] }
 0x942   :  { %25220 = vmatprep.subr.bf16.mxu0 %v35034_v46  ;;  %25408 = vmatprep.subr.bf16.mxu1 %v35035_v33  ;;  %v35043_v46 = vld [vmem:[#allocation51_spill] sm:$0xff] }
 0x945   :  { %25222 = vmatpush1.bf16.msra.mxu0 %v35036_v48  ;;  %25410 = vmatpush3.bf16.msra.mxu1 %v35035_v33  ;;  %v35044_v48 = vld [vmem:[#allocation103_spill] sm:$0xff]  ;;  %v35045_v33 = vld [vmem:[#allocation52_spill] sm:$0xff] }
 0x946   :  { %25224 = vmatprep.subr.bf16.mxu0 %v35037_v9  ;;  %25412 = vmatprep.subr.bf16.mxu1 %v35038_v2 }
 0x949   :  { %25226 = vmatpush1.bf16.msra.mxu0 %v35039_v59  ;;  %25414 = vmatpush3.bf16.msra.mxu1 %v35038_v2  ;;  %v35046_v59 = vld [vmem:[#allocation11_spill] sm:$0xff]  ;;  %v31485_v2 = vld [vmem:[%s34046_s1 + $0x18] sm:$0xff] }
 0x94a   :  { %25228 = vmatprep.subr.bf16.mxu0 %v35040_v35  ;;  %25416 = vmatprep.subr.bf16.mxu1 %v35041_v0  ;;  %35050 = vst [vmem:[#allocation80_spill] sm:$0xff] %v31485_v2 }
 0x94d   :  { %25230 = vmatpush1.bf16.msra.mxu0 %v35042_v41  ;;  %25418 = vmatpush3.bf16.msra.mxu1 %v35041_v0  ;;  %v31479_v41 = vld [vmem:[%s34046_s1 + $0x8] sm:$0xff] }
 0x94e   :  { %25232 = vmatprep.subr.bf16.mxu0 %v35043_v46  ;;  %25420 = vmatprep.subr.bf16.mxu1 %v35044_v48  ;;  %35049 = vst [vmem:[#allocation24_spill] sm:$0xff] %v31479_v41 }
 0x951   :  { %25234 = vmatpush1.bf16.msra.mxu0 %v35045_v33  ;;  %25422 = vmatpush3.bf16.msra.mxu1 %v35044_v48 }
 0x952   :  { %25236 = vmatprep.subr.bf16.mxu0 %v34710_v50  ;;  %25424 = vmatprep.subr.bf16.mxu1 %v35046_v59 }
 0x954   :  { %8240 = vmatmul.mubr.f32.vlgmr.msra.gmra.mrb[16].mxu0 %v31221_v15 }
 0x955   :  { %25238 = vmatpush1.bf16.msra.mxu0 %v34714_v21  ;;  %25426 = vmatpush3.bf16.msra.mxu1 %v35046_v59  ;;  %v31473_v59 = vld [vmem:[%s34046_s1] sm:$0xff] }
 0x956   :  { %8245 = vmatprep.mubr.f32.mxu0 %v34688_v32  ;;  %25240 = vmatprep.subr.bf16.mxu0 %v34715_v22  ;;  %35048 = vst [vmem:[#allocation96_spill] sm:$0xff] %v31473_v59 }
 0x957   :  { %25428 = vmatprep.subr.bf16.mxu1 %v30012_v39 }
 0x958   :  { %8247 = vmatmul.mubr.f32.gmra.mrb[18].mxu0 %v31233_v19  ;;  %22038 = vmatmul.mubr.f32.vlgmr.msra.gmra.mrb[20].mxu1 %v31233_v19 }
 0x959   :  { %25242 = vmatpush1.bf16.msra.mxu0 %v34719_v26  ;;  %25430 = vmatpush3.bf16.msra.mxu1 %v30012_v39 }
 0x95a   :  { %22072 = vmatprep.mubr.f32.mxu1 %v31221_v15  ;;  %25244 = vmatprep.subr.bf16.mxu0 %v34720_v38 }
 0x95b   :  { %25432 = vmatprep.subr.bf16.mxu1 %v30029_v18  ;;  %8349 = vmatprep.mubr.f32.mxu0 %v34688_v32 }
 0x95d   :  { %25246 = vmatpush1.bf16.msra.mxu0 %v34724_v63  ;;  %25434 = vmatpush3.bf16.msra.mxu1 %v30029_v18 }
 0x95e   :  { %25248 = vmatprep.subr.bf16.mxu0 %v34725_v60  ;;  %25436 = vmatprep.subr.bf16.mxu1 %v34821_v43 }
 0x961   :  { %25250 = vmatpush1.bf16.msra.mxu0 %v34729_v7  ;;  %25438 = vmatpush3.bf16.msra.mxu1 %v34821_v43 }
 0x962   :  { %25252 = vmatprep.subr.bf16.mxu0 %v34730_v49  ;;  %25440 = vmatprep.subr.bf16.mxu1 %v34822_v29 }
 0x965   :  { %25254 = vmatpush1.bf16.msra.mxu0 %v34734_v3  ;;  %25442 = vmatpush3.bf16.msra.mxu1 %v34822_v29 }
 0x966   :  { %25256 = vmatprep.subr.bf16.mxu0 %v34735_v31  ;;  %25444 = vmatprep.subr.bf16.mxu1 %v34953_v37 }
 0x969   :  { %25258 = vmatpush1.bf16.msra.mxu0 %v35015_v24  ;;  %25446 = vmatpush3.bf16.msra.mxu1 %v34953_v37 }
 0x96a   :  { %25260 = vmatprep.subr.bf16.mxu0 %v35016_v23  ;;  %25448 = vmatprep.subr.bf16.mxu1 %v35017_v42 }
 0x96d   :  { %25262 = vmatpush1.bf16.msra.mxu0 %v35018_v53  ;;  %25450 = vmatpush3.bf16.msra.mxu1 %v35017_v42 }
 0x96e   :  { %25264 = vmatprep.subr.bf16.mxu0 %v35019_v30  ;;  %25452 = vmatprep.subr.bf16.mxu1 %v35020_v16 }
 0x971   :  { %25266 = vmatpush1.bf16.msra.mxu0 %v35021_v17  ;;  %25454 = vmatpush3.bf16.msra.mxu1 %v35020_v16 }
 0x972   :  { %25456 = vmatprep.subr.bf16.mxu1 %v35023_v56  ;;  %25460 = vmatprep.subr.bf16.mxu0 %v34710_v50 }
 0x974   :  { %8351 = vmatmul.mubr.f32.vlgmr.msra.gmra.mrb[16].mxu0 %v31221_v15  ;;  %v35047_v15 = vld [vmem:[#allocation31_spill] sm:$0xff] }
 0x975   :  { %25458 = vmatpush3.bf16.msra.mxu1 %v35023_v56  ;;  %8356 = vmatprep.mubr.f32.mxu0 %v34688_v32 }
 0x976   :  { %25462 = vmatpush1.bf16.msra.mxu0 %v34714_v21  ;;  %25652 = vmatprep.subr.bf16.mxu1 %v30012_v39 }
 0x977   :  { %25464 = vmatprep.subr.bf16.mxu0 %v34715_v22 }
 0x978   :  { %8358 = vmatmul.mubr.f32.gmra.mrb[18].mxu0 %v31233_v19  ;;  %22073 = vmatmul.mubr.f32.vlgmr.msra.gmra.mrb[20].mxu1 %v31233_v19 }
 0x979   :  { %25654 = vmatpush3.bf16.msra.mxu1 %v30012_v39  ;;  %9188 = vmatprep.mubr.f32.mxu0 %v34688_v32 }
 0x97a   :  { %25466 = vmatpush1.bf16.msra.mxu0 %v34719_v26  ;;  %25656 = vmatprep.subr.bf16.mxu1 %v30029_v18 }
 0x97b   :  { %25468 = vmatprep.subr.bf16.mxu0 %v34720_v38 }
 0x97d   :  { %25658 = vmatpush3.bf16.msra.mxu1 %v30029_v18 }
 0x97e   :  { %25470 = vmatpush1.bf16.msra.mxu0 %v34724_v63  ;;  %25660 = vmatprep.subr.bf16.mxu1 %v34821_v43 }
 0x97f   :  { %25472 = vmatprep.subr.bf16.mxu0 %v34725_v60 }
 0x981   :  { %25662 = vmatpush3.bf16.msra.mxu1 %v34821_v43 }
 0x982   :  { %25474 = vmatpush1.bf16.msra.mxu0 %v34729_v7  ;;  %25664 = vmatprep.subr.bf16.mxu1 %v34822_v29 }
 0x983   :  { %25476 = vmatprep.subr.bf16.mxu0 %v34730_v49 }
 0x985   :  { %25666 = vmatpush3.bf16.msra.mxu1 %v34822_v29 }
 0x986   :  { %25478 = vmatpush1.bf16.msra.mxu0 %v34734_v3  ;;  %25668 = vmatprep.subr.bf16.mxu1 %v34953_v37 }
 0x987   :  { %25480 = vmatprep.subr.bf16.mxu0 %v34735_v31 }
 0x989   :  { %25670 = vmatpush3.bf16.msra.mxu1 %v34953_v37 }
 0x98a   :  { %25482 = vmatpush1.bf16.msra.mxu0 %v35015_v24  ;;  %25672 = vmatprep.subr.bf16.mxu1 %v35017_v42 }
 0x98b   :  { %25484 = vmatprep.subr.bf16.mxu0 %v35016_v23 }
 0x98d   :  { %25674 = vmatpush3.bf16.msra.mxu1 %v35017_v42  ;;  %v31497_v42 = vld [vmem:[%s34051_s6] ss:$0 sm:$0xff] }
 0x98e   :  { %25486 = vmatpush1.bf16.msra.mxu0 %v35018_v53  ;;  %25676 = vmatprep.subr.bf16.mxu1 %v35020_v16 }
 0x98f   :  { %25488 = vmatprep.subr.bf16.mxu0 %v35019_v30 }
 0x991   :  { %25678 = vmatpush3.bf16.msra.mxu1 %v35020_v16 }
 0x992   :  { %25490 = vmatpush1.bf16.msra.mxu0 %v35021_v17  ;;  %25680 = vmatprep.subr.bf16.mxu1 %v35023_v56 }
 0x993   :  { %25492 = vmatprep.subr.bf16.mxu0 %v35047_v15 }
 0x995   :  { %25682 = vmatpush3.bf16.msra.mxu1 %v35023_v56  ;;  %v31491_v56 = vld [vmem:[%s34046_s1 + $0x20] sm:$0xff] }
 0x996   :  { %25684 = vmatprep.subr.bf16.mxu1 %v34827_v54  ;;  %35051 = vst [vmem:[#allocation81_spill] sm:$0xff] %v31491_v56 }
 0xa47   :  { %v8352_v19 = vpop.f32.mrb[16].mxu0 }
 0xa48   :  { %v27679_v33 = vadd.f32 %v31473_v59, %v8352_v19  ;;  %v8354_v48 = vpop.f32.mrb[17].mxu0 }
 0xa49   :  { %v27680_v15 = vadd.f32 %v31479_v41, %v8354_v48 }
 0xa4a   :  { %v19566_v46 = vmul.f32 -1.442695, %v27679_v33 }
 0xa4b   :  { %v8359_v0 = vpop.f32.mrb[18].mxu0  ;;  %v22074_v35 = vpop.f32.mrb[20].mxu1  ;;  %v19568_v41 = vmul.f32 -1.442695, %v27680_v15 }
 0xa4c   :  { %28362 = vpow2.f32 %v19566_v46  ;;  %v27681_v9 = vadd.f32 %v31485_v2, %v8359_v0  ;;  %v8361_v19 = vpop.f32.mrb[19].mxu0  ;;  %v9038_v59 = vpop.f32.mrb[21].mxu1 }
 0xa4d   :  { %v27682_v48 = vadd.f32 %v31491_v56, %v8361_v19  ;;  %v9076_v15 = vadd.f32 %v31497_v42, %v9038_v59 }
 0xa4e   :  { %v19567_v33 = vmul.f32 -1.442695, %v27681_v9 }
 0xa4f   :  { %v19569_v46 = vmul.f32 -1.442695, %v27682_v48 }
 0xa50   :  { %28364 = vpow2.f32 %v19567_v33 }
 0xa51   :  { %28366 = vpow2.f32 %v19568_v41 }
 0xa52   :  { %28368 = vpow2.f32 %v19569_v46 }
 0xa56   :  { %v28363_v17 = vpop.eup %28362 }
 0xa57   :  { %v9056_v16 = vadd.f32 1.0, %v28363_v17  ;;  %v9077_v17 = vadd.f32 %v31497_v42, %v22074_v35 }
 0xa59   :  { %28370 = vrcp.f32 %v9056_v16  ;;  %v35052_v16 = vld [vmem:[#allocation94_spill] sm:$0xff] }
 0xa5a   :  { %v28365_v30 = vpop.eup %28364 }
 0xa5b   :  { %v9057_v0 = vadd.f32 1.0, %v28365_v30  ;;  %v28367_v2 = vpop.eup %28366 }
 0xa5c   :  { %v28369_v9 = vpop.eup %28368  ;;  %v9070_v53 = vadd.f32 1.0, %v28367_v2  ;;  %v35053_v2 = vld [vmem:[#allocation93_spill] sm:$0xff] }
 0xa5d   :  { %28372 = vrcp.f32 %v9057_v0  ;;  %v9071_v33 = vadd.f32 1.0, %v28369_v9 }
 0xa5e   :  { %28374 = vrcp.f32 %v9070_v53 }
 0xa5f   :  { %28376 = vrcp.f32 %v9071_v33 }
 0xa63   :  { %v28371_v19 = vpop.eup %28370 }
 0xa64   :  { %v9078_v41 = vmul.f32 %v28371_v19, %v9076_v15 }
 0xa66   :  { %v9080_v48 = vadd.f32 %v9078_v41, %v35052_v16 }
 0xa67   :  { %v28373_v30 = vpop.eup %28372 }
 0xa68   :  { %v9079_v46 = vmul.f32 %v28373_v30, %v9077_v17  ;;  %28378 = vtanh.f32 %v9080_v48  ;;  %v28375_v56 = vpop.eup %28374 }
 0xa69   :  { %v28377_v23 = vpop.eup %28376  ;;  %v9084_v24 = vsub.f32 1.0, %v28375_v56  ;;  %v9088_v59 = vmul.f32 %v28375_v56, %v31217_v62 }
 0xa6a   :  { %v9081_v0 = vadd.f32 %v9079_v46, %v35053_v2  ;;  %v9085_v53 = vsub.f32 1.0, %v28377_v23  ;;  %v9089_v41 = vmul.f32 %v28377_v23, %v31227_v57  ;;  %v35054_v46 = vld [vmem:[#allocation108_spill] sm:$0xff]  ;;  %v35055_v2 = vld [vmem:[#allocation67_spill] sm:$0xff] }
 0xa6c   :  { %28380 = vtanh.f32 %v9081_v0  ;;  %v35056_v0 = vld [vmem:[#allocation68_spill] sm:$0xff] }
 0xa72   :  { %v28379_v37 = vpop.eup %28378 }
 0xa73   :  { %v9086_v9 = vmul.f32 %v28379_v37, %v9084_v24 }
 0xa75   :  { %v31504_v15 = vadd.f32 %v9088_v59, %v9086_v9  ;;  %v35057_v59 = vld [vmem:[#allocation110_spill] sm:$0xff]  ;;  %v35058_v9 = vld [vmem:[#allocation69_spill] sm:$0xff] }
 0xa76   :  { %v28381_v35 = vpop.eup %28380 }
 0xa77   :  { %v9087_v19 = vmul.f32 %v28381_v35, %v9085_v53  ;;  %v31508_v33 = vand.u32 4294901760, %v31504_v15  ;;  %v35059_v53 = vld [vmem:[#allocation70_spill] sm:$0xff]  ;;  %v35060_v35 = vld [vmem:[#allocation113_spill] sm:$0xff] }
 0xa79   :  { %v31512_v17 = vsub.f32 %v31504_v15, %v31508_v33  ;;  %v31514_v16 = vadd.f32 %v9089_v41, %v9087_v19  ;;  %v35061_v19 = vld [vmem:[#allocation71_spill] sm:$0xff]  ;;  %v35062_v41 = vld [vmem:[#allocation72_spill] sm:$0xff] }
 0xa7b   :  { %v31517_v48 = vand.u32 4294901760, %v31512_v17  ;;  %v31520_v37 = vand.u32 4294901760, %v31514_v16 }
 0xa7d   :  { %v9192_v62 = vsub.f32 %v31512_v17, %v31517_v48  ;;  %v31526_v57 = vsub.f32 %v31514_v16, %v31520_v37 }
 0xa7f   :  { %v9193_v56 = vand.u32 4294901760, %v9192_v62  ;;  %v31529_v24 = vand.u32 4294901760, %v31526_v57  ;;  %v35063_v62 = vld [vmem:[#allocation36_spill] sm:$0xff] }
 0xa81   :  { %9194 = vmatmul.mubr.f32.vlgmr.msra.gmra.mrb[20].mxu0 %v9193_v56  ;;  %22107 = vmatprep.mubr.f32.mxu1 %v9193_v56  ;;  %v9203_v23 = vsub.f32 %v31526_v57, %v31529_v24  ;;  %v35064_v56 = vld [vmem:[#allocation73_spill] sm:$0xff] }
 0xa82   :  { %25494 = vmatpush1.bf16.msra.mxu0 %v34871_v36  ;;  %9199 = vmatprep.mubr.f32.mxu0 %v34688_v32 }
 0xa83   :  { %25496 = vmatprep.subr.bf16.mxu0 %v34872_v51  ;;  %v9204_v30 = vand.u32 4294901760, %v9203_v23  ;;  %v35065_v23 = vld [vmem:[#allocation74_spill] sm:$0xff] }
 0xa85   :  { %9205 = vmatmul.mubr.f32.gmra.mrb[22].mxu0 %v9204_v30  ;;  %22108 = vmatmul.mubr.f32.vlgmr.msra.gmra.mrb[22].mxu1 %v9204_v30  ;;  %v35066_v30 = vld [vmem:[#allocation41_spill] sm:$0xff] }
 0xa86   :  { %25498 = vmatpush1.bf16.msra.mxu0 %v34873_v61  ;;  %25686 = vmatpush3.bf16.msra.mxu1 %v34827_v54 }
 0xa87   :  { %22142 = vmatprep.mubr.f32.mxu1 %v31508_v33  ;;  %25500 = vmatprep.subr.bf16.mxu0 %v34874_v20 }
 0xa88   :  { %25688 = vmatprep.subr.bf16.mxu1 %v34829_v11  ;;  %9435 = vmatprep.mubr.f32.mxu0 %v34688_v32 }
 0xa8a   :  { %25502 = vmatpush1.bf16.msra.mxu0 %v34875_v13  ;;  %25690 = vmatpush3.bf16.msra.mxu1 %v34829_v11 }
 0xa8b   :  { %25504 = vmatprep.subr.bf16.mxu0 %v34876_v4  ;;  %25692 = vmatprep.subr.bf16.mxu1 %v34830_v58 }
 0xa8e   :  { %25506 = vmatpush1.bf16.msra.mxu0 %v34877_v6  ;;  %25694 = vmatpush3.bf16.msra.mxu1 %v34830_v58 }
 0xa8f   :  { %25508 = vmatprep.subr.bf16.mxu0 %v34878_v55  ;;  %25696 = vmatprep.subr.bf16.mxu1 %v34831_v14 }
 0xa92   :  { %25510 = vmatpush1.bf16.msra.mxu0 %v34879_v47  ;;  %25698 = vmatpush3.bf16.msra.mxu1 %v34831_v14 }
 0xa93   :  { %25512 = vmatprep.subr.bf16.mxu0 %v34932_v40  ;;  %25700 = vmatprep.subr.bf16.mxu1 %v34933_v12 }
 0xa96   :  { %25514 = vmatpush1.bf16.msra.mxu0 %v34881_v8  ;;  %25702 = vmatpush3.bf16.msra.mxu1 %v34933_v12 }
 0xa97   :  { %25516 = vmatprep.subr.bf16.mxu0 %v34882_v52  ;;  %25704 = vmatprep.subr.bf16.mxu1 %v34934_v28 }
 0xa9a   :  { %25518 = vmatpush1.bf16.msra.mxu0 %v34883_v27  ;;  %25706 = vmatpush3.bf16.msra.mxu1 %v34934_v28 }
 0xa9b   :  { %25520 = vmatprep.subr.bf16.mxu0 %v34884_v10  ;;  %25708 = vmatprep.subr.bf16.mxu1 %v34935_v44 }
 0xa9e   :  { %25522 = vmatpush1.bf16.msra.mxu0 %v34885_v25  ;;  %25710 = vmatpush3.bf16.msra.mxu1 %v34935_v44 }
 0xa9f   :  { %25524 = vmatprep.subr.bf16.mxu0 %v34936_v5  ;;  %25712 = vmatprep.subr.bf16.mxu1 %v34937_v1 }
 0xaa1   :  { %9437 = vmatmul.mubr.f32.vlgmr.msra.gmra.mrb[20].mxu0 %v31508_v33 }
 0xaa2   :  { %25526 = vmatpush1.bf16.msra.mxu0 %v34993_v45  ;;  %25714 = vmatpush3.bf16.msra.mxu1 %v34937_v1 }
 0xaa3   :  { %9442 = vmatprep.mubr.f32.mxu0 %v34688_v32  ;;  %25528 = vmatprep.subr.bf16.mxu0 %v34994_v34  ;;  %v35098_v34 = vld [vmem:[#allocation42_spill] sm:$0xff] }
 0xaa4   :  { %25716 = vmatprep.subr.bf16.mxu1 %v35054_v46 }
 0xaa5   :  { %9444 = vmatmul.mubr.f32.gmra.mrb[22].mxu0 %v31520_v37  ;;  %22143 = vmatmul.mubr.f32.vlgmr.msra.gmra.mrb[22].mxu1 %v31520_v37 }
 0xaa6   :  { %25530 = vmatpush1.bf16.msra.mxu0 %v35055_v2  ;;  %25718 = vmatpush3.bf16.msra.mxu1 %v35054_v46  ;;  %v35088_v2 = vld [vmem:[#allocation109_spill] sm:$0xff]  ;;  %v35093_v46 = vld [vmem:[#allocation59_spill] sm:$0xff] }
 0xaa7   :  { %22177 = vmatprep.mubr.f32.mxu1 %v31512_v17  ;;  %25532 = vmatprep.subr.bf16.mxu0 %v35056_v0  ;;  %v35087_v0 = vld [vmem:[#allocation55_spill] sm:$0xff] }
 0xaa8   :  { %25720 = vmatprep.subr.bf16.mxu1 %v35057_v59  ;;  %9578 = vmatprep.mubr.f32.mxu0 %v34688_v32 }
 0xaaa   :  { %25534 = vmatpush1.bf16.msra.mxu0 %v35058_v9  ;;  %25722 = vmatpush3.bf16.msra.mxu1 %v35057_v59  ;;  %v35067_v9 = vld [vmem:[#allocation75_spill] sm:$0xff]  ;;  %v35086_v59 = vld [vmem:[#allocation21_spill] sm:$0xff] }
 0xaab   :  { %25536 = vmatprep.subr.bf16.mxu0 %v35059_v53  ;;  %25724 = vmatprep.subr.bf16.mxu1 %v35060_v35  ;;  %v35068_v53 = vld [vmem:[#allocation76_spill] sm:$0xff] }
 0xaae   :  { %25538 = vmatpush1.bf16.msra.mxu0 %v35061_v19  ;;  %25726 = vmatpush3.bf16.msra.mxu1 %v35060_v35  ;;  %v35069_v19 = vld [vmem:[#allocation45_spill] sm:$0xff] }
 0xaaf   :  { %25540 = vmatprep.subr.bf16.mxu0 %v35062_v41  ;;  %25728 = vmatprep.subr.bf16.mxu1 %v35063_v62  ;;  %v35070_v35 = vld [vmem:[#allocation77_spill] sm:$0xff]  ;;  %v35071_v41 = vld [vmem:[#allocation78_spill] sm:$0xff] }
 0xab2   :  { %25542 = vmatpush1.bf16.msra.mxu0 %v35064_v56  ;;  %25730 = vmatpush3.bf16.msra.mxu1 %v35063_v62  ;;  %v35072_v56 = vld [vmem:[#allocation50_spill] sm:$0xff]  ;;  %v35073_v62 = vld [vmem:[#allocation79_spill] sm:$0xff] }
 0xab3   :  { %25544 = vmatprep.subr.bf16.mxu0 %v35065_v23  ;;  %25732 = vmatprep.subr.bf16.mxu1 %v35066_v30  ;;  %v35085_v23 = vld [vmem:[#allocation20_spill] sm:$0xff] }
 0xab6   :  { %25546 = vmatpush1.bf16.msra.mxu0 %v35067_v9  ;;  %25734 = vmatpush3.bf16.msra.mxu1 %v35066_v30  ;;  %v35074_v9 = vld [vmem:[#allocation54_spill] sm:$0xff]  ;;  %v35084_v30 = vld [vmem:[#allocation107_spill] sm:$0xff] }
 0xab7   :  { %25548 = vmatprep.subr.bf16.mxu0 %v35068_v53  ;;  %25736 = vmatprep.subr.bf16.mxu1 %v35069_v19  ;;  %v35083_v53 = vld [vmem:[#allocation18_spill] sm:$0xff] }
 0xaba   :  { %25550 = vmatpush1.bf16.msra.mxu0 %v35070_v35  ;;  %25738 = vmatpush3.bf16.msra.mxu1 %v35069_v19  ;;  %v35081_v35 = vld [vmem:[#allocation106_spill] sm:$0xff]  ;;  %v35082_v19 = vld [vmem:[#allocation29_spill] sm:$0xff] }
 0xabb   :  { %25552 = vmatprep.subr.bf16.mxu0 %v35071_v41  ;;  %25740 = vmatprep.subr.bf16.mxu1 %v35072_v56  ;;  %v35080_v41 = vld [vmem:[#allocation27_spill] sm:$0xff] }
 0xabe   :  { %25554 = vmatpush1.bf16.msra.mxu0 %v35073_v62  ;;  %25742 = vmatpush3.bf16.msra.mxu1 %v35072_v56  ;;  %v35078_v62 = vld [vmem:[#allocation105_spill] sm:$0xff] }
 0xabf   :  { %25556 = vmatprep.subr.bf16.mxu0 %v34710_v50  ;;  %25744 = vmatprep.subr.bf16.mxu1 %v35074_v9  ;;  %v35079_v56 = vld [vmem:[#allocation25_spill] sm:$0xff] }
 0xac1   :  { %9581 = vmatmul.mubr.f32.vlgmr.msra.gmra.mrb[20].mxu0 %v31512_v17  ;;  %v35075_v17 = vld [vmem:[#allocation104_spill] sm:$0xff] }
 0xac2   :  { %25558 = vmatpush1.bf16.msra.mxu0 %v34714_v21  ;;  %25746 = vmatpush3.bf16.msra.mxu1 %v35074_v9  ;;  %v35077_v9 = vld [vmem:[#allocation23_spill] sm:$0xff] }
 0xac3   :  { %9586 = vmatprep.mubr.f32.mxu0 %v34688_v32  ;;  %25560 = vmatprep.subr.bf16.mxu0 %v34715_v22 }
 0xac4   :  { %25748 = vmatprep.subr.bf16.mxu1 %v30012_v39 }
 0xac5   :  { %9589 = vmatmul.mubr.f32.gmra.mrb[22].mxu0 %v31526_v57  ;;  %22178 = vmatmul.mubr.f32.vlgmr.msra.gmra.mrb[22].mxu1 %v31526_v57  ;;  %v35076_v57 = vld [vmem:[#allocation22_spill] sm:$0xff] }
 0xac6   :  { %25562 = vmatpush1.bf16.msra.mxu0 %v34719_v26  ;;  %25750 = vmatpush3.bf16.msra.mxu1 %v30012_v39 }
 0xac7   :  { %22212 = vmatprep.mubr.f32.mxu1 %v31517_v48  ;;  %25564 = vmatprep.subr.bf16.mxu0 %v34720_v38 }
 0xac8   :  { %25752 = vmatprep.subr.bf16.mxu1 %v30029_v18  ;;  %9691 = vmatprep.mubr.f32.mxu0 %v34688_v32 }
 0xaca   :  { %25566 = vmatpush1.bf16.msra.mxu0 %v34724_v63  ;;  %25754 = vmatpush3.bf16.msra.mxu1 %v30029_v18 }
 0xacb   :  { %25568 = vmatprep.subr.bf16.mxu0 %v34725_v60  ;;  %25756 = vmatprep.subr.bf16.mxu1 %v34821_v43 }
 0xace   :  { %25570 = vmatpush1.bf16.msra.mxu0 %v34729_v7  ;;  %25758 = vmatpush3.bf16.msra.mxu1 %v34821_v43 }
 0xacf   :  { %25572 = vmatprep.subr.bf16.mxu0 %v34730_v49  ;;  %25760 = vmatprep.subr.bf16.mxu1 %v34822_v29 }
 0xad2   :  { %25574 = vmatpush1.bf16.msra.mxu0 %v34734_v3  ;;  %25762 = vmatpush3.bf16.msra.mxu1 %v34822_v29 }
 0xad3   :  { %25576 = vmatprep.subr.bf16.mxu0 %v34735_v31  ;;  %25764 = vmatprep.subr.bf16.mxu1 %v35075_v17 }
 0xad6   :  { %25578 = vmatpush1.bf16.msra.mxu0 %v35076_v57  ;;  %25766 = vmatpush3.bf16.msra.mxu1 %v35075_v17 }
 0xad7   :  { %25580 = vmatprep.subr.bf16.mxu0 %v35077_v9  ;;  %25768 = vmatprep.subr.bf16.mxu1 %v35078_v62 }
 0xada   :  { %25582 = vmatpush1.bf16.msra.mxu0 %v35079_v56  ;;  %25770 = vmatpush3.bf16.msra.mxu1 %v35078_v62 }
 0xadb   :  { %25584 = vmatprep.subr.bf16.mxu0 %v35080_v41  ;;  %25772 = vmatprep.subr.bf16.mxu1 %v35081_v35 }
 0xade   :  { %25586 = vmatpush1.bf16.msra.mxu0 %v35082_v19  ;;  %25774 = vmatpush3.bf16.msra.mxu1 %v35081_v35 }
 0xadf   :  { %25588 = vmatprep.subr.bf16.mxu0 %v35083_v53  ;;  %25776 = vmatprep.subr.bf16.mxu1 %v35084_v30  ;;  %v35091_v53 = vld [vmem:[#allocation112_spill] sm:$0xff] }
 0xae1   :  { %9695 = vmatmul.mubr.f32.vlgmr.msra.gmra.mrb[20].mxu0 %v31517_v48  ;;  %v35089_v48 = vld [vmem:[#allocation111_spill] sm:$0xff] }
 0xae2   :  { %25590 = vmatpush1.bf16.msra.mxu0 %v35085_v23  ;;  %25778 = vmatpush3.bf16.msra.mxu1 %v35084_v30  ;;  %v35090_v23 = vld [vmem:[#allocation57_spill] sm:$0xff] }
 0xae3   :  { %9700 = vmatprep.mubr.f32.mxu0 %v34688_v32  ;;  %25592 = vmatprep.subr.bf16.mxu0 %v35086_v59  ;;  %v35092_v59 = vld [vmem:[#allocation114_spill] sm:$0xff] }
 0xae4   :  { %25780 = vmatprep.subr.bf16.mxu1 %v35087_v0 }
 0xae5   :  { %9704 = vmatmul.mubr.f32.gmra.mrb[22].mxu0 %v31529_v24  ;;  %22213 = vmatmul.mubr.f32.vlgmr.msra.gmra.mrb[22].mxu1 %v31529_v24  ;;  %v35094_v24 = vld [vmem:[#allocation35_spill] sm:$0xff] }
 0xae6   :  { %25594 = vmatpush1.bf16.msra.mxu0 %v35088_v2  ;;  %25782 = vmatpush3.bf16.msra.mxu1 %v35087_v0  ;;  %v35095_v2 = vld [vmem:[#allocation37_spill] sm:$0xff]  ;;  %v35096_v0 = vld [vmem:[#allocation60_spill] sm:$0xff] }
 0xae7   :  { %22247 = vmatprep.mubr.f32.mxu1 %v31508_v33  ;;  %25596 = vmatprep.subr.bf16.mxu0 %v35089_v48  ;;  %v35097_v48 = vld [vmem:[#allocation39_spill] sm:$0xff] }
 0xae8   :  { %25784 = vmatprep.subr.bf16.mxu1 %v35090_v23  ;;  %9870 = vmatprep.mubr.f32.mxu0 %v34688_v32 }
 0xaea   :  { %25598 = vmatpush1.bf16.msra.mxu0 %v35091_v53  ;;  %25786 = vmatpush3.bf16.msra.mxu1 %v35090_v23  ;;  %v35099_v53 = vld [vmem:[#allocation30_spill] sm:$0xff]  ;;  %v35100_v23 = vld [vmem:[#allocation43_spill] sm:$0xff] }
 0xaeb   :  { %25600 = vmatprep.subr.bf16.mxu0 %v35092_v59  ;;  %25788 = vmatprep.subr.bf16.mxu1 %v35093_v46  ;;  %v35101_v59 = vld [vmem:[#allocation46_spill] sm:$0xff] }
 0xaee   :  { %25602 = vmatpush1.bf16.msra.mxu0 %v35094_v24  ;;  %25790 = vmatpush3.bf16.msra.mxu1 %v35093_v46  ;;  %v35102_v24 = vld [vmem:[#allocation102_spill] sm:$0xff]  ;;  %v35103_v46 = vld [vmem:[#allocation48_spill] sm:$0xff] }
 0xaef   :  { %25604 = vmatprep.subr.bf16.mxu0 %v35095_v2  ;;  %25792 = vmatprep.subr.bf16.mxu1 %v35096_v0  ;;  %v35104_v2 = vld [vmem:[#allocation51_spill] sm:$0xff] }
 0xaf2   :  { %25606 = vmatpush1.bf16.msra.mxu0 %v35097_v48  ;;  %25794 = vmatpush3.bf16.msra.mxu1 %v35096_v0  ;;  %v35105_v48 = vld [vmem:[#allocation103_spill] sm:$0xff]  ;;  %v35106_v0 = vld [vmem:[#allocation52_spill] sm:$0xff] }
 0xaf3   :  { %25608 = vmatprep.subr.bf16.mxu0 %v35098_v34  ;;  %25796 = vmatprep.subr.bf16.mxu1 %v35099_v53  ;;  %v35111_v34 = vld [vmem:[#allocation80_spill] sm:$0xff] }
 0xaf6   :  { %25610 = vmatpush1.bf16.msra.mxu0 %v35100_v23  ;;  %25798 = vmatpush3.bf16.msra.mxu1 %v35099_v53  ;;  %v35107_v23 = vld [vmem:[#allocation11_spill] sm:$0xff] }
 0xaf7   :  { %25612 = vmatprep.subr.bf16.mxu0 %v35101_v59  ;;  %25800 = vmatprep.subr.bf16.mxu1 %v35102_v24 }
 0xafa   :  { %25614 = vmatpush1.bf16.msra.mxu0 %v35103_v46  ;;  %25802 = vmatpush3.bf16.msra.mxu1 %v35102_v24  ;;  %v35110_v46 = vld [vmem:[#allocation24_spill] sm:$0xff] }
 0xafb   :  { %25616 = vmatprep.subr.bf16.mxu0 %v35104_v2  ;;  %25804 = vmatprep.subr.bf16.mxu1 %v35105_v48 }
 0xafe   :  { %25618 = vmatpush1.bf16.msra.mxu0 %v35106_v0  ;;  %25806 = vmatpush3.bf16.msra.mxu1 %v35105_v48 }
 0xaff   :  { %25620 = vmatprep.subr.bf16.mxu0 %v34710_v50  ;;  %25808 = vmatprep.subr.bf16.mxu1 %v35107_v23 }
 0xb01   :  { %9872 = vmatmul.mubr.f32.vlgmr.msra.gmra.mrb[20].mxu0 %v31508_v33 }
 0xb02   :  { %25622 = vmatpush1.bf16.msra.mxu0 %v34714_v21  ;;  %25810 = vmatpush3.bf16.msra.mxu1 %v35107_v23  ;;  %v35109_v23 = vld [vmem:[#allocation96_spill] sm:$0xff] }
 0xb03   :  { %9877 = vmatprep.mubr.f32.mxu0 %v34688_v32  ;;  %25624 = vmatprep.subr.bf16.mxu0 %v34715_v22 }
 0xb04   :  { %25812 = vmatprep.subr.bf16.mxu1 %v30012_v39 }
 0xb05   :  { %9879 = vmatmul.mubr.f32.gmra.mrb[22].mxu0 %v31520_v37  ;;  %22248 = vmatmul.mubr.f32.vlgmr.msra.gmra.mrb[22].mxu1 %v31520_v37 }
 0xb06   :  { %25626 = vmatpush1.bf16.msra.mxu0 %v34719_v26  ;;  %25814 = vmatpush3.bf16.msra.mxu1 %v30012_v39 }
 0xb07   :  { %22282 = vmatprep.mubr.f32.mxu1 %v31508_v33  ;;  %25628 = vmatprep.subr.bf16.mxu0 %v34720_v38 }
 0xb08   :  { %25816 = vmatprep.subr.bf16.mxu1 %v30029_v18  ;;  %9981 = vmatprep.mubr.f32.mxu0 %v34688_v32 }
 0xb0a   :  { %25630 = vmatpush1.bf16.msra.mxu0 %v34724_v63  ;;  %25818 = vmatpush3.bf16.msra.mxu1 %v30029_v18 }
 0xb0b   :  { %25632 = vmatprep.subr.bf16.mxu0 %v34725_v60  ;;  %25820 = vmatprep.subr.bf16.mxu1 %v34821_v43 }
 0xb0e   :  { %25634 = vmatpush1.bf16.msra.mxu0 %v34729_v7  ;;  %25822 = vmatpush3.bf16.msra.mxu1 %v34821_v43 }
 0xb0f   :  { %25636 = vmatprep.subr.bf16.mxu0 %v34730_v49  ;;  %25824 = vmatprep.subr.bf16.mxu1 %v34822_v29 }
 0xb12   :  { %25638 = vmatpush1.bf16.msra.mxu0 %v34734_v3  ;;  %25826 = vmatpush3.bf16.msra.mxu1 %v34822_v29 }
 0xb13   :  { %25640 = vmatprep.subr.bf16.mxu0 %v34735_v31  ;;  %25828 = vmatprep.subr.bf16.mxu1 %v35075_v17 }
 0xb16   :  { %25642 = vmatpush1.bf16.msra.mxu0 %v35076_v57  ;;  %25830 = vmatpush3.bf16.msra.mxu1 %v35075_v17 }
 0xb17   :  { %25644 = vmatprep.subr.bf16.mxu0 %v35077_v9  ;;  %25832 = vmatprep.subr.bf16.mxu1 %v35078_v62 }
 0xb1a   :  { %25646 = vmatpush1.bf16.msra.mxu0 %v35079_v56  ;;  %25834 = vmatpush3.bf16.msra.mxu1 %v35078_v62 }
 0xb1b   :  { %25648 = vmatprep.subr.bf16.mxu0 %v35080_v41  ;;  %25836 = vmatprep.subr.bf16.mxu1 %v35081_v35 }
 0xb1e   :  { %25650 = vmatpush1.bf16.msra.mxu0 %v35082_v19  ;;  %25838 = vmatpush3.bf16.msra.mxu1 %v35081_v35 }
 0xb1f   :  { %25840 = vmatprep.subr.bf16.mxu1 %v35084_v30  ;;  %25844 = vmatprep.subr.bf16.mxu0 %v34710_v50 }
 0xb21   :  { %9983 = vmatmul.mubr.f32.vlgmr.msra.gmra.mrb[20].mxu0 %v31508_v33  ;;  %v35108_v33 = vld [vmem:[#allocation31_spill] sm:$0xff] }
 0xb22   :  { %25842 = vmatpush3.bf16.msra.mxu1 %v35084_v30  ;;  %9988 = vmatprep.mubr.f32.mxu0 %v34688_v32 }
 0xb23   :  { %25846 = vmatpush1.bf16.msra.mxu0 %v34714_v21  ;;  %26036 = vmatprep.subr.bf16.mxu1 %v30012_v39 }
 0xb24   :  { %25848 = vmatprep.subr.bf16.mxu0 %v34715_v22 }
 0xb25   :  { %9990 = vmatmul.mubr.f32.gmra.mrb[22].mxu0 %v31520_v37  ;;  %22283 = vmatmul.mubr.f32.vlgmr.msra.gmra.mrb[22].mxu1 %v31520_v37 }
 0xb26   :  { %26038 = vmatpush3.bf16.msra.mxu1 %v30012_v39  ;;  %10820 = vmatprep.mubr.f32.mxu0 %v34688_v32 }
 0xb27   :  { %25850 = vmatpush1.bf16.msra.mxu0 %v34719_v26  ;;  %26040 = vmatprep.subr.bf16.mxu1 %v30029_v18 }
 0xb28   :  { %25852 = vmatprep.subr.bf16.mxu0 %v34720_v38 }
 0xb2a   :  { %26042 = vmatpush3.bf16.msra.mxu1 %v30029_v18 }
 0xb2b   :  { %25854 = vmatpush1.bf16.msra.mxu0 %v34724_v63  ;;  %26044 = vmatprep.subr.bf16.mxu1 %v34821_v43 }
 0xb2c   :  { %25856 = vmatprep.subr.bf16.mxu0 %v34725_v60 }
 0xb2e   :  { %26046 = vmatpush3.bf16.msra.mxu1 %v34821_v43 }
 0xb2f   :  { %25858 = vmatpush1.bf16.msra.mxu0 %v34729_v7  ;;  %26048 = vmatprep.subr.bf16.mxu1 %v34822_v29 }
 0xb30   :  { %25860 = vmatprep.subr.bf16.mxu0 %v34730_v49 }
 0xb32   :  { %26050 = vmatpush3.bf16.msra.mxu1 %v34822_v29 }
 0xb33   :  { %25862 = vmatpush1.bf16.msra.mxu0 %v34734_v3  ;;  %26052 = vmatprep.subr.bf16.mxu1 %v35075_v17 }
 0xb34   :  { %25864 = vmatprep.subr.bf16.mxu0 %v34735_v31 }
 0xb36   :  { %26054 = vmatpush3.bf16.msra.mxu1 %v35075_v17 }
 0xb37   :  { %25866 = vmatpush1.bf16.msra.mxu0 %v35076_v57  ;;  %26056 = vmatprep.subr.bf16.mxu1 %v35078_v62 }
 0xb38   :  { %25868 = vmatprep.subr.bf16.mxu0 %v35077_v9 }
 0xb3a   :  { %26058 = vmatpush3.bf16.msra.mxu1 %v35078_v62 }
 0xb3b   :  { %25870 = vmatpush1.bf16.msra.mxu0 %v35079_v56  ;;  %26060 = vmatprep.subr.bf16.mxu1 %v35081_v35 }
 0xb3c   :  { %25872 = vmatprep.subr.bf16.mxu0 %v35080_v41 }
 0xb3e   :  { %26062 = vmatpush3.bf16.msra.mxu1 %v35081_v35 }
 0xb3f   :  { %25874 = vmatpush1.bf16.msra.mxu0 %v35082_v19  ;;  %26064 = vmatprep.subr.bf16.mxu1 %v35084_v30 }
 0xb40   :  { %25876 = vmatprep.subr.bf16.mxu0 %v35108_v33  ;;  %v35112_v33 = vld [vmem:[#allocation81_spill] sm:$0xff] }
 0xb42   :  { %26066 = vmatpush3.bf16.msra.mxu1 %v35084_v30 }
 0xb43   :  { %26068 = vmatprep.subr.bf16.mxu1 %v34827_v54 }
 0xbf4   :  { %v9984_v37 = vpop.f32.mrb[20].mxu0 }
 0xbf5   :  { %v27683_v0 = vadd.f32 %v35109_v23, %v9984_v37  ;;  %v9986_v48 = vpop.f32.mrb[21].mxu0 }
 0xbf6   :  { %v27684_v24 = vadd.f32 %v35110_v46, %v9986_v48 }
 0xbf7   :  { %v19570_v2 = vmul.f32 -1.442695, %v27683_v0 }
 0xbf8   :  { %v9991_v59 = vpop.f32.mrb[22].mxu0  ;;  %v22284_v53 = vpop.f32.mrb[22].mxu1  ;;  %v19572_v30 = vmul.f32 -1.442695, %v27684_v24 }
 0xbf9   :  { %28382 = vpow2.f32 %v19570_v2  ;;  %v27685_v19 = vadd.f32 %v35111_v34, %v9991_v59  ;;  %v9993_v35 = vpop.f32.mrb[23].mxu0  ;;  %v10670_v41 = vpop.f32.mrb[23].mxu1 }
 0xbfa   :  { %v27686_v62 = vadd.f32 %v35112_v33, %v9993_v35  ;;  %v10708_v34 = vadd.f32 %v31497_v42, %v10670_v41 }
 0xbfb   :  { %v19571_v56 = vmul.f32 -1.442695, %v27685_v19 }
 0xbfc   :  { %v19573_v9 = vmul.f32 -1.442695, %v27686_v62  ;;  %v35113_v62 = vld [vmem:[#allocation97_spill] sm:$0xff] }
 0xbfd   :  { %28384 = vpow2.f32 %v19571_v56  ;;  %v10709_v56 = vadd.f32 %v31497_v42, %v22284_v53 }
 0xbfe   :  { %28386 = vpow2.f32 %v19572_v30 }
 0xbff   :  { %28388 = vpow2.f32 %v19573_v9 }
 0xc03   :  { %v28383_v57 = vpop.eup %28382 }
 0xc04   :  { %v10688_v23 = vadd.f32 1.0, %v28383_v57  ;;  %v35114_v57 = vld [vmem:[#allocation95_spill] sm:$0xff] }
 0xc06   :  { %28390 = vrcp.f32 %v10688_v23 }
 0xc07   :  { %v28385_v0 = vpop.eup %28384 }
 0xc08   :  { %v10689_v46 = vadd.f32 1.0, %v28385_v0  ;;  %v28387_v48 = vpop.eup %28386 }
 0xc09   :  { %v28389_v2 = vpop.eup %28388  ;;  %v10702_v37 = vadd.f32 1.0, %v28387_v48 }
 0xc0a   :  { %28392 = vrcp.f32 %v10689_v46  ;;  %v10703_v19 = vadd.f32 1.0, %v28389_v2 }
 0xc0b   :  { %28394 = vrcp.f32 %v10702_v37 }
 0xc0c   :  { %28396 = vrcp.f32 %v10703_v19 }
 0xc10   :  { %v28391_v59 = vpop.eup %28390 }
 0xc11   :  { %v10710_v35 = vmul.f32 %v28391_v59, %v10708_v34 }
 0xc13   :  { %v10712_v30 = vadd.f32 %v10710_v35, %v35113_v62 }
 0xc14   :  { %v28393_v24 = vpop.eup %28392 }
 0xc15   :  { %v10711_v9 = vmul.f32 %v28393_v24, %v10709_v56  ;;  %28398 = vtanh.f32 %v10712_v30  ;;  %v28395_v23 = vpop.eup %28394 }
 0xc16   :  { %v28397_v0 = vpop.eup %28396  ;;  %v10716_v46 = vsub.f32 1.0, %v28395_v23  ;;  %v10720_v41 = vmul.f32 %v28395_v23, %v31504_v15  ;;  %v35115_v23 = vld [vmem:[#allocation66_spill] sm:$0xff] }
 0xc17   :  { %v10713_v33 = vadd.f32 %v10711_v9, %v35114_v57  ;;  %v10717_v37 = vsub.f32 1.0, %v28397_v0  ;;  %v10721_v59 = vmul.f32 %v28397_v0, %v31514_v16  ;;  %v35116_v0 = vld [vmem:[#allocation108_spill] sm:$0xff] }
 0xc19   :  { %28400 = vtanh.f32 %v10713_v33 }
 0xc1f   :  { %v28399_v48 = vpop.eup %28398 }
 0xc20   :  { %v10718_v2 = vmul.f32 %v28399_v48, %v10716_v46  ;;  %v35117_v46 = vld [vmem:[#allocation67_spill] sm:$0xff]  ;;  %v35118_v48 = vld [vmem:[#allocation68_spill] sm:$0xff] }
 0xc22   :  { %v31766_v34 = vadd.f32 %v10720_v41, %v10718_v2  ;;  %v35119_v41 = vld [vmem:[#allocation110_spill] sm:$0xff]  ;;  %v35120_v2 = vld [vmem:[#allocation69_spill] sm:$0xff] }
 0xc23   :  { %v28401_v42 = vpop.eup %28400 }
 0xc24   :  { %v10719_v53 = vmul.f32 %v28401_v42, %v10717_v37  ;;  %v31770_v19 = vand.u32 4294901760, %v31766_v34  ;;  %v35121_v37 = vld [vmem:[#allocation70_spill] sm:$0xff]  ;;  %v35122_v42 = vld [vmem:[#allocation113_spill] sm:$0xff] }
 0xc26   :  { %v31774_v35 = vsub.f32 %v31766_v34, %v31770_v19  ;;  %v31776_v56 = vadd.f32 %v10721_v59, %v10719_v53  ;;  %v35123_v53 = vld [vmem:[#allocation71_spill] sm:$0xff]  ;;  %v35124_v59 = vld [vmem:[#allocation72_spill] sm:$0xff] }
 0xc28   :  { %v31779_v62 = vand.u32 4294901760, %v31774_v35  ;;  %v31782_v15 = vand.u32 4294901760, %v31776_v56 }
 0xc2a   :  { %v10824_v30 = vsub.f32 %v31774_v35, %v31779_v62  ;;  %v31788_v16 = vsub.f32 %v31776_v56, %v31782_v15 }
 0xc2c   :  { %v10825_v24 = vand.u32 4294901760, %v10824_v30  ;;  %v31791_v9 = vand.u32 4294901760, %v31788_v16  ;;  %v35125_v30 = vld [vmem:[#allocation36_spill] sm:$0xff] }
 0xc2e   :  { %10826 = vmatmul.mubr.f32.vlgmr.msra.gmra.mrb[24].mxu0 %v10825_v24  ;;  %22317 = vmatprep.mubr.f32.mxu1 %v10825_v24  ;;  %v10835_v57 = vsub.f32 %v31788_v16, %v31791_v9  ;;  %v35126_v24 = vld [vmem:[#allocation73_spill] sm:$0xff] }
 0xc2f   :  { %25878 = vmatpush1.bf16.msra.mxu0 %v34871_v36  ;;  %10831 = vmatprep.mubr.f32.mxu0 %v34688_v32 }
 0xc30   :  { %25880 = vmatprep.subr.bf16.mxu0 %v34872_v51  ;;  %v10836_v33 = vand.u32 4294901760, %v10835_v57  ;;  %v35127_v57 = vld [vmem:[#allocation74_spill] sm:$0xff] }
 0xc32   :  { %10837 = vmatmul.mubr.f32.gmra.mrb[26].mxu0 %v10836_v33  ;;  %22318 = vmatmul.mubr.f32.vlgmr.msra.gmra.mrb[24].mxu1 %v10836_v33  ;;  %v35128_v33 = vld [vmem:[#allocation41_spill] sm:$0xff] }
 0xc33   :  { %25882 = vmatpush1.bf16.msra.mxu0 %v34873_v61  ;;  %26070 = vmatpush3.bf16.msra.mxu1 %v34827_v54 }
 0xc34   :  { %22352 = vmatprep.mubr.f32.mxu1 %v31770_v19  ;;  %25884 = vmatprep.subr.bf16.mxu0 %v34874_v20 }
 0xc35   :  { %26072 = vmatprep.subr.bf16.mxu1 %v34829_v11  ;;  %11067 = vmatprep.mubr.f32.mxu0 %v34688_v32 }
 0xc37   :  { %25886 = vmatpush1.bf16.msra.mxu0 %v34875_v13  ;;  %26074 = vmatpush3.bf16.msra.mxu1 %v34829_v11 }
 0xc38   :  { %25888 = vmatprep.subr.bf16.mxu0 %v34876_v4  ;;  %26076 = vmatprep.subr.bf16.mxu1 %v34830_v58 }
 0xc3b   :  { %25890 = vmatpush1.bf16.msra.mxu0 %v34877_v6  ;;  %26078 = vmatpush3.bf16.msra.mxu1 %v34830_v58 }
 0xc3c   :  { %25892 = vmatprep.subr.bf16.mxu0 %v34878_v55  ;;  %26080 = vmatprep.subr.bf16.mxu1 %v34831_v14 }
 0xc3f   :  { %25894 = vmatpush1.bf16.msra.mxu0 %v34879_v47  ;;  %26082 = vmatpush3.bf16.msra.mxu1 %v34831_v14 }
 0xc40   :  { %25896 = vmatprep.subr.bf16.mxu0 %v34932_v40  ;;  %26084 = vmatprep.subr.bf16.mxu1 %v34933_v12 }
 0xc43   :  { %25898 = vmatpush1.bf16.msra.mxu0 %v34881_v8  ;;  %26086 = vmatpush3.bf16.msra.mxu1 %v34933_v12 }
 0xc44   :  { %25900 = vmatprep.subr.bf16.mxu0 %v34882_v52  ;;  %26088 = vmatprep.subr.bf16.mxu1 %v34934_v28 }
 0xc47   :  { %25902 = vmatpush1.bf16.msra.mxu0 %v34883_v27  ;;  %26090 = vmatpush3.bf16.msra.mxu1 %v34934_v28 }
 0xc48   :  { %25904 = vmatprep.subr.bf16.mxu0 %v34884_v10  ;;  %26092 = vmatprep.subr.bf16.mxu1 %v34935_v44 }
 0xc4b   :  { %25906 = vmatpush1.bf16.msra.mxu0 %v34885_v25  ;;  %26094 = vmatpush3.bf16.msra.mxu1 %v34935_v44 }
 0xc4c   :  { %25908 = vmatprep.subr.bf16.mxu0 %v34936_v5  ;;  %26096 = vmatprep.subr.bf16.mxu1 %v34937_v1 }
 0xc4e   :  { %11069 = vmatmul.mubr.f32.vlgmr.msra.gmra.mrb[24].mxu0 %v31770_v19 }
 0xc4f   :  { %25910 = vmatpush1.bf16.msra.mxu0 %v34993_v45  ;;  %26098 = vmatpush3.bf16.msra.mxu1 %v34937_v1 }
 0xc50   :  { %11074 = vmatprep.mubr.f32.mxu0 %v34688_v32  ;;  %25912 = vmatprep.subr.bf16.mxu0 %v35115_v23 }
 0xc51   :  { %26100 = vmatprep.subr.bf16.mxu1 %v35116_v0 }
 0xc52   :  { %11076 = vmatmul.mubr.f32.gmra.mrb[26].mxu0 %v31782_v15  ;;  %22353 = vmatmul.mubr.f32.vlgmr.msra.gmra.mrb[24].mxu1 %v31782_v15 }
 0xc53   :  { %25914 = vmatpush1.bf16.msra.mxu0 %v35117_v46  ;;  %26102 = vmatpush3.bf16.msra.mxu1 %v35116_v0  ;;  %v35154_v46 = vld [vmem:[#allocation59_spill] sm:$0xff]  ;;  %v35159_v0 = vld [vmem:[#allocation42_spill] sm:$0xff] }
 0xc54   :  { %22387 = vmatprep.mubr.f32.mxu1 %v31774_v35  ;;  %25916 = vmatprep.subr.bf16.mxu0 %v35118_v48  ;;  %v35149_v48 = vld [vmem:[#allocation109_spill] sm:$0xff] }
 0xc55   :  { %26104 = vmatprep.subr.bf16.mxu1 %v35119_v41  ;;  %11210 = vmatprep.mubr.f32.mxu0 %v34688_v32 }
 0xc57   :  { %25918 = vmatpush1.bf16.msra.mxu0 %v35120_v2  ;;  %26106 = vmatpush3.bf16.msra.mxu1 %v35119_v41  ;;  %v35129_v2 = vld [vmem:[#allocation75_spill] sm:$0xff] }
 0xc58   :  { %25920 = vmatprep.subr.bf16.mxu0 %v35121_v37  ;;  %26108 = vmatprep.subr.bf16.mxu1 %v35122_v42  ;;  %v35130_v37 = vld [vmem:[#allocation76_spill] sm:$0xff]  ;;  %v35148_v41 = vld [vmem:[#allocation55_spill] sm:$0xff] }
 0xc5b   :  { %25922 = vmatpush1.bf16.msra.mxu0 %v35123_v53  ;;  %26110 = vmatpush3.bf16.msra.mxu1 %v35122_v42  ;;  %v35131_v53 = vld [vmem:[#allocation45_spill] sm:$0xff] }
 0xc5c   :  { %25924 = vmatprep.subr.bf16.mxu0 %v35124_v59  ;;  %26112 = vmatprep.subr.bf16.mxu1 %v35125_v30  ;;  %v35132_v42 = vld [vmem:[#allocation77_spill] sm:$0xff]  ;;  %v35133_v59 = vld [vmem:[#allocation78_spill] sm:$0xff] }
 0xc5f   :  { %25926 = vmatpush1.bf16.msra.mxu0 %v35126_v24  ;;  %26114 = vmatpush3.bf16.msra.mxu1 %v35125_v30  ;;  %v35134_v24 = vld [vmem:[#allocation50_spill] sm:$0xff]  ;;  %v35135_v30 = vld [vmem:[#allocation79_spill] sm:$0xff] }
 0xc60   :  { %25928 = vmatprep.subr.bf16.mxu0 %v35127_v57  ;;  %26116 = vmatprep.subr.bf16.mxu1 %v35128_v33  ;;  %v35147_v57 = vld [vmem:[#allocation21_spill] sm:$0xff] }
 0xc63   :  { %25930 = vmatpush1.bf16.msra.mxu0 %v35129_v2  ;;  %26118 = vmatpush3.bf16.msra.mxu1 %v35128_v33  ;;  %v35136_v2 = vld [vmem:[#allocation54_spill] sm:$0xff]  ;;  %v35146_v33 = vld [vmem:[#allocation20_spill] sm:$0xff] }
 0xc64   :  { %25932 = vmatprep.subr.bf16.mxu0 %v35130_v37  ;;  %26120 = vmatprep.subr.bf16.mxu1 %v35131_v53  ;;  %v35145_v37 = vld [vmem:[#allocation107_spill] sm:$0xff] }
 0xc67   :  { %25934 = vmatpush1.bf16.msra.mxu0 %v35132_v42  ;;  %26122 = vmatpush3.bf16.msra.mxu1 %v35131_v53  ;;  %v35143_v42 = vld [vmem:[#allocation29_spill] sm:$0xff]  ;;  %v35144_v53 = vld [vmem:[#allocation18_spill] sm:$0xff] }
 0xc68   :  { %25936 = vmatprep.subr.bf16.mxu0 %v35133_v59  ;;  %26124 = vmatprep.subr.bf16.mxu1 %v35134_v24  ;;  %v35142_v59 = vld [vmem:[#allocation106_spill] sm:$0xff] }
 0xc6b   :  { %25938 = vmatpush1.bf16.msra.mxu0 %v35135_v30  ;;  %26126 = vmatpush3.bf16.msra.mxu1 %v35134_v24  ;;  %v35140_v30 = vld [vmem:[#allocation25_spill] sm:$0xff]  ;;  %v35141_v24 = vld [vmem:[#allocation27_spill] sm:$0xff] }
 0xc6c   :  { %25940 = vmatprep.subr.bf16.mxu0 %v34710_v50  ;;  %26128 = vmatprep.subr.bf16.mxu1 %v35136_v2 }
 0xc6e   :  { %11213 = vmatmul.mubr.f32.vlgmr.msra.gmra.mrb[24].mxu0 %v31774_v35  ;;  %v35137_v35 = vld [vmem:[#allocation22_spill] sm:$0xff] }
 0xc6f   :  { %25942 = vmatpush1.bf16.msra.mxu0 %v34714_v21  ;;  %26130 = vmatpush3.bf16.msra.mxu1 %v35136_v2  ;;  %v35139_v2 = vld [vmem:[#allocation105_spill] sm:$0xff] }
 0xc70   :  { %11218 = vmatprep.mubr.f32.mxu0 %v34688_v32  ;;  %25944 = vmatprep.subr.bf16.mxu0 %v34715_v22 }
 0xc71   :  { %26132 = vmatprep.subr.bf16.mxu1 %v30012_v39 }
 0xc72   :  { %11221 = vmatmul.mubr.f32.gmra.mrb[26].mxu0 %v31788_v16  ;;  %22388 = vmatmul.mubr.f32.vlgmr.msra.gmra.mrb[24].mxu1 %v31788_v16  ;;  %v35138_v16 = vld [vmem:[#allocation23_spill] sm:$0xff] }
 0xc73   :  { %25946 = vmatpush1.bf16.msra.mxu0 %v34719_v26  ;;  %26134 = vmatpush3.bf16.msra.mxu1 %v30012_v39 }
 0xc74   :  { %22422 = vmatprep.mubr.f32.mxu1 %v31779_v62  ;;  %25948 = vmatprep.subr.bf16.mxu0 %v34720_v38 }
 0xc75   :  { %26136 = vmatprep.subr.bf16.mxu1 %v30029_v18  ;;  %11323 = vmatprep.mubr.f32.mxu0 %v34688_v32 }
 0xc77   :  { %25950 = vmatpush1.bf16.msra.mxu0 %v34724_v63  ;;  %26138 = vmatpush3.bf16.msra.mxu1 %v30029_v18 }
 0xc78   :  { %25952 = vmatprep.subr.bf16.mxu0 %v34725_v60  ;;  %26140 = vmatprep.subr.bf16.mxu1 %v34821_v43 }
 0xc7b   :  { %25954 = vmatpush1.bf16.msra.mxu0 %v34729_v7  ;;  %26142 = vmatpush3.bf16.msra.mxu1 %v34821_v43 }
 0xc7c   :  { %25956 = vmatprep.subr.bf16.mxu0 %v34730_v49  ;;  %26144 = vmatprep.subr.bf16.mxu1 %v34822_v29 }
 0xc7f   :  { %25958 = vmatpush1.bf16.msra.mxu0 %v34734_v3  ;;  %26146 = vmatpush3.bf16.msra.mxu1 %v34822_v29 }
 0xc80   :  { %25960 = vmatprep.subr.bf16.mxu0 %v34735_v31  ;;  %26148 = vmatprep.subr.bf16.mxu1 %v35075_v17 }
 0xc83   :  { %25962 = vmatpush1.bf16.msra.mxu0 %v35137_v35  ;;  %26150 = vmatpush3.bf16.msra.mxu1 %v35075_v17 }
 0xc84   :  { %25964 = vmatprep.subr.bf16.mxu0 %v35138_v16  ;;  %26152 = vmatprep.subr.bf16.mxu1 %v35139_v2 }
 0xc87   :  { %25966 = vmatpush1.bf16.msra.mxu0 %v35140_v30  ;;  %26154 = vmatpush3.bf16.msra.mxu1 %v35139_v2 }
 0xc88   :  { %25968 = vmatprep.subr.bf16.mxu0 %v35141_v24  ;;  %26156 = vmatprep.subr.bf16.mxu1 %v35142_v59 }
 0xc8b   :  { %25970 = vmatpush1.bf16.msra.mxu0 %v35143_v42  ;;  %26158 = vmatpush3.bf16.msra.mxu1 %v35142_v59 }
 0xc8c   :  { %25972 = vmatprep.subr.bf16.mxu0 %v35144_v53  ;;  %26160 = vmatprep.subr.bf16.mxu1 %v35145_v37  ;;  %v35152_v53 = vld [vmem:[#allocation112_spill] sm:$0xff] }
 0xc8e   :  { %11327 = vmatmul.mubr.f32.vlgmr.msra.gmra.mrb[24].mxu0 %v31779_v62  ;;  %v35150_v62 = vld [vmem:[#allocation111_spill] sm:$0xff] }
 0xc8f   :  { %25974 = vmatpush1.bf16.msra.mxu0 %v35146_v33  ;;  %26162 = vmatpush3.bf16.msra.mxu1 %v35145_v37  ;;  %v35151_v33 = vld [vmem:[#allocation57_spill] sm:$0xff] }
 0xc90   :  { %11332 = vmatprep.mubr.f32.mxu0 %v34688_v32  ;;  %25976 = vmatprep.subr.bf16.mxu0 %v35147_v57  ;;  %v35153_v57 = vld [vmem:[#allocation114_spill] sm:$0xff] }
 0xc91   :  { %26164 = vmatprep.subr.bf16.mxu1 %v35148_v41 }
 0xc92   :  { %11336 = vmatmul.mubr.f32.gmra.mrb[26].mxu0 %v31791_v9  ;;  %22423 = vmatmul.mubr.f32.vlgmr.msra.gmra.mrb[24].mxu1 %v31791_v9  ;;  %v35155_v9 = vld [vmem:[#allocation35_spill] sm:$0xff] }
 0xc93   :  { %25978 = vmatpush1.bf16.msra.mxu0 %v35149_v48  ;;  %26166 = vmatpush3.bf16.msra.mxu1 %v35148_v41  ;;  %v35156_v48 = vld [vmem:[#allocation37_spill] sm:$0xff]  ;;  %v35157_v41 = vld [vmem:[#allocation60_spill] sm:$0xff] }
 0xc94   :  { %22457 = vmatprep.mubr.f32.mxu1 %v31770_v19  ;;  %25980 = vmatprep.subr.bf16.mxu0 %v35150_v62  ;;  %v35158_v62 = vld [vmem:[#allocation39_spill] sm:$0xff] }
 0xc95   :  { %26168 = vmatprep.subr.bf16.mxu1 %v35151_v33  ;;  %11502 = vmatprep.mubr.f32.mxu0 %v34688_v32 }
 0xc97   :  { %25982 = vmatpush1.bf16.msra.mxu0 %v35152_v53  ;;  %26170 = vmatpush3.bf16.msra.mxu1 %v35151_v33  ;;  %v35160_v53 = vld [vmem:[#allocation30_spill] sm:$0xff]  ;;  %v35161_v33 = vld [vmem:[#allocation43_spill] sm:$0xff] }
 0xc98   :  { %25984 = vmatprep.subr.bf16.mxu0 %v35153_v57  ;;  %26172 = vmatprep.subr.bf16.mxu1 %v35154_v46  ;;  %v35162_v57 = vld [vmem:[#allocation46_spill] sm:$0xff] }
 0xc9b   :  { %25986 = vmatpush1.bf16.msra.mxu0 %v35155_v9  ;;  %26174 = vmatpush3.bf16.msra.mxu1 %v35154_v46  ;;  %v35163_v9 = vld [vmem:[#allocation102_spill] sm:$0xff]  ;;  %v35164_v46 = vld [vmem:[#allocation48_spill] sm:$0xff] }
 0xc9c   :  { %25988 = vmatprep.subr.bf16.mxu0 %v35156_v48  ;;  %26176 = vmatprep.subr.bf16.mxu1 %v35157_v41  ;;  %v35165_v48 = vld [vmem:[#allocation51_spill] sm:$0xff] }
 0xc9f   :  { %25990 = vmatpush1.bf16.msra.mxu0 %v35158_v62  ;;  %26178 = vmatpush3.bf16.msra.mxu1 %v35157_v41  ;;  %v35166_v62 = vld [vmem:[#allocation103_spill] sm:$0xff]  ;;  %v35167_v41 = vld [vmem:[#allocation52_spill] sm:$0xff] }
 0xca0   :  { %25992 = vmatprep.subr.bf16.mxu0 %v35159_v0  ;;  %26180 = vmatprep.subr.bf16.mxu1 %v35160_v53 }
 0xca3   :  { %25994 = vmatpush1.bf16.msra.mxu0 %v35161_v33  ;;  %26182 = vmatpush3.bf16.msra.mxu1 %v35160_v53  ;;  %v35168_v33 = vld [vmem:[#allocation11_spill] sm:$0xff]  ;;  %v32034_v53 = vld [vmem:[%s34046_s1 + $0x18] sm:$0xff] }
 0xca4   :  { %25996 = vmatprep.subr.bf16.mxu0 %v35162_v57  ;;  %26184 = vmatprep.subr.bf16.mxu1 %v35163_v9  ;;  %35172 = vst [vmem:[#allocation84_spill] sm:$0xff] %v32034_v53 }
 0xca7   :  { %25998 = vmatpush1.bf16.msra.mxu0 %v35164_v46  ;;  %26186 = vmatpush3.bf16.msra.mxu1 %v35163_v9  ;;  %v32028_v46 = vld [vmem:[%s34046_s1 + $0x8] sm:$0xff] }
 0xca8   :  { %26000 = vmatprep.subr.bf16.mxu0 %v35165_v48  ;;  %26188 = vmatprep.subr.bf16.mxu1 %v35166_v62  ;;  %35171 = vst [vmem:[#allocation83_spill] sm:$0xff] %v32028_v46 }
 0xcab   :  { %26002 = vmatpush1.bf16.msra.mxu0 %v35167_v41  ;;  %26190 = vmatpush3.bf16.msra.mxu1 %v35166_v62 }
 0xcac   :  { %26004 = vmatprep.subr.bf16.mxu0 %v34710_v50  ;;  %26192 = vmatprep.subr.bf16.mxu1 %v35168_v33 }
 0xcae   :  { %11504 = vmatmul.mubr.f32.vlgmr.msra.gmra.mrb[24].mxu0 %v31770_v19 }
 0xcaf   :  { %26006 = vmatpush1.bf16.msra.mxu0 %v34714_v21  ;;  %26194 = vmatpush3.bf16.msra.mxu1 %v35168_v33  ;;  %v32022_v33 = vld [vmem:[%s34046_s1] sm:$0xff] }
 0xcb0   :  { %11509 = vmatprep.mubr.f32.mxu0 %v34688_v32  ;;  %26008 = vmatprep.subr.bf16.mxu0 %v34715_v22  ;;  %35170 = vst [vmem:[#allocation82_spill] sm:$0xff] %v32022_v33 }
 0xcb1   :  { %26196 = vmatprep.subr.bf16.mxu1 %v30012_v39 }
 0xcb2   :  { %11511 = vmatmul.mubr.f32.gmra.mrb[26].mxu0 %v31782_v15  ;;  %22458 = vmatmul.mubr.f32.vlgmr.msra.gmra.mrb[24].mxu1 %v31782_v15 }
 0xcb3   :  { %26010 = vmatpush1.bf16.msra.mxu0 %v34719_v26  ;;  %26198 = vmatpush3.bf16.msra.mxu1 %v30012_v39 }
 0xcb4   :  { %22492 = vmatprep.mubr.f32.mxu1 %v31770_v19  ;;  %26012 = vmatprep.subr.bf16.mxu0 %v34720_v38 }
 0xcb5   :  { %26200 = vmatprep.subr.bf16.mxu1 %v30029_v18  ;;  %11613 = vmatprep.mubr.f32.mxu0 %v34688_v32 }
 0xcb7   :  { %26014 = vmatpush1.bf16.msra.mxu0 %v34724_v63  ;;  %26202 = vmatpush3.bf16.msra.mxu1 %v30029_v18 }
 0xcb8   :  { %26016 = vmatprep.subr.bf16.mxu0 %v34725_v60  ;;  %26204 = vmatprep.subr.bf16.mxu1 %v34821_v43 }
 0xcbb   :  { %26018 = vmatpush1.bf16.msra.mxu0 %v34729_v7  ;;  %26206 = vmatpush3.bf16.msra.mxu1 %v34821_v43 }
 0xcbc   :  { %26020 = vmatprep.subr.bf16.mxu0 %v34730_v49  ;;  %26208 = vmatprep.subr.bf16.mxu1 %v34822_v29 }
 0xcbf   :  { %26022 = vmatpush1.bf16.msra.mxu0 %v34734_v3  ;;  %26210 = vmatpush3.bf16.msra.mxu1 %v34822_v29 }
 0xcc0   :  { %26024 = vmatprep.subr.bf16.mxu0 %v34735_v31  ;;  %26212 = vmatprep.subr.bf16.mxu1 %v35075_v17 }
 0xcc3   :  { %26026 = vmatpush1.bf16.msra.mxu0 %v35137_v35  ;;  %26214 = vmatpush3.bf16.msra.mxu1 %v35075_v17 }
 0xcc4   :  { %26028 = vmatprep.subr.bf16.mxu0 %v35138_v16  ;;  %26216 = vmatprep.subr.bf16.mxu1 %v35139_v2 }
 0xcc7   :  { %26030 = vmatpush1.bf16.msra.mxu0 %v35140_v30  ;;  %26218 = vmatpush3.bf16.msra.mxu1 %v35139_v2 }
 0xcc8   :  { %26032 = vmatprep.subr.bf16.mxu0 %v35141_v24  ;;  %26220 = vmatprep.subr.bf16.mxu1 %v35142_v59 }
 0xccb   :  { %26034 = vmatpush1.bf16.msra.mxu0 %v35143_v42  ;;  %26222 = vmatpush3.bf16.msra.mxu1 %v35142_v59 }
 0xccc   :  { %26224 = vmatprep.subr.bf16.mxu1 %v35145_v37  ;;  %26228 = vmatprep.subr.bf16.mxu0 %v34710_v50 }
 0xcce   :  { %11615 = vmatmul.mubr.f32.vlgmr.msra.gmra.mrb[24].mxu0 %v31770_v19  ;;  %v35169_v19 = vld [vmem:[#allocation31_spill] sm:$0xff] }
 0xccf   :  { %26226 = vmatpush3.bf16.msra.mxu1 %v35145_v37  ;;  %11620 = vmatprep.mubr.f32.mxu0 %v34688_v32 }
 0xcd0   :  { %26230 = vmatpush1.bf16.msra.mxu0 %v34714_v21  ;;  %26420 = vmatprep.subr.bf16.mxu1 %v30012_v39 }
 0xcd1   :  { %26232 = vmatprep.subr.bf16.mxu0 %v34715_v22 }
 0xcd2   :  { %11622 = vmatmul.mubr.f32.gmra.mrb[26].mxu0 %v31782_v15  ;;  %22493 = vmatmul.mubr.f32.vlgmr.msra.gmra.mrb[24].mxu1 %v31782_v15 }
 0xcd3   :  { %26422 = vmatpush3.bf16.msra.mxu1 %v30012_v39  ;;  %12452 = vmatprep.mubr.f32.mxu0 %v34688_v32 }
 0xcd4   :  { %26234 = vmatpush1.bf16.msra.mxu0 %v34719_v26  ;;  %26424 = vmatprep.subr.bf16.mxu1 %v30029_v18 }
 0xcd5   :  { %26236 = vmatprep.subr.bf16.mxu0 %v34720_v38 }
 0xcd7   :  { %26426 = vmatpush3.bf16.msra.mxu1 %v30029_v18 }
 0xcd8   :  { %26238 = vmatpush1.bf16.msra.mxu0 %v34724_v63  ;;  %26428 = vmatprep.subr.bf16.mxu1 %v34821_v43 }
 0xcd9   :  { %26240 = vmatprep.subr.bf16.mxu0 %v34725_v60 }
 0xcdb   :  { %26430 = vmatpush3.bf16.msra.mxu1 %v34821_v43 }
 0xcdc   :  { %26242 = vmatpush1.bf16.msra.mxu0 %v34729_v7  ;;  %26432 = vmatprep.subr.bf16.mxu1 %v34822_v29 }
 0xcdd   :  { %26244 = vmatprep.subr.bf16.mxu0 %v34730_v49 }
 0xcdf   :  { %26434 = vmatpush3.bf16.msra.mxu1 %v34822_v29 }
 0xce0   :  { %26246 = vmatpush1.bf16.msra.mxu0 %v34734_v3  ;;  %26436 = vmatprep.subr.bf16.mxu1 %v35075_v17 }
 0xce1   :  { %26248 = vmatprep.subr.bf16.mxu0 %v34735_v31 }
 0xce3   :  { %26438 = vmatpush3.bf16.msra.mxu1 %v35075_v17 }
 0xce4   :  { %26250 = vmatpush1.bf16.msra.mxu0 %v35137_v35  ;;  %26440 = vmatprep.subr.bf16.mxu1 %v35139_v2 }
 0xce5   :  { %26252 = vmatprep.subr.bf16.mxu0 %v35138_v16 }
 0xce7   :  { %26442 = vmatpush3.bf16.msra.mxu1 %v35139_v2  ;;  %v32046_v2 = vld [vmem:[%s34051_s6] ss:$0 sm:$0xff] }
 0xce8   :  { %26254 = vmatpush1.bf16.msra.mxu0 %v35140_v30  ;;  %26444 = vmatprep.subr.bf16.mxu1 %v35142_v59 }
 0xce9   :  { %26256 = vmatprep.subr.bf16.mxu0 %v35141_v24 }
 0xceb   :  { %26446 = vmatpush3.bf16.msra.mxu1 %v35142_v59 }
 0xcec   :  { %26258 = vmatpush1.bf16.msra.mxu0 %v35143_v42  ;;  %26448 = vmatprep.subr.bf16.mxu1 %v35145_v37 }
 0xced   :  { %26260 = vmatprep.subr.bf16.mxu0 %v35169_v19 }
 0xcef   :  { %26450 = vmatpush3.bf16.msra.mxu1 %v35145_v37  ;;  %v32040_v37 = vld [vmem:[%s34046_s1 + $0x20] sm:$0xff] }
 0xcf0   :  { %26452 = vmatprep.subr.bf16.mxu1 %v34827_v54  ;;  %35173 = vst [vmem:[#allocation85_spill] sm:$0xff] %v32040_v37 }
 0xda1   :  { %v11616_v15 = vpop.f32.mrb[24].mxu0 }
 0xda2   :  { %v27687_v41 = vadd.f32 %v32022_v33, %v11616_v15  ;;  %v11618_v62 = vpop.f32.mrb[25].mxu0 }
 0xda3   :  { %v27688_v19 = vadd.f32 %v32028_v46, %v11618_v62 }
 0xda4   :  { %v19574_v48 = vmul.f32 -1.442695, %v27687_v41 }
 0xda5   :  { %v11623_v9 = vpop.f32.mrb[26].mxu0  ;;  %v22494_v57 = vpop.f32.mrb[24].mxu1  ;;  %v19576_v46 = vmul.f32 -1.442695, %v27688_v19 }
 0xda6   :  { %28402 = vpow2.f32 %v19574_v48  ;;  %v27689_v0 = vadd.f32 %v32034_v53, %v11623_v9  ;;  %v11625_v15 = vpop.f32.mrb[27].mxu0  ;;  %v12302_v33 = vpop.f32.mrb[25].mxu1 }
 0xda7   :  { %v27690_v62 = vadd.f32 %v32040_v37, %v11625_v15  ;;  %v12340_v19 = vadd.f32 %v32046_v2, %v12302_v33 }
 0xda8   :  { %v19575_v41 = vmul.f32 -1.442695, %v27689_v0 }
 0xda9   :  { %v19577_v48 = vmul.f32 -1.442695, %v27690_v62 }
 0xdaa   :  { %28404 = vpow2.f32 %v19575_v41 }
 0xdab   :  { %28406 = vpow2.f32 %v19576_v46 }
 0xdac   :  { %28408 = vpow2.f32 %v19577_v48 }
 0xdb0   :  { %v28403_v42 = vpop.eup %28402 }
 0xdb1   :  { %v12320_v59 = vadd.f32 1.0, %v28403_v42  ;;  %v12341_v42 = vadd.f32 %v32046_v2, %v22494_v57 }
 0xdb3   :  { %28410 = vrcp.f32 %v12320_v59  ;;  %v35174_v59 = vld [vmem:[#allocation28_spill] sm:$0xff] }
 0xdb4   :  { %v28405_v24 = vpop.eup %28404 }
 0xdb5   :  { %v12321_v9 = vadd.f32 1.0, %v28405_v24  ;;  %v28407_v53 = vpop.eup %28406 }
 0xdb6   :  { %v28409_v0 = vpop.eup %28408  ;;  %v12334_v30 = vadd.f32 1.0, %v28407_v53  ;;  %v35175_v53 = vld [vmem:[#allocation26_spill] sm:$0xff] }
 0xdb7   :  { %28412 = vrcp.f32 %v12321_v9  ;;  %v12335_v41 = vadd.f32 1.0, %v28409_v0 }
 0xdb8   :  { %28414 = vrcp.f32 %v12334_v30 }
 0xdb9   :  { %28416 = vrcp.f32 %v12335_v41 }
 0xdbd   :  { %v28411_v15 = vpop.eup %28410 }
 0xdbe   :  { %v12342_v46 = vmul.f32 %v28411_v15, %v12340_v19 }
 0xdc0   :  { %v12344_v62 = vadd.f32 %v12342_v46, %v35174_v59 }
 0xdc1   :  { %v28413_v24 = vpop.eup %28412 }
 0xdc2   :  { %v12343_v48 = vmul.f32 %v28413_v24, %v12341_v42  ;;  %28418 = vtanh.f32 %v12344_v62  ;;  %v28415_v37 = vpop.eup %28414 }
 0xdc3   :  { %v28417_v16 = vpop.eup %28416  ;;  %v12348_v35 = vsub.f32 1.0, %v28415_v37  ;;  %v12352_v33 = vmul.f32 %v28415_v37, %v31766_v34 }
 0xdc4   :  { %v12345_v9 = vadd.f32 %v12343_v48, %v35175_v53  ;;  %v12349_v30 = vsub.f32 1.0, %v28417_v16  ;;  %v12353_v46 = vmul.f32 %v28417_v16, %v31776_v56  ;;  %v35202_v48 = vld [vmem:[#allocation27_spill] sm:$0xff]  ;;  %v35203_v53 = vld [vmem:[#allocation106_spill] sm:$0xff] }
 0xdc6   :  { %28420 = vtanh.f32 %v12345_v9  ;;  %v35204_v9 = vld [vmem:[#allocation29_spill] sm:$0xff] }
 0xdcc   :  { %v28419_v17 = vpop.eup %28418 }
 0xdcd   :  { %v12350_v0 = vmul.f32 %v28419_v17, %v12348_v35 }
 0xdcf   :  { %v32053_v19 = vadd.f32 %v12352_v33, %v12350_v0  ;;  %v35205_v33 = vld [vmem:[#allocation18_spill] sm:$0xff]  ;;  %v35206_v0 = vld [vmem:[#allocation107_spill] sm:$0xff] }
 0xdd0   :  { %v28421_v57 = vpop.eup %28420 }
 0xdd1   :  { %v12351_v15 = vmul.f32 %v28421_v57, %v12349_v30  ;;  %v32057_v41 = vand.u32 4294901760, %v32053_v19  ;;  %v35207_v30 = vld [vmem:[#allocation20_spill] sm:$0xff]  ;;  %v35208_v57 = vld [vmem:[#allocation21_spill] sm:$0xff] }
 0xdd3   :  { %v32061_v42 = vsub.f32 %v32053_v19, %v32057_v41  ;;  %v32063_v59 = vadd.f32 %v12353_v46, %v12351_v15  ;;  %v35209_v15 = vld [vmem:[#allocation55_spill] sm:$0xff]  ;;  %v35210_v46 = vld [vmem:[#allocation109_spill] sm:$0xff] }
 0xdd5   :  { %v32066_v62 = vand.u32 4294901760, %v32061_v42  ;;  %v32069_v17 = vand.u32 4294901760, %v32063_v59 }
 0xdd7   :  { %v12456_v34 = vsub.f32 %v32061_v42, %v32066_v62  ;;  %v32075_v56 = vsub.f32 %v32063_v59, %v32069_v17 }
 0xdd9   :  { %v12457_v37 = vand.u32 4294901760, %v12456_v34  ;;  %v32078_v35 = vand.u32 4294901760, %v32075_v56  ;;  %v35213_v34 = vld [vmem:[#allocation112_spill] sm:$0xff] }
 0xddb   :  { %12458 = vmatmul.mubr.f32.vlgmr.msra.gmra.mrb[28].mxu0 %v12457_v37  ;;  %22527 = vmatprep.mubr.f32.mxu1 %v12457_v37  ;;  %v12467_v16 = vsub.f32 %v32075_v56, %v32078_v35  ;;  %v35215_v37 = vld [vmem:[#allocation59_spill] sm:$0xff] }
 0xddc   :  { %26262 = vmatpush1.bf16.msra.mxu0 %v34871_v36  ;;  %12463 = vmatprep.mubr.f32.mxu0 %v34688_v32  ;;  %v35181_v36 = vld [vmem:[#allocation70_spill] sm:$0xff] }
 0xddd   :  { %26264 = vmatprep.subr.bf16.mxu0 %v34872_v51  ;;  %v12468_v24 = vand.u32 4294901760, %v12467_v16  ;;  %v35182_v51 = vld [vmem:[#allocation113_spill] sm:$0xff] }
 0xdde   :  { %v35217_v16 = vld [vmem:[#allocation37_spill] sm:$0xff] }
 0xddf   :  { %12469 = vmatmul.mubr.f32.gmra.mrb[30].mxu0 %v12468_v24  ;;  %22528 = vmatmul.mubr.f32.vlgmr.msra.gmra.mrb[26].mxu1 %v12468_v24  ;;  %v35218_v24 = vld [vmem:[#allocation60_spill] sm:$0xff] }
 0xde0   :  { %26266 = vmatpush1.bf16.msra.mxu0 %v34873_v61  ;;  %26454 = vmatpush3.bf16.msra.mxu1 %v34827_v54  ;;  %v35180_v54 = vld [vmem:[#allocation69_spill] sm:$0xff]  ;;  %v35183_v61 = vld [vmem:[#allocation71_spill] sm:$0xff] }
 0xde1   :  { %22562 = vmatprep.mubr.f32.mxu1 %v32057_v41  ;;  %26268 = vmatprep.subr.bf16.mxu0 %v34874_v20  ;;  %v35184_v20 = vld [vmem:[#allocation72_spill] sm:$0xff] }
 0xde2   :  { %26456 = vmatprep.subr.bf16.mxu1 %v34829_v11  ;;  %12699 = vmatprep.mubr.f32.mxu0 %v34688_v32 }
 0xde4   :  { %26270 = vmatpush1.bf16.msra.mxu0 %v34875_v13  ;;  %26458 = vmatpush3.bf16.msra.mxu1 %v34829_v11  ;;  %v35179_v11 = vld [vmem:[#allocation110_spill] sm:$0xff]  ;;  %v35185_v13 = vld [vmem:[#allocation36_spill] sm:$0xff] }
 0xde5   :  { %26272 = vmatprep.subr.bf16.mxu0 %v34876_v4  ;;  %26460 = vmatprep.subr.bf16.mxu1 %v34830_v58  ;;  %v35186_v4 = vld [vmem:[#allocation73_spill] sm:$0xff] }
 0xde8   :  { %26274 = vmatpush1.bf16.msra.mxu0 %v34877_v6  ;;  %26462 = vmatpush3.bf16.msra.mxu1 %v34830_v58  ;;  %v35178_v58 = vld [vmem:[#allocation68_spill] sm:$0xff]  ;;  %v35187_v6 = vld [vmem:[#allocation74_spill] sm:$0xff] }
 0xde9   :  { %26276 = vmatprep.subr.bf16.mxu0 %v34878_v55  ;;  %26464 = vmatprep.subr.bf16.mxu1 %v34831_v14  ;;  %v35188_v55 = vld [vmem:[#allocation41_spill] sm:$0xff] }
 0xdec   :  { %26278 = vmatpush1.bf16.msra.mxu0 %v34879_v47  ;;  %26466 = vmatpush3.bf16.msra.mxu1 %v34831_v14  ;;  %v35176_v14 = vld [vmem:[#allocation108_spill] sm:$0xff]  ;;  %v35189_v47 = vld [vmem:[#allocation75_spill] sm:$0xff] }
 0xded   :  { %26280 = vmatprep.subr.bf16.mxu0 %v34932_v40  ;;  %26468 = vmatprep.subr.bf16.mxu1 %v34933_v12  ;;  %v35194_v40 = vld [vmem:[#allocation50_spill] sm:$0xff] }
 0xdf0   :  { %26282 = vmatpush1.bf16.msra.mxu0 %v34881_v8  ;;  %26470 = vmatpush3.bf16.msra.mxu1 %v34933_v12  ;;  %v35190_v8 = vld [vmem:[#allocation76_spill] sm:$0xff]  ;;  %v35195_v12 = vld [vmem:[#allocation79_spill] sm:$0xff] }
 0xdf1   :  { %26284 = vmatprep.subr.bf16.mxu0 %v34882_v52  ;;  %26472 = vmatprep.subr.bf16.mxu1 %v34934_v28  ;;  %v35191_v52 = vld [vmem:[#allocation45_spill] sm:$0xff] }
 0xdf4   :  { %26286 = vmatpush1.bf16.msra.mxu0 %v34883_v27  ;;  %26474 = vmatpush3.bf16.msra.mxu1 %v34934_v28  ;;  %v35192_v27 = vld [vmem:[#allocation77_spill] sm:$0xff]  ;;  %v35196_v28 = vld [vmem:[#allocation54_spill] sm:$0xff] }
 0xdf5   :  { %26288 = vmatprep.subr.bf16.mxu0 %v34884_v10  ;;  %26476 = vmatprep.subr.bf16.mxu1 %v34935_v44  ;;  %v35193_v10 = vld [vmem:[#allocation78_spill] sm:$0xff] }
 0xdf8   :  { %26290 = vmatpush1.bf16.msra.mxu0 %v34885_v25  ;;  %26478 = vmatpush3.bf16.msra.mxu1 %v34935_v44  ;;  %v35177_v25 = vld [vmem:[#allocation67_spill] sm:$0xff]  ;;  %v35197_v44 = vld [vmem:[#allocation104_spill] sm:$0xff] }
 0xdf9   :  { %26292 = vmatprep.subr.bf16.mxu0 %v34936_v5  ;;  %26480 = vmatprep.subr.bf16.mxu1 %v34937_v1  ;;  %v35198_v5 = vld [vmem:[#allocation22_spill] sm:$0xff] }
 0xdfb   :  { %12701 = vmatmul.mubr.f32.vlgmr.msra.gmra.mrb[28].mxu0 %v32057_v41 }
 0xdfc   :  { %26294 = vmatpush1.bf16.msra.mxu0 %v34993_v45  ;;  %26482 = vmatpush3.bf16.msra.mxu1 %v34937_v1  ;;  %v35199_v1 = vld [vmem:[#allocation23_spill] sm:$0xff]  ;;  %v35200_v45 = vld [vmem:[#allocation105_spill] sm:$0xff] }
 0xdfd   :  { %12706 = vmatprep.mubr.f32.mxu0 %v34688_v32  ;;  %26296 = vmatprep.subr.bf16.mxu0 %v35115_v23  ;;  %v35201_v23 = vld [vmem:[#allocation25_spill] sm:$0xff] }
 0xdfe   :  { %26484 = vmatprep.subr.bf16.mxu1 %v35176_v14 }
 0xdff   :  { %12708 = vmatmul.mubr.f32.gmra.mrb[30].mxu0 %v32069_v17  ;;  %22563 = vmatmul.mubr.f32.vlgmr.msra.gmra.mrb[26].mxu1 %v32069_v17 }
 0xe00   :  { %26298 = vmatpush1.bf16.msra.mxu0 %v35177_v25  ;;  %26486 = vmatpush3.bf16.msra.mxu1 %v35176_v14  ;;  %v35219_v14 = vld [vmem:[#allocation39_spill] sm:$0xff]  ;;  %v35220_v25 = vld [vmem:[#allocation42_spill] sm:$0xff] }
 0xe01   :  { %22597 = vmatprep.mubr.f32.mxu1 %v32061_v42  ;;  %26300 = vmatprep.subr.bf16.mxu0 %v35178_v58  ;;  %v35221_v58 = vld [vmem:[#allocation30_spill] sm:$0xff] }
 0xe02   :  { %26488 = vmatprep.subr.bf16.mxu1 %v35179_v11  ;;  %12842 = vmatprep.mubr.f32.mxu0 %v34688_v32 }
 0xe04   :  { %26302 = vmatpush1.bf16.msra.mxu0 %v35180_v54  ;;  %26490 = vmatpush3.bf16.msra.mxu1 %v35179_v11  ;;  %v35222_v11 = vld [vmem:[#allocation43_spill] sm:$0xff]  ;;  %v35223_v54 = vld [vmem:[#allocation46_spill] sm:$0xff] }
 0xe05   :  { %26304 = vmatprep.subr.bf16.mxu0 %v35181_v36  ;;  %26492 = vmatprep.subr.bf16.mxu1 %v35182_v51  ;;  %v35224_v36 = vld [vmem:[#allocation102_spill] sm:$0xff] }
 0xe08   :  { %26306 = vmatpush1.bf16.msra.mxu0 %v35183_v61  ;;  %26494 = vmatpush3.bf16.msra.mxu1 %v35182_v51  ;;  %v35225_v51 = vld [vmem:[#allocation48_spill] sm:$0xff]  ;;  %v35226_v61 = vld [vmem:[#allocation51_spill] sm:$0xff] }
 0xe09   :  { %26308 = vmatprep.subr.bf16.mxu0 %v35184_v20  ;;  %26496 = vmatprep.subr.bf16.mxu1 %v35185_v13  ;;  %v35227_v20 = vld [vmem:[#allocation103_spill] sm:$0xff] }
 0xe0c   :  { %26310 = vmatpush1.bf16.msra.mxu0 %v35186_v4  ;;  %26498 = vmatpush3.bf16.msra.mxu1 %v35185_v13  ;;  %v35228_v13 = vld [vmem:[#allocation52_spill] sm:$0xff]  ;;  %v35229_v4 = vld [vmem:[#allocation11_spill] sm:$0xff] }
 0xe0d   :  { %26312 = vmatprep.subr.bf16.mxu0 %v35187_v6  ;;  %26500 = vmatprep.subr.bf16.mxu1 %v35188_v55 }
 0xe10   :  { %26314 = vmatpush1.bf16.msra.mxu0 %v35189_v47  ;;  %26502 = vmatpush3.bf16.msra.mxu1 %v35188_v55  ;;  %v32285_v47 = vld [vmem:[#allocation5 + $0x40] sm:$0xff] }
 0xe11   :  { %26316 = vmatprep.subr.bf16.mxu0 %v35190_v8  ;;  %26504 = vmatprep.subr.bf16.mxu1 %v35191_v52  ;;  %v32287_v8 = vld [vmem:[#allocation5 + $0x48] sm:$0xff] }
 0xe14   :  { %26318 = vmatpush1.bf16.msra.mxu0 %v35192_v27  ;;  %26506 = vmatpush3.bf16.msra.mxu1 %v35191_v52  ;;  %v14039_v52 = vand.u32 4294901760, %v32285_v47  ;;  %v14042_v27 = vand.u32 4294901760, %v32287_v8 }
 0xe15   :  { %26320 = vmatprep.subr.bf16.mxu0 %v35193_v10  ;;  %26508 = vmatprep.subr.bf16.mxu1 %v35194_v40 }
 0xe16   :  { %v32293_v10 = vpack.c.bf16 %v14042_v27, %v14039_v52 }
 0xe18   :  { %26322 = vmatpush1.bf16.msra.mxu0 %v35195_v12  ;;  %26510 = vmatpush3.bf16.msra.mxu1 %v35194_v40  ;;  %v32295_v40 = vld [vmem:[#allocation5 + $0x50] sm:$0xff]  ;;  %v32297_v12 = vld [vmem:[#allocation5 + $0x58] sm:$0xff] }
 0xe19   :  { %26324 = vmatprep.subr.bf16.mxu0 %v34710_v50  ;;  %26512 = vmatprep.subr.bf16.mxu1 %v35196_v28 }
 0xe1b   :  { %12845 = vmatmul.mubr.f32.vlgmr.msra.gmra.mrb[28].mxu0 %v32061_v42  ;;  %v35211_v42 = vld [vmem:[#allocation111_spill] sm:$0xff] }
 0xe1c   :  { %26326 = vmatpush1.bf16.msra.mxu0 %v34714_v21  ;;  %26514 = vmatpush3.bf16.msra.mxu1 %v35196_v28  ;;  %v14045_v28 = vand.u32 4294901760, %v32295_v40 }
 0xe1d   :  { %12850 = vmatprep.mubr.f32.mxu0 %v34688_v32  ;;  %26328 = vmatprep.subr.bf16.mxu0 %v34715_v22 }
 0xe1e   :  { %26516 = vmatprep.subr.bf16.mxu1 %v30012_v39 }
 0xe1f   :  { %12853 = vmatmul.mubr.f32.gmra.mrb[30].mxu0 %v32075_v56  ;;  %22598 = vmatmul.mubr.f32.vlgmr.msra.gmra.mrb[26].mxu1 %v32075_v56  ;;  %v35214_v56 = vld [vmem:[#allocation114_spill] sm:$0xff] }
 0xe20   :  { %26330 = vmatpush1.bf16.msra.mxu0 %v34719_v26  ;;  %26518 = vmatpush3.bf16.msra.mxu1 %v30012_v39 }
 0xe21   :  { %22632 = vmatprep.mubr.f32.mxu1 %v32066_v62  ;;  %26332 = vmatprep.subr.bf16.mxu0 %v34720_v38 }
 0xe22   :  { %26520 = vmatprep.subr.bf16.mxu1 %v30029_v18  ;;  %12955 = vmatprep.mubr.f32.mxu0 %v34688_v32 }
 0xe24   :  { %26334 = vmatpush1.bf16.msra.mxu0 %v34724_v63  ;;  %26522 = vmatpush3.bf16.msra.mxu1 %v30029_v18 }
 0xe25   :  { %26336 = vmatprep.subr.bf16.mxu0 %v34725_v60  ;;  %26524 = vmatprep.subr.bf16.mxu1 %v34821_v43 }
 0xe28   :  { %26338 = vmatpush1.bf16.msra.mxu0 %v34729_v7  ;;  %26526 = vmatpush3.bf16.msra.mxu1 %v34821_v43 }
 0xe29   :  { %26340 = vmatprep.subr.bf16.mxu0 %v34730_v49  ;;  %26528 = vmatprep.subr.bf16.mxu1 %v34822_v29 }
 0xe2c   :  { %26342 = vmatpush1.bf16.msra.mxu0 %v34734_v3  ;;  %26530 = vmatpush3.bf16.msra.mxu1 %v34822_v29 }
 0xe2d   :  { %26344 = vmatprep.subr.bf16.mxu0 %v34735_v31  ;;  %26532 = vmatprep.subr.bf16.mxu1 %v35197_v44 }
 0xe30   :  { %26346 = vmatpush1.bf16.msra.mxu0 %v35198_v5  ;;  %26534 = vmatpush3.bf16.msra.mxu1 %v35197_v44 }
 0xe31   :  { %26348 = vmatprep.subr.bf16.mxu0 %v35199_v1  ;;  %26536 = vmatprep.subr.bf16.mxu1 %v35200_v45 }
 0xe34   :  { %26350 = vmatpush1.bf16.msra.mxu0 %v35201_v23  ;;  %26538 = vmatpush3.bf16.msra.mxu1 %v35200_v45 }
 0xe35   :  { %26352 = vmatprep.subr.bf16.mxu0 %v35202_v48  ;;  %26540 = vmatprep.subr.bf16.mxu1 %v35203_v53 }
 0xe38   :  { %26354 = vmatpush1.bf16.msra.mxu0 %v35204_v9  ;;  %26542 = vmatpush3.bf16.msra.mxu1 %v35203_v53 }
 0xe39   :  { %26356 = vmatprep.subr.bf16.mxu0 %v35205_v33  ;;  %26544 = vmatprep.subr.bf16.mxu1 %v35206_v0 }
 0xe3b   :  { %12959 = vmatmul.mubr.f32.vlgmr.msra.gmra.mrb[28].mxu0 %v32066_v62  ;;  %v35212_v62 = vld [vmem:[#allocation57_spill] sm:$0xff] }
 0xe3c   :  { %26358 = vmatpush1.bf16.msra.mxu0 %v35207_v30  ;;  %26546 = vmatpush3.bf16.msra.mxu1 %v35206_v0  ;;  %v32325_v30 = vld [vmem:[#allocation5 + $0x78] sm:$0xff] }
 0xe3d   :  { %12964 = vmatprep.mubr.f32.mxu0 %v34688_v32  ;;  %26360 = vmatprep.subr.bf16.mxu0 %v35208_v57 }
 0xe3e   :  { %26548 = vmatprep.subr.bf16.mxu1 %v35209_v15 }
 0xe3f   :  { %12968 = vmatmul.mubr.f32.gmra.mrb[30].mxu0 %v32078_v35  ;;  %22633 = vmatmul.mubr.f32.vlgmr.msra.gmra.mrb[26].mxu1 %v32078_v35  ;;  %v35216_v35 = vld [vmem:[#allocation35_spill] sm:$0xff] }
 0xe40   :  { %26362 = vmatpush1.bf16.msra.mxu0 %v35210_v46  ;;  %26550 = vmatpush3.bf16.msra.mxu1 %v35209_v15  ;;  %v14060_v15 = vand.u32 4294901760, %v32325_v30 }
 0xe41   :  { %22667 = vmatprep.mubr.f32.mxu1 %v32057_v41  ;;  %26364 = vmatprep.subr.bf16.mxu0 %v35211_v42 }
 0xe42   :  { %26552 = vmatprep.subr.bf16.mxu1 %v35212_v62  ;;  %13134 = vmatprep.mubr.f32.mxu0 %v34688_v32 }
 0xe44   :  { %26366 = vmatpush1.bf16.msra.mxu0 %v35213_v34  ;;  %26554 = vmatpush3.bf16.msra.mxu1 %v35212_v62 }
 0xe45   :  { %26368 = vmatprep.subr.bf16.mxu0 %v35214_v56  ;;  %26556 = vmatprep.subr.bf16.mxu1 %v35215_v37 }
 0xe48   :  { %26370 = vmatpush1.bf16.msra.mxu0 %v35216_v35  ;;  %26558 = vmatpush3.bf16.msra.mxu1 %v35215_v37 }
 0xe49   :  { %26372 = vmatprep.subr.bf16.mxu0 %v35217_v16  ;;  %26560 = vmatprep.subr.bf16.mxu1 %v35218_v24 }
 0xe4c   :  { %26374 = vmatpush1.bf16.msra.mxu0 %v35219_v14  ;;  %26562 = vmatpush3.bf16.msra.mxu1 %v35218_v24 }
 0xe4d   :  { %26376 = vmatprep.subr.bf16.mxu0 %v35220_v25  ;;  %26564 = vmatprep.subr.bf16.mxu1 %v35221_v58 }
 0xe50   :  { %26378 = vmatpush1.bf16.msra.mxu0 %v35222_v11  ;;  %26566 = vmatpush3.bf16.msra.mxu1 %v35221_v58 }
 0xe51   :  { %26380 = vmatprep.subr.bf16.mxu0 %v35223_v54  ;;  %26568 = vmatprep.subr.bf16.mxu1 %v35224_v36 }
 0xe54   :  { %26382 = vmatpush1.bf16.msra.mxu0 %v35225_v51  ;;  %26570 = vmatpush3.bf16.msra.mxu1 %v35224_v36 }
 0xe55   :  { %26384 = vmatprep.subr.bf16.mxu0 %v35226_v61  ;;  %26572 = vmatprep.subr.bf16.mxu1 %v35227_v20 }
 0xe58   :  { %26386 = vmatpush1.bf16.msra.mxu0 %v35228_v13  ;;  %26574 = vmatpush3.bf16.msra.mxu1 %v35227_v20 }
 0xe59   :  { %26388 = vmatprep.subr.bf16.mxu0 %v34710_v50  ;;  %26576 = vmatprep.subr.bf16.mxu1 %v35229_v4  ;;  %v14001_v50 = vld [vmem:[#allocation5 + $0x18] sm:$0xff] }
 0xe5b   :  { %13136 = vmatmul.mubr.f32.vlgmr.msra.gmra.mrb[28].mxu0 %v32057_v41 }
 0xe5c   :  { %26390 = vmatpush1.bf16.msra.mxu0 %v34714_v21  ;;  %26578 = vmatpush3.bf16.msra.mxu1 %v35229_v4  ;;  %v14024_v21 = vand.u32 4294901760, %v14001_v50 }
 0xe5d   :  { %13141 = vmatprep.mubr.f32.mxu0 %v34688_v32  ;;  %26392 = vmatprep.subr.bf16.mxu0 %v34715_v22 }
 0xe5e   :  { %26580 = vmatprep.subr.bf16.mxu1 %v30012_v39  ;;  %v32347_v35 = vsub.f32 %v14001_v50, %v14024_v21 }
 0xe5f   :  { %13143 = vmatmul.mubr.f32.gmra.mrb[30].mxu0 %v32069_v17  ;;  %22668 = vmatmul.mubr.f32.vlgmr.msra.gmra.mrb[26].mxu1 %v32069_v17 }
 0xe60   :  { %26394 = vmatpush1.bf16.msra.mxu0 %v34719_v26  ;;  %26582 = vmatpush3.bf16.msra.mxu1 %v30012_v39  ;;  %v34504_v25 = vand.u32 4294901760, %v32347_v35 }
 0xe61   :  { %22702 = vmatprep.mubr.f32.mxu1 %v32057_v41  ;;  %26396 = vmatprep.subr.bf16.mxu0 %v34720_v38 }
 0xe62   :  { %26584 = vmatprep.subr.bf16.mxu1 %v30029_v18  ;;  %13245 = vmatprep.mubr.f32.mxu0 %v34688_v32  ;;  %v14140_v51 = vsub.f32 %v32347_v35, %v34504_v25 }
 0xe64   :  { %26398 = vmatpush1.bf16.msra.mxu0 %v34724_v63  ;;  %26586 = vmatpush3.bf16.msra.mxu1 %v30029_v18  ;;  %v14000_v18 = vld [vmem:[#allocation5 + $0x10] sm:$0xff]  ;;  %v14141_v4 = vand.u32 4294901760, %v14140_v51 }
 0xe65   :  { %26400 = vmatprep.subr.bf16.mxu0 %v34725_v60  ;;  %26588 = vmatprep.subr.bf16.mxu1 %v34821_v43  ;;  %v14003_v60 = vld [vmem:[#allocation5 + $0x28] sm:$0xff] }
 0xe66   :  { %v14030_v63 = vand.u32 4294901760, %v14003_v60 }
 0xe68   :  { %26402 = vmatpush1.bf16.msra.mxu0 %v34729_v7  ;;  %26590 = vmatpush3.bf16.msra.mxu1 %v34821_v43  ;;  %v32360_v36 = vsub.f32 %v14003_v60, %v14030_v63 }
 0xe69   :  { %26404 = vmatprep.subr.bf16.mxu0 %v34730_v49  ;;  %26592 = vmatprep.subr.bf16.mxu1 %v34822_v29  ;;  %v14021_v49 = vand.u32 4294901760, %v14000_v18 }
 0xe6a   :  { %v34502_v13 = vand.u32 4294901760, %v32360_v36 }
 0xe6b   :  { %v32275_v22 = vpack.c.bf16 %v14024_v21, %v14021_v49  ;;  %v32345_v37 = vsub.f32 %v14000_v18, %v14021_v49 }
 0xe6c   :  { %26406 = vmatpush1.bf16.msra.mxu0 %v34734_v3  ;;  %26594 = vmatpush3.bf16.msra.mxu1 %v34822_v29  ;;  %v13998_v3 = vld [vmem:[#allocation5] sm:$0xff]  ;;  %v14004_v29 = vld [vmem:[#allocation5 + $0x30] sm:$0xff] }
 0xe6d   :  { %26408 = vmatprep.subr.bf16.mxu0 %v34735_v31  ;;  %26596 = vmatprep.subr.bf16.mxu1 %v35197_v44  ;;  %v13999_v31 = vld [vmem:[#allocation5 + $0x8] sm:$0xff]  ;;  %v14015_v39 = vand.u32 4294901760, %v13998_v3  ;;  %v34505_v14 = vand.u32 4294901760, %v32345_v37 }
 0xe6e   :  { %v14018_v7 = vand.u32 4294901760, %v13999_v31 }
 0xe6f   :  { %v14133_v11 = vsub.f32 %v32345_v37, %v34505_v14 }
 0xe70   :  { %26410 = vmatpush1.bf16.msra.mxu0 %v35198_v5  ;;  %26598 = vmatpush3.bf16.msra.mxu1 %v35197_v44  ;;  %v32271_v26 = vpack.c.bf16 %v14018_v7, %v14015_v39  ;;  %v14048_v44 = vand.u32 4294901760, %v32297_v12  ;;  %v32321_v33 = vsub.f32 %v13999_v31, %v14018_v7  ;;  %v14154_v31 = vsub.f32 %v32360_v36, %v34502_v13 }
 0xe71   :  { %26412 = vmatprep.subr.bf16.mxu0 %v35199_v1  ;;  %26600 = vmatprep.subr.bf16.mxu1 %v35200_v45  ;;  %v32305_v1 = vld [vmem:[#allocation5 + $0x60] sm:$0xff]  ;;  %v14134_v61 = vand.u32 4294901760, %v14133_v11  ;;  %v32404_v11 = vsub.f32 %v32295_v40, %v14045_v28 }
 0xe72   :  { %v32303_v5 = vpack.c.bf16 %v14048_v44, %v14045_v28  ;;  %v14125_v42 = vand.u32 4294901760, %v32321_v33  ;;  %v14155_v49 = vand.u32 4294901760, %v14154_v31 }
 0xe73   :  { %v32378_v18 = vpack.c.bf16 %v14141_v4, %v14134_v61 }
 0xe74   :  { %26414 = vmatpush1.bf16.msra.mxu0 %v35201_v23  ;;  %26602 = vmatpush3.bf16.msra.mxu1 %v35200_v45  ;;  %v32307_v45 = vld [vmem:[#allocation5 + $0x68] sm:$0xff]  ;;  %v14051_v23 = vand.u32 4294901760, %v32305_v1  ;;  %v14126_v56 = vsub.f32 %v32321_v33, %v14125_v42 }
 0xe75   :  { %26416 = vmatprep.subr.bf16.mxu0 %v35202_v48  ;;  %26604 = vmatprep.subr.bf16.mxu1 %v35203_v53  ;;  %v14054_v48 = vand.u32 4294901760, %v32307_v45 }
 0xe76   :  { %v14127_v24 = vand.u32 4294901760, %v14126_v56 }
 0xe77   :  { %v32428_v28 = vsub.f32 %v32307_v45, %v14054_v48 }
 0xe78   :  { %26418 = vmatpush1.bf16.msra.mxu0 %v35204_v9  ;;  %26606 = vmatpush3.bf16.msra.mxu1 %v35203_v53  ;;  %v32317_v53 = vpack.c.bf16 %v14054_v48, %v14051_v23  ;;  %v32319_v9 = vsub.f32 %v13998_v3, %v14015_v39  ;;  %v32450_v48 = vsub.f32 %v32325_v30, %v14060_v15 }
 0xe79   :  { %26608 = vmatprep.subr.bf16.mxu1 %v35206_v0 }
 0xe7a   :  { %v14118_v46 = vand.u32 4294901760, %v32319_v9 }
 0xe7b   :  { %13247 = vmatmul.mubr.f32.vlgmr.msra.gmra.mrb[28].mxu0 %v32057_v41  ;;  %v14005_v41 = vld [vmem:[#allocation5 + $0x38] sm:$0xff] }
 0xe7c   :  { %26610 = vmatpush3.bf16.msra.mxu1 %v35206_v0  ;;  %13252 = vmatprep.mubr.f32.mxu0 %v34688_v32  ;;  %v14002_v32 = vld [vmem:[#allocation5 + $0x20] sm:$0xff]  ;;  %v14036_v6 = vand.u32 4294901760, %v14005_v41  ;;  %v32323_v0 = vld [vmem:[#allocation5 + $0x70] sm:$0xff]  ;;  %v14119_v34 = vsub.f32 %v32319_v9, %v14118_v46 }
 0xe7d   :  { %26612 = vmatprep.subr.bf16.mxu1 %v32271_v26  ;;  %v14027_v38 = vand.u32 4294901760, %v14002_v32  ;;  %v14057_v57 = vand.u32 4294901760, %v32323_v0 }
 0xe7e   :  { %v14120_v16 = vand.u32 4294901760, %v14119_v34  ;;  %v32376_v7 = vsub.f32 %v14005_v41, %v14036_v6  ;;  %v32394_v41 = vsub.f32 %v32287_v8, %v14042_v27  ;;  %v34497_v27 = vand.u32 4294901760, %v32404_v11 }
 0xe7f   :  { %13254 = vmatmul.mubr.f32.gmra.mrb[30].mxu0 %v32069_v17  ;;  %22703 = vmatmul.mubr.f32.vlgmr.msra.gmra.mrb[26].mxu1 %v32069_v17  ;;  %v32279_v43 = vpack.c.bf16 %v14030_v63, %v14027_v38  ;;  %v14033_v17 = vand.u32 4294901760, %v14004_v29  ;;  %v32337_v62 = vpack.c.bf16 %v14060_v15, %v14057_v57  ;;  %v32358_v54 = vsub.f32 %v14002_v32, %v14027_v38 }
 0xe80   :  { %26614 = vmatpush3.bf16.msra.mxu1 %v32271_v26  ;;  %v32353_v58 = vpack.c.bf16 %v14127_v24, %v14120_v16  ;;  %v34500_v32 = vand.u32 4294901760, %v32376_v7  ;;  %v34498_v56 = vand.u32 4294901760, %v32394_v41  ;;  %v14189_v4 = vsub.f32 %v32404_v11, %v34497_v27 }
 0xe81   :  { %26616 = vmatprep.subr.bf16.mxu1 %v32275_v22  ;;  %v32283_v55 = vpack.c.bf16 %v14036_v6, %v14033_v17  ;;  %v34503_v20 = vand.u32 4294901760, %v32358_v54  ;;  %v32374_v39 = vsub.f32 %v14004_v29, %v14033_v17  ;;  %v32391_v29 = vsub.f32 %v32285_v47, %v14039_v52 }
 0xe82   :  { %v14168_v63 = vsub.f32 %v32376_v7, %v34500_v32  ;;  %v32407_v47 = vsub.f32 %v32297_v12, %v14048_v44  ;;  %v14182_v8 = vsub.f32 %v32394_v41, %v34498_v56  ;;  %v32423_v12 = vsub.f32 %v32305_v1, %v14051_v23 }
 0xe83   :  { %v14147_v3 = vsub.f32 %v32358_v54, %v34503_v20  ;;  %v34501_v21 = vand.u32 4294901760, %v32374_v39  ;;  %v34499_v34 = vand.u32 4294901760, %v32391_v29  ;;  %v32445_v45 = vsub.f32 %v32323_v0, %v14057_v57 }
 0xe84   :  { %26618 = vmatpush3.bf16.msra.mxu1 %v32275_v22  ;;  %v14169_v6 = vand.u32 4294901760, %v14168_v63  ;;  %v34496_v51 = vand.u32 4294901760, %v32407_v47  ;;  %v14183_v61 = vand.u32 4294901760, %v14182_v8  ;;  %v32466_v15 = vpack.c.bf16 %v32321_v33, %v32319_v9 }
 0xe85   :  { %26620 = vmatprep.subr.bf16.mxu1 %v32279_v43  ;;  %v14148_v50 = vand.u32 4294901760, %v14147_v3  ;;  %v14161_v38 = vsub.f32 %v32374_v39, %v34501_v21  ;;  %v14175_v24 = vsub.f32 %v32391_v29, %v34499_v34  ;;  %v14190_v3 = vand.u32 4294901760, %v14189_v4  ;;  %v35233_v21 = vld [vmem:[#allocation85_spill] sm:$0xff] }
 0xe86   :  { %v14196_v40 = vsub.f32 %v32407_v47, %v34496_v51  ;;  %v32470_v4 = vpack.c.bf16 %v32347_v35, %v32345_v37  ;;  %v35232_v51 = vld [vmem:[#allocation84_spill] sm:$0xff]  ;;  %v35239_v9 = vand.u32 4294901760, %v32360_v36 }
 0xe87   :  { %v32382_v60 = vpack.c.bf16 %v14155_v49, %v14148_v50  ;;  %v14162_v17 = vand.u32 4294901760, %v14161_v38  ;;  %v14176_v52 = vand.u32 4294901760, %v14175_v24  ;;  %v34495_v50 = vand.u32 4294901760, %v32423_v12 }
 0xe88   :  { %26622 = vmatpush3.bf16.msra.mxu1 %v32279_v43  ;;  %v14197_v31 = vand.u32 4294901760, %v14196_v40  ;;  %v34494_v49 = vand.u32 4294901760, %v32428_v28  ;;  %v34492_v24 = vand.u32 4294901760, %v32450_v48  ;;  %v32474_v40 = vpack.c.bf16 %v32360_v36, %v32358_v54 }
 0xe89   :  { %26624 = vmatprep.subr.bf16.mxu1 %v32283_v55  ;;  %v32398_v16 = vpack.c.bf16 %v14169_v6, %v14162_v17  ;;  %v32430_v44 = vpack.c.bf16 %v14183_v61, %v14176_v52  ;;  %v14203_v1 = vsub.f32 %v32423_v12, %v34495_v50  ;;  %v34493_v6 = vand.u32 4294901760, %v32445_v45 }
 0xe8a   :  { %v32434_v38 = vpack.c.bf16 %v14197_v31, %v14190_v3  ;;  %v14210_v23 = vsub.f32 %v32428_v28, %v34494_v49  ;;  %v14224_v0 = vsub.f32 %v32450_v48, %v34492_v24  ;;  %v32478_v3 = vpack.c.bf16 %v32376_v7, %v32374_v39  ;;  %v35231_v24 = vld [vmem:[#allocation83_spill] sm:$0xff] }
 0xe8b   :  { %v14204_v63 = vand.u32 4294901760, %v14203_v1  ;;  %v14217_v52 = vsub.f32 %v32445_v45, %v34493_v6  ;;  %v32482_v31 = vpack.c.bf16 %v32394_v41, %v32391_v29  ;;  %v32486_v1 = vpack.c.bf16 %v32407_v47, %v32404_v11 }
 0xe8c   :  { %26626 = vmatpush3.bf16.msra.mxu1 %v32283_v55  ;;  %v14211_v17 = vand.u32 4294901760, %v14210_v23  ;;  %v14225_v61 = vand.u32 4294901760, %v14224_v0  ;;  %v32490_v23 = vpack.c.bf16 %v32428_v28, %v32423_v12  ;;  %v35245_v36 = vand.u32 4294901760, %v32407_v47 }
 0xe8d   :  { %26628 = vmatprep.subr.bf16.mxu1 %v32293_v10  ;;  %v14218_v57 = vand.u32 4294901760, %v14217_v52  ;;  %v35230_v52 = vld [vmem:[#allocation82_spill] sm:$0xff] }
 0xe8e   :  { %v32454_v8 = vpack.c.bf16 %v14211_v17, %v14204_v63  ;;  %v32494_v63 = vpack.c.bf16 %v32450_v48, %v32445_v45 }
 0xe8f   :  { %v32462_v30 = vpack.c.bf16 %v14225_v61, %v14218_v57 }
 0xe90   :  { %26630 = vmatpush3.bf16.msra.mxu1 %v32293_v10 }
 0xe91   :  { %26632 = vmatprep.subr.bf16.mxu1 %v32303_v5 }
 0xe94   :  { %26634 = vmatpush3.bf16.msra.mxu1 %v32303_v5 }
 0xe95   :  { %26636 = vmatprep.subr.bf16.mxu1 %v32317_v53 }
 0xe98   :  { %26638 = vmatpush3.bf16.msra.mxu1 %v32317_v53 }
 0xe99   :  { %26640 = vmatprep.subr.bf16.mxu1 %v32337_v62 }
 0xe9c   :  { %26642 = vmatpush3.bf16.msra.mxu1 %v32337_v62 }
 0xe9d   :  { %26644 = vmatprep.subr.bf16.mxu1 %v32353_v58 }
 0xf4e   :  { %v13248_v17 = vpop.f32.mrb[28].mxu0 }
 0xf4f   :  { %v27691_v0 = vadd.f32 %v35230_v52, %v13248_v17  ;;  %v13250_v57 = vpop.f32.mrb[29].mxu0 }
 0xf50   :  { %v27692_v6 = vadd.f32 %v35231_v24, %v13250_v57 }
 0xf51   :  { %v19578_v61 = vmul.f32 -1.442695, %v27691_v0 }
 0xf52   :  { %v13255_v49 = vpop.f32.mrb[30].mxu0  ;;  %v22704_v50 = vpop.f32.mrb[26].mxu1  ;;  %v19580_v20 = vmul.f32 -1.442695, %v27692_v6 }
 0xf53   :  { %28422 = vpow2.f32 %v19578_v61  ;;  %v27693_v27 = vadd.f32 %v35232_v51, %v13255_v49  ;;  %v13257_v56 = vpop.f32.mrb[31].mxu0  ;;  %v13934_v34 = vpop.f32.mrb[27].mxu1 }
 0xf54   :  { %v27694_v13 = vadd.f32 %v35233_v21, %v13257_v56  ;;  %v13972_v51 = vadd.f32 %v32046_v2, %v13934_v34 }
 0xf55   :  { %v19579_v32 = vmul.f32 -1.442695, %v27693_v27 }
 0xf56   :  { %v19581_v25 = vmul.f32 -1.442695, %v27694_v13  ;;  %v35234_v13 = vld [vmem:[#allocation99_spill] sm:$0xff] }
 0xf57   :  { %28424 = vpow2.f32 %v19579_v32  ;;  %v13973_v32 = vadd.f32 %v32046_v2, %v22704_v50 }
 0xf58   :  { %28426 = vpow2.f32 %v19580_v20 }
 0xf59   :  { %28428 = vpow2.f32 %v19581_v25  ;;  %v35235_v25 = vld [vmem:[#allocation32_spill] sm:$0xff] }
 0xf5d   :  { %v28423_v14 = vpop.eup %28422 }
 0xf5e   :  { %v13952_v17 = vadd.f32 1.0, %v28423_v14 }
 0xf60   :  { %28430 = vrcp.f32 %v13952_v17 }
 0xf61   :  { %v28425_v52 = vpop.eup %28424 }
 0xf62   :  { %v13953_v24 = vadd.f32 1.0, %v28425_v52  ;;  %v28427_v0 = vpop.eup %28426 }
 0xf63   :  { %v28429_v57 = vpop.eup %28428  ;;  %v13966_v61 = vadd.f32 1.0, %v28427_v0 }
 0xf64   :  { %28432 = vrcp.f32 %v13953_v24  ;;  %v13967_v27 = vadd.f32 1.0, %v28429_v57 }
 0xf65   :  { %28434 = vrcp.f32 %v13966_v61 }
 0xf66   :  { %28436 = vrcp.f32 %v13967_v27 }
 0xf6a   :  { %v28431_v49 = vpop.eup %28430 }
 0xf6b   :  { %v13974_v21 = vmul.f32 %v28431_v49, %v13972_v51 }
 0xf6d   :  { %v13976_v20 = vadd.f32 %v13974_v21, %v35234_v13 }
 0xf6e   :  { %v28433_v56 = vpop.eup %28432 }
 0xf6f   :  { %v13975_v14 = vmul.f32 %v28433_v56, %v13973_v32  ;;  %28438 = vtanh.f32 %v13976_v20  ;;  %v28435_v17 = vpop.eup %28434 }
 0xf70   :  { %v28437_v52 = vpop.eup %28436  ;;  %v13980_v24 = vsub.f32 1.0, %v28435_v17  ;;  %v13984_v34 = vmul.f32 %v28435_v17, %v32053_v19 }
 0xf71   :  { %v13977_v6 = vadd.f32 %v13975_v14, %v35235_v25  ;;  %v13981_v61 = vsub.f32 1.0, %v28437_v52  ;;  %v13985_v50 = vmul.f32 %v28437_v52, %v32063_v59 }
 0xf73   :  { %28440 = vtanh.f32 %v13977_v6 }
 0xf79   :  { %v28439_v0 = vpop.eup %28438 }
 0xf7a   :  { %v13982_v57 = vmul.f32 %v28439_v0, %v13980_v24  ;;  %v35237_v24 = vand.u32 4294901760, %v32347_v35  ;;  %v35242_v35 = vand.u32 4294901760, %v32391_v29  ;;  %v35248_v29 = vand.u32 4294901760, %v32445_v45  ;;  %v32708_v45 = vld [vmem:[#allocation5 + $0xa8] sm:$0xff] }
 0xf7c   :  { %v13986_v51 = vadd.f32 %v13984_v34, %v13982_v57  ;;  %v35238_v34 = vand.u32 4294901760, %v32358_v54  ;;  %v35243_v57 = vand.u32 4294901760, %v32394_v41  ;;  %v35244_v54 = vand.u32 4294901760, %v32404_v11  ;;  %v32698_v11 = vld [vmem:[#allocation5 + $0x98] sm:$0xff] }
 0xf7d   :  { %v28441_v49 = vpop.eup %28440  ;;  %v35249_v41 = vand.u32 4294901760, %v32450_v48 }
 0xf7e   :  { %v13983_v2 = vmul.f32 %v28441_v49, %v13981_v61  ;;  %v32506_v21 = vand.u32 4294901760, %v13986_v51  ;;  %v26747_v33 = vpack.c.bf16 %v35239_v9, %v35238_v34  ;;  %v26755_v61 = vpack.c.bf16 %v35243_v57, %v35242_v35 }
 0xf80   :  { %v13987_v27 = vadd.f32 %v13985_v50, %v13983_v2  ;;  %v32509_v32 = vsub.f32 %v13986_v51, %v32506_v21  ;;  %v26759_v51 = vpack.c.bf16 %v35245_v36, %v35244_v54  ;;  %v26767_v2 = vpack.c.bf16 %v35249_v41, %v35248_v29 }
 0xf82   :  { %v32511_v13 = vand.u32 4294901760, %v13987_v27  ;;  %v32514_v20 = vand.u32 4294901760, %v32509_v32 }
 0xf84   :  { %v32518_v19 = vpack.c.bf16 %v32511_v13, %v32506_v21  ;;  %v14098_v56 = vsub.f32 %v32509_v32, %v32514_v20  ;;  %v32523_v59 = vsub.f32 %v13987_v27, %v32511_v13  ;;  %v32718_v27 = vld [vmem:[#allocation5 + $0xb0] sm:$0xff] }
 0xf86   :  { %26804 = vmatprep.subr.bf16.mxu0 %v32518_v19  ;;  %v14099_v14 = vand.u32 4294901760, %v14098_v56  ;;  %v32527_v25 = vand.u32 4294901760, %v32523_v59 }
 0xf87   :  { %26806 = vmatpush3.bf16.msra.mxu0 %v32518_v19 }
 0xf88   :  { %22737 = vmatprep.mubr.f32.mxu1 %v14099_v14  ;;  %v14108_v6 = vsub.f32 %v32523_v59, %v32527_v25 }
 0xf8a   :  { %v14109_v17 = vand.u32 4294901760, %v14108_v6 }
 0xf8c   :  { %v32532_v52 = vpack.c.bf16 %v14109_v17, %v14099_v14  ;;  %22738 = vmatmul.mubr.f32.vlgmr.msra.gmra.mrb[28].mxu1 %v14109_v17  ;;  %v32735_v14 = vld [vmem:[#allocation5 + $0xc8] sm:$0xff] }
 0xf8d   :  { %26646 = vmatpush3.bf16.msra.mxu1 %v32353_v58  ;;  %22772 = vmatprep.mubr.f32.mxu1 %v32506_v21  ;;  %v13989_v58 = vld [vmem:[%s34049_s4 + $0x8] sm:$0xff]  ;;  %v15253_v17 = vand.u32 4294901760, %v32735_v14 }
 0xf8e   :  { %26648 = vmatprep.subr.bf16.mxu1 %v32378_v18 }
 0xf91   :  { %26650 = vmatpush3.bf16.msra.mxu1 %v32378_v18  ;;  %v13988_v18 = vld [vmem:[%s34049_s4] sm:$0xff] }
 0xf92   :  { %26652 = vmatprep.subr.bf16.mxu1 %v32382_v60 }
 0xf95   :  { %26654 = vmatpush3.bf16.msra.mxu1 %v32382_v60  ;;  %v14705_v60 = vsel %vm14700_vm2, %v13989_v58, 0 }
 0xf96   :  { %26656 = vmatprep.subr.bf16.mxu1 %v32398_v16 }
 0xf99   :  { %26658 = vmatpush3.bf16.msra.mxu1 %v32398_v16  ;;  %v14702_v16 = vsel %vm14700_vm2, %v13988_v18, 0  ;;  %v15219_v18 = vld [vmem:[#allocation5 + $0xd0] sm:$0xff] }
 0xf9a   :  { %26660 = vmatprep.subr.bf16.mxu1 %v32430_v44 }
 0xf9d   :  { %26662 = vmatpush3.bf16.msra.mxu1 %v32430_v44  ;;  %v32572_v44 = vand.u32 4294901760, %v14705_v60 }
 0xf9e   :  { %26664 = vmatprep.subr.bf16.mxu1 %v32434_v38 }
 0xfa1   :  { %26666 = vmatpush3.bf16.msra.mxu1 %v32434_v38  ;;  %v32575_v38 = vand.u32 4294901760, %v14702_v16 }
 0xfa2   :  { %26668 = vmatprep.subr.bf16.mxu1 %v32454_v8 }
 0xfa5   :  { %26670 = vmatpush3.bf16.msra.mxu1 %v32454_v8  ;;  %v32578_v8 = vsub.f32 %v14705_v60, %v32572_v44  ;;  %v15220_v60 = vld [vmem:[#allocation5 + $0xd8] sm:$0xff] }
 0xfa6   :  { %26672 = vmatprep.subr.bf16.mxu1 %v32462_v30 }
 0xfa9   :  { %26674 = vmatpush3.bf16.msra.mxu1 %v32462_v30  ;;  %v32582_v30 = vsub.f32 %v14702_v16, %v32575_v38 }
 0xfaa   :  { %26676 = vmatprep.subr.bf16.mxu1 %v32466_v15 }
 0xfac   :  { %22773 = vmatmul.mubr.f32.vlgmr.msra.gmra.mrb[28].mxu1 %v32511_v13 }
 0xfad   :  { %26678 = vmatpush3.bf16.msra.mxu1 %v32466_v15  ;;  %22807 = vmatprep.mubr.f32.mxu1 %v32509_v32  ;;  %v32585_v15 = vand.u32 4294901760, %v32578_v8 }
 0xfae   :  { %26680 = vmatprep.subr.bf16.mxu1 %v32470_v4 }
 0xfb1   :  { %26682 = vmatpush3.bf16.msra.mxu1 %v32470_v4  ;;  %v32589_v4 = vand.u32 4294901760, %v32582_v30 }
 0xfb2   :  { %26684 = vmatprep.subr.bf16.mxu1 %v32474_v40 }
 0xfb5   :  { %26686 = vmatpush3.bf16.msra.mxu1 %v32474_v40  ;;  %v14787_v40 = vsub.f32 %v32578_v8, %v32585_v15 }
 0xfb6   :  { %26688 = vmatprep.subr.bf16.mxu1 %v32478_v3 }
 0xfb9   :  { %26690 = vmatpush3.bf16.msra.mxu1 %v32478_v3  ;;  %v14777_v3 = vsub.f32 %v32582_v30, %v32589_v4 }
 0xfba   :  { %26692 = vmatprep.subr.bf16.mxu1 %v32482_v31 }
 0xfbd   :  { %26694 = vmatpush3.bf16.msra.mxu1 %v32482_v31  ;;  %v14778_v31 = vand.u32 4294901760, %v14777_v3  ;;  %v15259_v3 = vand.u32 4294901760, %v15220_v60 }
 0xfbe   :  { %26696 = vmatprep.subr.bf16.mxu1 %v32486_v1 }
 0xfbf   :  { %22919 = vmatprep.mubr.f32.mxu0 %v14778_v31 }
 0xfc1   :  { %26698 = vmatpush3.bf16.msra.mxu1 %v32486_v1  ;;  %v32597_v1 = vand.u32 4294901760, %v14787_v40  ;;  %v15256_v40 = vand.u32 4294901760, %v15219_v18 }
 0xfc2   :  { %26700 = vmatprep.subr.bf16.mxu1 %v32490_v23 }
 0xfc3   :  { %22920 = vmatmul.mubr.f32.vlgmr.msra.gmra.mrb[50].mxu0 %v32597_v1  ;;  %v32789_v41 = vsub.f32 %v15219_v18, %v15256_v40 }
 0xfc4   :  { %23171 = vmatprep.mubr.f32.mxu0 %v14778_v31 }
 0xfc5   :  { %26702 = vmatpush3.bf16.msra.mxu1 %v32490_v23  ;;  %v26739_v23 = vpack.c.bf16 %v14125_v42, %v14118_v46  ;;  %v35240_v46 = vand.u32 4294901760, %v32374_v39  ;;  %v35241_v42 = vand.u32 4294901760, %v32376_v7  ;;  %v35246_v39 = vand.u32 4294901760, %v32423_v12 }
 0xfc6   :  { %26704 = vmatprep.subr.bf16.mxu1 %v32494_v63  ;;  %v35247_v7 = vand.u32 4294901760, %v32428_v28  ;;  %v15235_v12 = vand.u32 4294901760, %v32698_v11  ;;  %v32706_v28 = vld [vmem:[#allocation5 + $0xa0] sm:$0xff] }
 0xfc7   :  { %v15238_v50 = vand.u32 4294901760, %v32706_v28 }
 0xfc8   :  { %v26763_v49 = vpack.c.bf16 %v35247_v7, %v35246_v39 }
 0xfc9   :  { %26706 = vmatpush3.bf16.msra.mxu1 %v32494_v63  ;;  %v35236_v63 = vand.u32 4294901760, %v32345_v37  ;;  %v26751_v37 = vpack.c.bf16 %v35241_v42, %v35240_v46  ;;  %v15223_v42 = vld [vmem:[#allocation5 + $0xf0] sm:$0xff] }
 0xfca   :  { %26708 = vmatprep.subr.bf16.mxu1 %v32271_v26  ;;  %v15268_v35 = vand.u32 4294901760, %v15223_v42 }
 0xfcb   :  { %v26743_v0 = vpack.c.bf16 %v35237_v24, %v35236_v63  ;;  %v15221_v63 = vld [vmem:[#allocation5 + $0xe0] sm:$0xff]  ;;  %v15222_v24 = vld [vmem:[#allocation5 + $0xe8] sm:$0xff] }
 0xfcc   :  { %22808 = vmatmul.mubr.f32.vlgmr.msra.gmra.mrb[28].mxu1 %v32523_v59  ;;  %v15265_v34 = vand.u32 4294901760, %v15222_v24 }
 0xfcd   :  { %26710 = vmatpush3.bf16.msra.mxu1 %v32271_v26  ;;  %22842 = vmatprep.mubr.f32.mxu1 %v32514_v20 }
 0xfce   :  { %26712 = vmatprep.subr.bf16.mxu1 %v32275_v22 }
 0xfd1   :  { %26714 = vmatpush3.bf16.msra.mxu1 %v32275_v22 }
 0xfd2   :  { %26716 = vmatprep.subr.bf16.mxu1 %v32279_v43 }
 0xfd5   :  { %26718 = vmatpush3.bf16.msra.mxu1 %v32279_v43 }
 0xfd6   :  { %26720 = vmatprep.subr.bf16.mxu1 %v32283_v55 }
 0xfd9   :  { %26722 = vmatpush3.bf16.msra.mxu1 %v32283_v55 }
 0xfda   :  { %26724 = vmatprep.subr.bf16.mxu1 %v32293_v10 }
 0xfdd   :  { %26726 = vmatpush3.bf16.msra.mxu1 %v32293_v10 }
 0xfde   :  { %26728 = vmatprep.subr.bf16.mxu1 %v32303_v5 }
 0xfe1   :  { %26730 = vmatpush3.bf16.msra.mxu1 %v32303_v5 }
 0xfe2   :  { %26732 = vmatprep.subr.bf16.mxu1 %v32317_v53 }
 0xfe5   :  { %26734 = vmatpush3.bf16.msra.mxu1 %v32317_v53 }
 0xfe6   :  { %26736 = vmatprep.subr.bf16.mxu1 %v32337_v62 }
 0xfe9   :  { %26738 = vmatpush3.bf16.msra.mxu1 %v32337_v62 }
 0xfea   :  { %26740 = vmatprep.subr.bf16.mxu1 %v26739_v23 }
 0xfec   :  { %22843 = vmatmul.mubr.f32.vlgmr.msra.gmra.mrb[28].mxu1 %v32527_v25 }
 0xfed   :  { %26742 = vmatpush3.bf16.msra.mxu1 %v26739_v23  ;;  %22877 = vmatprep.mubr.f32.mxu1 %v32506_v21  ;;  %v32762_v23 = vpack.c.bf16 %v15259_v3, %v15256_v40 }
 0xfee   :  { %26744 = vmatprep.subr.bf16.mxu1 %v26743_v0 }
 0xff1   :  { %26746 = vmatpush3.bf16.msra.mxu1 %v26743_v0  ;;  %v15262_v0 = vand.u32 4294901760, %v15221_v63 }
 0xff2   :  { %26748 = vmatprep.subr.bf16.mxu1 %v26747_v33 }
 0xff3   :  { %v32766_v9 = vpack.c.bf16 %v15265_v34, %v15262_v0 }
 0xff5   :  { %26750 = vmatpush3.bf16.msra.mxu1 %v26747_v33 }
 0xff6   :  { %26752 = vmatprep.subr.bf16.mxu1 %v26751_v37 }
 0xff9   :  { %26754 = vmatpush3.bf16.msra.mxu1 %v26751_v37  ;;  %v15224_v37 = vld [vmem:[#allocation5 + $0xf8] sm:$0xff] }
 0xffa   :  { %26756 = vmatprep.subr.bf16.mxu1 %v26755_v61  ;;  %v15271_v57 = vand.u32 4294901760, %v15224_v37 }
 0xffc   :  { %v32776_v36 = vpack.c.bf16 %v15271_v57, %v15268_v35 }
 0xffd   :  { %26758 = vmatpush3.bf16.msra.mxu1 %v26755_v61 }
 0xffe   :  { %26760 = vmatprep.subr.bf16.mxu1 %v26759_v51 }
0x1001   :  { %26762 = vmatpush3.bf16.msra.mxu1 %v26759_v51 }
0x1002   :  { %26764 = vmatprep.subr.bf16.mxu1 %v26763_v49 }
0x1005   :  { %26766 = vmatpush3.bf16.msra.mxu1 %v26763_v49 }
0x1006   :  { %26768 = vmatprep.subr.bf16.mxu1 %v26767_v2 }
0x1009   :  { %26770 = vmatpush3.bf16.msra.mxu1 %v26767_v2  ;;  %v32791_v2 = vsub.f32 %v15220_v60, %v15259_v3 }
0x100a   :  { %26772 = vmatprep.subr.bf16.mxu1 %v32271_v26 }
0x100c   :  { %22878 = vmatmul.mubr.f32.vlgmr.msra.gmra.mrb[28].mxu1 %v32511_v13 }
0x100d   :  { %26774 = vmatpush3.bf16.msra.mxu1 %v32271_v26  ;;  %22912 = vmatprep.mubr.f32.mxu1 %v32506_v21  ;;  %v32673_v26 = vpack.c.bf16 %v32523_v59, %v32509_v32  ;;  %v15241_v21 = vand.u32 4294901760, %v32708_v45  ;;  %v32720_v32 = vld [vmem:[#allocation5 + $0xb8] sm:$0xff]  ;;  %v32733_v59 = vld [vmem:[#allocation5 + $0xc0] sm:$0xff] }
0x100e   :  { %26776 = vmatprep.subr.bf16.mxu1 %v32275_v22  ;;  %v15247_v56 = vand.u32 4294901760, %v32720_v32  ;;  %v15250_v6 = vand.u32 4294901760, %v32733_v59 }
0x1010   :  { %v32753_v58 = vpack.c.bf16 %v15253_v17, %v15250_v6 }
0x1011   :  { %26778 = vmatpush3.bf16.msra.mxu1 %v32275_v22  ;;  %v32685_v22 = vpack.c.bf16 %v32527_v25, %v32514_v20  ;;  %v15244_v20 = vand.u32 4294901760, %v32718_v27 }
0x1012   :  { %26780 = vmatprep.subr.bf16.mxu1 %v32279_v43 }
0x1013   :  { %v32743_v25 = vpack.c.bf16 %v15247_v56, %v15244_v20 }
0x1015   :  { %26782 = vmatpush3.bf16.msra.mxu1 %v32279_v43  ;;  %v15209_v43 = vld [vmem:[#allocation5 + $0x80] sm:$0xff] }
0x1016   :  { %26784 = vmatprep.subr.bf16.mxu1 %v32283_v55 }
0x1019   :  { %26786 = vmatpush3.bf16.msra.mxu1 %v32283_v55  ;;  %v15210_v55 = vld [vmem:[#allocation5 + $0x88] sm:$0xff] }
0x101a   :  { %26788 = vmatprep.subr.bf16.mxu1 %v32293_v10 }
0x101d   :  { %26790 = vmatpush3.bf16.msra.mxu1 %v32293_v10  ;;  %v15226_v10 = vand.u32 4294901760, %v15209_v43 }
0x101e   :  { %26792 = vmatprep.subr.bf16.mxu1 %v32303_v5 }
0x101f   :  { %v32768_v33 = vsub.f32 %v15209_v43, %v15226_v10  ;;  %v34506_v43 = vand.u32 4294901760, %v32789_v41 }
0x1021   :  { %26794 = vmatpush3.bf16.msra.mxu1 %v32303_v5  ;;  %v15229_v5 = vand.u32 4294901760, %v15210_v55  ;;  %v34517_v61 = vand.u32 4294901760, %v32768_v33 }
0x1022   :  { %26796 = vmatprep.subr.bf16.mxu1 %v32317_v53 }
0x1023   :  { %v32770_v46 = vsub.f32 %v15210_v55, %v15229_v5  ;;  %v15330_v51 = vsub.f32 %v32768_v33, %v34517_v61  ;;  %v34512_v55 = vand.u32 4294901760, %v32791_v2 }
0x1025   :  { %26798 = vmatpush3.bf16.msra.mxu1 %v32317_v53  ;;  %v32694_v53 = vpack.c.bf16 %v15229_v5, %v15226_v10  ;;  %v34507_v54 = vand.u32 4294901760, %v32770_v46  ;;  %v15331_v7 = vand.u32 4294901760, %v15330_v51  ;;  %v15400_v10 = vsub.f32 %v32789_v41, %v34506_v43 }
0x1026   :  { %26800 = vmatprep.subr.bf16.mxu1 %v32337_v62  ;;  %v15407_v5 = vsub.f32 %v32791_v2, %v34512_v55  ;;  %v32801_v51 = vsub.f32 %v15221_v63, %v15262_v0  ;;  %v32812_v43 = vsub.f32 %v15223_v42, %v15268_v35 }
0x1027   :  { %v15337_v39 = vsub.f32 %v32770_v46, %v34507_v54  ;;  %v15401_v18 = vand.u32 4294901760, %v15400_v10  ;;  %v32814_v54 = vsub.f32 %v15224_v37, %v15271_v57 }
0x1028   :  { %v15408_v40 = vand.u32 4294901760, %v15407_v5  ;;  %v34511_v60 = vand.u32 4294901760, %v32801_v51  ;;  %35250 = vst [vmem:[#allocation86_spill] sm:$0xff] %v32812_v43  ;;  %v34509_v0 = vand.u32 4294901760, %v32812_v43 }
0x1029   :  { %26802 = vmatpush3.bf16.msra.mxu1 %v32337_v62  ;;  %v32696_v62 = vld [vmem:[#allocation5 + $0x90] sm:$0xff]  ;;  %v15338_v49 = vand.u32 4294901760, %v15337_v39  ;;  %v32803_v39 = vsub.f32 %v15222_v24, %v15265_v34  ;;  %35251 = vst [vmem:[#allocation91_spill] sm:$0xff] %v32814_v54  ;;  %v34508_v34 = vand.u32 4294901760, %v32814_v54 }
0x102a   :  { %26808 = vmatprep.subr.bf16.mxu1 %v32532_v52  ;;  %v15232_v47 = vand.u32 4294901760, %v32696_v62  ;;  %v15428_v5 = vsub.f32 %v32812_v43, %v34509_v0 }
0x102b   :  { %v32786_v29 = vpack.c.bf16 %v15338_v49, %v15331_v7  ;;  %v34510_v3 = vand.u32 4294901760, %v32803_v39  ;;  %v32807_v7 = vpack.c.bf16 %v15408_v40, %v15401_v18  ;;  %v15414_v49 = vsub.f32 %v32801_v51, %v34511_v60 }
0x102c   :  { %22913 = vmatmul.mubr.f32.vlgmr.msra.gmra.mrb[28].mxu1 %v32511_v13  ;;  %v32714_v48 = vpack.c.bf16 %v15235_v12, %v15232_v47  ;;  %v32729_v13 = vpack.c.bf16 %v15241_v21, %v15238_v50  ;;  %v15435_v42 = vsub.f32 %v32814_v54, %v34508_v34  ;;  %v15429_v35 = vand.u32 4294901760, %v15428_v5 }
0x102d   :  { %26810 = vmatpush3.bf16.msra.mxu1 %v32532_v52  ;;  %22926 = vmatprep.mubr.f32.mxu1 %v32575_v38  ;;  %v15421_v63 = vsub.f32 %v32803_v39, %v34510_v3  ;;  %v15415_v24 = vand.u32 4294901760, %v15414_v49  ;;  %v32833_v40 = vpack.c.bf16 %v32770_v46, %v32768_v33  ;;  %v32837_v49 = vpack.c.bf16 %v32791_v2, %v32789_v41 }
0x102e   :  { %26812 = vmatprep.subr.bf16.mxu1 %v32673_v26  ;;  %v15436_v57 = vand.u32 4294901760, %v15435_v42  ;;  %v32855_v5 = vsub.f32 %v32698_v11, %v15235_v12  ;;  %v32862_v34 = vsub.f32 %v32706_v28, %v15238_v50 }
0x102f   :  { %v15422_v10 = vand.u32 4294901760, %v15421_v63  ;;  %v32841_v63 = vpack.c.bf16 %v32803_v39, %v32801_v51 }
0x1030   :  { %22927 = vmatmul.mubr.f32.vlgmr.msra.gmra.mrb[30].mxu1 %v32572_v44  ;;  %v32829_v18 = vpack.c.bf16 %v15436_v57, %v15429_v35  ;;  %v34513_v35 = vand.u32 4294901760, %v32855_v5 }
0x1031   :  { %26814 = vmatpush3.bf16.msra.mxu1 %v32673_v26  ;;  %22933 = vmatprep.mubr.f32.mxu1 %v32582_v30  ;;  %v32827_v37 = vpack.c.bf16 %v15422_v10, %v15415_v24  ;;  %v32845_v24 = vpack.c.bf16 %v32814_v54, %v32812_v43  ;;  %v32850_v10 = vsub.f32 %v32696_v62, %v15232_v47 }
0x1032   :  { %26816 = vmatprep.subr.bf16.mxu1 %v32518_v19  ;;  %v32867_v62 = vsub.f32 %v32708_v45, %v15241_v21  ;;  %v15351_v28 = vsub.f32 %v32855_v5, %v34513_v35  ;;  %v34514_v45 = vand.u32 4294901760, %v32862_v34  ;;  %v32924_v35 = vsub.f32 %v32733_v59, %v15250_v6 }
0x1033   :  { %v34516_v42 = vand.u32 4294901760, %v32850_v10 }
0x1034   :  { %v34515_v21 = vand.u32 4294901760, %v32867_v62 }
0x1035   :  { %v15344_v3 = vsub.f32 %v32850_v10, %v34516_v42 }
0x1038   :  { %22934 = vmatmul.mubr.f32.vlgmr.msra.gmra.mrb[30].mxu1 %v32578_v8 }
0x1039   :  { %26818 = vmatpush3.bf16.msra.mxu1 %v32518_v19  ;;  %22940 = vmatprep.mubr.f32.mxu1 %v32589_v4 }
0x103a   :  { %26820 = vmatprep.subr.bf16.mxu1 %v32685_v22 }
0x1040   :  { %22941 = vmatmul.mubr.f32.vlgmr.msra.gmra.mrb[30].mxu1 %v32585_v15 }
0x1041   :  { %26822 = vmatpush3.bf16.msra.mxu1 %v32685_v22  ;;  %22947 = vmatprep.mubr.f32.mxu1 %v32575_v38 }
0x1042   :  { %26824 = vmatprep.subr.bf16.mxu1 %v32518_v19 }
0x1048   :  { %22948 = vmatmul.mubr.f32.vlgmr.msra.gmra.mrb[30].mxu1 %v32572_v44 }
0x1049   :  { %26826 = vmatpush3.bf16.msra.mxu1 %v32518_v19  ;;  %22954 = vmatprep.mubr.f32.mxu1 %v32575_v38 }
0x104a   :  { %26828 = vmatprep.subr.bf16.mxu1 %v32694_v53 }
0x1050   :  { %22955 = vmatmul.mubr.f32.vlgmr.msra.gmra.mrb[30].mxu1 %v32572_v44 }
0x1051   :  { %26830 = vmatpush3.bf16.msra.mxu1 %v32694_v53 }
0x1052   :  { %26832 = vmatprep.subr.bf16.mxu1 %v32714_v48 }
0x1055   :  { %26834 = vmatpush3.bf16.msra.mxu1 %v32714_v48 }
0x1056   :  { %26836 = vmatprep.subr.bf16.mxu1 %v32729_v13 }
0x1059   :  { %26838 = vmatpush3.bf16.msra.mxu1 %v32729_v13 }
0x105a   :  { %26840 = vmatprep.subr.bf16.mxu1 %v32743_v25 }
0x105d   :  { %26842 = vmatpush3.bf16.msra.mxu1 %v32743_v25 }
0x105e   :  { %26844 = vmatprep.subr.bf16.mxu1 %v32753_v58 }
0x1061   :  { %26846 = vmatpush3.bf16.msra.mxu1 %v32753_v58 }
0x1062   :  { %26848 = vmatprep.subr.bf16.mxu1 %v32762_v23 }
0x1065   :  { %26850 = vmatpush3.bf16.msra.mxu1 %v32762_v23 }
0x1066   :  { %26852 = vmatprep.subr.bf16.mxu1 %v32766_v9 }
0x1069   :  { %26854 = vmatpush3.bf16.msra.mxu1 %v32766_v9 }
0x106a   :  { %26856 = vmatprep.subr.bf16.mxu1 %v32776_v36 }
0x106d   :  { %26858 = vmatpush3.bf16.msra.mxu1 %v32776_v36 }
0x106e   :  { %26860 = vmatprep.subr.bf16.mxu1 %v32786_v29 }
0x1096   :  { %v32758_v16 = vpop.f32.mrb[50].mxu0 }
0x1097   :  { %v32760_v31 = vpop.f32.mrb[51].mxu0 }
0x1123   :  { %v22956_v57 = vpop.f32.mrb[30].mxu1 }
0x1124   :  { %v27713_v47 = vadd.f32 %v22956_v57, %v32758_v16  ;;  %v15199_v0 = vpop.f32.mrb[31].mxu1  ;;  %v32886_v16 = vsub.f32 %v32718_v27, %v15244_v20  ;;  %v15345_v27 = vand.u32 4294901760, %v15344_v3  ;;  %v15352_v20 = vand.u32 4294901760, %v15351_v28 }
0x1125   :  { %v27714_v11 = vadd.f32 %v15199_v0, %v32760_v31  ;;  %v32894_v0 = vsub.f32 %v32720_v32, %v15247_v56  ;;  %v15358_v32 = vsub.f32 %v32862_v34, %v34514_v45  ;;  %v15365_v56 = vsub.f32 %v32867_v62, %v34515_v21 }
0x1126   :  { %v32871_v12 = vand.u32 4294901760, %v27713_v47  ;;  %v32929_v45 = vsub.f32 %v32735_v14, %v15253_v17  ;;  %v35252_v28 = vand.u32 4294901760, %v32886_v16  ;;  %v26863_v59 = vpack.c.bf16 %v15352_v20, %v15345_v27 }
0x1127   :  { %v32879_v50 = vand.u32 4294901760, %v27714_v11  ;;  %v15366_v54 = vand.u32 4294901760, %v15365_v56  ;;  %v35253_v6 = vand.u32 4294901760, %v32894_v0  ;;  %v15385_v17 = vand.u32 4294901760, %v32924_v35 }
0x1128   :  { %v32889_v31 = vsub.f32 %v27713_v47, %v32871_v12  ;;  %v15372_v43 = vsub.f32 %v32886_v16, %v35252_v28 }
0x1129   :  { %v32897_v57 = vsub.f32 %v27714_v11, %v32879_v50  ;;  %v32901_v60 = vpack.c.bf16 %v32871_v12, %v32879_v50  ;;  %v15359_v11 = vand.u32 4294901760, %v15358_v32  ;;  %v15379_v14 = vsub.f32 %v32894_v0, %v35253_v6 }
0x112a   :  { %v32904_v55 = vand.u32 4294901760, %v32889_v31  ;;  %v15373_v32 = vand.u32 4294901760, %v15372_v43  ;;  %v15386_v56 = vsub.f32 %v32924_v35, %v15385_v17 }
0x112b   :  { %27020 = vmatprep.subr.bf16.mxu0 %v32901_v60  ;;  %v32908_v47 = vand.u32 4294901760, %v32897_v57  ;;  %v27027_v27 = vpack.c.bf16 %v32889_v31, %v32897_v57  ;;  %v15380_v20 = vand.u32 4294901760, %v15379_v14 }
0x112c   :  { %27022 = vmatpush3.bf16.msra.mxu0 %v32901_v60  ;;  %v15319_v3 = vsub.f32 %v32889_v31, %v32904_v55 }
0x112d   :  { %v15309_v21 = vsub.f32 %v32897_v57, %v32908_v47  ;;  %v27035_v28 = vpack.c.bf16 %v32904_v55, %v32908_v47 }
0x112e   :  { %v15320_v42 = vand.u32 4294901760, %v15319_v3  ;;  %v15392_v3 = vand.u32 4294901760, %v32929_v45 }
0x112f   :  { %23172 = vmatmul.mubr.f32.vlgmr.msra.gmra.mrb[52].mxu0 %v32597_v1  ;;  %v15310_v61 = vand.u32 4294901760, %v15309_v21  ;;  %v26867_v21 = vpack.c.bf16 %v15366_v54, %v15359_v11  ;;  %v26871_v54 = vpack.c.bf16 %v15380_v20, %v15373_v32  ;;  %v19582_v11 = vld [vmem:[%s34049_s4 + $0x10] sm:$0xff]  ;;  %v16414_v20 = vld [vmem:[#allocation5 + $0x108] sm:$0xff] }
0x1130   :  { %23178 = vmatprep.mubr.f32.mxu0 %v32575_v38 }
0x1131   :  { %22989 = vmatprep.mubr.f32.mxu1 %v15310_v61  ;;  %v27023_v1 = vpack.c.bf16 %v15320_v42, %v15310_v61  ;;  %v15393_v61 = vsub.f32 %v32929_v45, %v15392_v3 }
0x1132   :  { %22990 = vmatmul.mubr.f32.vlgmr.msra.gmra.mrb[28].mxu1 %v15320_v42 }
0x1133   :  { %26862 = vmatpush3.bf16.msra.mxu1 %v32786_v29  ;;  %23024 = vmatprep.mubr.f32.mxu1 %v32879_v50  ;;  %v15387_v29 = vand.u32 4294901760, %v15386_v56  ;;  %v15394_v43 = vand.u32 4294901760, %v15393_v61 }
0x1134   :  { %27024 = vmatprep.subr.bf16.mxu0 %v27023_v1  ;;  %26864 = vmatprep.subr.bf16.mxu1 %v26863_v59 }
0x1135   :  { %27026 = vmatpush3.bf16.msra.mxu0 %v27023_v1  ;;  %v26875_v42 = vpack.c.bf16 %v15394_v43, %v15387_v29  ;;  %v26895_v1 = vpack.c.bf16 %v32855_v5, %v32850_v10 }
0x1136   :  { %27028 = vmatprep.subr.bf16.mxu0 %v27027_v27 }
0x1137   :  { %26866 = vmatpush3.bf16.msra.mxu1 %v26863_v59  ;;  %v19583_v59 = vld [vmem:[%s34049_s4 + $0x18] sm:$0xff] }
0x1138   :  { %23179 = vmatmul.mubr.f32.vlgmr.msra.gmra.mrb[52].mxu0 %v32572_v44  ;;  %26868 = vmatprep.subr.bf16.mxu1 %v26867_v21 }
0x1139   :  { %27030 = vmatpush3.bf16.msra.mxu0 %v27027_v27  ;;  %23185 = vmatprep.mubr.f32.mxu0 %v32582_v30  ;;  %v17116_v30 = vsel %vm14700_vm2, %v19582_v11, 0  ;;  %v26903_v27 = vpack.c.bf16 %v32894_v0, %v32886_v16 }
0x113a   :  { %27032 = vmatprep.subr.bf16.mxu0 %v32901_v60  ;;  %v32969_v6 = vand.u32 4294901760, %v17116_v30 }
0x113b   :  { %26870 = vmatpush3.bf16.msra.mxu1 %v26867_v21 }
0x113c   :  { %26872 = vmatprep.subr.bf16.mxu1 %v26871_v54  ;;  %v32979_v14 = vsub.f32 %v17116_v30, %v32969_v6 }
0x113f   :  { %26874 = vmatpush3.bf16.msra.mxu1 %v26871_v54  ;;  %v33132_v54 = vld [vmem:[#allocation5 + $0x170] sm:$0xff] }
0x1140   :  { %23186 = vmatmul.mubr.f32.vlgmr.msra.gmra.mrb[52].mxu0 %v32578_v8  ;;  %26876 = vmatprep.subr.bf16.mxu1 %v26875_v42  ;;  %v17119_v8 = vsel %vm14700_vm2, %v19583_v59, 0 }
0x1141   :  { %27034 = vmatpush3.bf16.msra.mxu0 %v32901_v60  ;;  %23192 = vmatprep.mubr.f32.mxu0 %v32589_v4  ;;  %v32975_v4 = vand.u32 4294901760, %v17119_v8 }
0x1142   :  { %27036 = vmatprep.subr.bf16.mxu0 %v27035_v28 }
0x1143   :  { %26878 = vmatpush3.bf16.msra.mxu1 %v26875_v42  ;;  %v33136_v42 = vld [vmem:[#allocation5 + $0x178] sm:$0xff] }
0x1144   :  { %26880 = vmatprep.subr.bf16.mxu1 %v32807_v7 }
0x1147   :  { %26882 = vmatpush3.bf16.msra.mxu1 %v32807_v7  ;;  %v32985_v7 = vsub.f32 %v17119_v8, %v32975_v4  ;;  %v16433_v8 = vand.u32 4294901760, %v16414_v20 }
0x1148   :  { %23193 = vmatmul.mubr.f32.vlgmr.msra.gmra.mrb[52].mxu0 %v32585_v15  ;;  %26884 = vmatprep.subr.bf16.mxu1 %v32827_v37  ;;  %v32988_v15 = vand.u32 4294901760, %v32979_v14 }
0x1149   :  { %27038 = vmatpush3.bf16.msra.mxu0 %v27035_v28  ;;  %23199 = vmatprep.mubr.f32.mxu0 %v32575_v38  ;;  %v32996_v21 = vand.u32 4294901760, %v32985_v7 }
0x114a   :  { %27040 = vmatprep.subr.bf16.mxu0 %v32901_v60 }
0x114b   :  { %26886 = vmatpush3.bf16.msra.mxu1 %v32827_v37  ;;  %v17191_v37 = vsub.f32 %v32979_v14, %v32988_v15 }
0x114c   :  { %26888 = vmatprep.subr.bf16.mxu1 %v32829_v18 }
0x114d   :  { %v17192_v32 = vand.u32 4294901760, %v17191_v37  ;;  %v33157_v37 = vld [vmem:[#allocation5 + $0x110] sm:$0xff] }
0x114f   :  { %26890 = vmatpush3.bf16.msra.mxu1 %v32829_v18  ;;  %v26899_v18 = vpack.c.bf16 %v32867_v62, %v32862_v34 }
0x1150   :  { %23200 = vmatmul.mubr.f32.vlgmr.msra.gmra.mrb[52].mxu0 %v32572_v44  ;;  %26892 = vmatprep.subr.bf16.mxu1 %v32833_v40 }
0x1151   :  { %27042 = vmatpush3.bf16.msra.mxu0 %v32901_v60  ;;  %23206 = vmatprep.mubr.f32.mxu0 %v32575_v38  ;;  %v17201_v60 = vsub.f32 %v32985_v7, %v32996_v21 }
0x1152   :  { %27236 = vmatprep.subr.bf16.mxu0 %v32518_v19  ;;  %23025 = vmatmul.mubr.f32.vlgmr.msra.gmra.mrb[28].mxu1 %v32871_v12 }
0x1153   :  { %26894 = vmatpush3.bf16.msra.mxu1 %v32833_v40  ;;  %23059 = vmatprep.mubr.f32.mxu1 %v32897_v57  ;;  %v33011_v38 = vand.u32 4294901760, %v17201_v60  ;;  %v26907_v40 = vpack.c.bf16 %v32929_v45, %v32924_v35  ;;  %v35266_v35 = vld [vmem:[#allocation86_spill] sm:$0xff]  ;;  %v35268_v45 = vld [vmem:[#allocation91_spill] sm:$0xff] }
0x1154   :  { %26896 = vmatprep.subr.bf16.mxu1 %v26895_v1 }
0x1157   :  { %26898 = vmatpush3.bf16.msra.mxu1 %v26895_v1  ;;  %v16472_v1 = vand.u32 4294901760, %v33132_v54 }
0x1158   :  { %23207 = vmatmul.mubr.f32.vlgmr.msra.gmra.mrb[52].mxu0 %v32572_v44  ;;  %26900 = vmatprep.subr.bf16.mxu1 %v26899_v18 }
0x1159   :  { %27238 = vmatpush3.bf16.msra.mxu0 %v32518_v19  ;;  %23423 = vmatprep.mubr.f32.mxu0 %v17192_v32 }
0x115a   :  { %27240 = vmatprep.subr.bf16.mxu0 %v32532_v52 }
0x115b   :  { %26902 = vmatpush3.bf16.msra.mxu1 %v26899_v18  ;;  %v33159_v18 = vld [vmem:[#allocation5 + $0x118] sm:$0xff] }
0x115c   :  { %23424 = vmatmul.mubr.f32.vlgmr.msra.gmra.mrb[54].mxu0 %v33011_v38  ;;  %26904 = vmatprep.subr.bf16.mxu1 %v26903_v27 }
0x115d   :  { %27242 = vmatpush3.bf16.msra.mxu0 %v32532_v52  ;;  %23430 = vmatprep.mubr.f32.mxu0 %v32969_v6  ;;  %v35255_v52 = vand.u32 4294901760, %v32770_v46 }
0x115e   :  { %27244 = vmatprep.subr.bf16.mxu0 %v32673_v26 }
0x115f   :  { %26906 = vmatpush3.bf16.msra.mxu1 %v26903_v27 }
0x1160   :  { %26908 = vmatprep.subr.bf16.mxu1 %v26907_v40 }
0x1163   :  { %26910 = vmatpush3.bf16.msra.mxu1 %v26907_v40 }
0x1164   :  { %23431 = vmatmul.mubr.f32.vlgmr.msra.gmra.mrb[54].mxu0 %v32975_v4  ;;  %26912 = vmatprep.subr.bf16.mxu1 %v32837_v49 }
0x1165   :  { %27246 = vmatpush3.bf16.msra.mxu0 %v32673_v26  ;;  %23437 = vmatprep.mubr.f32.mxu0 %v32979_v14  ;;  %v35256_v26 = vand.u32 4294901760, %v32850_v10  ;;  %v35261_v10 = vand.u32 4294901760, %v32894_v0  ;;  %v35265_v0 = vand.u32 4294901760, %v32803_v39  ;;  %v33114_v39 = vld [vmem:[#allocation5 + $0x160] sm:$0xff] }
0x1166   :  { %27248 = vmatprep.subr.bf16.mxu0 %v32518_v19  ;;  %v16466_v56 = vand.u32 4294901760, %v33114_v39 }
0x1167   :  { %26914 = vmatpush3.bf16.msra.mxu1 %v32837_v49 }
0x1168   :  { %26916 = vmatprep.subr.bf16.mxu1 %v32841_v63  ;;  %v33147_v28 = vsub.f32 %v33114_v39, %v16466_v56 }
0x116a   :  { %v34523_v27 = vand.u32 4294901760, %v33147_v28 }
0x116b   :  { %26918 = vmatpush3.bf16.msra.mxu1 %v32841_v63  ;;  %v35258_v63 = vand.u32 4294901760, %v32862_v34  ;;  %v35262_v34 = vand.u32 4294901760, %v32789_v41  ;;  %v33106_v41 = vld [vmem:[#allocation5 + $0x150] sm:$0xff] }
0x116c   :  { %23438 = vmatmul.mubr.f32.vlgmr.msra.gmra.mrb[54].mxu0 %v32985_v7  ;;  %26920 = vmatprep.subr.bf16.mxu1 %v32845_v24 }
0x116d   :  { %27250 = vmatpush3.bf16.msra.mxu0 %v32518_v19  ;;  %23444 = vmatprep.mubr.f32.mxu0 %v32988_v15 }
0x116e   :  { %27252 = vmatprep.subr.bf16.mxu0 %v32685_v22 }
0x116f   :  { %26922 = vmatpush3.bf16.msra.mxu1 %v32845_v24  ;;  %v35260_v24 = vand.u32 4294901760, %v32886_v16  ;;  %v35264_v16 = vand.u32 4294901760, %v32801_v51 }
0x1170   :  { %26924 = vmatprep.subr.bf16.mxu1 %v32694_v53 }
0x1171   :  { %v26979_v57 = vpack.c.bf16 %v35265_v0, %v35264_v16 }
0x1172   :  { %23060 = vmatmul.mubr.f32.vlgmr.msra.gmra.mrb[28].mxu1 %v32889_v31  ;;  %v26967_v31 = vpack.c.bf16 %v35261_v10, %v35260_v24  ;;  %v33188_v24 = vld [vmem:[#allocation5 + $0x128] sm:$0xff] }
0x1173   :  { %26926 = vmatpush3.bf16.msra.mxu1 %v32694_v53  ;;  %23094 = vmatprep.mubr.f32.mxu1 %v32908_v47  ;;  %v35267_v47 = vand.u32 4294901760, %v35266_v35  ;;  %v16445_v16 = vand.u32 4294901760, %v33188_v24 }
0x1174   :  { %23445 = vmatmul.mubr.f32.vlgmr.msra.gmra.mrb[54].mxu0 %v32996_v21  ;;  %26928 = vmatprep.subr.bf16.mxu1 %v32714_v48 }
0x1175   :  { %27254 = vmatpush3.bf16.msra.mxu0 %v32685_v22  ;;  %23451 = vmatprep.mubr.f32.mxu0 %v32969_v6  ;;  %v35257_v22 = vand.u32 4294901760, %v32855_v5  ;;  %v35263_v5 = vand.u32 4294901760, %v32791_v2  ;;  %v33108_v2 = vld [vmem:[#allocation5 + $0x158] sm:$0xff] }
0x1176   :  { %27256 = vmatprep.subr.bf16.mxu0 %v32518_v19  ;;  %v16463_v51 = vand.u32 4294901760, %v33108_v2 }
0x1177   :  { %26930 = vmatpush3.bf16.msra.mxu1 %v32714_v48  ;;  %v26959_v49 = vpack.c.bf16 %v35257_v22, %v35256_v26  ;;  %v33175_v26 = vsub.f32 %v33132_v54, %v16472_v1  ;;  %v16436_v22 = vand.u32 4294901760, %v33157_v37 }
0x1178   :  { %26932 = vmatprep.subr.bf16.mxu1 %v32729_v13 }
0x117b   :  { %26934 = vmatpush3.bf16.msra.mxu1 %v32729_v13 }
0x117c   :  { %23452 = vmatmul.mubr.f32.vlgmr.msra.gmra.mrb[54].mxu0 %v32975_v4  ;;  %26936 = vmatprep.subr.bf16.mxu1 %v32743_v25 }
0x117d   :  { %27258 = vmatpush3.bf16.msra.mxu0 %v32518_v19  ;;  %23458 = vmatprep.mubr.f32.mxu0 %v32969_v6  ;;  %v35254_v19 = vand.u32 4294901760, %v32768_v33  ;;  %v35259_v33 = vand.u32 4294901760, %v32867_v62  ;;  %v26975_v62 = vpack.c.bf16 %v35263_v5, %v35262_v34 }
0x117f   :  { %26938 = vmatpush3.bf16.msra.mxu1 %v32743_v25  ;;  %v26955_v44 = vpack.c.bf16 %v35255_v52, %v35254_v19  ;;  %v26963_v46 = vpack.c.bf16 %v35259_v33, %v35258_v63  ;;  %v16475_v19 = vand.u32 4294901760, %v33136_v42 }
0x1180   :  { %26940 = vmatprep.subr.bf16.mxu1 %v32753_v58 }
0x1181   :  { %v33181_v63 = vsub.f32 %v33136_v42, %v16475_v19 }
0x1183   :  { %26942 = vmatpush3.bf16.msra.mxu1 %v32753_v58  ;;  %v33276_v54 = vpack.c.bf16 %v33181_v63, %v33175_v26 }
0x1184   :  { %26944 = vmatprep.subr.bf16.mxu1 %v32762_v23  ;;  %23459 = vmatmul.mubr.f32.vlgmr.msra.gmra.mrb[54].mxu0 %v32975_v4 }
0x1185   :  { %23675 = vmatprep.mubr.f32.mxu0 %v17192_v32 }
0x1187   :  { %26946 = vmatpush3.bf16.msra.mxu1 %v32762_v23 }
0x1188   :  { %26948 = vmatprep.subr.bf16.mxu1 %v32766_v9 }
0x118b   :  { %26950 = vmatpush3.bf16.msra.mxu1 %v32766_v9 }
0x118c   :  { %26952 = vmatprep.subr.bf16.mxu1 %v32776_v36 }
0x118f   :  { %26954 = vmatpush3.bf16.msra.mxu1 %v32776_v36 }
0x1190   :  { %26956 = vmatprep.subr.bf16.mxu1 %v26955_v44 }
0x1192   :  { %23095 = vmatmul.mubr.f32.vlgmr.msra.gmra.mrb[28].mxu1 %v32904_v55  ;;  %v26971_v55 = vpack.c.bf16 %v15392_v3, %v15385_v17  ;;  %v35269_v17 = vand.u32 4294901760, %v35268_v45  ;;  %v16420_v45 = vld [vmem:[#allocation5 + $0x138] sm:$0xff] }
0x1193   :  { %26958 = vmatpush3.bf16.msra.mxu1 %v26955_v44  ;;  %23129 = vmatprep.mubr.f32.mxu1 %v32879_v50 }
0x1194   :  { %26960 = vmatprep.subr.bf16.mxu1 %v26959_v49  ;;  %v26983_v3 = vpack.c.bf16 %v35269_v17, %v35267_v47  ;;  %v16419_v47 = vld [vmem:[#allocation5 + $0x130] sm:$0xff] }
0x1195   :  { %v16448_v42 = vand.u32 4294901760, %v16419_v47 }
0x1197   :  { %26962 = vmatpush3.bf16.msra.mxu1 %v26959_v49  ;;  %v16439_v49 = vand.u32 4294901760, %v33159_v18 }
0x1198   :  { %26964 = vmatprep.subr.bf16.mxu1 %v26963_v46 }
0x119b   :  { %26966 = vmatpush3.bf16.msra.mxu1 %v26963_v46  ;;  %v33186_v46 = vld [vmem:[#allocation5 + $0x120] sm:$0xff] }
0x119c   :  { %26968 = vmatprep.subr.bf16.mxu1 %v26967_v31 }
0x119f   :  { %26970 = vmatpush3.bf16.msra.mxu1 %v26967_v31 }
0x11a0   :  { %26972 = vmatprep.subr.bf16.mxu1 %v26971_v55 }
0x11a3   :  { %26974 = vmatpush3.bf16.msra.mxu1 %v26971_v55  ;;  %v34521_v55 = vand.u32 4294901760, %v33175_v26 }
0x11a4   :  { %26976 = vmatprep.subr.bf16.mxu1 %v26975_v62 }
0x11a5   :  { %v16632_v5 = vsub.f32 %v33175_v26, %v34521_v55 }
0x11a7   :  { %26978 = vmatpush3.bf16.msra.mxu1 %v26975_v62  ;;  %v16442_v62 = vand.u32 4294901760, %v33186_v46  ;;  %v16633_v35 = vand.u32 4294901760, %v16632_v5 }
0x11a8   :  { %26980 = vmatprep.subr.bf16.mxu1 %v26979_v57 }
0x11a9   :  { %v33212_v17 = vpack.c.bf16 %v16445_v16, %v16442_v62 }
0x11ab   :  { %26982 = vmatpush3.bf16.msra.mxu1 %v26979_v57  ;;  %v33208_v57 = vpack.c.bf16 %v16439_v49, %v16436_v22 }
0x11ac   :  { %26984 = vmatprep.subr.bf16.mxu1 %v26983_v3 }
0x11af   :  { %26986 = vmatpush3.bf16.msra.mxu1 %v26983_v3 }
0x11b0   :  { %26988 = vmatprep.subr.bf16.mxu1 %v32694_v53 }
0x11b2   :  { %23130 = vmatmul.mubr.f32.vlgmr.msra.gmra.mrb[28].mxu1 %v32871_v12 }
0x11b3   :  { %26990 = vmatpush3.bf16.msra.mxu1 %v32694_v53  ;;  %23164 = vmatprep.mubr.f32.mxu1 %v32879_v50  ;;  %v16460_v53 = vand.u32 4294901760, %v33106_v41  ;;  %v33126_v50 = vsub.f32 %v33108_v2, %v16463_v51 }
0x11b4   :  { %26992 = vmatprep.subr.bf16.mxu1 %v32714_v48 }
0x11b5   :  { %v34524_v43 = vand.u32 4294901760, %v33126_v50 }
0x11b7   :  { %26994 = vmatpush3.bf16.msra.mxu1 %v32714_v48  ;;  %v33116_v48 = vld [vmem:[#allocation5 + $0x168] sm:$0xff]  ;;  %v16611_v11 = vsub.f32 %v33126_v50, %v34524_v43 }
0x11b8   :  { %26996 = vmatprep.subr.bf16.mxu1 %v32729_v13  ;;  %v16469_v61 = vand.u32 4294901760, %v33116_v48 }
0x11b9   :  { %v16612_v32 = vand.u32 4294901760, %v16611_v11 }
0x11ba   :  { %v33152_v30 = vsub.f32 %v33116_v48, %v16469_v61  ;;  %v33249_v5 = vpack.c.bf16 %v16469_v61, %v16466_v56 }
0x11bb   :  { %26998 = vmatpush3.bf16.msra.mxu1 %v32729_v13  ;;  %v33121_v13 = vsub.f32 %v33106_v41, %v16460_v53 }
0x11bc   :  { %27000 = vmatprep.subr.bf16.mxu1 %v32743_v25  ;;  %v34522_v40 = vand.u32 4294901760, %v33152_v30  ;;  %v33271_v61 = vpack.c.bf16 %v33152_v30, %v33147_v28 }
0x11bd   :  { %v34525_v29 = vand.u32 4294901760, %v33121_v13  ;;  %v33265_v48 = vpack.c.bf16 %v33126_v50, %v33121_v13 }
0x11be   :  { %v16625_v44 = vsub.f32 %v33152_v30, %v34522_v40 }
0x11bf   :  { %27002 = vmatpush3.bf16.msra.mxu1 %v32743_v25  ;;  %v16413_v25 = vld [vmem:[#allocation5 + $0x100] sm:$0xff] }
0x11c0   :  { %27004 = vmatprep.subr.bf16.mxu1 %v32753_v58  ;;  %v16430_v59 = vand.u32 4294901760, %v16413_v25  ;;  %v16626_v31 = vand.u32 4294901760, %v16625_v44 }
0x11c2   :  { %v33184_v33 = vpack.c.bf16 %v16433_v8, %v16430_v59  ;;  %v33217_v11 = vsub.f32 %v16413_v25, %v16430_v59 }
0x11c3   :  { %27006 = vmatpush3.bf16.msra.mxu1 %v32753_v58  ;;  %v16604_v58 = vsub.f32 %v33121_v13, %v34525_v29 }
0x11c4   :  { %27008 = vmatprep.subr.bf16.mxu1 %v32762_v23  ;;  %v16533_v59 = vand.u32 4294901760, %v33217_v11 }
0x11c5   :  { %v16605_v60 = vand.u32 4294901760, %v16604_v58  ;;  %v16451_v58 = vand.u32 4294901760, %v16420_v45 }
0x11c6   :  { %v16534_v41 = vsub.f32 %v33217_v11, %v16533_v59 }
0x11c7   :  { %27010 = vmatpush3.bf16.msra.mxu1 %v32762_v23  ;;  %v33164_v52 = vpack.c.bf16 %v16612_v32, %v16605_v60  ;;  %v16618_v23 = vsub.f32 %v33147_v28, %v34523_v27  ;;  %v33219_v60 = vsub.f32 %v16414_v20, %v16433_v8  ;;  %v16421_v32 = vld [vmem:[#allocation5 + $0x140] sm:$0xff]  ;;  %v33239_v20 = vpack.c.bf16 %v16463_v51, %v16460_v53 }
0x11c8   :  { %27012 = vmatprep.subr.bf16.mxu1 %v32766_v9  ;;  %v33261_v53 = vpack.c.bf16 %v16475_v19, %v16472_v1  ;;  %v16535_v51 = vand.u32 4294901760, %v16534_v41  ;;  %v33281_v1 = vsub.f32 %v33157_v37, %v16436_v22  ;;  %v33286_v19 = vsub.f32 %v33159_v18, %v16439_v49 }
0x11c9   :  { %v16619_v10 = vand.u32 4294901760, %v16618_v23  ;;  %v16422_v23 = vld [vmem:[#allocation5 + $0x148] sm:$0xff]  ;;  %v33223_v44 = vpack.c.bf16 %v33219_v60, %v33217_v11  ;;  %v34530_v8 = vand.u32 4294901760, %v33219_v60  ;;  %v33294_v41 = vsub.f32 %v33188_v24, %v16445_v16 }
0x11ca   :  { %v33308_v24 = vsub.f32 %v16419_v47, %v16448_v42 }
0x11cb   :  { %27014 = vmatpush3.bf16.msra.mxu1 %v32766_v9  ;;  %v34520_v9 = vand.u32 4294901760, %v33181_v63  ;;  %v33192_v34 = vpack.c.bf16 %v16626_v31, %v16619_v10  ;;  %v16454_v10 = vand.u32 4294901760, %v16421_v32  ;;  %v16457_v31 = vand.u32 4294901760, %v16422_v23 }
0x11cc   :  { %27016 = vmatprep.subr.bf16.mxu1 %v32776_v36  ;;  %v16541_v2 = vsub.f32 %v33219_v60, %v34530_v8 }
0x11cd   :  { %v16639_v0 = vsub.f32 %v33181_v63, %v34520_v9  ;;  %v33231_v25 = vpack.c.bf16 %v16457_v31, %v16454_v10 }
0x11ce   :  { %v16542_v39 = vand.u32 4294901760, %v16541_v2 }
0x11cf   :  { %27018 = vmatpush3.bf16.msra.mxu1 %v32776_v36  ;;  %v16640_v36 = vand.u32 4294901760, %v16639_v0  ;;  %v34529_v0 = vand.u32 4294901760, %v33281_v1 }
0x11d0   :  { %27044 = vmatprep.subr.bf16.mxu1 %v33184_v33  ;;  %v27075_v56 = vpack.c.bf16 %v16542_v39, %v16535_v51  ;;  %v33313_v39 = vsub.f32 %v16420_v45, %v16451_v58  ;;  %v16575_v45 = vand.u32 4294901760, %v33308_v24 }
0x11d1   :  { %v33214_v3 = vpack.c.bf16 %v16640_v36, %v16633_v35  ;;  %v34527_v35 = vand.u32 4294901760, %v33286_v19  ;;  %v33291_v36 = vsub.f32 %v33186_v46, %v16442_v62  ;;  %v16548_v22 = vsub.f32 %v33281_v1, %v34529_v0 }
0x11d2   :  { %23165 = vmatmul.mubr.f32.vlgmr.msra.gmra.mrb[28].mxu1 %v32871_v12  ;;  %v33227_v12 = vpack.c.bf16 %v16451_v58, %v16448_v42  ;;  %v34528_v62 = vand.u32 4294901760, %v33294_v41  ;;  %v16582_v58 = vand.u32 4294901760, %v33313_v39  ;;  %v16576_v0 = vsub.f32 %v33308_v24, %v16575_v45 }
0x11d3   :  { %27046 = vmatpush3.bf16.msra.mxu1 %v33184_v33  ;;  %v16555_v18 = vsub.f32 %v33286_v19, %v34527_v35  ;;  %v34526_v46 = vand.u32 4294901760, %v33291_v36  ;;  %v16549_v40 = vand.u32 4294901760, %v16548_v22 }
0x11d4   :  { %27048 = vmatprep.subr.bf16.mxu1 %v33208_v57  ;;  %v16569_v47 = vsub.f32 %v33294_v41, %v34528_v62  ;;  %v27183_v11 = vpack.c.bf16 %v16582_v58, %v16575_v45 }
0x11d5   :  { %v16556_v27 = vand.u32 4294901760, %v16555_v18  ;;  %v16562_v29 = vsub.f32 %v33291_v36, %v34526_v46 }
0x11d6   :  { %v16570_v62 = vand.u32 4294901760, %v16569_v47 }
0x11d7   :  { %27050 = vmatpush3.bf16.msra.mxu1 %v33208_v57  ;;  %v27079_v18 = vpack.c.bf16 %v16556_v27, %v16549_v40  ;;  %v16563_v35 = vand.u32 4294901760, %v16562_v29  ;;  %v16577_v27 = vand.u32 4294901760, %v16576_v0  ;;  %v27111_v0 = vpack.c.bf16 %v33286_v19, %v33281_v1 }
0x11d8   :  { %27052 = vmatprep.subr.bf16.mxu1 %v33212_v17 }
0x11d9   :  { %v27083_v29 = vpack.c.bf16 %v16570_v62, %v16563_v35 }
0x11db   :  { %27054 = vmatpush3.bf16.msra.mxu1 %v33212_v17 }
0x11dc   :  { %27056 = vmatprep.subr.bf16.mxu1 %v33227_v12 }
0x11df   :  { %27058 = vmatpush3.bf16.msra.mxu1 %v33227_v12 }
0x11e0   :  { %27060 = vmatprep.subr.bf16.mxu1 %v33231_v25 }
0x11e3   :  { %27062 = vmatpush3.bf16.msra.mxu1 %v33231_v25 }
0x11e4   :  { %27064 = vmatprep.subr.bf16.mxu1 %v33239_v20 }
0x11e7   :  { %27066 = vmatpush3.bf16.msra.mxu1 %v33239_v20 }
0x11e8   :  { %27068 = vmatprep.subr.bf16.mxu1 %v33249_v5 }
0x11eb   :  { %27070 = vmatpush3.bf16.msra.mxu1 %v33249_v5 }
0x11ec   :  { %27072 = vmatprep.subr.bf16.mxu1 %v33261_v53 }
0x11ef   :  { %27074 = vmatpush3.bf16.msra.mxu1 %v33261_v53 }
0x11f0   :  { %27076 = vmatprep.subr.bf16.mxu1 %v27075_v56 }
0x122b   :  { %v23208_v2 = vpop.f32.mrb[52].mxu0 }
0x122c   :  { %v33296_v51 = vand.u32 4294901760, %v23208_v2  ;;  %v16403_v37 = vpop.f32.mrb[53].mxu0 }
0x122d   :  { %v33304_v49 = vand.u32 4294901760, %v16403_v37 }
0x122e   :  { %v33311_v16 = vsub.f32 %v23208_v2, %v33296_v51  ;;  %v33331_v2 = vsub.f32 %v16421_v32, %v16454_v10  ;;  %v16583_v32 = vsub.f32 %v33313_v39, %v16582_v58  ;;  %v17631_v58 = vld [vmem:[#allocation5 + $0x1c0] sm:$0xff] }
0x122f   :  { %v33316_v9 = vsub.f32 %v16403_v37, %v33304_v49  ;;  %v33333_v37 = vsub.f32 %v16422_v23, %v16457_v31 }
0x1230   :  { %v16522_v55 = vand.u32 4294901760, %v33311_v16  ;;  %v16589_v23 = vand.u32 4294901760, %v33331_v2  ;;  %v16584_v40 = vand.u32 4294901760, %v16583_v32 }
0x1231   :  { %v16512_v43 = vand.u32 4294901760, %v33316_v9  ;;  %v16596_v10 = vand.u32 4294901760, %v33333_v37 }
0x1232   :  { %v16523_v42 = vsub.f32 %v33311_v16, %v16522_v55  ;;  %v16590_v31 = vsub.f32 %v33331_v2, %v16589_v23 }
0x1233   :  { %v16513_v22 = vsub.f32 %v33316_v9, %v16512_v43  ;;  %v16597_v47 = vsub.f32 %v33333_v37, %v16596_v10 }
0x1234   :  { %v16524_v8 = vand.u32 4294901760, %v16523_v42  ;;  %v27087_v42 = vpack.c.bf16 %v16584_v40, %v16577_v27  ;;  %v27119_v27 = vpack.c.bf16 %v33313_v39, %v33308_v24  ;;  %v17630_v39 = vld [vmem:[#allocation5 + $0x1b8] sm:$0xff] }
0x1235   :  { %v16514_v46 = vand.u32 4294901760, %v16513_v22 }
0x1237   :  { %23241 = vmatprep.mubr.f32.mxu1 %v16514_v46  ;;  %v16591_v46 = vand.u32 4294901760, %v16590_v31 }
0x1238   :  { %23242 = vmatmul.mubr.f32.vlgmr.msra.gmra.mrb[28].mxu1 %v16524_v8  ;;  %v16598_v8 = vand.u32 4294901760, %v16597_v47 }
0x1239   :  { %27078 = vmatpush3.bf16.msra.mxu1 %v27075_v56  ;;  %23276 = vmatprep.mubr.f32.mxu1 %v33304_v49 }
0x123a   :  { %27080 = vmatprep.subr.bf16.mxu1 %v27079_v18  ;;  %v27091_v56 = vpack.c.bf16 %v16598_v8, %v16591_v46  ;;  %v27123_v46 = vpack.c.bf16 %v33333_v37, %v33331_v2  ;;  %v17632_v2 = vld [vmem:[#allocation5 + $0x1c8] sm:$0xff] }
0x123d   :  { %27082 = vmatpush3.bf16.msra.mxu1 %v27079_v18 }
0x123e   :  { %27084 = vmatprep.subr.bf16.mxu1 %v27083_v29 }
0x1241   :  { %27086 = vmatpush3.bf16.msra.mxu1 %v27083_v29 }
0x1242   :  { %27088 = vmatprep.subr.bf16.mxu1 %v27087_v42 }
0x1245   :  { %27090 = vmatpush3.bf16.msra.mxu1 %v27087_v42 }
0x1246   :  { %27092 = vmatprep.subr.bf16.mxu1 %v27091_v56 }
0x1249   :  { %27094 = vmatpush3.bf16.msra.mxu1 %v27091_v56 }
0x124a   :  { %27096 = vmatprep.subr.bf16.mxu1 %v33164_v52 }
0x124d   :  { %27098 = vmatpush3.bf16.msra.mxu1 %v33164_v52 }
0x124e   :  { %27100 = vmatprep.subr.bf16.mxu1 %v33192_v34 }
0x1251   :  { %27102 = vmatpush3.bf16.msra.mxu1 %v33192_v34 }
0x1252   :  { %27104 = vmatprep.subr.bf16.mxu1 %v33214_v3 }
0x1255   :  { %27106 = vmatpush3.bf16.msra.mxu1 %v33214_v3  ;;  %v27115_v3 = vpack.c.bf16 %v33294_v41, %v33291_v36 }
0x1256   :  { %27108 = vmatprep.subr.bf16.mxu1 %v33223_v44 }
0x1257   :  { %v23460_v35 = vpop.f32.mrb[54].mxu0 }
0x1258   :  { %23277 = vmatmul.mubr.f32.vlgmr.msra.gmra.mrb[28].mxu1 %v33296_v51  ;;  %v33363_v62 = vand.u32 4294901760, %v23460_v35  ;;  %v17613_v22 = vpop.f32.mrb[55].mxu0 }
0x1259   :  { %27110 = vmatpush3.bf16.msra.mxu1 %v33223_v44  ;;  %23311 = vmatprep.mubr.f32.mxu1 %v33316_v9  ;;  %v33367_v52 = vand.u32 4294901760, %v17613_v22 }
0x125a   :  { %v33370_v34 = vsub.f32 %v23460_v35, %v33363_v62  ;;  %27112 = vmatprep.subr.bf16.mxu1 %v27111_v0  ;;  %v33508_v35 = vld [vmem:[#allocation5 + $0x1e0] sm:$0xff] }
0x125b   :  { %v33375_v18 = vsub.f32 %v17613_v22, %v33367_v52  ;;  %v27451_v32 = vpack.c.bf16 %v33363_v62, %v33367_v52  ;;  %v33510_v22 = vld [vmem:[#allocation5 + $0x1e8] sm:$0xff] }
0x125c   :  { %v33380_v29 = vand.u32 4294901760, %v33370_v34 }
0x125d   :  { %v33383_v44 = vand.u32 4294901760, %v33375_v18  ;;  %27114 = vmatpush3.bf16.msra.mxu1 %v27111_v0  ;;  %27452 = vmatprep.subr.bf16.mxu0 %v27451_v32  ;;  %v27459_v56 = vpack.c.bf16 %v33370_v34, %v33375_v18  ;;  %v17634_v0 = vld [vmem:[#allocation5 + $0x1d8] sm:$0xff] }
0x125e   :  { %27116 = vmatprep.subr.bf16.mxu1 %v27115_v3  ;;  %27454 = vmatpush3.bf16.msra.mxu0 %v27451_v32  ;;  %v17733_v40 = vsub.f32 %v33370_v34, %v33380_v29 }
0x125f   :  { %v17723_v31 = vsub.f32 %v33375_v18, %v33383_v44 }
0x1260   :  { %v33391_v47 = vand.u32 4294901760, %v17733_v40 }
0x1261   :  { %27118 = vmatpush3.bf16.msra.mxu1 %v27115_v3  ;;  %23676 = vmatmul.mubr.f32.vlgmr.msra.gmra.mrb[56].mxu0 %v33011_v38  ;;  %v33394_v42 = vand.u32 4294901760, %v17723_v31  ;;  %v27467_v38 = vpack.c.bf16 %v33380_v29, %v33383_v44  ;;  %v17673_v31 = vand.u32 4294901760, %v17634_v0 }
0x1262   :  { %27120 = vmatprep.subr.bf16.mxu1 %v27119_v27  ;;  %23682 = vmatprep.mubr.f32.mxu0 %v32969_v6 }
0x1263   :  { %v27455_v8 = vpack.c.bf16 %v33391_v47, %v33394_v42 }
0x1265   :  { %27122 = vmatpush3.bf16.msra.mxu1 %v27119_v27  ;;  %27456 = vmatprep.subr.bf16.mxu0 %v27455_v8 }
0x1266   :  { %27124 = vmatprep.subr.bf16.mxu1 %v27123_v46  ;;  %27458 = vmatpush3.bf16.msra.mxu0 %v27455_v8 }
0x1267   :  { %27460 = vmatprep.subr.bf16.mxu0 %v27459_v56 }
0x1269   :  { %27126 = vmatpush3.bf16.msra.mxu1 %v27123_v46  ;;  %23683 = vmatmul.mubr.f32.vlgmr.msra.gmra.mrb[56].mxu0 %v32975_v4  ;;  %v17679_v46 = vand.u32 4294901760, %v33510_v22 }
0x126a   :  { %27128 = vmatprep.subr.bf16.mxu1 %v33265_v48  ;;  %27462 = vmatpush3.bf16.msra.mxu0 %v27459_v56 }
0x126b   :  { %23689 = vmatprep.mubr.f32.mxu0 %v32979_v14  ;;  %27464 = vmatprep.subr.bf16.mxu0 %v27451_v32 }
0x126d   :  { %27130 = vmatpush3.bf16.msra.mxu1 %v33265_v48 }
0x126e   :  { %27132 = vmatprep.subr.bf16.mxu1 %v33271_v61 }
0x1271   :  { %27134 = vmatpush3.bf16.msra.mxu1 %v33271_v61  ;;  %23690 = vmatmul.mubr.f32.vlgmr.msra.gmra.mrb[56].mxu0 %v32985_v7  ;;  %v35271_v7 = vand.u32 4294901760, %v33281_v1  ;;  %v35277_v61 = vand.u32 4294901760, %v33147_v28 }
0x1272   :  { %27136 = vmatprep.subr.bf16.mxu1 %v33276_v54  ;;  %27466 = vmatpush3.bf16.msra.mxu0 %v27451_v32 }
0x1273   :  { %23696 = vmatprep.mubr.f32.mxu0 %v32988_v15  ;;  %27468 = vmatprep.subr.bf16.mxu0 %v27467_v38 }
0x1275   :  { %27138 = vmatpush3.bf16.msra.mxu1 %v33276_v54  ;;  %v35278_v54 = vand.u32 4294901760, %v33152_v30 }
0x1276   :  { %27140 = vmatprep.subr.bf16.mxu1 %v33184_v33 }
0x1277   :  { %v27195_v1 = vpack.c.bf16 %v35278_v54, %v35277_v61 }
0x1278   :  { %23312 = vmatmul.mubr.f32.vlgmr.msra.gmra.mrb[28].mxu1 %v33311_v16  ;;  %v17629_v16 = vld [vmem:[#allocation5 + $0x1b0] sm:$0xff] }
0x1279   :  { %27142 = vmatpush3.bf16.msra.mxu1 %v33184_v33  ;;  %23346 = vmatprep.mubr.f32.mxu1 %v16512_v43  ;;  %v35274_v43 = vand.u32 4294901760, %v33294_v41  ;;  %v17658_v45 = vand.u32 4294901760, %v17629_v16 }
0x127a   :  { %27144 = vmatprep.subr.bf16.mxu1 %v33208_v57  ;;  %23697 = vmatmul.mubr.f32.vlgmr.msra.gmra.mrb[56].mxu0 %v32996_v21  ;;  %v35273_v21 = vand.u32 4294901760, %v33291_v36  ;;  %v35280_v36 = vand.u32 4294901760, %v33181_v63  ;;  %v17626_v63 = vld [vmem:[#allocation5 + $0x198] sm:$0xff] }
0x127b   :  { %27470 = vmatpush3.bf16.msra.mxu0 %v27467_v38  ;;  %23703 = vmatprep.mubr.f32.mxu0 %v32969_v6  ;;  %v33557_v61 = vsub.f32 %v17629_v16, %v17658_v45 }
0x127c   :  { %27472 = vmatprep.subr.bf16.mxu0 %v27451_v32  ;;  %v27179_v9 = vpack.c.bf16 %v35274_v43, %v35273_v21 }
0x127d   :  { %27146 = vmatpush3.bf16.msra.mxu1 %v33208_v57 }
0x127e   :  { %27148 = vmatprep.subr.bf16.mxu1 %v33212_v17 }
0x1281   :  { %27150 = vmatpush3.bf16.msra.mxu1 %v33212_v17 }
0x1282   :  { %27152 = vmatprep.subr.bf16.mxu1 %v33227_v12  ;;  %23704 = vmatmul.mubr.f32.vlgmr.msra.gmra.mrb[56].mxu0 %v32975_v4 }
0x1283   :  { %27474 = vmatpush3.bf16.msra.mxu0 %v27451_v32  ;;  %23710 = vmatprep.mubr.f32.mxu0 %v32969_v6  ;;  %v35270_v6 = vand.u32 4294901760, %v33219_v60  ;;  %v35275_v60 = vand.u32 4294901760, %v33121_v13  ;;  %v17623_v13 = vld [vmem:[#allocation5 + $0x180] sm:$0xff] }
0x1284   :  { %v17640_v28 = vand.u32 4294901760, %v17623_v13 }
0x1285   :  { %27154 = vmatpush3.bf16.msra.mxu1 %v33227_v12  ;;  %v27171_v14 = vpack.c.bf16 %v35270_v6, %v16533_v59  ;;  %v35276_v59 = vand.u32 4294901760, %v33126_v50  ;;  %v17624_v50 = vld [vmem:[#allocation5 + $0x188] sm:$0xff]  ;;  %v33527_v6 = vld [vmem:[#allocation5 + $0x1f0] sm:$0xff] }
0x1286   :  { %27156 = vmatprep.subr.bf16.mxu1 %v33231_v25  ;;  %v17643_v30 = vand.u32 4294901760, %v17624_v50  ;;  %v33512_v3 = vsub.f32 %v17623_v13, %v17640_v28  ;;  %v17682_v21 = vand.u32 4294901760, %v33527_v6 }
0x1287   :  { %v27191_v48 = vpack.c.bf16 %v35276_v59, %v35275_v60 }
0x1288   :  { %v33514_v32 = vsub.f32 %v17624_v50, %v17643_v30  ;;  %v17743_v8 = vand.u32 4294901760, %v33512_v3 }
0x1289   :  { %27158 = vmatpush3.bf16.msra.mxu1 %v33231_v25 }
0x128a   :  { %27160 = vmatprep.subr.bf16.mxu1 %v33239_v20  ;;  %23711 = vmatmul.mubr.f32.vlgmr.msra.gmra.mrb[56].mxu0 %v32975_v4  ;;  %v35272_v4 = vand.u32 4294901760, %v33286_v19  ;;  %v35279_v19 = vand.u32 4294901760, %v33175_v26  ;;  %v17625_v26 = vld [vmem:[#allocation5 + $0x190] sm:$0xff]  ;;  %v17750_v56 = vand.u32 4294901760, %v33514_v32 }
0x128c   :  { %v27175_v15 = vpack.c.bf16 %v35272_v4, %v35271_v7  ;;  %v27199_v41 = vpack.c.bf16 %v35280_v36, %v35279_v19 }
0x128d   :  { %27162 = vmatpush3.bf16.msra.mxu1 %v33239_v20 }
0x128e   :  { %27164 = vmatprep.subr.bf16.mxu1 %v33249_v5 }
0x1291   :  { %27166 = vmatpush3.bf16.msra.mxu1 %v33249_v5 }
0x1292   :  { %27168 = vmatprep.subr.bf16.mxu1 %v33261_v53 }
0x1295   :  { %27170 = vmatpush3.bf16.msra.mxu1 %v33261_v53 }
0x1296   :  { %27172 = vmatprep.subr.bf16.mxu1 %v27171_v14 }
0x1298   :  { %23347 = vmatmul.mubr.f32.vlgmr.msra.gmra.mrb[28].mxu1 %v16522_v55  ;;  %v27187_v55 = vpack.c.bf16 %v16596_v10, %v16589_v23  ;;  %v17664_v23 = vand.u32 4294901760, %v17631_v58  ;;  %v17633_v10 = vld [vmem:[#allocation5 + $0x1d0] sm:$0xff] }
0x1299   :  { %27174 = vmatpush3.bf16.msra.mxu1 %v27171_v14  ;;  %23381 = vmatprep.mubr.f32.mxu1 %v33304_v49  ;;  %v17670_v40 = vand.u32 4294901760, %v17633_v10  ;;  %v33529_v14 = vld [vmem:[#allocation5 + $0x1f8] sm:$0xff] }
0x129a   :  { %27176 = vmatprep.subr.bf16.mxu1 %v27175_v15  ;;  %v17685_v43 = vand.u32 4294901760, %v33529_v14 }
0x129b   :  { %v33525_v38 = vpack.c.bf16 %v17673_v31, %v17670_v40 }
0x129d   :  { %27178 = vmatpush3.bf16.msra.mxu1 %v27175_v15 }
0x129e   :  { %27180 = vmatprep.subr.bf16.mxu1 %v27179_v9 }
0x12a1   :  { %27182 = vmatpush3.bf16.msra.mxu1 %v27179_v9  ;;  %v17744_v9 = vsub.f32 %v33512_v3, %v17743_v8 }
0x12a2   :  { %27184 = vmatprep.subr.bf16.mxu1 %v27183_v11 }
0x12a3   :  { %v17745_v19 = vand.u32 4294901760, %v17744_v9 }
0x12a5   :  { %27186 = vmatpush3.bf16.msra.mxu1 %v27183_v11  ;;  %v17751_v11 = vsub.f32 %v33514_v32, %v17750_v56 }
0x12a6   :  { %27188 = vmatprep.subr.bf16.mxu1 %v27187_v55 }
0x12a7   :  { %v17752_v36 = vand.u32 4294901760, %v17751_v11 }
0x12a9   :  { %27190 = vmatpush3.bf16.msra.mxu1 %v27187_v55 }
0x12aa   :  { %27192 = vmatprep.subr.bf16.mxu1 %v27191_v48 }
0x12ad   :  { %27194 = vmatpush3.bf16.msra.mxu1 %v27191_v48 }
0x12ae   :  { %27196 = vmatprep.subr.bf16.mxu1 %v27195_v1 }
0x12b1   :  { %27198 = vmatpush3.bf16.msra.mxu1 %v27195_v1  ;;  %v33566_v1 = vpack.c.bf16 %v17685_v43, %v17682_v21 }
0x12b2   :  { %27200 = vmatprep.subr.bf16.mxu1 %v27199_v41 }
0x12b5   :  { %27202 = vmatpush3.bf16.msra.mxu1 %v27199_v41 }
0x12b6   :  { %27204 = vmatprep.subr.bf16.mxu1 %v33184_v33 }
0x12b8   :  { %23382 = vmatmul.mubr.f32.vlgmr.msra.gmra.mrb[28].mxu1 %v33296_v51 }
0x12b9   :  { %27206 = vmatpush3.bf16.msra.mxu1 %v33184_v33  ;;  %23416 = vmatprep.mubr.f32.mxu1 %v33304_v49  ;;  %v33491_v33 = vpack.c.bf16 %v17643_v30, %v17640_v28  ;;  %v17785_v30 = vand.u32 4294901760, %v33557_v61 }
0x12ba   :  { %27208 = vmatprep.subr.bf16.mxu1 %v33208_v57 }
0x12bb   :  { %v17786_v16 = vsub.f32 %v33557_v61, %v17785_v30 }
0x12bd   :  { %27210 = vmatpush3.bf16.msra.mxu1 %v33208_v57  ;;  %v17646_v57 = vand.u32 4294901760, %v17625_v26  ;;  %v17787_v11 = vand.u32 4294901760, %v17786_v16 }
0x12be   :  { %27212 = vmatprep.subr.bf16.mxu1 %v33212_v17 }
0x12bf   :  { %v33531_v7 = vsub.f32 %v17625_v26, %v17646_v57 }
0x12c1   :  { %27214 = vmatpush3.bf16.msra.mxu1 %v33212_v17  ;;  %v17649_v17 = vand.u32 4294901760, %v17626_v63  ;;  %v17757_v55 = vand.u32 4294901760, %v33531_v7 }
0x12c2   :  { %27216 = vmatprep.subr.bf16.mxu1 %v33227_v12 }
0x12c3   :  { %v33533_v4 = vsub.f32 %v17626_v63, %v17649_v17  ;;  %v17758_v41 = vsub.f32 %v33531_v7, %v17757_v55  ;;  %v27291_v63 = vpack.c.bf16 %v17752_v36, %v17745_v19 }
0x12c5   :  { %27218 = vmatpush3.bf16.msra.mxu1 %v33227_v12  ;;  %v17627_v12 = vld [vmem:[#allocation5 + $0x1a0] sm:$0xff]  ;;  %v17764_v60 = vand.u32 4294901760, %v33533_v4 }
0x12c6   :  { %27220 = vmatprep.subr.bf16.mxu1 %v33231_v25  ;;  %v17652_v49 = vand.u32 4294901760, %v17627_v12 }
0x12c7   :  { %v17765_v13 = vsub.f32 %v33533_v4, %v17764_v60 }
0x12c8   :  { %v33553_v59 = vsub.f32 %v17627_v12, %v17652_v49  ;;  %v17759_v12 = vand.u32 4294901760, %v17758_v41  ;;  %v33622_v41 = vsub.f32 %v33510_v22, %v17679_v46  ;;  %v33635_v22 = vsub.f32 %v33527_v6, %v17682_v21 }
0x12c9   :  { %27222 = vmatpush3.bf16.msra.mxu1 %v33231_v25  ;;  %v17628_v25 = vld [vmem:[#allocation5 + $0x1a8] sm:$0xff] }
0x12ca   :  { %27224 = vmatprep.subr.bf16.mxu1 %v33239_v20  ;;  %v17655_v24 = vand.u32 4294901760, %v17628_v25  ;;  %v17771_v50 = vand.u32 4294901760, %v33553_v59  ;;  %v17841_v6 = vand.u32 4294901760, %v33635_v22 }
0x12cc   :  { %v33555_v48 = vsub.f32 %v17628_v25, %v17655_v24  ;;  %v17766_v25 = vand.u32 4294901760, %v17765_v13 }
0x12cd   :  { %27226 = vmatpush3.bf16.msra.mxu1 %v33239_v20  ;;  %v33495_v20 = vpack.c.bf16 %v17649_v17, %v17646_v57  ;;  %v33580_v57 = vsub.f32 %v17631_v58, %v17664_v23  ;;  %v33600_v58 = vsub.f32 %v17633_v10, %v17670_v40 }
0x12ce   :  { %27228 = vmatprep.subr.bf16.mxu1 %v33249_v5  ;;  %v17778_v28 = vand.u32 4294901760, %v33555_v48 }
0x12d1   :  { %27230 = vmatpush3.bf16.msra.mxu1 %v33249_v5  ;;  %v33501_v5 = vpack.c.bf16 %v17655_v24, %v17652_v49  ;;  %v17772_v49 = vsub.f32 %v33553_v59, %v17771_v50  ;;  %v17779_v24 = vsub.f32 %v33555_v48, %v17778_v28 }
0x12d2   :  { %27232 = vmatprep.subr.bf16.mxu1 %v33261_v53 }
0x12d3   :  { %v17780_v9 = vand.u32 4294901760, %v17779_v24 }
0x12d5   :  { %27234 = vmatpush3.bf16.msra.mxu1 %v33261_v53  ;;  %v17661_v53 = vand.u32 4294901760, %v17630_v39 }
0x12d6   :  { %27260 = vmatprep.subr.bf16.mxu1 %v33491_v33 }
0x12d7   :  { %v33505_v37 = vpack.c.bf16 %v17661_v53, %v17658_v45  ;;  %v33559_v54 = vsub.f32 %v17630_v39, %v17661_v53  ;;  %v17799_v45 = vand.u32 4294901760, %v33580_v57 }
0x12d8   :  { %23417 = vmatmul.mubr.f32.vlgmr.msra.gmra.mrb[28].mxu1 %v33296_v51  ;;  %v17667_v51 = vand.u32 4294901760, %v17632_v2 }
0x12d9   :  { %27262 = vmatpush3.bf16.msra.mxu1 %v33491_v33  ;;  %23493 = vmatprep.mubr.f32.mxu1 %v33394_v42  ;;  %v17676_v42 = vand.u32 4294901760, %v33508_v35  ;;  %v17792_v26 = vand.u32 4294901760, %v33559_v54  ;;  %v17800_v36 = vsub.f32 %v33580_v57, %v17799_v45 }
0x12da   :  { %27264 = vmatprep.subr.bf16.mxu1 %v33495_v20  ;;  %v33517_v27 = vpack.c.bf16 %v17667_v51, %v17664_v23  ;;  %v33582_v17 = vsub.f32 %v17632_v2, %v17667_v51  ;;  %v33602_v2 = vsub.f32 %v17634_v0, %v17673_v31  ;;  %v27295_v23 = vpack.c.bf16 %v17766_v25, %v17759_v12 }
0x12db   :  { %v33539_v15 = vpack.c.bf16 %v17679_v46, %v17676_v42  ;;  %v17793_v39 = vsub.f32 %v33559_v54, %v17792_v26  ;;  %v17773_v51 = vand.u32 4294901760, %v17772_v49  ;;  %v17813_v0 = vand.u32 4294901760, %v33600_v58 }
0x12dc   :  { %v17806_v53 = vand.u32 4294901760, %v33582_v17  ;;  %v17820_v40 = vand.u32 4294901760, %v33602_v2  ;;  %v33640_v46 = vsub.f32 %v33529_v14, %v17685_v43 }
0x12dd   :  { %27266 = vmatpush3.bf16.msra.mxu1 %v33495_v20  ;;  %v17794_v19 = vand.u32 4294901760, %v17793_v39  ;;  %v27299_v31 = vpack.c.bf16 %v17780_v9, %v17773_v51  ;;  %v17814_v25 = vsub.f32 %v33600_v58, %v17813_v0 }
0x12de   :  { %27268 = vmatprep.subr.bf16.mxu1 %v33501_v5  ;;  %v17807_v10 = vsub.f32 %v33582_v17, %v17806_v53  ;;  %v17821_v49 = vsub.f32 %v33602_v2, %v17820_v40  ;;  %v17848_v21 = vand.u32 4294901760, %v33640_v46 }
0x12df   :  { %v27303_v13 = vpack.c.bf16 %v17794_v19, %v17787_v11  ;;  %v17815_v16 = vand.u32 4294901760, %v17814_v25  ;;  %v17842_v11 = vsub.f32 %v33635_v22, %v17841_v6  ;;  %v27331_v25 = vpack.c.bf16 %v33555_v48, %v33553_v59  ;;  %v18829_v48 = vld [vmem:[#allocation5 + $0x210] sm:$0xff] }
0x12e0   :  { %v17808_v12 = vand.u32 4294901760, %v17807_v10  ;;  %v17822_v39 = vand.u32 4294901760, %v17821_v49  ;;  %v17849_v19 = vsub.f32 %v33640_v46, %v17848_v21  ;;  %v27335_v49 = vpack.c.bf16 %v33559_v54, %v33557_v61  ;;  %v18830_v61 = vld [vmem:[#allocation5 + $0x218] sm:$0xff] }
0x12e1   :  { %27270 = vmatpush3.bf16.msra.mxu1 %v33501_v5  ;;  %v17843_v10 = vand.u32 4294901760, %v17842_v11  ;;  %v18850_v54 = vand.u32 4294901760, %v18829_v48  ;;  %v33790_v11 = vld [vmem:[#allocation5 + $0x270] sm:$0xff] }
0x12e2   :  { %27272 = vmatprep.subr.bf16.mxu1 %v33505_v37  ;;  %v27311_v14 = vpack.c.bf16 %v17822_v39, %v17815_v16  ;;  %v27343_v16 = vpack.c.bf16 %v33602_v2, %v33600_v58  ;;  %v27351_v39 = vpack.c.bf16 %v33640_v46, %v33635_v22  ;;  %v33774_v22 = vld [vmem:[#allocation5 + $0x260] sm:$0xff]  ;;  %v33776_v46 = vld [vmem:[#allocation5 + $0x268] sm:$0xff] }
0x12e5   :  { %27274 = vmatpush3.bf16.msra.mxu1 %v33505_v37 }
0x12e6   :  { %27276 = vmatprep.subr.bf16.mxu1 %v33517_v27 }
0x12e9   :  { %27278 = vmatpush3.bf16.msra.mxu1 %v33517_v27 }
0x12ea   :  { %27280 = vmatprep.subr.bf16.mxu1 %v33525_v38 }
0x12ed   :  { %27282 = vmatpush3.bf16.msra.mxu1 %v33525_v38 }
0x12ee   :  { %27284 = vmatprep.subr.bf16.mxu1 %v33539_v15 }
0x12f1   :  { %27286 = vmatpush3.bf16.msra.mxu1 %v33539_v15 }
0x12f2   :  { %27288 = vmatprep.subr.bf16.mxu1 %v33566_v1 }
0x12f5   :  { %27290 = vmatpush3.bf16.msra.mxu1 %v33566_v1 }
0x12f6   :  { %27292 = vmatprep.subr.bf16.mxu1 %v27291_v63 }
0x12f8   :  { %23494 = vmatmul.mubr.f32.vlgmr.msra.gmra.mrb[28].mxu1 %v33391_v47  ;;  %v33617_v47 = vsub.f32 %v33508_v35, %v17676_v42  ;;  %v17834_v42 = vand.u32 4294901760, %v33622_v41 }
0x12f9   :  { %27294 = vmatpush3.bf16.msra.mxu1 %v27291_v63  ;;  %23528 = vmatprep.mubr.f32.mxu1 %v33367_v52  ;;  %v17801_v63 = vand.u32 4294901760, %v17800_v36 }
0x12fa   :  { %27296 = vmatprep.subr.bf16.mxu1 %v27295_v23  ;;  %v17827_v35 = vand.u32 4294901760, %v33617_v47  ;;  %v17835_v51 = vsub.f32 %v33622_v41, %v17834_v42 }
0x12fb   :  { %v27307_v24 = vpack.c.bf16 %v17808_v12, %v17801_v63  ;;  %v27323_v63 = vpack.c.bf16 %v33514_v32, %v33512_v3  ;;  %v27327_v12 = vpack.c.bf16 %v33533_v4, %v33531_v7  ;;  %v27395_v3 = vpack.c.bf16 %v17778_v28, %v17771_v50  ;;  %v18831_v28 = vld [vmem:[#allocation5 + $0x220] sm:$0xff] }
0x12fc   :  { %v17836_v9 = vand.u32 4294901760, %v17835_v51  ;;  %v27407_v7 = vpack.c.bf16 %v17820_v40, %v17813_v0  ;;  %v27411_v4 = vpack.c.bf16 %v17834_v42, %v17827_v35  ;;  %v18853_v50 = vand.u32 4294901760, %v18830_v61  ;;  %v18835_v0 = vld [vmem:[#allocation5 + $0x240] sm:$0xff]  ;;  %v18836_v40 = vld [vmem:[#allocation5 + $0x248] sm:$0xff]  ;;  %v33771_v42 = vld [vmem:[#allocation5 + $0x258] sm:$0xff] }
0x12fd   :  { %27298 = vmatpush3.bf16.msra.mxu1 %v27295_v23  ;;  %v17828_v23 = vsub.f32 %v33617_v47, %v17827_v35  ;;  %v18871_v35 = vand.u32 4294901760, %v18836_v40 }
0x12fe   :  { %27300 = vmatprep.subr.bf16.mxu1 %v27299_v31 }
0x12ff   :  { %v17829_v43 = vand.u32 4294901760, %v17828_v23 }
0x1301   :  { %27302 = vmatpush3.bf16.msra.mxu1 %v27299_v31  ;;  %v27315_v36 = vpack.c.bf16 %v17836_v9, %v17829_v43  ;;  %v17850_v31 = vand.u32 4294901760, %v17849_v19  ;;  %v18880_v43 = vand.u32 4294901760, %v33774_v22  ;;  %v18883_v9 = vand.u32 4294901760, %v33776_v46 }
0x1302   :  { %27304 = vmatprep.subr.bf16.mxu1 %v27303_v13 }
0x1305   :  { %27306 = vmatpush3.bf16.msra.mxu1 %v27303_v13  ;;  %v27319_v13 = vpack.c.bf16 %v17850_v31, %v17843_v10  ;;  %v33794_v10 = vsub.f32 %v18829_v48, %v18850_v54 }
0x1306   :  { %27308 = vmatprep.subr.bf16.mxu1 %v27307_v24 }
0x1309   :  { %27310 = vmatpush3.bf16.msra.mxu1 %v27307_v24  ;;  %v27339_v24 = vpack.c.bf16 %v33582_v17, %v33580_v57  ;;  %v18856_v57 = vand.u32 4294901760, %v18831_v28 }
0x130a   :  { %27312 = vmatprep.subr.bf16.mxu1 %v27311_v14 }
0x130d   :  { %27314 = vmatpush3.bf16.msra.mxu1 %v27311_v14  ;;  %v18877_v14 = vand.u32 4294901760, %v33771_v42 }
0x130e   :  { %27316 = vmatprep.subr.bf16.mxu1 %v27315_v36 }
0x1311   :  { %27318 = vmatpush3.bf16.msra.mxu1 %v27315_v36 }
0x1312   :  { %27320 = vmatprep.subr.bf16.mxu1 %v27319_v13 }
0x1315   :  { %27322 = vmatpush3.bf16.msra.mxu1 %v27319_v13 }
0x1316   :  { %27324 = vmatprep.subr.bf16.mxu1 %v27323_v63 }
0x1318   :  { %23529 = vmatmul.mubr.f32.vlgmr.msra.gmra.mrb[28].mxu1 %v33363_v62 }
0x1319   :  { %27326 = vmatpush3.bf16.msra.mxu1 %v27323_v63  ;;  %23563 = vmatprep.mubr.f32.mxu1 %v33375_v18  ;;  %v27347_v18 = vpack.c.bf16 %v33622_v41, %v33617_v47  ;;  %v18868_v41 = vand.u32 4294901760, %v18835_v0  ;;  %v33802_v63 = vld [vmem:[#allocation5 + $0x278] sm:$0xff] }
0x131a   :  { %27328 = vmatprep.subr.bf16.mxu1 %v27327_v12 }
0x131d   :  { %27330 = vmatpush3.bf16.msra.mxu1 %v27327_v12  ;;  %v33804_v12 = vsub.f32 %v18830_v61, %v18853_v50 }
0x131e   :  { %27332 = vmatprep.subr.bf16.mxu1 %v27331_v25 }
0x1321   :  { %27334 = vmatpush3.bf16.msra.mxu1 %v27331_v25  ;;  %v33810_v25 = vpack.c.bf16 %v18883_v9, %v18880_v43 }
0x1322   :  { %27336 = vmatprep.subr.bf16.mxu1 %v27335_v49 }
0x1325   :  { %27338 = vmatpush3.bf16.msra.mxu1 %v27335_v49  ;;  %v18886_v49 = vand.u32 4294901760, %v33790_v11 }
0x1326   :  { %27340 = vmatprep.subr.bf16.mxu1 %v27339_v24 }
0x1329   :  { %27342 = vmatpush3.bf16.msra.mxu1 %v27339_v24  ;;  %v18889_v24 = vand.u32 4294901760, %v33802_v63 }
0x132a   :  { %27344 = vmatprep.subr.bf16.mxu1 %v27343_v16 }
0x132d   :  { %27346 = vmatpush3.bf16.msra.mxu1 %v27343_v16 }
0x132e   :  { %27348 = vmatprep.subr.bf16.mxu1 %v27347_v18 }
0x1331   :  { %27350 = vmatpush3.bf16.msra.mxu1 %v27347_v18 }
0x1332   :  { %27352 = vmatprep.subr.bf16.mxu1 %v27351_v39 }
0x1335   :  { %27354 = vmatpush3.bf16.msra.mxu1 %v27351_v39  ;;  %v18961_v39 = vand.u32 4294901760, %v33794_v10 }
0x1336   :  { %27356 = vmatprep.subr.bf16.mxu1 %v33491_v33 }
0x1338   :  { %23564 = vmatmul.mubr.f32.vlgmr.msra.gmra.mrb[28].mxu1 %v33370_v34  ;;  %v27387_v34 = vpack.c.bf16 %v17750_v56, %v17743_v8  ;;  %v27399_v8 = vpack.c.bf16 %v17792_v26, %v17785_v30  ;;  %v18832_v30 = vld [vmem:[#allocation5 + $0x228] sm:$0xff]  ;;  %v33758_v26 = vpack.c.bf16 %v18853_v50, %v18850_v54 }
0x1339   :  { %27358 = vmatpush3.bf16.msra.mxu1 %v33491_v33  ;;  %23598 = vmatprep.mubr.f32.mxu1 %v33383_v44  ;;  %v27391_v44 = vpack.c.bf16 %v17764_v60, %v17757_v55  ;;  %v27415_v55 = vpack.c.bf16 %v17848_v21, %v17841_v6  ;;  %v33783_v6 = vpack.c.bf16 %v18871_v35, %v18868_v41 }
0x133a   :  { %27360 = vmatprep.subr.bf16.mxu1 %v33495_v20 }
0x133d   :  { %27362 = vmatpush3.bf16.msra.mxu1 %v33495_v20 }
0x133e   :  { %27364 = vmatprep.subr.bf16.mxu1 %v33501_v5 }
0x1341   :  { %27366 = vmatpush3.bf16.msra.mxu1 %v33501_v5 }
0x1342   :  { %27368 = vmatprep.subr.bf16.mxu1 %v33505_v37 }
0x1345   :  { %27370 = vmatpush3.bf16.msra.mxu1 %v33505_v37 }
0x1346   :  { %27372 = vmatprep.subr.bf16.mxu1 %v33517_v27 }
0x1349   :  { %27374 = vmatpush3.bf16.msra.mxu1 %v33517_v27 }
0x134a   :  { %27376 = vmatprep.subr.bf16.mxu1 %v33525_v38 }
0x134d   :  { %27378 = vmatpush3.bf16.msra.mxu1 %v33525_v38 }
0x134e   :  { %27380 = vmatprep.subr.bf16.mxu1 %v33539_v15 }
0x1351   :  { %27382 = vmatpush3.bf16.msra.mxu1 %v33539_v15 }
0x1352   :  { %27384 = vmatprep.subr.bf16.mxu1 %v33566_v1 }
0x1355   :  { %27386 = vmatpush3.bf16.msra.mxu1 %v33566_v1 }
0x1356   :  { %27388 = vmatprep.subr.bf16.mxu1 %v27387_v34 }
0x1358   :  { %23599 = vmatmul.mubr.f32.vlgmr.msra.gmra.mrb[28].mxu1 %v33380_v29  ;;  %v27403_v29 = vpack.c.bf16 %v17806_v53, %v17799_v45  ;;  %v18833_v45 = vld [vmem:[#allocation5 + $0x230] sm:$0xff]  ;;  %v18834_v53 = vld [vmem:[#allocation5 + $0x238] sm:$0xff] }
0x1359   :  { %27390 = vmatpush3.bf16.msra.mxu1 %v27387_v34  ;;  %23633 = vmatprep.mubr.f32.mxu1 %v33367_v52  ;;  %v18862_v2 = vand.u32 4294901760, %v18833_v45 }
0x135a   :  { %27392 = vmatprep.subr.bf16.mxu1 %v27391_v44 }
0x135d   :  { %27394 = vmatpush3.bf16.msra.mxu1 %v27391_v44  ;;  %v33706_v32 = vpop.f32.mrb[56].mxu0  ;;  %v18968_v44 = vand.u32 4294901760, %v33804_v12 }
0x135e   :  { %27396 = vmatprep.subr.bf16.mxu1 %v27395_v3  ;;  %v18817_v56 = vpop.f32.mrb[57].mxu0  ;;  %v33797_v31 = vand.u32 4294901760, %v33706_v32 }
0x135f   :  { %v33739_v60 = vand.u32 4294901760, %v18817_v56 }
0x1360   :  { %v33824_v34 = vsub.f32 %v33706_v32, %v33797_v31  ;;  %v33841_v32 = vpack.c.bf16 %v18889_v24, %v18886_v49 }
0x1361   :  { %27398 = vmatpush3.bf16.msra.mxu1 %v27395_v3  ;;  %v33828_v3 = vsub.f32 %v18831_v28, %v18856_v57  ;;  %v33858_v28 = vsub.f32 %v18836_v40, %v18871_v35  ;;  %v33883_v40 = vsub.f32 %v33771_v42, %v18877_v14 }
0x1362   :  { %27400 = vmatprep.subr.bf16.mxu1 %v27399_v8 }
0x1365   :  { %27402 = vmatpush3.bf16.msra.mxu1 %v27399_v8 }
0x1366   :  { %27404 = vmatprep.subr.bf16.mxu1 %v27403_v29 }
0x1369   :  { %27406 = vmatpush3.bf16.msra.mxu1 %v27403_v29 }
0x136a   :  { %27408 = vmatprep.subr.bf16.mxu1 %v27407_v7 }
0x136d   :  { %27410 = vmatpush3.bf16.msra.mxu1 %v27407_v7 }
0x136e   :  { %27412 = vmatprep.subr.bf16.mxu1 %v27411_v4 }
0x1371   :  { %27414 = vmatpush3.bf16.msra.mxu1 %v27411_v4 }
0x1372   :  { %27416 = vmatprep.subr.bf16.mxu1 %v27415_v55 }
0x1375   :  { %27418 = vmatpush3.bf16.msra.mxu1 %v27415_v55  ;;  %v18962_v55 = vsub.f32 %v33794_v10, %v18961_v39 }
0x1376   :  { %27420 = vmatprep.subr.bf16.mxu1 %v33491_v33 }
0x1377   :  { %v18963_v50 = vand.u32 4294901760, %v18962_v55 }
0x1378   :  { %23634 = vmatmul.mubr.f32.vlgmr.msra.gmra.mrb[28].mxu1 %v33363_v62 }
0x1379   :  { %27422 = vmatpush3.bf16.msra.mxu1 %v33491_v33  ;;  %23668 = vmatprep.mubr.f32.mxu1 %v33367_v52  ;;  %v33744_v52 = vsub.f32 %v18817_v56, %v33739_v60  ;;  %v18827_v33 = vld [vmem:[#allocation5 + $0x200] sm:$0xff]  ;;  %v33832_v56 = vsub.f32 %v18833_v45, %v18862_v2 }
0x137a   :  { %27424 = vmatprep.subr.bf16.mxu1 %v33495_v20 }
0x137b   :  { %v18989_v48 = vand.u32 4294901760, %v33832_v56 }
0x137d   :  { %27426 = vmatpush3.bf16.msra.mxu1 %v33495_v20  ;;  %v18828_v20 = vld [vmem:[#allocation5 + $0x208] sm:$0xff]  ;;  %v18990_v45 = vsub.f32 %v33832_v56, %v18989_v48 }
0x137e   :  { %27428 = vmatprep.subr.bf16.mxu1 %v33501_v5  ;;  %v18847_v59 = vand.u32 4294901760, %v18828_v20 }
0x1380   :  { %v33780_v51 = vsub.f32 %v18828_v20, %v18847_v59  ;;  %v18969_v20 = vsub.f32 %v33804_v12, %v18968_v44 }
0x1381   :  { %27430 = vmatpush3.bf16.msra.mxu1 %v33501_v5  ;;  %v18844_v5 = vand.u32 4294901760, %v18827_v33 }
0x1382   :  { %27432 = vmatprep.subr.bf16.mxu1 %v33505_v37  ;;  %v18954_v36 = vand.u32 4294901760, %v33780_v51 }
0x1383   :  { %v33778_v23 = vsub.f32 %v18827_v33, %v18844_v5  ;;  %v18936_v33 = vand.u32 4294901760, %v33824_v34 }
0x1384   :  { %v18955_v18 = vsub.f32 %v33780_v51, %v18954_v36 }
0x1385   :  { %27434 = vmatpush3.bf16.msra.mxu1 %v33505_v37  ;;  %v18926_v37 = vand.u32 4294901760, %v33744_v52  ;;  %v18947_v19 = vand.u32 4294901760, %v33778_v23 }
0x1386   :  { %27436 = vmatprep.subr.bf16.mxu1 %v33517_v27  ;;  %v18956_v4 = vand.u32 4294901760, %v18955_v18 }
0x1387   :  { %v18948_v16 = vsub.f32 %v33778_v23, %v18947_v19 }
0x1389   :  { %27438 = vmatpush3.bf16.msra.mxu1 %v33517_v27  ;;  %v33751_v27 = vpack.c.bf16 %v18847_v59, %v18844_v5  ;;  %v18949_v7 = vand.u32 4294901760, %v18948_v16  ;;  %v18975_v5 = vand.u32 4294901760, %v33828_v3 }
0x138a   :  { %27440 = vmatprep.subr.bf16.mxu1 %v33525_v38 }
0x138b   :  { %v27507_v54 = vpack.c.bf16 %v18956_v4, %v18949_v7  ;;  %v18991_v7 = vand.u32 4294901760, %v18990_v45 }
0x138d   :  { %27442 = vmatpush3.bf16.msra.mxu1 %v33525_v38  ;;  %v18927_v38 = vsub.f32 %v33744_v52, %v18926_v37 }
0x138e   :  { %27444 = vmatprep.subr.bf16.mxu1 %v33539_v15 }
0x138f   :  { %v18928_v17 = vand.u32 4294901760, %v18927_v38  ;;  %v33856_v38 = vsub.f32 %v18835_v0, %v18868_v41 }
0x1391   :  { %27446 = vmatpush3.bf16.msra.mxu1 %v33539_v15  ;;  %v18859_v15 = vand.u32 4294901760, %v18832_v30 }
0x1392   :  { %27448 = vmatprep.subr.bf16.mxu1 %v33566_v1 }
0x1393   :  { %v33763_v58 = vpack.c.bf16 %v18859_v15, %v18856_v57  ;;  %v33830_v8 = vsub.f32 %v18832_v30, %v18859_v15  ;;  %v18937_v30 = vsub.f32 %v33824_v34, %v18936_v33  ;;  %v18970_v57 = vand.u32 4294901760, %v18969_v20 }
0x1394   :  { %v18976_v15 = vsub.f32 %v33828_v3, %v18975_v5  ;;  %v33897_v20 = vsub.f32 %v33774_v22, %v18880_v43 }
0x1395   :  { %27450 = vmatpush3.bf16.msra.mxu1 %v33566_v1  ;;  %v18865_v1 = vand.u32 4294901760, %v18834_v53  ;;  %v18982_v59 = vand.u32 4294901760, %v33830_v8  ;;  %v18938_v41 = vand.u32 4294901760, %v18937_v30  ;;  %v27511_v35 = vpack.c.bf16 %v18970_v57, %v18963_v50 }
0x1396   :  { %27476 = vmatprep.subr.bf16.mxu1 %v33751_v27  ;;  %v18977_v16 = vand.u32 4294901760, %v18976_v15  ;;  %v19031_v22 = vand.u32 4294901760, %v33897_v20 }
0x1397   :  { %v33767_v47 = vpack.c.bf16 %v18865_v1, %v18862_v2  ;;  %v33834_v29 = vsub.f32 %v18834_v53, %v18865_v1  ;;  %v19003_v2 = vand.u32 4294901760, %v33856_v38  ;;  %v19010_v1 = vand.u32 4294901760, %v33858_v28 }
0x1398   :  { %23669 = vmatmul.mubr.f32.vlgmr.msra.gmra.mrb[28].mxu1 %v33363_v62  ;;  %v33769_v62 = vld [vmem:[#allocation5 + $0x250] sm:$0xff] }
0x1399   :  { %27478 = vmatpush3.bf16.msra.mxu1 %v33751_v27  ;;  %23745 = vmatprep.mubr.f32.mxu1 %v18928_v17  ;;  %v18874_v21 = vand.u32 4294901760, %v33769_v62  ;;  %v18996_v61 = vand.u32 4294901760, %v33834_v29  ;;  %v18983_v17 = vsub.f32 %v33830_v8, %v18982_v59  ;;  %v19004_v55 = vsub.f32 %v33856_v38, %v19003_v2 }
0x139a   :  { %27480 = vmatprep.subr.bf16.mxu1 %v33758_v26 }
0x139b   :  { %v33800_v13 = vpack.c.bf16 %v18877_v14, %v18874_v21  ;;  %v18997_v53 = vsub.f32 %v33834_v29, %v18996_v61  ;;  %v33880_v0 = vsub.f32 %v33769_v62, %v18874_v21  ;;  %v18984_v18 = vand.u32 4294901760, %v18983_v17 }
0x139c   :  { %v19011_v62 = vsub.f32 %v33858_v28, %v19010_v1  ;;  %v19024_v21 = vand.u32 4294901760, %v33883_v40  ;;  %v19005_v30 = vand.u32 4294901760, %v19004_v55 }
0x139d   :  { %27482 = vmatpush3.bf16.msra.mxu1 %v33758_v26  ;;  %v18998_v4 = vand.u32 4294901760, %v18997_v53  ;;  %v19017_v42 = vand.u32 4294901760, %v33880_v0  ;;  %v27515_v14 = vpack.c.bf16 %v18984_v18, %v18977_v16 }
0x139e   :  { %27484 = vmatprep.subr.bf16.mxu1 %v33763_v58  ;;  %v19012_v57 = vand.u32 4294901760, %v19011_v62  ;;  %v19025_v17 = vsub.f32 %v33883_v40, %v19024_v21 }
0x139f   :  { %v27519_v50 = vpack.c.bf16 %v18998_v4, %v18991_v7  ;;  %v19018_v15 = vsub.f32 %v33880_v0, %v19017_v42 }
0x13a0   :  { %v27523_v45 = vpack.c.bf16 %v19012_v57, %v19005_v30  ;;  %v27539_v30 = vpack.c.bf16 %v33780_v51, %v33778_v23  ;;  %v27543_v57 = vpack.c.bf16 %v33804_v12, %v33794_v10  ;;  %v27611_v23 = vpack.c.bf16 %v18982_v59, %v18975_v5 }
0x13a1   :  { %27486 = vmatpush3.bf16.msra.mxu1 %v33763_v58  ;;  %v19019_v53 = vand.u32 4294901760, %v19018_v15  ;;  %v27547_v15 = vpack.c.bf16 %v33830_v8, %v33828_v3  ;;  %v27615_v51 = vpack.c.bf16 %v18996_v61, %v18989_v48 }
0x13a2   :  { %27488 = vmatprep.subr.bf16.mxu1 %v33767_v47 }
0x13a5   :  { %27490 = vmatpush3.bf16.msra.mxu1 %v33767_v47 }
0x13a6   :  { %27492 = vmatprep.subr.bf16.mxu1 %v33783_v6 }
0x13a9   :  { %27494 = vmatpush3.bf16.msra.mxu1 %v33783_v6 }
0x13aa   :  { %27496 = vmatprep.subr.bf16.mxu1 %v33800_v13 }
0x13ad   :  { %27498 = vmatpush3.bf16.msra.mxu1 %v33800_v13 }
0x13ae   :  { %27500 = vmatprep.subr.bf16.mxu1 %v33810_v25 }
0x13b1   :  { %27502 = vmatpush3.bf16.msra.mxu1 %v33810_v25 }
0x13b2   :  { %27504 = vmatprep.subr.bf16.mxu1 %v33841_v32 }
0x13b5   :  { %27506 = vmatpush3.bf16.msra.mxu1 %v33841_v32 }
0x13b6   :  { %27508 = vmatprep.subr.bf16.mxu1 %v27507_v54 }
0x13b8   :  { %23746 = vmatmul.mubr.f32.vlgmr.msra.gmra.mrb[28].mxu1 %v18938_v41  ;;  %v19026_v41 = vand.u32 4294901760, %v19025_v17  ;;  %v27551_v17 = vpack.c.bf16 %v33834_v29, %v33832_v56 }
0x13b9   :  { %27510 = vmatpush3.bf16.msra.mxu1 %v27507_v54  ;;  %23780 = vmatprep.mubr.f32.mxu1 %v33739_v60  ;;  %v33902_v54 = vsub.f32 %v33776_v46, %v18883_v9  ;;  %v33915_v46 = vsub.f32 %v33790_v11, %v18886_v49  ;;  %v33920_v9 = vsub.f32 %v33802_v63, %v18889_v24 }
0x13ba   :  { %27512 = vmatprep.subr.bf16.mxu1 %v27511_v35  ;;  %v27527_v63 = vpack.c.bf16 %v19026_v41, %v19019_v53  ;;  %v27559_v53 = vpack.c.bf16 %v33883_v40, %v33880_v0 }
0x13bb   :  { %v19038_v43 = vand.u32 4294901760, %v33902_v54  ;;  %v19045_v11 = vand.u32 4294901760, %v33915_v46  ;;  %v19052_v49 = vand.u32 4294901760, %v33920_v9  ;;  %v27563_v41 = vpack.c.bf16 %v33902_v54, %v33897_v20 }
0x13bd   :  { %27514 = vmatpush3.bf16.msra.mxu1 %v27511_v35  ;;  %v19032_v35 = vsub.f32 %v33897_v20, %v19031_v22  ;;  %v19039_v16 = vsub.f32 %v33902_v54, %v19038_v43  ;;  %v19046_v7 = vsub.f32 %v33915_v46, %v19045_v11  ;;  %v19053_v4 = vsub.f32 %v33920_v9, %v19052_v49 }
0x13be   :  { %27516 = vmatprep.subr.bf16.mxu1 %v27515_v14  ;;  %v27627_v10 = vpack.c.bf16 %v19038_v43, %v19031_v22  ;;  %v27631_v12 = vpack.c.bf16 %v19052_v49, %v19045_v11 }
0x13bf   :  { %v19033_v24 = vand.u32 4294901760, %v19032_v35  ;;  %v19040_v18 = vand.u32 4294901760, %v19039_v16  ;;  %v19047_v62 = vand.u32 4294901760, %v19046_v7  ;;  %v27567_v35 = vpack.c.bf16 %v33920_v9, %v33915_v46 }
0x13c1   :  { %27518 = vmatpush3.bf16.msra.mxu1 %v27515_v14  ;;  %v27531_v55 = vpack.c.bf16 %v19040_v18, %v19033_v24  ;;  %v19054_v14 = vand.u32 4294901760, %v19053_v4 }
0x13c2   :  { %27520 = vmatprep.subr.bf16.mxu1 %v27519_v50 }
0x13c5   :  { %27522 = vmatpush3.bf16.msra.mxu1 %v27519_v50  ;;  %v27535_v50 = vpack.c.bf16 %v19054_v14, %v19047_v62 }
0x13c6   :  { %27524 = vmatprep.subr.bf16.mxu1 %v27523_v45 }
0x13c9   :  { %27526 = vmatpush3.bf16.msra.mxu1 %v27523_v45  ;;  %v27555_v45 = vpack.c.bf16 %v33858_v28, %v33856_v38 }
0x13ca   :  { %27528 = vmatprep.subr.bf16.mxu1 %v27527_v63 }
0x13cd   :  { %27530 = vmatpush3.bf16.msra.mxu1 %v27527_v63 }
0x13ce   :  { %27532 = vmatprep.subr.bf16.mxu1 %v27531_v55 }
0x13d1   :  { %27534 = vmatpush3.bf16.msra.mxu1 %v27531_v55 }
0x13d2   :  { %27536 = vmatprep.subr.bf16.mxu1 %v27535_v50 }
0x13d5   :  { %27538 = vmatpush3.bf16.msra.mxu1 %v27535_v50 }
0x13d6   :  { %27540 = vmatprep.subr.bf16.mxu1 %v27539_v30 }
0x13d8   :  { %23781 = vmatmul.mubr.f32.vlgmr.msra.gmra.mrb[28].mxu1 %v33797_v31 }
0x13d9   :  { %27542 = vmatpush3.bf16.msra.mxu1 %v27539_v30  ;;  %23815 = vmatprep.mubr.f32.mxu1 %v33744_v52  ;;  %v27603_v52 = vpack.c.bf16 %v18954_v36, %v18947_v19  ;;  %v27619_v19 = vpack.c.bf16 %v19010_v1, %v19003_v2  ;;  %v27623_v36 = vpack.c.bf16 %v19024_v21, %v19017_v42 }
0x13da   :  { %27544 = vmatprep.subr.bf16.mxu1 %v27543_v57 }
0x13dd   :  { %27546 = vmatpush3.bf16.msra.mxu1 %v27543_v57 }
0x13de   :  { %27548 = vmatprep.subr.bf16.mxu1 %v27547_v15 }
0x13e1   :  { %27550 = vmatpush3.bf16.msra.mxu1 %v27547_v15 }
0x13e2   :  { %27552 = vmatprep.subr.bf16.mxu1 %v27551_v17 }
0x13e5   :  { %27554 = vmatpush3.bf16.msra.mxu1 %v27551_v17 }
0x13e6   :  { %27556 = vmatprep.subr.bf16.mxu1 %v27555_v45 }
0x13e9   :  { %27558 = vmatpush3.bf16.msra.mxu1 %v27555_v45 }
0x13ea   :  { %27560 = vmatprep.subr.bf16.mxu1 %v27559_v53 }
0x13ed   :  { %27562 = vmatpush3.bf16.msra.mxu1 %v27559_v53 }
0x13ee   :  { %27564 = vmatprep.subr.bf16.mxu1 %v27563_v41 }
0x13f1   :  { %27566 = vmatpush3.bf16.msra.mxu1 %v27563_v41 }
0x13f2   :  { %27568 = vmatprep.subr.bf16.mxu1 %v27567_v35 }
0x13f5   :  { %27570 = vmatpush3.bf16.msra.mxu1 %v27567_v35 }
0x13f6   :  { %27572 = vmatprep.subr.bf16.mxu1 %v33751_v27 }
0x13f8   :  { %23816 = vmatmul.mubr.f32.vlgmr.msra.gmra.mrb[28].mxu1 %v33824_v34 }
0x13f9   :  { %27574 = vmatpush3.bf16.msra.mxu1 %v33751_v27  ;;  %23850 = vmatprep.mubr.f32.mxu1 %v18926_v37  ;;  %v27607_v37 = vpack.c.bf16 %v18968_v44, %v18961_v39 }
0x13fa   :  { %27576 = vmatprep.subr.bf16.mxu1 %v33758_v26 }
0x13fd   :  { %27578 = vmatpush3.bf16.msra.mxu1 %v33758_v26 }
0x13fe   :  { %27580 = vmatprep.subr.bf16.mxu1 %v33763_v58 }
0x1401   :  { %27582 = vmatpush3.bf16.msra.mxu1 %v33763_v58 }
0x1402   :  { %27584 = vmatprep.subr.bf16.mxu1 %v33767_v47 }
0x1405   :  { %27586 = vmatpush3.bf16.msra.mxu1 %v33767_v47 }
0x1406   :  { %27588 = vmatprep.subr.bf16.mxu1 %v33783_v6 }
0x1409   :  { %27590 = vmatpush3.bf16.msra.mxu1 %v33783_v6 }
0x140a   :  { %27592 = vmatprep.subr.bf16.mxu1 %v33800_v13 }
0x140d   :  { %27594 = vmatpush3.bf16.msra.mxu1 %v33800_v13 }
0x140e   :  { %27596 = vmatprep.subr.bf16.mxu1 %v33810_v25 }
0x1411   :  { %27598 = vmatpush3.bf16.msra.mxu1 %v33810_v25 }
0x1412   :  { %27600 = vmatprep.subr.bf16.mxu1 %v33841_v32 }
0x1415   :  { %27602 = vmatpush3.bf16.msra.mxu1 %v33841_v32 }
0x1416   :  { %27604 = vmatprep.subr.bf16.mxu1 %v27603_v52 }
0x1418   :  { %23851 = vmatmul.mubr.f32.vlgmr.msra.gmra.mrb[28].mxu1 %v18936_v33 }
0x1419   :  { %27606 = vmatpush3.bf16.msra.mxu1 %v27603_v52  ;;  %23885 = vmatprep.mubr.f32.mxu1 %v33739_v60 }
0x141a   :  { %27608 = vmatprep.subr.bf16.mxu1 %v27607_v37 }
0x141d   :  { %27610 = vmatpush3.bf16.msra.mxu1 %v27607_v37 }
0x141e   :  { %27612 = vmatprep.subr.bf16.mxu1 %v27611_v23 }
0x1421   :  { %27614 = vmatpush3.bf16.msra.mxu1 %v27611_v23 }
0x1422   :  { %27616 = vmatprep.subr.bf16.mxu1 %v27615_v51 }
0x1425   :  { %27618 = vmatpush3.bf16.msra.mxu1 %v27615_v51 }
0x1426   :  { %27620 = vmatprep.subr.bf16.mxu1 %v27619_v19 }
0x1429   :  { %27622 = vmatpush3.bf16.msra.mxu1 %v27619_v19 }
0x142a   :  { %27624 = vmatprep.subr.bf16.mxu1 %v27623_v36 }
0x142d   :  { %27626 = vmatpush3.bf16.msra.mxu1 %v27623_v36 }
0x142e   :  { %27628 = vmatprep.subr.bf16.mxu1 %v27627_v10 }
0x1431   :  { %27630 = vmatpush3.bf16.msra.mxu1 %v27627_v10 }
0x1432   :  { %27632 = vmatprep.subr.bf16.mxu1 %v27631_v12 }
0x1435   :  { %27634 = vmatpush3.bf16.msra.mxu1 %v27631_v12 }
0x1436   :  { %27636 = vmatprep.subr.bf16.mxu1 %v33751_v27 }
0x1438   :  { %23886 = vmatmul.mubr.f32.vlgmr.msra.gmra.mrb[28].mxu1 %v33797_v31 }
0x1439   :  { %27638 = vmatpush3.bf16.msra.mxu1 %v33751_v27  ;;  %23920 = vmatprep.mubr.f32.mxu1 %v33739_v60  ;;  %v19584_v60 = vld [vmem:[%s34051_s6 + $0x1] ss:$0 sm:$0xff] }
0x143a   :  { %27640 = vmatprep.subr.bf16.mxu1 %v33758_v26 }
0x143d   :  { %27642 = vmatpush3.bf16.msra.mxu1 %v33758_v26 }
0x143e   :  { %27644 = vmatprep.subr.bf16.mxu1 %v33763_v58 }
0x1441   :  { %27646 = vmatpush3.bf16.msra.mxu1 %v33763_v58 }
0x1442   :  { %27648 = vmatprep.subr.bf16.mxu1 %v33767_v47 }
0x1445   :  { %27650 = vmatpush3.bf16.msra.mxu1 %v33767_v47 }
0x1446   :  { %27652 = vmatprep.subr.bf16.mxu1 %v33783_v6 }
0x1449   :  { %27654 = vmatpush3.bf16.msra.mxu1 %v33783_v6 }
0x144a   :  { %27656 = vmatprep.subr.bf16.mxu1 %v33800_v13 }
0x144d   :  { %27658 = vmatpush3.bf16.msra.mxu1 %v33800_v13 }
0x144e   :  { %27660 = vmatprep.subr.bf16.mxu1 %v33810_v25 }
0x1451   :  { %27662 = vmatpush3.bf16.msra.mxu1 %v33810_v25 }
0x1452   :  { %27664 = vmatprep.subr.bf16.mxu1 %v33841_v32 }
0x1455   :  { %27666 = vmatpush3.bf16.msra.mxu1 %v33841_v32 }
0x1458   :  { %23921 = vmatmul.mubr.f32.vlgmr.msra.gmra.mrb[28].mxu1 %v33797_v31 }
0x152b   :  { %v23922_v27 = vpop.f32.mrb[28].mxu1 }
0x152c   :  { %v27711_v26 = vadd.f32 %v23922_v27, %v19584_v60  ;;  %v19517_v58 = vpop.f32.mrb[29].mxu1 }
0x152d   :  { %v27712_v47 = vadd.f32 %v19584_v60, %v19517_v58 }
0x152e   :  { %19530 = vst [vmem:[#allocation7 + $0x8] sm:$0xff] %v27711_v26 }
0x152f   :  { %19529 = vst [vmem:[#allocation7] sm:$0xff] %v27712_v47 }
0x1530   :  { %28512 = shalt.err (!%p28509_p6)
}
0x1531   :  { %s28513_s6 = scalar_lea.hbm %s34052_s7, 256 }
0x1532   :  { %p28514_p7 = scmp.ne.s32.totalorder %s34052_s7, %s28513_s6  ;;  %p28517_p8 = scmp.lt.u32.totalorder %s28513_s6, %s34052_s7 }
0x1534   :  { %p28519_p9 = pnand %p28517_p8, %p28514_p7 }
0x1536   :  { %28522 = shalt.err (!%p28519_p9)
}
0x1537   :  { %19542 = dma.vmem_to_hbm [thread:$0]  %s19537_s17, 256, %s34052_s7, [#allocation4], %s28533_s3, %s28533_s3, %s28534_s25  }
0x1538   :  { %28527 = dma.done.wait [#allocation4], 256  }
0x1539   :  { %28528 = vsyncadd [#allocation4], 4294967040 }
0x153a   :  { %19546 = vsyncpa [#allocation3], 1 }
0x153b   :  { %19547 = vsyncpa [#allocation6], 1 }
0x153c   :  { %19548 = vsyncpa [#allocation4], 1 }

</bundles_post_ra>
